<compile_context>
chip_gen: v6e
topology: v6e:2x2x1
jax: 0.10.0
libtpu: 0.0.40
codegen_flags: <defaults>
</compile_context>

<pallas_src>
import functools

import jax
import jax.numpy as jnp
from jax.experimental import pallas as pl
from jax.experimental.pallas import tpu as pltpu


def _residual_kernel(xp_ref, w1_ref, w2_ref, s1_ref, b1_ref, s2_ref, b2_ref,
                     out_ref, y1p_ref, *, H, W):
    # xp_ref : (1, (H+3)*(W+2), C) f32 zero-padded input, spatially flattened
    #          (one extra zero row of padding at the bottom so all tap slices
    #           stay in-bounds; the extra rows only feed discarded wrap rows).
    # w1/w2  : (9*C, C) bf16 conv weights reshaped to im2col K (kh,kw,ci)->rows
    # s*/b*  : (1, C) f32 folded (conv-bias + eval BN) per-channel scale/bias
    # out_ref: (1, H*(W+2), C) conv output in "wrapped" row layout; columns
    #          j >= W of each row are junk and are sliced away by the wrapper.
    # y1p_ref: (ROWS, C) f32 scratch: zero-bordered intermediate for conv2.
    Wp = W + 2
    Mw = H * Wp                          # wrapped output rows
    C = out_ref.shape[2]
    P0 = ((Wp + 1 + 7) // 8) * 8         # sublane-aligned start of data region
    ROWS = y1p_ref.shape[0]

    xp = xp_ref[0]                       # ((H+3)*Wp, C) f32

    # ---- conv1: im2col via 9 contiguous row slices -> single K=9*C matmul ----
    taps1 = []
    for kh in range(3):
        for kw in range(3):
            off = kh * Wp + kw
            taps1.append(xp[off:off + Mw, :].astype(jnp.bfloat16))
    patches1 = jnp.concatenate(taps1, axis=-1)           # (Mw, 9*C) bf16
    acc1 = jnp.dot(patches1, w1_ref[...],
                   preferred_element_type=jnp.float32)   # (Mw, C) f32

    # folded BN1 + ReLU (f32 epilogue)
    y1 = jnp.maximum(acc1 * s1_ref[...] + b1_ref[...], 0.0)

    # Columns j >= W of each wrapped row are wrap-garbage; zero them so they
    # act as conv2's left/right zero halo.
    col = jax.lax.broadcasted_iota(jnp.int32, (Mw, 1), 0) % Wp
    y1 = jnp.where(col < W, y1, 0.0)

    # Zero-bordered intermediate.  Only the small borders are written (re-done
    # every grid step so the kernel is correct under megacore partitioning);
    # the data store below is sublane-aligned (P0 % 8 == 0) and full-width.
    y1p_ref[0:P0, :] = jnp.zeros((P0, C), jnp.float32)
    y1p_ref[P0 + Mw:ROWS, :] = jnp.zeros((ROWS - P0 - Mw, C), jnp.float32)
    y1p_ref[P0:P0 + Mw, :] = y1

    # ---- conv2: same im2col trick on the zero-bordered intermediate ----
    taps2 = []
    for kh in range(3):
        for kw in range(3):
            off = P0 + (kh - 1) * Wp + (kw - 1)
            taps2.append(y1p_ref[off:off + Mw, :].astype(jnp.bfloat16))
    patches2 = jnp.concatenate(taps2, axis=-1)           # (Mw, 9*C) bf16
    acc2 = jnp.dot(patches2, w2_ref[...],
                   preferred_element_type=jnp.float32)   # (Mw, C) f32

    # folded BN2 + residual + ReLU.  The residual in wrapped layout is just the
    # interior of the padded input (row offset Wp+1) -- x is not DMA'd twice.
    resid = xp[Wp + 1:Wp + 1 + Mw, :]
    y2 = acc2 * s2_ref[...] + b2_ref[...] + resid
    out_ref[0] = jnp.maximum(y2, 0.0).astype(out_ref.dtype)


def residual_layer_pallas(x_nchw, w1_oihw, cb1, w2_oihw, cb2,
                          g1, be1, m1, v1, g2, be2, m2, v2, eps=1e-5):
    B, C, H, W = x_nchw.shape
    Wp = W + 2
    Mw = H * Wp
    MPAD = (H + 3) * Wp                       # padded + 1 extra zero row block
    P0 = ((Wp + 1 + 7) // 8) * 8
    ROWS = P0 + Mw + Wp + 2

    # ---- layout glue (plain XLA ops, fused by jit) ----
    x_nhwc = jnp.transpose(x_nchw, (0, 2, 3, 1)).astype(jnp.float32)
    xp = jnp.pad(x_nhwc, ((0, 0), (1, 2), (1, 1), (0, 0))).reshape(B, MPAD, C)

    def prep_w(w):  # OIHW -> HWIO -> (9*Cin, Cout) bf16 for the MXU
        return jnp.transpose(w, (2, 3, 1, 0)).reshape(9 * C, C).astype(jnp.bfloat16)
    w1 = prep_w(w1_oihw)
    w2 = prep_w(w2_oihw)

    # Fold conv bias + eval-mode BN into per-channel scale/bias (f32).
    def fold(cb, g, be, m, v):
        s = (g / jnp.sqrt(v + eps)).astype(jnp.float32)
        b = (be + (cb - m) * s).astype(jnp.float32)
        return s.reshape(1, C), b.reshape(1, C)
    s1, b1 = fold(cb1, g1, be1, m1, v1)
    s2, b2 = fold(cb2, g2, be2, m2, v2)

    kernel = functools.partial(_residual_kernel, H=H, W=W)

    out_wrapped = pl.pallas_call(
        kernel,
        out_shape=jax.ShapeDtypeStruct((B, Mw, C), jnp.float32),
        grid_spec=pltpu.PrefetchScalarGridSpec(
            num_scalar_prefetch=0,
            grid=(B,),
            in_specs=[
                pl.BlockSpec((1, MPAD, C), lambda b: (b, 0, 0)),
                pl.BlockSpec((9 * C, C), lambda b: (0, 0)),
                pl.BlockSpec((9 * C, C), lambda b: (0, 0)),
                pl.BlockSpec((1, C), lambda b: (0, 0)),
                pl.BlockSpec((1, C), lambda b: (0, 0)),
                pl.BlockSpec((1, C), lambda b: (0, 0)),
                pl.BlockSpec((1, C), lambda b: (0, 0)),
            ],
            out_specs=pl.BlockSpec((1, Mw, C), lambda b: (b, 0, 0)),
            scratch_shapes=[pltpu.VMEM((ROWS, C), jnp.float32)],
        ),
        compiler_params=pltpu.CompilerParams(
            dimension_semantics=("parallel",)),
    )(xp, w1, w2, s1, b1, s2, b2)

    # un-wrap: drop the 2 junk columns per row, back to NCHW
    out = out_wrapped.reshape(B, H, Wp, C)[:, :, :W, :]
    return jnp.transpose(out, (0, 3, 1, 2)).astype(x_nchw.dtype)


def ref_forward(x_nchw, w1_oihw, cb1, w2_oihw, cb2,
                g1, be1, m1, v1, g2, be2, m2, v2, eps=1e-5):
    """Pure-JAX reference mirroring the PyTorch forward (eval-mode BN)."""
    def conv(x, w, b):
        y = jax.lax.conv_general_dilated(
            x, w, window_strides=(1, 1), padding="SAME",
            dimension_numbers=("NCHW", "OIHW", "NCHW"),
            precision=jax.lax.Precision.HIGHEST)
        return y + b[None, :, None, None]

    def bn(x, g, be, m, v):
        return ((x - m[None, :, None, None])
                / jnp.sqrt(v[None, :, None, None] + eps)
                * g[None, :, None, None] + be[None, :, None, None])

    y = jax.nn.relu(bn(conv(x_nchw, w1_oihw, cb1), g1, be1, m1, v1))
    y = bn(conv(y, w2_oihw, cb2), g2, be2, m2, v2) + x_nchw
    return jax.nn.relu(y)


if __name__ == "__main__":
    B, C, H, W = 2, 256, 8, 8  # channels fixed at 256 by the module
    eps = 1e-5

    keys = jax.random.split(jax.random.PRNGKey(0), 13)
    x = jax.random.normal(keys[0], (B, C, H, W), jnp.float32)

    # Deterministic synthetic parameters (PyTorch shapes: OIHW weights).
    w1 = jax.random.normal(keys[1], (C, C, 3, 3), jnp.float32) * 0.02
    cb1 = jax.random.normal(keys[2], (C,), jnp.float32) * 0.1
    w2 = jax.random.normal(keys[3], (C, C, 3, 3), jnp.float32) * 0.02
    cb2 = jax.random.normal(keys[4], (C,), jnp.float32) * 0.1
    g1 = 1.0 + 0.1 * jax.random.normal(keys[5], (C,), jnp.float32)
    be1 = 0.1 * jax.random.normal(keys[6], (C,), jnp.float32)
    m1 = 0.1 * jax.random.normal(keys[7], (C,), jnp.float32)
    v1 = 1.0 + 0.5 * jax.random.uniform(keys[8], (C,), jnp.float32)
    g2 = 1.0 + 0.1 * jax.random.normal(keys[9], (C,), jnp.float32)
    be2 = 0.1 * jax.random.normal(keys[10], (C,), jnp.float32)
    m2 = 0.1 * jax.random.normal(keys[11], (C,), jnp.float32)
    v2 = 1.0 + 0.5 * jax.random.uniform(keys[12], (C,), jnp.float32)

    fwd = jax.jit(residual_layer_pallas)
    out = fwd(x, w1, cb1, w2, cb2, g1, be1, m1, v1, g2, be2, m2, v2)
    jax.block_until_ready(out)

    ref = ref_forward(x, w1, cb1, w2, cb2, g1, be1, m1, v1, g2, be2, m2, v2, eps)
    assert out.shape == (B, C, H, W)
    # bf16 matmuls -> slightly looser tolerance than the f32 reference
    assert jnp.allclose(out, ref, atol=5e-2, rtol=5e-2), (
        float(jnp.max(jnp.abs(out - ref))))

    print("KERNEL_OK")
</pallas_src>

<mosaic_0001>
module attributes {stable_mosaic.version = 11 : i64} {
  func.func @_residual_kernel(%arg0: i32, %arg1: memref<1x110x256xf32, #tpu.memory_space<vmem>>, %arg2: memref<2304x256xbf16, #tpu.memory_space<vmem>>, %arg3: memref<2304x256xbf16, #tpu.memory_space<vmem>>, %arg4: memref<1x256xf32, #tpu.memory_space<vmem>>, %arg5: memref<1x256xf32, #tpu.memory_space<vmem>>, %arg6: memref<1x256xf32, #tpu.memory_space<vmem>>, %arg7: memref<1x256xf32, #tpu.memory_space<vmem>>, %arg8: memref<1x80x256xf32, #tpu.memory_space<vmem>>, %arg9: memref<108x256xf32, #tpu.memory_space<vmem>>) attributes {dimension_semantics = [#tpu.dimension_semantics<parallel>], iteration_bounds = array<i64: 2>, scalar_prefetch = 0 : i64, scratch_operands = 1 : i64, tpu.core_type = #tpu.core_type<tc>, window_params = [{transform_indices = @transform_0, window_bounds = array<i64: 1, 110, 256>}, {pipeline_mode = #tpu.pipeline_mode<synchronous>, transform_indices = @transform_1, window_bounds = array<i64: 2304, 256>}, {pipeline_mode = #tpu.pipeline_mode<synchronous>, transform_indices = @transform_2, window_bounds = array<i64: 2304, 256>}, {pipeline_mode = #tpu.pipeline_mode<synchronous>, transform_indices = @transform_3, window_bounds = array<i64: 1, 256>}, {pipeline_mode = #tpu.pipeline_mode<synchronous>, transform_indices = @transform_4, window_bounds = array<i64: 1, 256>}, {pipeline_mode = #tpu.pipeline_mode<synchronous>, transform_indices = @transform_5, window_bounds = array<i64: 1, 256>}, {pipeline_mode = #tpu.pipeline_mode<synchronous>, transform_indices = @transform_6, window_bounds = array<i64: 1, 256>}, {transform_indices = @transform_7, window_bounds = array<i64: 1, 80, 256>}]} {
    %c0 = arith.constant 0 : index
    %c0_0 = arith.constant 0 : index
    %c0_1 = arith.constant 0 : index
    %0 = vector.load %arg1[%c0, %c0_0, %c0_1] : memref<1x110x256xf32, #tpu.memory_space<vmem>>, vector<1x110x256xf32>
    %1 = vector.shape_cast %0 : vector<1x110x256xf32> to vector<110x256xf32>
    %2 = vector.extract_strided_slice %1 {offsets = [0, 0], sizes = [80, 256], strides = [1, 1]} : vector<110x256xf32> to vector<80x256xf32>
    %3 = arith.truncf %2 : vector<80x256xf32> to vector<80x256xbf16>
    %4 = vector.extract_strided_slice %1 {offsets = [1, 0], sizes = [80, 256], strides = [1, 1]} : vector<110x256xf32> to vector<80x256xf32>
    %5 = arith.truncf %4 : vector<80x256xf32> to vector<80x256xbf16>
    %6 = vector.extract_strided_slice %1 {offsets = [2, 0], sizes = [80, 256], strides = [1, 1]} : vector<110x256xf32> to vector<80x256xf32>
    %7 = arith.truncf %6 : vector<80x256xf32> to vector<80x256xbf16>
    %8 = vector.extract_strided_slice %1 {offsets = [10, 0], sizes = [80, 256], strides = [1, 1]} : vector<110x256xf32> to vector<80x256xf32>
    %9 = arith.truncf %8 : vector<80x256xf32> to vector<80x256xbf16>
    %10 = vector.extract_strided_slice %1 {offsets = [11, 0], sizes = [80, 256], strides = [1, 1]} : vector<110x256xf32> to vector<80x256xf32>
    %11 = arith.truncf %10 : vector<80x256xf32> to vector<80x256xbf16>
    %12 = vector.extract_strided_slice %1 {offsets = [12, 0], sizes = [80, 256], strides = [1, 1]} : vector<110x256xf32> to vector<80x256xf32>
    %13 = arith.truncf %12 : vector<80x256xf32> to vector<80x256xbf16>
    %14 = vector.extract_strided_slice %1 {offsets = [20, 0], sizes = [80, 256], strides = [1, 1]} : vector<110x256xf32> to vector<80x256xf32>
    %15 = arith.truncf %14 : vector<80x256xf32> to vector<80x256xbf16>
    %16 = vector.extract_strided_slice %1 {offsets = [21, 0], sizes = [80, 256], strides = [1, 1]} : vector<110x256xf32> to vector<80x256xf32>
    %17 = arith.truncf %16 : vector<80x256xf32> to vector<80x256xbf16>
    %18 = vector.extract_strided_slice %1 {offsets = [22, 0], sizes = [80, 256], strides = [1, 1]} : vector<110x256xf32> to vector<80x256xf32>
    %19 = arith.truncf %18 : vector<80x256xf32> to vector<80x256xbf16>
    %20 = tpu.concatenate %3, %5, %7, %9, %11, %13, %15, %17, %19 in 1 : vector<80x256xbf16>, vector<80x256xbf16>, vector<80x256xbf16>, vector<80x256xbf16>, vector<80x256xbf16>, vector<80x256xbf16>, vector<80x256xbf16>, vector<80x256xbf16>, vector<80x256xbf16> -> vector<80x2304xbf16>
    %c0_2 = arith.constant 0 : index
    %c0_3 = arith.constant 0 : index
    %21 = vector.load %arg2[%c0_2, %c0_3] : memref<2304x256xbf16, #tpu.memory_space<vmem>>, vector<2304x256xbf16>
    %cst = arith.constant dense<0.000000e+00> : vector<80x256xf32>
    %22 = tpu.matmul %20, %21, %cst {dimension_numbers = #tpu.dot_dimension_numbers<[1], [0], [0], [1], [0, 0, 1, 1], [], []>} : vector<80x2304xbf16>, vector<2304x256xbf16>, vector<80x256xf32> -> vector<80x256xf32>
    %c0_4 = arith.constant 0 : index
    %c0_5 = arith.constant 0 : index
    %23 = vector.load %arg4[%c0_4, %c0_5] : memref<1x256xf32, #tpu.memory_space<vmem>>, vector<1x256xf32>
    %24 = vector.broadcast %23 : vector<1x256xf32> to vector<80x256xf32>
    %25 = arith.mulf %22, %24 : vector<80x256xf32>
    %c0_6 = arith.constant 0 : index
    %c0_7 = arith.constant 0 : index
    %26 = vector.load %arg5[%c0_6, %c0_7] : memref<1x256xf32, #tpu.memory_space<vmem>>, vector<1x256xf32>
    %27 = vector.broadcast %26 : vector<1x256xf32> to vector<80x256xf32>
    %28 = arith.addf %25, %27 : vector<80x256xf32>
    %cst_8 = arith.constant 0.000000e+00 : f32
    %29 = vector.broadcast %cst_8 : f32 to vector<80x256xf32>
    %30 = arith.maximumf %28, %29 : vector<80x256xf32>
    %31 = tpu.iota {dimensions = array<i32: 0>} : vector<80x1xi32>
    %c10_i32 = arith.constant 10 : i32
    %c0_i32 = arith.constant 0 : i32
    %32 = arith.cmpi eq, %c10_i32, %c0_i32 : i32
    %c1_i32 = arith.constant 1 : i32
    %33 = arith.select %32, %c1_i32, %c10_i32 : i32
    %34 = vector.broadcast %33 : i32 to vector<80x1xi32>
    %35 = arith.remsi %31, %34 : vector<80x1xi32>
    %c0_i32_9 = arith.constant 0 : i32
    %36 = vector.broadcast %c0_i32_9 : i32 to vector<80x1xi32>
    %37 = arith.cmpi ne, %35, %36 : vector<80x1xi32>
    %c0_i32_10 = arith.constant 0 : i32
    %38 = vector.broadcast %c0_i32_10 : i32 to vector<80x1xi32>
    %39 = arith.cmpi slt, %35, %38 : vector<80x1xi32>
    %c0_i32_11 = arith.constant 0 : i32
    %40 = arith.cmpi slt, %33, %c0_i32_11 : i32
    %41 = vector.broadcast %40 : i1 to vector<80x1xi1>
    %42 = vector.broadcast %41 : vector<80x1xi1> to vector<80x1xi1>
    %43 = arith.xori %39, %42 : vector<80x1xi1>
    %44 = arith.andi %43, %37 : vector<80x1xi1>
    %45 = vector.broadcast %33 : i32 to vector<80x1xi32>
    %46 = arith.addi %35, %45 : vector<80x1xi32>
    %47 = arith.select %44, %46, %35 : vector<80x1xi1>, vector<80x1xi32>
    %c8_i32 = arith.constant 8 : i32
    %48 = vector.broadcast %c8_i32 : i32 to vector<80x1xi32>
    %49 = arith.cmpi slt, %47, %48 : vector<80x1xi32>
    %cst_12 = arith.constant 0.000000e+00 : f32
    %50 = vector.shape_cast %49 : vector<80x1xi1> to vector<80x1xi1>
    %51 = vector.broadcast %50 : vector<80x1xi1> to vector<80x256xi1>
    %52 = vector.broadcast %cst_12 : f32 to vector<80x256xf32>
    %53 = arith.select %51, %30, %52 : vector<80x256xi1>, vector<80x256xf32>
    %cst_13 = arith.constant 0.000000e+00 : f32
    %54 = vector.broadcast %cst_13 : f32 to vector<16x256xf32>
    %c0_14 = arith.constant 0 : index
    %c0_15 = arith.constant 0 : index
    %55 = vector.load %arg9[%c0_14, %c0_15] : memref<108x256xf32, #tpu.memory_space<vmem>>, vector<16x256xf32>
    tpu.vector_store %arg9[%c0_14, %c0_15], %54 {strides = array<i32>} : memref<108x256xf32, #tpu.memory_space<vmem>>, vector<16x256xf32>,
    %cst_16 = arith.constant 0.000000e+00 : f32
    %56 = vector.broadcast %cst_16 : f32 to vector<12x256xf32>
    %c96 = arith.constant 96 : index
    %c0_17 = arith.constant 0 : index
    %57 = vector.load %arg9[%c96, %c0_17] : memref<108x256xf32, #tpu.memory_space<vmem>>, vector<12x256xf32>
    tpu.vector_store %arg9[%c96, %c0_17], %56 {strides = array<i32>} : memref<108x256xf32, #tpu.memory_space<vmem>>, vector<12x256xf32>,
    %c16 = arith.constant 16 : index
    %c0_18 = arith.constant 0 : index
    %58 = vector.load %arg9[%c16, %c0_18] : memref<108x256xf32, #tpu.memory_space<vmem>>, vector<80x256xf32>
    tpu.vector_store %arg9[%c16, %c0_18], %53 {strides = array<i32>} : memref<108x256xf32, #tpu.memory_space<vmem>>, vector<80x256xf32>,
    %c5 = arith.constant 5 : index
    %c0_19 = arith.constant 0 : index
    %59 = vector.load %arg9[%c5, %c0_19] : memref<108x256xf32, #tpu.memory_space<vmem>>, vector<80x256xf32>
    %60 = arith.truncf %59 : vector<80x256xf32> to vector<80x256xbf16>
    %c6 = arith.constant 6 : index
    %c0_20 = arith.constant 0 : index
    %61 = vector.load %arg9[%c6, %c0_20] : memref<108x256xf32, #tpu.memory_space<vmem>>, vector<80x256xf32>
    %62 = arith.truncf %61 : vector<80x256xf32> to vector<80x256xbf16>
    %c7 = arith.constant 7 : index
    %c0_21 = arith.constant 0 : index
    %63 = vector.load %arg9[%c7, %c0_21] : memref<108x256xf32, #tpu.memory_space<vmem>>, vector<80x256xf32>
    %64 = arith.truncf %63 : vector<80x256xf32> to vector<80x256xbf16>
    %c15 = arith.constant 15 : index
    %c0_22 = arith.constant 0 : index
    %65 = vector.load %arg9[%c15, %c0_22] : memref<108x256xf32, #tpu.memory_space<vmem>>, vector<80x256xf32>
    %66 = arith.truncf %65 : vector<80x256xf32> to vector<80x256xbf16>
    %c16_23 = arith.constant 16 : index
    %c0_24 = arith.constant 0 : index
    %67 = vector.load %arg9[%c16_23, %c0_24] : memref<108x256xf32, #tpu.memory_space<vmem>>, vector<80x256xf32>
    %68 = arith.truncf %67 : vector<80x256xf32> to vector<80x256xbf16>
    %c17 = arith.constant 17 : index
    %c0_25 = arith.constant 0 : index
    %69 = vector.load %arg9[%c17, %c0_25] : memref<108x256xf32, #tpu.memory_space<vmem>>, vector<80x256xf32>
    %70 = arith.truncf %69 : vector<80x256xf32> to vector<80x256xbf16>
    %c25 = arith.constant 25 : index
    %c0_26 = arith.constant 0 : index
    %71 = vector.load %arg9[%c25, %c0_26] : memref<108x256xf32, #tpu.memory_space<vmem>>, vector<80x256xf32>
    %72 = arith.truncf %71 : vector<80x256xf32> to vector<80x256xbf16>
    %c26 = arith.constant 26 : index
    %c0_27 = arith.constant 0 : index
    %73 = vector.load %arg9[%c26, %c0_27] : memref<108x256xf32, #tpu.memory_space<vmem>>, vector<80x256xf32>
    %74 = arith.truncf %73 : vector<80x256xf32> to vector<80x256xbf16>
    %c27 = arith.constant 27 : index
    %c0_28 = arith.constant 0 : index
    %75 = vector.load %arg9[%c27, %c0_28] : memref<108x256xf32, #tpu.memory_space<vmem>>, vector<80x256xf32>
    %76 = arith.truncf %75 : vector<80x256xf32> to vector<80x256xbf16>
    %77 = tpu.concatenate %60, %62, %64, %66, %68, %70, %72, %74, %76 in 1 : vector<80x256xbf16>, vector<80x256xbf16>, vector<80x256xbf16>, vector<80x256xbf16>, vector<80x256xbf16>, vector<80x256xbf16>, vector<80x256xbf16>, vector<80x256xbf16>, vector<80x256xbf16> -> vector<80x2304xbf16>
    %c0_29 = arith.constant 0 : index
    %c0_30 = arith.constant 0 : index
    %78 = vector.load %arg3[%c0_29, %c0_30] : memref<2304x256xbf16, #tpu.memory_space<vmem>>, vector<2304x256xbf16>
    %cst_31 = arith.constant dense<0.000000e+00> : vector<80x256xf32>
    %79 = tpu.matmul %77, %78, %cst_31 {dimension_numbers = #tpu.dot_dimension_numbers<[1], [0], [0], [1], [0, 0, 1, 1], [], []>} : vector<80x2304xbf16>, vector<2304x256xbf16>, vector<80x256xf32> -> vector<80x256xf32>
    %80 = vector.extract_strided_slice %1 {offsets = [11, 0], sizes = [80, 256], strides = [1, 1]} : vector<110x256xf32> to vector<80x256xf32>
    %c0_32 = arith.constant 0 : index
    %c0_33 = arith.constant 0 : index
    %81 = vector.load %arg6[%c0_32, %c0_33] : memref<1x256xf32, #tpu.memory_space<vmem>>, vector<1x256xf32>
    %82 = vector.broadcast %81 : vector<1x256xf32> to vector<80x256xf32>
    %83 = arith.mulf %79, %82 : vector<80x256xf32>
    %c0_34 = arith.constant 0 : index
    %c0_35 = arith.constant 0 : index
    %84 = vector.load %arg7[%c0_34, %c0_35] : memref<1x256xf32, #tpu.memory_space<vmem>>, vector<1x256xf32>
    %85 = vector.broadcast %84 : vector<1x256xf32> to vector<80x256xf32>
    %86 = arith.addf %83, %85 : vector<80x256xf32>
    %87 = arith.addf %86, %80 : vector<80x256xf32>
    %cst_36 = arith.constant 0.000000e+00 : f32
    %88 = vector.broadcast %cst_36 : f32 to vector<80x256xf32>
    %89 = arith.maximumf %87, %88 : vector<80x256xf32>
    %c0_37 = arith.constant 0 : index
    %c0_38 = arith.constant 0 : index
    %c0_39 = arith.constant 0 : index
    %90 = vector.load %arg8[%c0_37, %c0_38, %c0_39] : memref<1x80x256xf32, #tpu.memory_space<vmem>>, vector<1x80x256xf32>
    %91 = vector.shape_cast %90 : vector<1x80x256xf32> to vector<80x256xf32>
    %92 = vector.shape_cast %89 : vector<80x256xf32> to vector<1x80x256xf32>
    tpu.vector_store %arg8[%c0_37, %c0_38, %c0_39], %92 {strides = array<i32>} : memref<1x80x256xf32, #tpu.memory_space<vmem>>, vector<1x80x256xf32>,
    return
  }
  func.func @transform_0(%arg0: i32) -> (i32, i32, i32) {
    %c0_i32 = arith.constant 0 : i32
    %c0_i32_0 = arith.constant 0 : i32
    %c0_i32_1 = arith.constant 0 : i32
    return %arg0, %c0_i32, %c0_i32_0 : i32, i32, i32
  }
  func.func @transform_1(%arg0: i32) -> (i32, i32) {
    %c0_i32 = arith.constant 0 : i32
    %c0_i32_0 = arith.constant 0 : i32
    %c0_i32_1 = arith.constant 0 : i32
    return %c0_i32, %c0_i32_0 : i32, i32
  }
  func.func @transform_2(%arg0: i32) -> (i32, i32) {
    %c0_i32 = arith.constant 0 : i32
    %c0_i32_0 = arith.constant 0 : i32
    %c0_i32_1 = arith.constant 0 : i32
    return %c0_i32, %c0_i32_0 : i32, i32
  }
  func.func @transform_3(%arg0: i32) -> (i32, i32) {
    %c0_i32 = arith.constant 0 : i32
    %c0_i32_0 = arith.constant 0 : i32
    %c0_i32_1 = arith.constant 0 : i32
    return %c0_i32, %c0_i32_0 : i32, i32
  }
  func.func @transform_4(%arg0: i32) -> (i32, i32) {
    %c0_i32 = arith.constant 0 : i32
    %c0_i32_0 = arith.constant 0 : i32
    %c0_i32_1 = arith.constant 0 : i32
    return %c0_i32, %c0_i32_0 : i32, i32
  }
  func.func @transform_5(%arg0: i32) -> (i32, i32) {
    %c0_i32 = arith.constant 0 : i32
    %c0_i32_0 = arith.constant 0 : i32
    %c0_i32_1 = arith.constant 0 : i32
    return %c0_i32, %c0_i32_0 : i32, i32
  }
  func.func @transform_6(%arg0: i32) -> (i32, i32) {
    %c0_i32 = arith.constant 0 : i32
    %c0_i32_0 = arith.constant 0 : i32
    %c0_i32_1 = arith.constant 0 : i32
    return %c0_i32, %c0_i32_0 : i32, i32
  }
  func.func @transform_7(%arg0: i32) -> (i32, i32, i32) {
    %c0_i32 = arith.constant 0 : i32
    %c0_i32_0 = arith.constant 0 : i32
    %c0_i32_1 = arith.constant 0 : i32
    return %arg0, %c0_i32, %c0_i32_0 : i32, i32, i32
  }
}

</mosaic_0001>

<bundles_post_ra>
// kernel: residual_layer_pallas.1
= control target key start
LH: loop header
LB: loop body
LE: loop exit
PB: predicated region body
PF: predicated region fallthrough
CT: control target
= control target key end

     0   :  { %s9441_s24 = smov 0   ;;  %s14135_s0 = inlined_call_operand.vmem [shape: f32[2,110,256], index: 0, kind: input, shape index: {}]   ;;  %s14136_s1 = inlined_call_operand.vmem [shape: bf16[2304,256], index: 1, kind: input, shape index: {}]   ;;  %s14137_s2 = inlined_call_operand.vmem [shape: bf16[2304,256], index: 2, kind: input, shape index: {}]   ;;  %s14138_s3 = inlined_call_operand.vmem [shape: f32[1,256], index: 3, kind: input, shape index: {}]   ;;  %s14139_s4 = inlined_call_operand.vmem [shape: f32[1,256], index: 4, kind: input, shape index: {}]   ;;  %s14140_s5 = inlined_call_operand.vmem [shape: f32[1,256], index: 5, kind: input, shape index: {}]   ;;  %s14141_s6 = inlined_call_operand.vmem [shape: f32[1,256], index: 6, kind: input, shape index: {}]   ;;  %s14142_s7 = inlined_call_operand.vmem [shape: f32[2,80,256], index: 7, kind: output, shape index: {}]  }
   0x1 LB: > { %s7878_s25 = sadd.s32 4294967295, %s9398_s24   ;;  %p7882_p0 = scmp.ge.s32.totalorder %s9398_s24, 1  ;;  %s9398_s24 = sphi %s9441_s24, %s17_s24  }
   0x2   : > { %p237_p1 = scmp.lt.s32.totalorder %s9398_s24, 3 }
   0x4   : > { %p238_p2 = pnand %p7882_p0, %p237_p1 }
   0x6   : > { %241 = sbr.rel (%p238_p2) target bundleno = 1061 (0x425), region = 48 }
   0xb   : > { %v8494_v0 = vld [vmem:[%s14136_s1 + $0x74] ss:$8 sps:$4 sm:$0xff]   ;;  %v8498_v2 = vld [vmem:[%s14136_s1 + $0x70] ss:$8 sps:$4 sm:$0xff]   ;;  %v8500_v4 = vld [vmem:[%s14136_s1 + $0x64] ss:$8 sps:$4 sm:$0xff]  }
   0xc   : > { %v8496_v1 = vld [vmem:[%s14136_s1 + $0x174] ss:$8 sps:$4 sm:$0xff]   ;;  %2545 = vmatprep.subr.bf16.mxu0 %v8494_v0  ;;  %v8499_v3 = vld [vmem:[%s14136_s1 + $0x170] ss:$8 sps:$4 sm:$0xff]   ;;  %v8502_v5 = vld [vmem:[%s14136_s1 + $0x164] ss:$8 sps:$4 sm:$0xff]  }
   0xd   : > { %2628 = vmatprep.subr.bf16.mxu1 %v8496_v1  ;;  %2546 = vmatpush1.bf16.msra.mxu0 %v8498_v2  ;;  %v8504_v6 = vld [vmem:[%s14136_s1 + $0x60] ss:$8 sps:$4 sm:$0xff]   ;;  %v8506_v8 = vld [vmem:[%s14136_s1 + $0x54] ss:$8 sps:$4 sm:$0xff]   ;;  %v8510_v10 = vld [vmem:[%s14136_s1 + $0x50] ss:$8 sps:$4 sm:$0xff]  }
   0xe   : > { %2629 = vmatpush1.bf16.msra.mxu1 %v8499_v3  ;;  %2547 = vmatprep.subr.bf16.mxu0 %v8500_v4  ;;  %v8505_v7 = vld [vmem:[%s14136_s1 + $0x160] ss:$8 sps:$4 sm:$0xff]   ;;  %v8508_v9 = vld [vmem:[%s14136_s1 + $0x154] ss:$8 sps:$4 sm:$0xff]   ;;  %v8511_v11 = vld [vmem:[%s14136_s1 + $0x150] ss:$8 sps:$4 sm:$0xff]  }
   0xf   : > { %2630 = vmatprep.subr.bf16.mxu1 %v8502_v5  ;;  %v8512_v12 = vld [vmem:[%s14136_s1 + $0x44] ss:$8 sps:$4 sm:$0xff]   ;;  %v8516_v14 = vld [vmem:[%s14136_s1 + $0x40] ss:$8 sps:$4 sm:$0xff]   ;;  %v8518_v16 = vld [vmem:[%s14136_s1 + $0x34] ss:$8 sps:$4 sm:$0xff]  }
  0x10   : > { %v8514_v13 = vld [vmem:[%s14136_s1 + $0x144] ss:$8 sps:$4 sm:$0xff]   ;;  %v8517_v15 = vld [vmem:[%s14136_s1 + $0x140] ss:$8 sps:$4 sm:$0xff]   ;;  %v8520_v17 = vld [vmem:[%s14136_s1 + $0x134] ss:$8 sps:$4 sm:$0xff]  }
  0x11   : > { %2548 = vmatpush1.bf16.msra.mxu0 %v8504_v6  ;;  %v8522_v18 = vld [vmem:[%s14136_s1 + $0x30] ss:$8 sps:$4 sm:$0xff]   ;;  %v8524_v20 = vld [vmem:[%s14136_s1 + $0x24] ss:$8 sps:$4 sm:$0xff]   ;;  %v8528_v22 = vld [vmem:[%s14136_s1 + $0x20] ss:$8 sps:$4 sm:$0xff]  }
  0x12   : > { %2631 = vmatpush1.bf16.msra.mxu1 %v8505_v7  ;;  %2549 = vmatprep.subr.bf16.mxu0 %v8506_v8  ;;  %v8523_v19 = vld [vmem:[%s14136_s1 + $0x130] ss:$8 sps:$4 sm:$0xff]   ;;  %v8526_v21 = vld [vmem:[%s14136_s1 + $0x124] ss:$8 sps:$4 sm:$0xff]   ;;  %v8529_v23 = vld [vmem:[%s14136_s1 + $0x120] ss:$8 sps:$4 sm:$0xff]  }
  0x13   : > { %2632 = vmatprep.subr.bf16.mxu1 %v8508_v9  ;;  %v8530_v24 = vld [vmem:[%s14136_s1 + $0x14] ss:$8 sps:$4 sm:$0xff]   ;;  %v8534_v26 = vld [vmem:[%s14136_s1 + $0x10] ss:$8 sps:$4 sm:$0xff]   ;;  %v8536_v28 = vld [vmem:[%s14136_s1 + $0x4] ss:$8 sps:$4 sm:$0xff]  }
  0x14   : > { %v8532_v25 = vld [vmem:[%s14136_s1 + $0x114] ss:$8 sps:$4 sm:$0xff]   ;;  %v8535_v27 = vld [vmem:[%s14136_s1 + $0x110] ss:$8 sps:$4 sm:$0xff]   ;;  %v8538_v29 = vld [vmem:[%s14136_s1 + $0x104] ss:$8 sps:$4 sm:$0xff]  }
  0x15   : > { %2550 = vmatpush1.bf16.msra.mxu0 %v8510_v10  ;;  %v8540_v30 = vld [vmem:[%s14136_s1] ss:$8 sps:$4 sm:$0xff]   ;;  %p269_p3 = scmp.lt.s32.totalorder %s7878_s25, 1  ;;  %v8542_v32 = vld [vmem:[%s14136_s1 + $0xf4] ss:$8 sps:$4 sm:$0xff]   ;;  %vm14163_vm1 = vcmask 1046528  }
  0x16   : > { %2633 = vmatpush1.bf16.msra.mxu1 %v8511_v11  ;;  %2551 = vmatprep.subr.bf16.mxu0 %v8512_v12  ;;  %v8541_v31 = vld [vmem:[%s14136_s1 + $0x100] ss:$8 sps:$4 sm:$0xff]   ;;  %v8544_v33 = vld [vmem:[%s14136_s1 + $0x1f4] ss:$8 sps:$4 sm:$0xff]   ;;  %v8546_v34 = vld [vmem:[%s14136_s1 + $0xf0] ss:$8 sps:$4 sm:$0xff]  }
  0x17   : > { %2634 = vmatprep.subr.bf16.mxu1 %v8514_v13  ;;  %v8547_v35 = vld [vmem:[%s14136_s1 + $0x1f0] ss:$8 sps:$4 sm:$0xff]   ;;  %s14478_s25 = smov (!%p269_p3, %s7878_s25), 1  ;;  %v8548_v36 = vld [vmem:[%s14136_s1 + $0xe4] ss:$8 sps:$4 sm:$0xff]   ;;  %vm638_vm2 = vcmask 1045504  }
  0x18   : > { %v8550_v37 = vld [vmem:[%s14136_s1 + $0x1e4] ss:$8 sps:$4 sm:$0xff]   ;;  %v8552_v38 = vld [vmem:[%s14136_s1 + $0xe0] ss:$8 sps:$4 sm:$0xff]   ;;  %s8463_s18 = smul.u32 224, %s14478_s25  ;;  %vm14162_vm5 = vcmask 1044480  }
  0x19   : > { %2552 = vmatpush1.bf16.msra.mxu0 %v8516_v14  ;;  %v8553_v39 = vld [vmem:[%s14136_s1 + $0x1e0] ss:$8 sps:$4 sm:$0xff]   ;;  %v8554_v40 = vld [vmem:[%s14136_s1 + $0xd4] ss:$8 sps:$4 sm:$0xff]   ;;  %v8558_v42 = vld [vmem:[%s14136_s1 + $0xd0] ss:$8 sps:$4 sm:$0xff]  }
  0x1a   : > { %2635 = vmatpush1.bf16.msra.mxu1 %v8517_v15  ;;  %2553 = vmatprep.subr.bf16.mxu0 %v8518_v16  ;;  %v8556_v41 = vld [vmem:[%s14136_s1 + $0x1d4] ss:$8 sps:$4 sm:$0xff]   ;;  %v8559_v43 = vld [vmem:[%s14136_s1 + $0x1d0] ss:$8 sps:$4 sm:$0xff]   ;;  %s9591_s10 = scalar_lea.vmem %s14135_s0, %s8463_s18  ;;  %v8560_v44 = vld [vmem:[%s14136_s1 + $0xc4] ss:$8 sps:$4 sm:$0xff]  }
  0x1b   : > { %2636 = vmatprep.subr.bf16.mxu1 %v8520_v17  ;;  %v8562_v45 = vld [vmem:[%s14136_s1 + $0x1c4] ss:$8 sps:$4 sm:$0xff]   ;;  %v8564_v46 = vld [vmem:[%s14136_s1 + $0xc0] ss:$8 sps:$4 sm:$0xff]   ;;  %v9607_v49 = vld [vmem:[%s9591_s10 + $0x18] sm:$0xff]  ;;  %s8464_s23 = smul.u32 160, %s14478_s25 }
  0x1c   : > { %v8565_v47 = vld [vmem:[%s14136_s1 + $0x1c0] ss:$8 sps:$4 sm:$0xff]   ;;  %v9613_v51 = vld [vmem:[%s9591_s10 + $0x38] sm:$0xff]  ;;  %v9630_v57 = vld [vmem:[%s9591_s10 + $0x10] sm:$0xff]  ;;  %vm14164_vm0 = vsmask.f32 7424 }
  0x1d   : > { %2554 = vmatpush1.bf16.msra.mxu0 %v8522_v18  ;;  %v280_v48 = vld [vmem:[%s9591_s10 + $0x8] sm:$0xff]  ;;  %v8566_v52 = vld [vmem:[%s14136_s1 + $0xb4] ss:$8 sps:$4 sm:$0xff]   ;;  %v279_v56 = vld [vmem:[%s9591_s10] sm:$0xff]  ;;  %vm707_vm3 = vsmask.f32 5376  ;;  %s13985_s27 = scalar_lea.vmem %s14142_s7, %s8464_s23 }
  0x1e   : > { %2637 = vmatpush1.bf16.msra.mxu1 %v8523_v19  ;;  %2555 = vmatprep.subr.bf16.mxu0 %v8524_v20  ;;  %v9610_v50 = vld [vmem:[%s9591_s10 + $0x28] sm:$0xff]  ;;  %v8568_v53 = vld [vmem:[%s14136_s1 + $0x1b4] ss:$8 sps:$4 sm:$0xff]   ;;  %v9622_v54 = vpack.c.bf16 %v9607_v49, %v280_v48  ;;  %v8570_v58 = vld [vmem:[%s14136_s1 + $0xb0] ss:$8 sps:$4 sm:$0xff]   ;;  %v9651_v3 = vpack.c.bf16 %v9630_v57, %v279_v56 }
  0x1f   : > { %2638 = vmatprep.subr.bf16.mxu1 %v8526_v21  ;;  %v9626_v55 = vpack.c.bf16 %v9613_v51, %v9610_v50  ;;  %v8571_v59 = vld [vmem:[%s14136_s1 + $0x1b0] ss:$8 sps:$4 sm:$0xff]   ;;  %v8572_v63 = vld [vmem:[%s14136_s1 + $0xa4] ss:$8 sps:$4 sm:$0xff]   ;;  %v8576_v7 = vld [vmem:[%s14136_s1 + $0xa0] ss:$8 sps:$4 sm:$0xff]  }
  0x20   : > { %2577 = vmatprep.mubr.bf16.mxu0 %v9622_v54  ;;  %v347_v60 = vshrl.u32 %v9622_v54, 16  ;;  %v349_v61 = vshll.u32 %v9622_v54, 16  ;;  %v8574_v0 = vld [vmem:[%s14136_s1 + $0x1a4] ss:$8 sps:$4 sm:$0xff]   ;;  %v9657_v5 = vld [vmem:[%s9591_s10 + $0x30] sm:$0xff]  ;;  %v337_v11 = vshll.u32 %v9651_v3, 16 }
  0x21   : > { %2556 = vmatpush1.bf16.msra.mxu0 %v8528_v22  ;;  %v14143_v62 = vshll.u32 %v9626_v55, 16  ;;  %v9654_v4 = vld [vmem:[%s9591_s10 + $0x20] sm:$0xff]  ;;  %v8578_v12 = vld [vmem:[%s14136_s1 + $0x94] ss:$8 sps:$4 sm:$0xff]   ;;  %v8582_v14 = vld [vmem:[%s14136_s1 + $0x90] ss:$8 sps:$4 sm:$0xff]  }
  0x22   : > { %2639 = vmatpush1.bf16.msra.mxu1 %v8529_v23  ;;  %2557 = vmatprep.subr.bf16.mxu0 %v8530_v24  ;;  %v351_v1 = vrot.slane %v349_v61, 1  ;;  %v8577_v8 = vld [vmem:[%s14136_s1 + $0x1a0] ss:$8 sps:$4 sm:$0xff]   ;;  %v9668_v10 = vpack.c.bf16 %v9657_v5, %v9654_v4  ;;  %v8580_v13 = vld [vmem:[%s14136_s1 + $0x194] ss:$8 sps:$4 sm:$0xff]   ;;  %v335_v16 = vshrl.u32 %v9651_v3, 16 }
  0x23   : > { %2640 = vmatprep.subr.bf16.mxu1 %v8532_v25  ;;  %v356_v2 = vrot.slane %v14143_v62, 1  ;;  %v8583_v15 = vld [vmem:[%s14136_s1 + $0x190] ss:$8 sps:$4 sm:$0xff]   ;;  %v339_v17 = vrot.slane %v337_v11, 1  ;;  %v8584_v19 = vld [vmem:[%s14136_s1 + $0x84] ss:$8 sps:$4 sm:$0xff]  }
  0x24   : > { %v352_v6 = vor.u32 %v351_v1, %v347_v60  ;;  %v342_v18 = vshll.u32 %v9668_v10, 16  ;;  %v8586_v20 = vld [vmem:[%s14136_s1 + $0x184] ss:$8 sps:$4 sm:$0xff]   ;;  %v8588_v21 = vld [vmem:[%s14136_s1 + $0x80] ss:$8 sps:$4 sm:$0xff]   ;;  %v9773_v60 = vld [vmem:[%s9591_s10 + $0x78] sm:$0xff] }
  0x25   : > { %2558 = vmatpush1.bf16.msra.mxu0 %v8534_v26  ;;  %v8589_v22 = vld [vmem:[%s14136_s1 + $0x180] ss:$8 sps:$4 sm:$0xff]   ;;  %v340_v23 = vor.u32 %v339_v17, %v335_v16  ;;  %v8592_v25 = vld [vmem:[%s14136_s1 + $0x274] ss:$8 sps:$4 sm:$0xff]   ;;  %v8605_v61 = vld [vmem:[%s14136_s1 + $0x350] ss:$8 sps:$4 sm:$0xff]  }
  0x26   : > { %2641 = vmatpush1.bf16.msra.mxu1 %v8535_v27  ;;  %2559 = vmatprep.subr.bf16.mxu0 %v8536_v28  ;;  %v357_v9 = vsel %vm14164_vm0, %v352_v6, %v356_v2  ;;  %v344_v24 = vrot.slane %v342_v18, 1  ;;  %v8595_v26 = vld [vmem:[%s14136_s1 + $0x374] ss:$8 sps:$4 sm:$0xff]   ;;  %v8590_v27 = vld [vmem:[%s14136_s1 + $0x270] ss:$8 sps:$4 sm:$0xff]   ;;  %v14144_v28 = vshrl.u32 %v9626_v55, 16 }
  0x27   : > { %2642 = vmatprep.subr.bf16.mxu1 %v8538_v29  ;;  %2660 = vmatprep.mubr.bf16.mxu1 %v357_v9  ;;  %v8593_v29 = vld [vmem:[%s14136_s1 + $0x370] ss:$8 sps:$4 sm:$0xff]   ;;  %v8607_v48 = vld [vmem:[%s14136_s1 + $0x354] ss:$8 sps:$4 sm:$0xff]   ;;  %vm521_vm4 = vsmask.f32 6400 }
  0x28   : > { %v9790_v6 = vld [vmem:[%s9591_s10 + $0x70] sm:$0xff] }
  0x29   : > { %2560 = vmatpush1.bf16.msra.mxu0 %v8540_v30  ;;  %v9713_v30 = vld [vmem:[%s9591_s10 + $0x48] sm:$0xff]  ;;  %v8616_v17 = vld [vmem:[%s14136_s1 + $0x234] ss:$8 sps:$4 sm:$0xff]   ;;  %v8686_v62 = vld [vmem:[%s14136_s1 + $0x470] ss:$8 sps:$4 sm:$0xff]  }
  0x2a   : > { %2643 = vmatpush1.bf16.msra.mxu1 %v8541_v31  ;;  %2561 = vmatprep.subr.bf16.mxu0 %v8542_v32  ;;  %v9716_v31 = vld [vmem:[%s9591_s10 + $0x58] sm:$0xff]  ;;  %v345_v32 = vsel %vm14164_vm0, %v340_v23, %v344_v24 }
  0x2b   : > { %2644 = vmatprep.subr.bf16.mxu1 %v8544_v33  ;;  %v8598_v33 = vld [vmem:[%s14136_s1 + $0x264] ss:$8 sps:$4 sm:$0xff]  }
  0x2d   : > { %2562 = vmatpush2.bf16.msra.mxu0 %v8546_v34  ;;  %v9724_v34 = vpack.c.bf16 %v9716_v31, %v9713_v30 }
  0x2e   : > { %2645 = vmatpush2.bf16.msra.mxu1 %v8547_v35  ;;  %2563 = vmatprep.subr.bf16.mxu0 %v8548_v36  ;;  %v358_v35 = vshrl.u32 %v9668_v10, 16  ;;  %v8601_v36 = vld [vmem:[%s14136_s1 + $0x364] ss:$8 sps:$4 sm:$0xff]  }
  0x2f   : > { %2646 = vmatprep.subr.bf16.mxu1 %v8550_v37  ;;  %v9731_v37 = vld [vmem:[%s9591_s10 + $0x40] sm:$0xff] }
  0x31   : > { %2564 = vmatpush2.bf16.msra.mxu0 %v8552_v38  ;;  %v9734_v38 = vld [vmem:[%s9591_s10 + $0x50] sm:$0xff] }
  0x32   : > { %2647 = vmatpush2.bf16.msra.mxu1 %v8553_v39  ;;  %2565 = vmatprep.subr.bf16.mxu0 %v8554_v40  ;;  %v368_v39 = vor.u32 %v14144_v28, %v356_v2  ;;  %v370_v40 = vshll.u32 %v9724_v34, 16  ;;  %v9787_v2 = vld [vmem:[%s9591_s10 + $0x60] sm:$0xff] }
  0x33   : > { %2648 = vmatprep.subr.bf16.mxu1 %v8556_v41  ;;  %v9741_v41 = vpack.c.bf16 %v9734_v38, %v9731_v37 }
  0x35   : > { %2566 = vmatpush2.bf16.msra.mxu0 %v8558_v42  ;;  %v8596_v42 = vld [vmem:[%s14136_s1 + $0x260] ss:$8 sps:$4 sm:$0xff]  }
  0x36   : > { %2649 = vmatpush2.bf16.msra.mxu1 %v8559_v43  ;;  %2567 = vmatprep.subr.bf16.mxu0 %v8560_v44  ;;  %v8599_v43 = vld [vmem:[%s14136_s1 + $0x360] ss:$8 sps:$4 sm:$0xff]   ;;  %v8604_v44 = vld [vmem:[%s14136_s1 + $0x254] ss:$8 sps:$4 sm:$0xff]  }
  0x37   : > { %2650 = vmatprep.subr.bf16.mxu1 %v8562_v45  ;;  %v372_v45 = vrot.slane %v370_v40, 1 }
  0x39   : > { %2568 = vmatpush2.bf16.msra.mxu0 %v8564_v46  ;;  %v360_v46 = vor.u32 %v358_v35, %v344_v24  ;;  %v373_v56 = vsel %vm14164_vm0, %v368_v39, %v372_v45  ;;  %v9826_v24 = vld [vmem:[%s9591_s10 + $0x88] sm:$0xff] }
  0x3a   : > { %2651 = vmatpush2.bf16.msra.mxu1 %v8565_v47  ;;  %2569 = vmatprep.subr.bf16.mxu0 %v8566_v52  ;;  %v362_v47 = vshll.u32 %v9741_v41, 16  ;;  %v382_v52 = vshrl.u32 %v9724_v34, 16  ;;  %v8622_v39 = vld [vmem:[%s14136_s1 + $0x224] ss:$8 sps:$4 sm:$0xff]  }
  0x3b   : > { %2652 = vmatprep.subr.bf16.mxu1 %v8568_v53  ;;  %v8602_v53 = vld [vmem:[%s14136_s1 + $0x250] ss:$8 sps:$4 sm:$0xff]  }
  0x3c   : > { %v384_v9 = vor.u32 %v382_v52, %v372_v45 }
  0x3d   : > { %2570 = vmatpush2.bf16.msra.mxu0 %v8570_v58  ;;  %v364_v58 = vrot.slane %v362_v47, 1 }
  0x3e   : > { %2653 = vmatpush2.bf16.msra.mxu1 %v8571_v59  ;;  %2571 = vmatprep.subr.bf16.mxu0 %v8572_v63  ;;  %v9770_v59 = vld [vmem:[%s9591_s10 + $0x68] sm:$0xff] }
  0x3f   : > { %2654 = vmatprep.subr.bf16.mxu1 %v8574_v0  ;;  %v9780_v63 = vpack.c.bf16 %v9773_v60, %v9770_v59  ;;  %v8610_v0 = vld [vmem:[%s14136_s1 + $0x244] ss:$8 sps:$4 sm:$0xff]   ;;  %v365_v1 = vsel %vm14164_vm0, %v360_v46, %v364_v58 }
  0x40   : > { %v8625_v46 = vld [vmem:[%s14136_s1 + $0x324] ss:$8 sps:$4 sm:$0xff]  }
  0x41   : > { %2572 = vmatpush2.bf16.msra.mxu0 %v8576_v7  ;;  %v374_v7 = vshrl.u32 %v9741_v41, 16  ;;  %v386_v11 = vshll.u32 %v9780_v63, 16 }
  0x42   : > { %2655 = vmatpush2.bf16.msra.mxu1 %v8577_v8  ;;  %2573 = vmatprep.subr.bf16.mxu0 %v8578_v12  ;;  %v8613_v8 = vld [vmem:[%s14136_s1 + $0x344] ss:$8 sps:$4 sm:$0xff]   ;;  %v9801_v12 = vpack.c.bf16 %v9790_v6, %v9787_v2 }
  0x43   : > { %2656 = vmatprep.subr.bf16.mxu1 %v8580_v13  ;;  %v8608_v13 = vld [vmem:[%s14136_s1 + $0x240] ss:$8 sps:$4 sm:$0xff]  }
  0x44   : > { %v378_v16 = vshll.u32 %v9801_v12, 16 }
  0x45   : > { %2574 = vmatpush2.bf16.msra.mxu0 %v8582_v14  ;;  %v8611_v14 = vld [vmem:[%s14136_s1 + $0x340] ss:$8 sps:$4 sm:$0xff]  }
  0x46   : > { %2657 = vmatpush2.bf16.msra.mxu1 %v8583_v15  ;;  %2575 = vmatprep.subr.bf16.mxu0 %v8584_v19  ;;  %v388_v15 = vrot.slane %v386_v11, 1  ;;  %v376_v19 = vor.u32 %v374_v7, %v364_v58  ;;  %v380_v23 = vrot.slane %v378_v16, 1 }
  0x47   : > { %2658 = vmatprep.subr.bf16.mxu1 %v8586_v20  ;;  %v398_v20 = vshrl.u32 %v9780_v63, 16 }
  0x49   : > { %2576 = vmatpush2.bf16.msra.mxu0 %v8588_v21  ;;  %v8619_v21 = vld [vmem:[%s14136_s1 + $0x334] ss:$8 sps:$4 sm:$0xff]  }
  0x4a   : > { %2659 = vmatpush2.bf16.msra.mxu1 %v8589_v22  ;;  %2711 = vmatprep.subr.bf16.mxu0 %v8592_v25  ;;  %v389_v22 = vsel %vm14164_vm0, %v384_v9, %v388_v15  ;;  %v9829_v25 = vld [vmem:[%s9591_s10 + $0x98] sm:$0xff]  ;;  %v9880_v9 = vld [vmem:[%s9591_s10 + $0xa8] sm:$0xff] }
  0x4b   : > { %2794 = vmatprep.subr.bf16.mxu1 %v8595_v26  ;;  %v8614_v26 = vld [vmem:[%s14136_s1 + $0x230] ss:$8 sps:$4 sm:$0xff]  }
  0x4c   : > { %2578 = vmatmul.mubr.bf16.vlgmr.msra.gmra.mxu0 %v9651_v3 }
  0x4d   : > { %2661 = vmatmul.mubr.bf16.vlgmr.msra.gmra.mxu1 %v345_v32  ;;  %2712 = vmatpush1.bf16.msra.mxu0 %v8590_v27  ;;  %v9837_v27 = vpack.c.bf16 %v9829_v25, %v9826_v24  ;;  %v9843_v32 = vld [vmem:[%s9591_s10 + $0x80] sm:$0xff] }
  0x4e   : > { %2795 = vmatpush1.bf16.msra.mxu1 %v8593_v29  ;;  %2713 = vmatprep.subr.bf16.mxu0 %v8598_v33  ;;  %v8617_v29 = vld [vmem:[%s14136_s1 + $0x330] ss:$8 sps:$4 sm:$0xff]  }
  0x4f   : > { %2796 = vmatprep.subr.bf16.mxu1 %v8601_v36  ;;  %2587 = vmatprep.mubr.bf16.mxu0 %v9626_v55  ;;  %v9846_v33 = vld [vmem:[%s9591_s10 + $0x90] sm:$0xff]  ;;  %v390_v36 = vshrl.u32 %v9801_v12, 16  ;;  %v414_v58 = vshrl.u32 %v9837_v27, 16 }
  0x50   : > { %2670 = vmatprep.mubr.bf16.mxu1 %v373_v56  ;;  %v9858_v45 = vpack.c.bf16 %v9846_v33, %v9843_v32  ;;  %v8620_v56 = vld [vmem:[%s14136_s1 + $0x220] ss:$8 sps:$4 sm:$0xff]  }
  0x51   : > { %2714 = vmatpush1.bf16.msra.mxu0 %v8596_v42  ;;  %v381_v42 = vsel %vm14164_vm0, %v376_v19, %v380_v23  ;;  %v8626_v19 = vld [vmem:[%s14136_s1 + $0x210] ss:$8 sps:$4 sm:$0xff]  }
  0x52   : > { %2797 = vmatpush1.bf16.msra.mxu1 %v8599_v43  ;;  %2715 = vmatprep.subr.bf16.mxu0 %v8604_v44  ;;  %v400_v43 = vor.u32 %v398_v20, %v388_v15  ;;  %v402_v44 = vshll.u32 %v9837_v27, 16  ;;  %v9890_v15 = vpack.c.bf16 %v9880_v9, %v9880_v9 }
  0x53   : > { %2798 = vmatprep.subr.bf16.mxu1 %v8607_v48 }
  0x54   : > { %2588 = vmatmul.mubr.bf16.gmra.mxu0 %v9668_v10  ;;  %v404_v48 = vrot.slane %v402_v44, 1 }
  0x55   : > { %2671 = vmatmul.mubr.bf16.gmra.mxu1 %v365_v1  ;;  %2716 = vmatpush1.bf16.msra.mxu0 %v8602_v53  ;;  %v14145_v53 = vshll.u32 %v9858_v45, 16  ;;  %v392_v1 = vor.u32 %v390_v36, %v380_v23 }
  0x56   : > { %2799 = vmatpush1.bf16.msra.mxu1 %v8605_v61  ;;  %2717 = vmatprep.subr.bf16.mxu0 %v8610_v0  ;;  %v8623_v61 = vld [vmem:[%s14136_s1 + $0x320] ss:$8 sps:$4 sm:$0xff]   ;;  %v405_v0 = vsel %vm14164_vm0, %v400_v43, %v404_v48  ;;  %v9916_v43 = vpack.c.bf16 %v9610_v50, %v9607_v49  ;;  %v9929_v49 = vpack.c.bf16 %v9713_v30, %v9613_v51  ;;  %v8643_v51 = vld [vmem:[%s14136_s1 + $0x3f4] ss:$8 sps:$4 sm:$0xff]  }
  0x57   : > { %2800 = vmatprep.subr.bf16.mxu1 %v8613_v8  ;;  %2597 = vmatprep.mubr.bf16.mxu0 %v9724_v34  ;;  %v396_v8 = vrot.slane %v14145_v53, 1  ;;  %v9945_v30 = vpack.c.bf16 %v9654_v4, %v9630_v57  ;;  %v9958_v57 = vpack.c.bf16 %v9731_v37, %v9657_v5  ;;  %v8646_v4 = vld [vmem:[%s14136_s1 + $0x2e4] ss:$8 sps:$4 sm:$0xff]  }
  0x58   : > { %2680 = vmatprep.mubr.bf16.mxu1 %v389_v22  ;;  %v418_v22 = vshll.u32 %v9890_v15, 16  ;;  %v642_v50 = vrot.slane %v9916_v43, 2  ;;  %v8649_v5 = vld [vmem:[%s14136_s1 + $0x3e4] ss:$8 sps:$4 sm:$0xff]  }
  0x59   : > { %2718 = vmatpush1.bf16.msra.mxu0 %v8608_v13  ;;  %v8628_v13 = vld [vmem:[%s14136_s1 + $0x214] ss:$8 sps:$4 sm:$0xff]   ;;  %v640_v37 = vrot.slane %v9958_v57, 2  ;;  %v8694_v53 = vld [vmem:[%s14136_s1 + $0x464] ss:$8 sps:$4 sm:$0xff]  }
  0x5a   : > { %2801 = vmatpush1.bf16.msra.mxu1 %v8611_v14  ;;  %2719 = vmatprep.subr.bf16.mxu0 %v8616_v17  ;;  %v8631_v14 = vld [vmem:[%s14136_s1 + $0x314] ss:$8 sps:$4 sm:$0xff]   ;;  %v9894_v17 = vld [vmem:[%s9591_s10 + $0xa0] sm:$0xff] }
  0x5b   : > { %2802 = vmatprep.subr.bf16.mxu1 %v8619_v21  ;;  %v416_v21 = vor.u32 %v414_v58, %v404_v48  ;;  %v9904_v23 = vpack.c.bf16 %v9894_v17, %v9894_v17  ;;  %v420_v48 = vrot.slane %v418_v22, 1  ;;  %v8638_v22 = vld [vmem:[%s14136_s1 + $0x2f0] ss:$8 sps:$4 sm:$0xff]  }
  0x5c   : > { %2598 = vmatmul.mubr.bf16.gmra.mxu0 %v9741_v41 }
  0x5d   : > { %2681 = vmatmul.mubr.bf16.gmra.mxu1 %v381_v42  ;;  %2720 = vmatpush1.bf16.msra.mxu0 %v8614_v26  ;;  %v8629_v26 = vld [vmem:[%s14136_s1 + $0x310] ss:$8 sps:$4 sm:$0xff]   ;;  %v14146_v42 = vshrl.u32 %v9858_v45, 16 }
  0x5e   : > { %2803 = vmatpush1.bf16.msra.mxu1 %v8617_v29  ;;  %2721 = vmatprep.subr.bf16.mxu0 %v8622_v39  ;;  %v8634_v29 = vld [vmem:[%s14136_s1 + $0x204] ss:$8 sps:$4 sm:$0xff]   ;;  %v397_v39 = vsel %vm14164_vm0, %v392_v1, %v396_v8  ;;  %v8635_v1 = vld [vmem:[%s14136_s1 + $0x300] ss:$8 sps:$4 sm:$0xff]  }
  0x5f   : > { %2804 = vmatprep.subr.bf16.mxu1 %v8625_v46  ;;  %2607 = vmatprep.mubr.bf16.mxu0 %v9780_v63  ;;  %v8637_v46 = vld [vmem:[%s14136_s1 + $0x304] ss:$8 sps:$4 sm:$0xff]  }
  0x60   : > { %2690 = vmatprep.mubr.bf16.mxu1 %v405_v0  ;;  %v421_v0 = vsel %vm14164_vm0, %v416_v21, %v420_v48 }
  0x61   : > { %2722 = vmatpush1.bf16.msra.mxu0 %v8620_v56  ;;  %v410_v56 = vshll.u32 %v9904_v23, 16 }
  0x62   : > { %2805 = vmatpush1.bf16.msra.mxu1 %v8623_v61  ;;  %2723 = vmatprep.subr.bf16.mxu0 %v8628_v13  ;;  %v8632_v61 = vld [vmem:[%s14136_s1 + $0x200] ss:$8 sps:$4 sm:$0xff]   ;;  %v8640_v13 = vld [vmem:[%s14136_s1 + $0x2f4] ss:$8 sps:$4 sm:$0xff]  }
  0x63   : > { %2806 = vmatprep.subr.bf16.mxu1 %v8631_v14  ;;  %v408_v14 = vor.u32 %v14146_v42, %v396_v8  ;;  %v412_v21 = vrot.slane %v410_v56, 1  ;;  %v643_v8 = vrot.slane %v9929_v49, 2  ;;  %v639_v56 = vrot.slane %v9945_v30, 2  ;;  %v8697_v42 = vld [vmem:[%s14136_s1 + $0x564] ss:$8 sps:$4 sm:$0xff]  }
  0x64   : > { %2608 = vmatmul.mubr.bf16.gmra.mxu0 %v9801_v12 }
  0x65   : > { %2691 = vmatmul.mubr.bf16.gmra.mxu1 %v397_v39  ;;  %2724 = vmatpush1.bf16.msra.mxu0 %v8626_v19  ;;  %v448_v19 = vrot.slane %v9622_v54, 1  ;;  %v493_v39 = vrot.slane %v9929_v49, 1  ;;  %v8641_v54 = vld [vmem:[%s14136_s1 + $0x3f0] ss:$8 sps:$4 sm:$0xff]   ;;  %v9968_v48 = vsel %vm638_vm2, %v642_v50, %v643_v8 }
  0x66   : > { %2807 = vmatpush1.bf16.msra.mxu1 %v8629_v26  ;;  %2725 = vmatprep.subr.bf16.mxu0 %v8634_v29  ;;  %v449_v26 = vrot.slane %v9626_v55, 1  ;;  %v492_v29 = vrot.slane %v9916_v43, 1 }
  0x67   : > { %2808 = vmatprep.subr.bf16.mxu1 %v8637_v46  ;;  %2617 = vmatprep.mubr.bf16.mxu0 %v9837_v27  ;;  %v413_v46 = vsel %vm14164_vm0, %v408_v14, %v412_v21  ;;  %v8652_v14 = vld [vmem:[%s14136_s1 + $0x2d4] ss:$8 sps:$4 sm:$0xff]   ;;  %v9996_v21 = vpack.c.bf16 %v9770_v59, %v9716_v31  ;;  %v8650_v31 = vld [vmem:[%s14136_s1 + $0x2d0] ss:$8 sps:$4 sm:$0xff]   ;;  %v8658_v59 = vld [vmem:[%s14136_s1 + $0x2c4] ss:$8 sps:$4 sm:$0xff]  }
  0x68   : > { %2700 = vmatprep.mubr.bf16.mxu1 %v421_v0  ;;  %v450_v0 = vsel %vm14163_vm1, %v448_v19, %v449_v26  ;;  %v494_v50 = vsel %vm14163_vm1, %v492_v29, %v493_v39  ;;  %v8655_v19 = vld [vmem:[%s14136_s1 + $0x3d4] ss:$8 sps:$4 sm:$0xff]  }
  0x69   : > { %2726 = vmatpush1.bf16.msra.mxu0 %v8632_v61  ;;  %v8644_v61 = vld [vmem:[%s14136_s1 + $0x2e0] ss:$8 sps:$4 sm:$0xff]  }
  0x6a   : > { %2809 = vmatpush1.bf16.msra.mxu1 %v8635_v1  ;;  %2727 = vmatprep.subr.bf16.mxu0 %v8640_v13  ;;  %v9986_v1 = vsel %vm638_vm2, %v639_v56, %v640_v37  ;;  %v8647_v13 = vld [vmem:[%s14136_s1 + $0x3e0] ss:$8 sps:$4 sm:$0xff]   ;;  %v10030_v56 = vpack.c.bf16 %v9826_v24, %v9773_v60  ;;  %v8667_v60 = vld [vmem:[%s14136_s1 + $0x3b4] ss:$8 sps:$4 sm:$0xff]  }
  0x6b   : > { %2810 = vmatprep.subr.bf16.mxu1 %v8643_v51  ;;  %v10000_v51 = vpack.c.bf16 %v9787_v2, %v9734_v38  ;;  %v8653_v38 = vld [vmem:[%s14136_s1 + $0x3d0] ss:$8 sps:$4 sm:$0xff]  }
  0x6c   : > { %2618 = vmatmul.mubr.bf16.gmra.mxu0 %v9858_v45  ;;  %v651_v24 = vrot.slane %v10030_v56, 2 }
  0x6d   : > { %2701 = vmatmul.mubr.bf16.gmra.mxu1 %v413_v46  ;;  %2728 = vmatpush2.bf16.msra.mxu0 %v8638_v22  ;;  %v647_v22 = vrot.slane %v9996_v21, 2  ;;  %v645_v29 = vrot.slane %v10000_v51, 2  ;;  %v8656_v46 = vld [vmem:[%s14136_s1 + $0x2c0] ss:$8 sps:$4 sm:$0xff]  }
  0x6e   : > { %2811 = vmatpush2.bf16.msra.mxu1 %v8641_v54  ;;  %2729 = vmatprep.subr.bf16.mxu0 %v8646_v4  ;;  %v8661_v4 = vld [vmem:[%s14136_s1 + $0x3c4] ss:$8 sps:$4 sm:$0xff]  }
  0x6f   : > { %2812 = vmatprep.subr.bf16.mxu1 %v8649_v5  ;;  %2743 = vmatprep.mubr.bf16.mxu0 %v450_v0  ;;  %v10017_v2 = vsel %vm638_vm2, %v643_v8, %v647_v22  ;;  %v10020_v54 = vsel %vm638_vm2, %v640_v37, %v645_v29  ;;  %v8659_v8 = vld [vmem:[%s14136_s1 + $0x3c0] ss:$8 sps:$4 sm:$0xff]   ;;  %v8664_v5 = vld [vmem:[%s14136_s1 + $0x2b4] ss:$8 sps:$4 sm:$0xff]   ;;  %v10040_v37 = vpack.c.bf16 %v9843_v32, %v9790_v6  ;;  %v8662_v0 = vld [vmem:[%s14136_s1 + $0x2b0] ss:$8 sps:$4 sm:$0xff]  }
  0x70   : > { %2826 = vmatprep.mubr.bf16.mxu1 %v494_v50  ;;  %v10051_v50 = vsel %vm638_vm2, %v647_v22, %v651_v24  ;;  %v8665_v6 = vld [vmem:[%s14136_s1 + $0x3b0] ss:$8 sps:$4 sm:$0xff]   ;;  %v8670_v32 = vld [vmem:[%s14136_s1 + $0x2a4] ss:$8 sps:$4 sm:$0xff]  }
  0x71   : > { %2730 = vmatpush2.bf16.msra.mxu0 %v8644_v61  ;;  %v649_v61 = vrot.slane %v10040_v37, 2 }
  0x72   : > { %2813 = vmatpush2.bf16.msra.mxu1 %v8647_v13  ;;  %2731 = vmatprep.subr.bf16.mxu0 %v8652_v14  ;;  %v10061_v13 = vpack.c.bf16 %v9880_v9, %v9829_v25  ;;  %v8668_v25 = vld [vmem:[%s14136_s1 + $0x2a0] ss:$8 sps:$4 sm:$0xff]  }
  0x73   : > { %2814 = vmatprep.subr.bf16.mxu1 %v8655_v19  ;;  %v10064_v14 = vsel %vm638_vm2, %v645_v29, %v649_v61  ;;  %v8673_v19 = vld [vmem:[%s14136_s1 + $0x3a4] ss:$8 sps:$4 sm:$0xff]   ;;  %v8671_v9 = vld [vmem:[%s14136_s1 + $0x3a0] ss:$8 sps:$4 sm:$0xff]  }
  0x74   : > { %v655_v22 = vrot.slane %v10061_v13, 2 }
  0x75   : > { %2732 = vmatpush2.bf16.msra.mxu0 %v8650_v31  ;;  %v10072_v31 = vpack.c.bf16 %v9894_v17, %v9846_v33  ;;  %v8676_v33 = vld [vmem:[%s14136_s1 + $0x294] ss:$8 sps:$4 sm:$0xff]  }
  0x76   : > { %2815 = vmatpush2.bf16.msra.mxu1 %v8653_v38  ;;  %2733 = vmatprep.subr.bf16.mxu0 %v8658_v59  ;;  %v10081_v29 = vsel %vm638_vm2, %v651_v24, %v655_v22  ;;  %v8679_v17 = vld [vmem:[%s14136_s1 + $0x394] ss:$8 sps:$4 sm:$0xff]   ;;  %v8674_v59 = vld [vmem:[%s14136_s1 + $0x290] ss:$8 sps:$4 sm:$0xff]  }
  0x77   : > { %2816 = vmatprep.subr.bf16.mxu1 %v8661_v4  ;;  %v653_v38 = vrot.slane %v10072_v31, 2  ;;  %v302_v24 = vld [vmem:[%s9591_s10 + $0xb8] sm:$0xff] }
  0x79   : > { %2734 = vmatpush2.bf16.msra.mxu0 %v8656_v46  ;;  %v10094_v4 = vsel %vm638_vm2, %v649_v61, %v653_v38  ;;  %v8677_v46 = vld [vmem:[%s14136_s1 + $0x390] ss:$8 sps:$4 sm:$0xff]  }
  0x7a   : > { %2817 = vmatpush2.bf16.msra.mxu1 %v8659_v8  ;;  %2735 = vmatprep.subr.bf16.mxu0 %v8664_v5  ;;  %v8682_v8 = vld [vmem:[%s14136_s1 + $0x284] ss:$8 sps:$4 sm:$0xff]   ;;  %v301_v61 = vld [vmem:[%s9591_s10 + $0xb0] sm:$0xff] }
  0x7b   : > { %2818 = vmatprep.subr.bf16.mxu1 %v8667_v60  ;;  %v8685_v5 = vld [vmem:[%s14136_s1 + $0x384] ss:$8 sps:$4 sm:$0xff]   ;;  %v709_v60 = vrot.slane %v342_v18, 3  ;;  %v490_v18 = vrot.slane %v9958_v57, 1 }
  0x7d   : > { %2736 = vmatpush2.bf16.msra.mxu0 %v8662_v0  ;;  %v8680_v0 = vld [vmem:[%s14136_s1 + $0x280] ss:$8 sps:$4 sm:$0xff]  }
  0x7e   : > { %2819 = vmatpush2.bf16.msra.mxu1 %v8665_v6  ;;  %2737 = vmatprep.subr.bf16.mxu0 %v8670_v32  ;;  %v445_v6 = vrot.slane %v9651_v3, 1  ;;  %v446_v32 = vrot.slane %v9668_v10, 1  ;;  %v8688_v3 = vld [vmem:[%s14136_s1 + $0x474] ss:$8 sps:$4 sm:$0xff]  }
  0x7f   : > { %2820 = vmatprep.subr.bf16.mxu1 %v8673_v19  ;;  %v8683_v19 = vld [vmem:[%s14136_s1 + $0x380] ss:$8 sps:$4 sm:$0xff]  }
  0x81   : > { %2738 = vmatpush2.bf16.msra.mxu0 %v8668_v25  ;;  %v489_v25 = vrot.slane %v9945_v30, 1 }
  0x82   : > { %2821 = vmatpush2.bf16.msra.mxu1 %v8671_v9  ;;  %2739 = vmatprep.subr.bf16.mxu0 %v8676_v33  ;;  %v708_v9 = vrot.slane %v358_v35, 2  ;;  %v8691_v33 = vld [vmem:[%s14136_s1 + $0x574] ss:$8 sps:$4 sm:$0xff]   ;;  %v711_v35 = vrot.slane %v374_v7, 2  ;;  %v8689_v7 = vld [vmem:[%s14136_s1 + $0x570] ss:$8 sps:$4 sm:$0xff]  }
  0x83   : > { %2822 = vmatprep.subr.bf16.mxu1 %v8679_v17  ;;  %v10127_v17 = vpack.c.bf16 %v302_v24, %v302_v24 }
  0x85   : > { %2740 = vmatpush2.bf16.msra.mxu0 %v8674_v59  ;;  %v10129_v59 = vpack.c.bf16 %v301_v61, %v301_v61  ;;  %v659_v28 = vrot.slane %v10127_v17, 2  ;;  %v447_v61 = vsel %vm14163_vm1, %v445_v6, %v446_v32 }
  0x86   : > { %2823 = vmatpush2.bf16.msra.mxu1 %v8677_v46  ;;  %2741 = vmatprep.subr.bf16.mxu0 %v8682_v8  ;;  %v712_v46 = vrot.slane %v362_v47, 3  ;;  %v453_v8 = vrot.slane %v9724_v34, 1  ;;  %v491_v47 = vsel %vm14163_vm1, %v489_v25, %v490_v18  ;;  %v8692_v25 = vld [vmem:[%s14136_s1 + $0x460] ss:$8 sps:$4 sm:$0xff]  }
  0x87   : > { %2824 = vmatprep.subr.bf16.mxu1 %v8685_v5  ;;  %v497_v5 = vrot.slane %v9996_v21, 1  ;;  %v657_v24 = vrot.slane %v10129_v59, 2 }
  0x89   : > { %2742 = vmatpush2.bf16.msra.mxu0 %v8680_v0  ;;  %v10154_v0 = vsel %vm638_vm2, %v655_v22, %v659_v28  ;;  %v10157_v6 = vsel %vm638_vm2, %v653_v38, %v657_v24  ;;  %v713_v28 = vor.u32 %v712_v46, %v711_v35  ;;  %v8695_v22 = vld [vmem:[%s14136_s1 + $0x560] ss:$8 sps:$4 sm:$0xff]   ;;  %v451_v38 = vrot.slane %v9741_v41, 1 }
  0x8a   : > { %2825 = vmatpush2.bf16.msra.mxu1 %v8683_v19  ;;  %2877 = vmatprep.subr.bf16.mxu0 %v8688_v3  ;;  %v710_v19 = vor.u32 %v709_v60, %v708_v9  ;;  %v454_v3 = vsel %vm14163_vm1, %v449_v26, %v453_v8  ;;  %v495_v60 = vrot.slane %v10000_v51, 1  ;;  %v8700_v26 = vld [vmem:[%s14136_s1 + $0x454] ss:$8 sps:$4 sm:$0xff]   ;;  %v457_v9 = vrot.slane %v9780_v63, 1 }
  0x8b   : > { %2960 = vmatprep.subr.bf16.mxu1 %v8691_v33  ;;  %v498_v33 = vsel %vm14163_vm1, %v493_v39, %v497_v5  ;;  %v8703_v39 = vld [vmem:[%s14136_s1 + $0x554] ss:$8 sps:$4 sm:$0xff]   ;;  %v718_v46 = vrot.slane %v382_v52, 2  ;;  %v501_v35 = vrot.slane %v10030_v56, 1  ;;  %v726_v24 = vrot.slane %v398_v20, 2 }
  0x8c   : > { %2744 = vmatmul.mubr.bf16.vlgmr.msra.gmra.mxu0 %v447_v61  ;;  %v452_v61 = vsel %vm14163_vm1, %v446_v32, %v451_v38  ;;  %v8701_v52 = vld [vmem:[%s14136_s1 + $0x550] ss:$8 sps:$4 sm:$0xff]   ;;  %v8709_v20 = vld [vmem:[%s14136_s1 + $0x544] ss:$8 sps:$4 sm:$0xff]   ;;  %v722_v32 = vrot.slane %v390_v36, 2 }
  0x8d   : > { %2827 = vmatmul.mubr.bf16.vlgmr.msra.gmra.mxu1 %v491_v47  ;;  %2878 = vmatpush1.bf16.msra.mxu0 %v8686_v62  ;;  %v10180_v62 = vsel %vm707_vm3, %v710_v19, %v713_v28  ;;  %v496_v47 = vsel %vm14163_vm1, %v490_v18, %v495_v60  ;;  %v8707_v36 = vld [vmem:[%s14136_s1 + $0x540] ss:$8 sps:$4 sm:$0xff]  }
  0x8e   : > { %2961 = vmatpush1.bf16.msra.mxu1 %v8689_v7  ;;  %2879 = vmatprep.subr.bf16.mxu0 %v8694_v53  ;;  %v719_v53 = vrot.slane %v370_v40, 3  ;;  %v727_v40 = vrot.slane %v386_v11, 3  ;;  %v8706_v7 = vld [vmem:[%s14136_s1 + $0x444] ss:$8 sps:$4 sm:$0xff]   ;;  %v8704_v11 = vld [vmem:[%s14136_s1 + $0x440] ss:$8 sps:$4 sm:$0xff]  }
  0x8f   : > { %2962 = vmatprep.subr.bf16.mxu1 %v8697_v42  ;;  %2753 = vmatprep.mubr.bf16.mxu0 %v454_v3  ;;  %v8698_v42 = vld [vmem:[%s14136_s1 + $0x450] ss:$8 sps:$4 sm:$0xff]   ;;  %v458_v3 = vsel %vm14163_vm1, %v453_v8, %v457_v9  ;;  %v8712_v8 = vld [vmem:[%s14136_s1 + $0x434] ss:$8 sps:$4 sm:$0xff]  }
  0x90   : > { %2836 = vmatprep.mubr.bf16.mxu1 %v498_v33  ;;  %v10208_v18 = vor.u32 %v719_v53, %v718_v46  ;;  %v728_v19 = vor.u32 %v727_v40, %v726_v24  ;;  %v502_v33 = vsel %vm14163_vm1, %v497_v5, %v501_v35  ;;  %v8715_v5 = vld [vmem:[%s14136_s1 + $0x534] ss:$8 sps:$4 sm:$0xff]   ;;  %v461_v46 = vrot.slane %v9837_v27, 1 }
  0x91   : > { %2880 = vmatpush1.bf16.msra.mxu0 %v8692_v25  ;;  %v723_v25 = vrot.slane %v378_v16, 3  ;;  %v499_v16 = vrot.slane %v10040_v37, 1  ;;  %v505_v24 = vrot.slane %v10061_v13, 1  ;;  %v735_v40 = vrot.slane %v402_v44, 3  ;;  %v8716_v44 = vld [vmem:[%s14136_s1 + $0x420] ss:$8 sps:$4 sm:$0xff]  }
  0x92   : > { %2963 = vmatpush1.bf16.msra.mxu1 %v8695_v22  ;;  %2881 = vmatprep.subr.bf16.mxu0 %v8700_v26  ;;  %v455_v22 = vrot.slane %v9801_v12, 1  ;;  %v10224_v26 = vsel %vm707_vm3, %v10208_v18, %v728_v19 }
  0x93   : > { %2964 = vmatprep.subr.bf16.mxu1 %v8703_v39  ;;  %v724_v39 = vor.u32 %v723_v25, %v722_v32  ;;  %v14181_v32 = vshll.u32 %v9858_v45, 16 }
  0x94   : > { %2754 = vmatmul.mubr.bf16.gmra.mxu0 %v452_v61  ;;  %v734_v61 = vrot.slane %v414_v58, 2  ;;  %v8721_v58 = vld [vmem:[%s14136_s1 + $0x524] ss:$8 sps:$4 sm:$0xff]  }
  0x95   : > { %2837 = vmatmul.mubr.bf16.gmra.mxu1 %v496_v47  ;;  %2882 = vmatpush1.bf16.msra.mxu0 %v8698_v42  ;;  %v10234_v53 = vsel %vm707_vm3, %v713_v28, %v724_v39  ;;  %v8710_v42 = vld [vmem:[%s14136_s1 + $0x430] ss:$8 sps:$4 sm:$0xff]   ;;  %v456_v47 = vsel %vm14163_vm1, %v451_v38, %v455_v22  ;;  %v14180_v38 = vshrl.u32 %v9858_v45, 16  ;;  %v731_v25 = vrot.slane %v14181_v32, 3 }
  0x96   : > { %2965 = vmatpush1.bf16.msra.mxu1 %v8701_v52  ;;  %2883 = vmatprep.subr.bf16.mxu0 %v8706_v7  ;;  %v500_v52 = vsel %vm14163_vm1, %v495_v60, %v499_v16  ;;  %v8713_v28 = vld [vmem:[%s14136_s1 + $0x530] ss:$8 sps:$4 sm:$0xff]   ;;  %v8718_v7 = vld [vmem:[%s14136_s1 + $0x424] ss:$8 sps:$4 sm:$0xff]  }
  0x97   : > { %2966 = vmatprep.subr.bf16.mxu1 %v8709_v20  ;;  %2763 = vmatprep.mubr.bf16.mxu0 %v458_v3  ;;  %v730_v60 = vrot.slane %v14180_v38, 2  ;;  %v10257_v20 = vor.u32 %v735_v40, %v734_v61  ;;  %v506_v3 = vsel %vm14163_vm1, %v501_v35, %v505_v24  ;;  %v8727_v35 = vld [vmem:[%s14136_s1 + $0x514] ss:$8 sps:$4 sm:$0xff]   ;;  %v8722_v40 = vld [vmem:[%s14136_s1 + $0x410] ss:$8 sps:$4 sm:$0xff]  }
  0x98   : > { %2846 = vmatprep.mubr.bf16.mxu1 %v502_v33  ;;  %v8719_v33 = vld [vmem:[%s14136_s1 + $0x520] ss:$8 sps:$4 sm:$0xff]  }
  0x99   : > { %2884 = vmatpush1.bf16.msra.mxu0 %v8704_v11  ;;  %v462_v11 = vsel %vm14163_vm1, %v457_v9, %v461_v46  ;;  %v10275_v61 = vor.u32 %v731_v25, %v730_v60  ;;  %v8724_v9 = vld [vmem:[%s14136_s1 + $0x414] ss:$8 sps:$4 sm:$0xff]  }
  0x9a   : > { %2967 = vmatpush1.bf16.msra.mxu1 %v8707_v36  ;;  %2885 = vmatprep.subr.bf16.mxu0 %v8712_v8  ;;  %v459_v36 = vrot.slane %v9858_v45, 1  ;;  %v503_v8 = vrot.slane %v10072_v31, 1 }
  0x9b   : > { %2968 = vmatprep.subr.bf16.mxu1 %v8715_v5  ;;  %v10273_v5 = vsel %vm707_vm3, %v728_v19, %v10257_v20  ;;  %v548_v19 = vshrl.u32 %v9929_v49, 16 }
  0x9c   : > { %2764 = vmatmul.mubr.bf16.gmra.mxu0 %v456_v47  ;;  %v543_v47 = vshll.u32 %v9916_v43, 16  ;;  %v504_v38 = vsel %vm14163_vm1, %v499_v16, %v503_v8 }
  0x9d   : > { %2847 = vmatmul.mubr.bf16.gmra.mxu1 %v500_v52  ;;  %2886 = vmatpush1.bf16.msra.mxu0 %v8710_v42  ;;  %v540_v42 = vshrl.u32 %v9916_v43, 16  ;;  %v551_v52 = vshll.u32 %v9929_v49, 16  ;;  %v460_v43 = vsel %vm14163_vm1, %v455_v22, %v459_v36  ;;  %v8725_v49 = vld [vmem:[%s14136_s1 + $0x510] ss:$8 sps:$4 sm:$0xff]   ;;  %v8728_v22 = vld [vmem:[%s14136_s1 + $0x400] ss:$8 sps:$4 sm:$0xff]  }
  0x9e   : > { %2969 = vmatpush1.bf16.msra.mxu1 %v8713_v28  ;;  %2887 = vmatprep.subr.bf16.mxu0 %v8718_v7  ;;  %v10289_v28 = vsel %vm707_vm3, %v724_v39, %v10275_v61  ;;  %v465_v7 = vrot.slane %v9890_v15, 1  ;;  %v8730_v39 = vld [vmem:[%s14136_s1 + $0x404] ss:$8 sps:$4 sm:$0xff]   ;;  %v545_v32 = vrot.slane %v543_v47, 2 }
  0x9f   : > { %2970 = vmatprep.subr.bf16.mxu1 %v8721_v58  ;;  %2773 = vmatprep.mubr.bf16.mxu0 %v462_v11  ;;  %v509_v58 = vrot.slane %v10127_v17, 1  ;;  %v8733_v15 = vld [vmem:[%s14136_s1 + $0x504] ss:$8 sps:$4 sm:$0xff]   ;;  %v542_v60 = vrot.slane %v540_v42, 1  ;;  %v553_v11 = vrot.slane %v551_v52, 2 }
  0xa0   : > { %2856 = vmatprep.mubr.bf16.mxu1 %v506_v3  ;;  %v466_v16 = vsel %vm14163_vm1, %v461_v46, %v465_v7  ;;  %v8731_v3 = vld [vmem:[%s14136_s1 + $0x500] ss:$8 sps:$4 sm:$0xff]   ;;  %v8736_v46 = vld [vmem:[%s14136_s1 + $0x4f4] ss:$8 sps:$4 sm:$0xff]   ;;  %v8737_v52 = vld [vmem:[%s14136_s1 + $0x5f0] ss:$8 sps:$4 sm:$0xff]  }
  0xa1   : > { %2888 = vmatpush1.bf16.msra.mxu0 %v8716_v44  ;;  %v510_v25 = vsel %vm14163_vm1, %v505_v24, %v509_v58  ;;  %v550_v44 = vrot.slane %v548_v19, 1  ;;  %v8739_v24 = vld [vmem:[%s14136_s1 + $0x5f4] ss:$8 sps:$4 sm:$0xff]   ;;  %v546_v42 = vor.u32 %v545_v32, %v542_v60  ;;  %v8745_v7 = vld [vmem:[%s14136_s1 + $0x5e4] ss:$8 sps:$4 sm:$0xff]  }
  0xa2   : > { %2971 = vmatpush1.bf16.msra.mxu1 %v8719_v33  ;;  %2889 = vmatprep.subr.bf16.mxu0 %v8724_v9  ;;  %v463_v33 = vrot.slane %v9904_v23, 1  ;;  %v507_v9 = vrot.slane %v10129_v59, 1  ;;  %v8743_v58 = vld [vmem:[%s14136_s1 + $0x5e0] ss:$8 sps:$4 sm:$0xff]  }
  0xa3   : > { %2972 = vmatprep.subr.bf16.mxu1 %v8727_v35  ;;  %v8734_v35 = vld [vmem:[%s14136_s1 + $0x4f0] ss:$8 sps:$4 sm:$0xff]   ;;  %v10326_v23 = vor.u32 %v553_v11, %v550_v44  ;;  %v8752_v60 = vld [vmem:[%s14136_s1 + $0x4c0] ss:$8 sps:$4 sm:$0xff]   ;;  %v8766_v11 = vld [vmem:[%s14136_s1 + $0x4a4] ss:$8 sps:$4 sm:$0xff]  }
  0xa4   : > { %2774 = vmatmul.mubr.bf16.gmra.mxu0 %v460_v43  ;;  %v464_v47 = vsel %vm14163_vm1, %v459_v36, %v463_v33  ;;  %v508_v19 = vsel %vm14163_vm1, %v503_v8, %v507_v9  ;;  %v8740_v36 = vld [vmem:[%s14136_s1 + $0x4e0] ss:$8 sps:$4 sm:$0xff]   ;;  %v8748_v43 = vld [vmem:[%s14136_s1 + $0x4d4] ss:$8 sps:$4 sm:$0xff]   ;;  %v8761_v44 = vld [vmem:[%s14136_s1 + $0x5b0] ss:$8 sps:$4 sm:$0xff]  }
  0xa5   : > { %2857 = vmatmul.mubr.bf16.gmra.mxu1 %v504_v38  ;;  %2890 = vmatpush1.bf16.msra.mxu0 %v8722_v40  ;;  %v8742_v40 = vld [vmem:[%s14136_s1 + $0x4e4] ss:$8 sps:$4 sm:$0xff]   ;;  %v555_v8 = vsel %vm521_vm4, %v546_v42, %v10326_v23  ;;  %v8751_v38 = vld [vmem:[%s14136_s1 + $0x5d4] ss:$8 sps:$4 sm:$0xff]   ;;  %v8755_v32 = vld [vmem:[%s14136_s1 + $0x5c0] ss:$8 sps:$4 sm:$0xff]  }
  0xa6   : > { %2973 = vmatpush1.bf16.msra.mxu1 %v8725_v49  ;;  %2891 = vmatprep.subr.bf16.mxu0 %v8730_v39  ;;  %v8746_v49 = vld [vmem:[%s14136_s1 + $0x4d0] ss:$8 sps:$4 sm:$0xff]   ;;  %v523_v33 = vshrl.u32 %v9945_v30, 16  ;;  %v526_v9 = vshll.u32 %v9945_v30, 16  ;;  %v534_v42 = vshll.u32 %v9958_v57, 16 }
  0xa7   : > { %2974 = vmatprep.subr.bf16.mxu1 %v8733_v15  ;;  %2783 = vmatprep.mubr.bf16.mxu0 %v466_v16  ;;  %v8749_v39 = vld [vmem:[%s14136_s1 + $0x5d0] ss:$8 sps:$4 sm:$0xff]   ;;  %v8754_v15 = vld [vmem:[%s14136_s1 + $0x4c4] ss:$8 sps:$4 sm:$0xff]   ;;  %v8763_v16 = vld [vmem:[%s14136_s1 + $0x5b4] ss:$8 sps:$4 sm:$0xff]  }
  0xa8   : > { %2866 = vmatprep.mubr.bf16.mxu1 %v510_v25  ;;  %v8758_v25 = vld [vmem:[%s14136_s1 + $0x4b0] ss:$8 sps:$4 sm:$0xff]   ;;  %v8772_v30 = vld [vmem:[%s14136_s1 + $0x494] ss:$8 sps:$4 sm:$0xff]  }
  0xa9   : > { %2892 = vmatpush1.bf16.msra.mxu0 %v8728_v22  ;;  %v8760_v22 = vld [vmem:[%s14136_s1 + $0x4b4] ss:$8 sps:$4 sm:$0xff]  }
  0xaa   : > { %2975 = vmatpush1.bf16.msra.mxu1 %v8731_v3  ;;  %2893 = vmatprep.subr.bf16.mxu0 %v8736_v46  ;;  %v8769_v3 = vld [vmem:[%s14136_s1 + $0x5a4] ss:$8 sps:$4 sm:$0xff]   ;;  %v8764_v46 = vld [vmem:[%s14136_s1 + $0x4a0] ss:$8 sps:$4 sm:$0xff]  }
  0xab   : > { %2976 = vmatprep.subr.bf16.mxu1 %v8739_v24  ;;  %v8767_v24 = vld [vmem:[%s14136_s1 + $0x5a0] ss:$8 sps:$4 sm:$0xff]  }
  0xac   : > { %2784 = vmatmul.mubr.bf16.gmra.mxu0 %v464_v47  ;;  %v8775_v47 = vld [vmem:[%s14136_s1 + $0x594] ss:$8 sps:$4 sm:$0xff]  }
  0xad   : > { %2867 = vmatmul.mubr.bf16.gmra.mxu1 %v508_v19  ;;  %2894 = vmatpush2.bf16.msra.mxu0 %v8734_v35  ;;  %v531_v35 = vshrl.u32 %v9958_v57, 16  ;;  %v525_v19 = vrot.slane %v523_v33, 1  ;;  %v569_v57 = vshll.u32 %v9996_v21, 16  ;;  %v584_v33 = vshrl.u32 %v10030_v56, 16 }
  0xae   : > { %2977 = vmatpush2.bf16.msra.mxu1 %v8737_v52  ;;  %2895 = vmatprep.subr.bf16.mxu0 %v8742_v40  ;;  %v528_v52 = vrot.slane %v526_v9, 2  ;;  %v8770_v40 = vld [vmem:[%s14136_s1 + $0x490] ss:$8 sps:$4 sm:$0xff]  }
  0xaf   : > { %2978 = vmatprep.subr.bf16.mxu1 %v8745_v7  ;;  %2909 = vmatprep.mubr.bf16.mxu0 %v555_v8  ;;  %v566_v7 = vshrl.u32 %v9996_v21, 16  ;;  %v533_v8 = vrot.slane %v531_v35, 1  ;;  %v557_v21 = vshrl.u32 %v10000_v51, 16 }
  0xb0   : > { %2992 = vmatprep.mubr.bf16.mxu1 %v9968_v48  ;;  %v8757_v48 = vld [vmem:[%s14136_s1 + $0x5c4] ss:$8 sps:$4 sm:$0xff]  }
  0xb1   : > { %2896 = vmatpush2.bf16.msra.mxu0 %v8740_v36  ;;  %v8773_v36 = vld [vmem:[%s14136_s1 + $0x590] ss:$8 sps:$4 sm:$0xff]  }
  0xb2   : > { %2979 = vmatpush2.bf16.msra.mxu1 %v8743_v58  ;;  %2897 = vmatprep.subr.bf16.mxu0 %v8748_v43  ;;  %v536_v58 = vrot.slane %v534_v42, 2  ;;  %v8778_v43 = vld [vmem:[%s14136_s1 + $0x484] ss:$8 sps:$4 sm:$0xff]  }
  0xb3   : > { %2980 = vmatprep.subr.bf16.mxu1 %v8751_v38  ;;  %v8781_v38 = vld [vmem:[%s14136_s1 + $0x584] ss:$8 sps:$4 sm:$0xff]  }
  0xb4   : > { %v8793_v42 = vld [vmem:[%s14136_s1 + $0x764] ss:$8 sps:$4 sm:$0xff]  }
  0xb5   : > { %2898 = vmatpush2.bf16.msra.mxu0 %v8746_v49  ;;  %v8776_v49 = vld [vmem:[%s14136_s1 + $0x480] ss:$8 sps:$4 sm:$0xff]  }
  0xb6   : > { %2981 = vmatpush2.bf16.msra.mxu1 %v8749_v39  ;;  %2899 = vmatprep.subr.bf16.mxu0 %v8754_v15  ;;  %v568_v39 = vrot.slane %v566_v7, 1  ;;  %v571_v15 = vrot.slane %v569_v57, 2  ;;  %v578_v57 = vshll.u32 %v10040_v37, 16 }
  0xb7   : > { %2982 = vmatprep.subr.bf16.mxu1 %v8757_v48  ;;  %v8779_v48 = vld [vmem:[%s14136_s1 + $0x580] ss:$8 sps:$4 sm:$0xff]  }
  0xb9   : > { %2900 = vmatpush2.bf16.msra.mxu0 %v8752_v60  ;;  %v529_v60 = vor.u32 %v528_v52, %v525_v19  ;;  %v586_v19 = vrot.slane %v584_v33, 1  ;;  %v8814_v33 = vld [vmem:[%s14136_s1 + $0x624] ss:$8 sps:$4 sm:$0xff]  }
  0xba   : > { %2983 = vmatpush2.bf16.msra.mxu1 %v8755_v32  ;;  %2901 = vmatprep.subr.bf16.mxu0 %v8760_v22  ;;  %v537_v32 = vor.u32 %v536_v58, %v533_v8  ;;  %v560_v22 = vshll.u32 %v10000_v51, 16  ;;  %v587_v51 = vshll.u32 %v10030_v56, 16  ;;  %v575_v56 = vshrl.u32 %v10040_v37, 16 }
  0xbb   : > { %2984 = vmatprep.subr.bf16.mxu1 %v8763_v16  ;;  %v8784_v16 = vld [vmem:[%s14136_s1 + $0x674] ss:$8 sps:$4 sm:$0xff]   ;;  %v602_v58 = vshrl.u32 %v10061_v13, 16 }
  0xbc   : > { %v538_v9 = vsel %vm521_vm4, %v529_v60, %v537_v32  ;;  %v562_v35 = vrot.slane %v560_v22, 2  ;;  %v589_v52 = vrot.slane %v587_v51, 2  ;;  %v577_v8 = vrot.slane %v575_v56, 1  ;;  %v8808_v60 = vld [vmem:[%s14136_s1 + $0x634] ss:$8 sps:$4 sm:$0xff]  }
  0xbd   : > { %2902 = vmatpush2.bf16.msra.mxu0 %v8758_v25  ;;  %v8787_v25 = vld [vmem:[%s14136_s1 + $0x774] ss:$8 sps:$4 sm:$0xff]   ;;  %v604_v22 = vrot.slane %v602_v58, 1  ;;  %v8815_v56 = vld [vmem:[%s14136_s1 + $0x720] ss:$8 sps:$4 sm:$0xff]  }
  0xbe   : > { %2985 = vmatpush2.bf16.msra.mxu1 %v8761_v44  ;;  %2903 = vmatprep.subr.bf16.mxu0 %v8766_v11  ;;  %v8782_v44 = vld [vmem:[%s14136_s1 + $0x670] ss:$8 sps:$4 sm:$0xff]   ;;  %v572_v11 = vor.u32 %v571_v15, %v568_v39  ;;  %v8800_v39 = vld [vmem:[%s14136_s1 + $0x640] ss:$8 sps:$4 sm:$0xff]  }
  0xbf   : > { %2986 = vmatprep.subr.bf16.mxu1 %v8769_v3  ;;  %v559_v3 = vrot.slane %v557_v21, 1  ;;  %v8797_v21 = vld [vmem:[%s14136_s1 + $0x750] ss:$8 sps:$4 sm:$0xff]   ;;  %v8803_v15 = vld [vmem:[%s14136_s1 + $0x740] ss:$8 sps:$4 sm:$0xff]  }
  0xc1   : > { %2904 = vmatpush2.bf16.msra.mxu0 %v8764_v46  ;;  %v8785_v46 = vld [vmem:[%s14136_s1 + $0x770] ss:$8 sps:$4 sm:$0xff]   ;;  %v563_v7 = vor.u32 %v562_v35, %v559_v3  ;;  %v596_v3 = vshll.u32 %v10072_v31, 16 }
  0xc2   : > { %2987 = vmatpush2.bf16.msra.mxu1 %v8767_v24  ;;  %2905 = vmatprep.subr.bf16.mxu0 %v8772_v30  ;;  %v8790_v24 = vld [vmem:[%s14136_s1 + $0x664] ss:$8 sps:$4 sm:$0xff]   ;;  %v8788_v30 = vld [vmem:[%s14136_s1 + $0x660] ss:$8 sps:$4 sm:$0xff]  }
  0xc3   : > { %2988 = vmatprep.subr.bf16.mxu1 %v8775_v47  ;;  %v573_v47 = vsel %vm521_vm4, %v10326_v23, %v572_v11  ;;  %v8799_v23 = vld [vmem:[%s14136_s1 + $0x754] ss:$8 sps:$4 sm:$0xff]   ;;  %v564_v37 = vsel %vm521_vm4, %v537_v32, %v563_v7  ;;  %v598_v35 = vrot.slane %v596_v3, 2  ;;  %v8838_v3 = vld [vmem:[%s14136_s1 + $0x6e4] ss:$8 sps:$4 sm:$0xff]  }
  0xc4   : > { %v8811_v32 = vld [vmem:[%s14136_s1 + $0x734] ss:$8 sps:$4 sm:$0xff]  }
  0xc5   : > { %2906 = vmatpush2.bf16.msra.mxu0 %v8770_v40  ;;  %v8791_v40 = vld [vmem:[%s14136_s1 + $0x760] ss:$8 sps:$4 sm:$0xff]  }
  0xc6   : > { %2989 = vmatpush2.bf16.msra.mxu1 %v8773_v36  ;;  %2907 = vmatprep.subr.bf16.mxu0 %v8778_v43  ;;  %v590_v36 = vor.u32 %v589_v52, %v586_v19  ;;  %v605_v43 = vshll.u32 %v10061_v13, 16  ;;  %v8805_v13 = vld [vmem:[%s14136_s1 + $0x744] ss:$8 sps:$4 sm:$0xff]  }
  0xc7   : > { %2990 = vmatprep.subr.bf16.mxu1 %v8781_v38  ;;  %v8794_v38 = vld [vmem:[%s14136_s1 + $0x650] ss:$8 sps:$4 sm:$0xff]  }
  0xc9   : > { %2908 = vmatpush2.bf16.msra.mxu0 %v8776_v49  ;;  %v580_v49 = vrot.slane %v578_v57, 2  ;;  %v614_v57 = vshll.u32 %v10129_v59, 16 }
  0xca   : > { %2991 = vmatpush2.bf16.msra.mxu1 %v8779_v48  ;;  %3043 = vmatprep.subr.bf16.mxu0 %v8784_v16  ;;  %v591_v48 = vsel %vm521_vm4, %v572_v11, %v590_v36  ;;  %v607_v16 = vrot.slane %v605_v43, 2  ;;  %v8809_v11 = vld [vmem:[%s14136_s1 + $0x730] ss:$8 sps:$4 sm:$0xff]  }
  0xcb   : > { %3126 = vmatprep.subr.bf16.mxu1 %v8787_v25  ;;  %v581_v25 = vor.u32 %v580_v49, %v577_v8  ;;  %v616_v43 = vrot.slane %v614_v57, 2  ;;  %v8832_v49 = vld [vmem:[%s14136_s1 + $0x6f4] ss:$8 sps:$4 sm:$0xff]   ;;  %v8854_v57 = vld [vmem:[%s14136_s1 + $0x6b0] ss:$8 sps:$4 sm:$0xff]  }
  0xcc   : > { %2910 = vmatmul.mubr.bf16.vlgmr.msra.gmra.mxu0 %v538_v9  ;;  %v608_v51 = vor.u32 %v607_v16, %v604_v22  ;;  %v620_v9 = vshrl.u32 %v10127_v17, 16  ;;  %v9358_v22 = vld [vmem:[%s9591_s10 + $0xa0] sm:$0xff]  ;;  %v9359_v16 = vld [vmem:[%s9591_s10 + $0xb0] sm:$0xff] }
  0xcd   : > { %2993 = vmatmul.mubr.bf16.vlgmr.msra.gmra.mxu1 %v9986_v1  ;;  %3044 = vmatpush1.bf16.msra.mxu0 %v8782_v44  ;;  %v8796_v1 = vld [vmem:[%s14136_s1 + $0x654] ss:$8 sps:$4 sm:$0xff]   ;;  %v593_v44 = vshrl.u32 %v10072_v31, 16  ;;  %v8817_v31 = vld [vmem:[%s14136_s1 + $0x724] ss:$8 sps:$4 sm:$0xff]  }
  0xce   : > { %3127 = vmatpush1.bf16.msra.mxu1 %v8785_v46  ;;  %3045 = vmatprep.subr.bf16.mxu0 %v8790_v24  ;;  %v623_v46 = vshll.u32 %v10127_v17, 16  ;;  %v609_v17 = vsel %vm521_vm4, %v590_v36, %v608_v51  ;;  %v622_v19 = vrot.slane %v620_v9, 1 }
  0xcf   : > { %3128 = vmatprep.subr.bf16.mxu1 %v8793_v42  ;;  %2919 = vmatprep.mubr.bf16.mxu0 %v573_v47  ;;  %v595_v24 = vrot.slane %v593_v44, 1  ;;  %v8812_v42 = vld [vmem:[%s14136_s1 + $0x620] ss:$8 sps:$4 sm:$0xff]   ;;  %v8823_v47 = vld [vmem:[%s14136_s1 + $0x714] ss:$8 sps:$4 sm:$0xff]  }
  0xd0   : > { %3002 = vmatprep.mubr.bf16.mxu1 %v10017_v2  ;;  %v8802_v2 = vld [vmem:[%s14136_s1 + $0x644] ss:$8 sps:$4 sm:$0xff]   ;;  %v625_v52 = vrot.slane %v623_v46, 2  ;;  %v8836_v46 = vld [vmem:[%s14136_s1 + $0x6e0] ss:$8 sps:$4 sm:$0xff]  }
  0xd1   : > { %3046 = vmatpush1.bf16.msra.mxu0 %v8788_v30  ;;  %v8820_v30 = vld [vmem:[%s14136_s1 + $0x614] ss:$8 sps:$4 sm:$0xff]  }
  0xd2   : > { %3129 = vmatpush1.bf16.msra.mxu1 %v8791_v40  ;;  %3047 = vmatprep.subr.bf16.mxu0 %v8796_v1  ;;  %v599_v40 = vor.u32 %v598_v35, %v595_v24  ;;  %v8821_v1 = vld [vmem:[%s14136_s1 + $0x710] ss:$8 sps:$4 sm:$0xff]   ;;  %v626_v36 = vor.u32 %v625_v52, %v622_v19  ;;  %v8844_v35 = vld [vmem:[%s14136_s1 + $0x6d4] ss:$8 sps:$4 sm:$0xff]   ;;  %v8848_v19 = vld [vmem:[%s14136_s1 + $0x6c0] ss:$8 sps:$4 sm:$0xff]  }
  0xd3   : > { %3130 = vmatprep.subr.bf16.mxu1 %v8799_v23  ;;  %v8826_v23 = vld [vmem:[%s14136_s1 + $0x604] ss:$8 sps:$4 sm:$0xff]   ;;  %v8851_v52 = vld [vmem:[%s14136_s1 + $0x7c0] ss:$8 sps:$4 sm:$0xff]  }
  0xd4   : > { %2920 = vmatmul.mubr.bf16.gmra.mxu0 %v564_v37  ;;  %v600_v8 = vsel %vm521_vm4, %v581_v25, %v599_v40  ;;  %v8824_v37 = vld [vmem:[%s14136_s1 + $0x600] ss:$8 sps:$4 sm:$0xff]  }
  0xd5   : > { %3003 = vmatmul.mubr.bf16.gmra.mxu1 %v10020_v54  ;;  %3048 = vmatpush1.bf16.msra.mxu0 %v8794_v38  ;;  %v8806_v54 = vld [vmem:[%s14136_s1 + $0x630] ss:$8 sps:$4 sm:$0xff]   ;;  %v8827_v38 = vld [vmem:[%s14136_s1 + $0x700] ss:$8 sps:$4 sm:$0xff]  }
  0xd6   : > { %3131 = vmatpush1.bf16.msra.mxu1 %v8797_v21  ;;  %3049 = vmatprep.subr.bf16.mxu0 %v8802_v2  ;;  %v627_v21 = vsel %vm521_vm4, %v608_v51, %v626_v36  ;;  %v8835_v2 = vld [vmem:[%s14136_s1 + $0x7f4] ss:$8 sps:$4 sm:$0xff]   ;;  %v8863_v36 = vld [vmem:[%s14136_s1 + $0x7a0] ss:$8 sps:$4 sm:$0xff]  }
  0xd7   : > { %3132 = vmatprep.subr.bf16.mxu1 %v8805_v13  ;;  %2929 = vmatprep.mubr.bf16.mxu0 %v591_v48  ;;  %v14182_v13 = vshrl.u32 %v9626_v55, 16 }
  0xd8   : > { %3012 = vmatprep.mubr.bf16.mxu1 %v10051_v50  ;;  %v582_v50 = vsel %vm521_vm4, %v563_v7, %v581_v25  ;;  %v611_v7 = vshrl.u32 %v10129_v59, 16  ;;  %v8829_v59 = vld [vmem:[%s14136_s1 + $0x704] ss:$8 sps:$4 sm:$0xff]   ;;  %v10572_v25 = vpack.c.bf16 %v9359_v16, %v9358_v22  ;;  %v8881_v22 = vld [vmem:[%s14136_s1 + $0x860] ss:$8 sps:$4 sm:$0xff]  }
  0xd9   : > { %3050 = vmatpush1.bf16.msra.mxu0 %v8800_v39  ;;  %v715_v39 = vrot.slane %v14182_v13, 2  ;;  %v675_v13 = vrot.slane %v9668_v10, 2  ;;  %v9360_v16 = vld [vmem:[%s9591_s10 + $0xa8] sm:$0xff] }
  0xda   : > { %3133 = vmatpush1.bf16.msra.mxu1 %v8803_v15  ;;  %3051 = vmatprep.subr.bf16.mxu0 %v8808_v60  ;;  %v613_v58 = vrot.slane %v611_v7, 1  ;;  %v14183_v15 = vshll.u32 %v9626_v55, 16  ;;  %v8830_v60 = vld [vmem:[%s14136_s1 + $0x6f0] ss:$8 sps:$4 sm:$0xff]   ;;  %v799_v51 = vrot.slane %v10572_v25, 3 }
  0xdb   : > { %3134 = vmatprep.subr.bf16.mxu1 %v8811_v32  ;;  %v8833_v32 = vld [vmem:[%s14136_s1 + $0x7f0] ss:$8 sps:$4 sm:$0xff]   ;;  %v8859_v7 = vld [vmem:[%s14136_s1 + $0x7b4] ss:$8 sps:$4 sm:$0xff]  }
  0xdc   : > { %2930 = vmatmul.mubr.bf16.gmra.mxu0 %v582_v50  ;;  %v716_v48 = vrot.slane %v14183_v15, 3  ;;  %v8839_v50 = vld [vmem:[%s14136_s1 + $0x7e0] ss:$8 sps:$4 sm:$0xff]   ;;  %v683_v15 = vrot.slane %v9780_v63, 2 }
  0xdd   : > { %3013 = vmatmul.mubr.bf16.gmra.mxu1 %v10064_v14  ;;  %3052 = vmatpush1.bf16.msra.mxu0 %v8806_v54  ;;  %v8818_v14 = vld [vmem:[%s14136_s1 + $0x610] ss:$8 sps:$4 sm:$0xff]   ;;  %v8841_v54 = vld [vmem:[%s14136_s1 + $0x7e4] ss:$8 sps:$4 sm:$0xff]  }
  0xde   : > { %3135 = vmatpush1.bf16.msra.mxu1 %v8809_v11  ;;  %3053 = vmatprep.subr.bf16.mxu0 %v8814_v33  ;;  %v679_v11 = vrot.slane %v9724_v34, 2  ;;  %v717_v33 = vor.u32 %v716_v48, %v715_v39  ;;  %v676_v39 = vrot.slane %v9741_v41, 2  ;;  %v8878_v48 = vld [vmem:[%s14136_s1 + $0x870] ss:$8 sps:$4 sm:$0xff]  }
  0xdf   : > { %3136 = vmatprep.subr.bf16.mxu1 %v8817_v31  ;;  %2939 = vmatprep.mubr.bf16.mxu0 %v609_v17 }
  0xe0   : > { %3022 = vmatprep.mubr.bf16.mxu1 %v10081_v29  ;;  %v303_v29 = vld [vmem:[%s9591_s10 + $0xc0] sm:$0xff]  ;;  %v721_v17 = vsel %vm707_vm3, %v717_v33, %v10208_v18 }
  0xe1   : > { %3054 = vmatpush1.bf16.msra.mxu0 %v8812_v42  ;;  %v10574_v44 = vpack.c.bf16 %v303_v29, %v303_v29  ;;  %v8847_v42 = vld [vmem:[%s14136_s1 + $0x7d4] ss:$8 sps:$4 sm:$0xff]   ;;  %v8853_v18 = vld [vmem:[%s14136_s1 + $0x7c4] ss:$8 sps:$4 sm:$0xff]   ;;  %v8869_v29 = vld [vmem:[%s14136_s1 + $0x790] ss:$8 sps:$4 sm:$0xff]  }
  0xe2   : > { %3137 = vmatpush1.bf16.msra.mxu1 %v8815_v56  ;;  %3055 = vmatprep.subr.bf16.mxu0 %v8820_v30  ;;  %v8845_v30 = vld [vmem:[%s14136_s1 + $0x7d0] ss:$8 sps:$4 sm:$0xff]  }
  0xe3   : > { %3138 = vmatprep.subr.bf16.mxu1 %v8823_v47  ;;  %v803_v9 = vrot.slane %v10574_v44, 3  ;;  %v8850_v47 = vld [vmem:[%s14136_s1 + $0x6c4] ss:$8 sps:$4 sm:$0xff]  }
  0xe4   : > { %2940 = vmatmul.mubr.bf16.gmra.mxu0 %v600_v8  ;;  %v8868_v8 = vld [vmem:[%s14136_s1 + $0x694] ss:$8 sps:$4 sm:$0xff]  }
  0xe5   : > { %3023 = vmatmul.mubr.bf16.gmra.mxu1 %v10094_v4  ;;  %3056 = vmatpush1.bf16.msra.mxu0 %v8818_v14  ;;  %v617_v4 = vor.u32 %v616_v43, %v613_v58  ;;  %v10596_v24 = vsel %vm14162_vm5, %v799_v51, %v803_v9  ;;  %v8857_v14 = vld [vmem:[%s14136_s1 + $0x7b0] ss:$8 sps:$4 sm:$0xff]   ;;  %v8871_v58 = vld [vmem:[%s14136_s1 + $0x794] ss:$8 sps:$4 sm:$0xff]  }
  0xe6   : > { %3139 = vmatpush1.bf16.msra.mxu1 %v8821_v1  ;;  %3057 = vmatprep.subr.bf16.mxu0 %v8826_v23  ;;  %v8862_v1 = vld [vmem:[%s14136_s1 + $0x6a4] ss:$8 sps:$4 sm:$0xff]   ;;  %v8866_v43 = vld [vmem:[%s14136_s1 + $0x690] ss:$8 sps:$4 sm:$0xff]  }
  0xe7   : > { %3140 = vmatprep.subr.bf16.mxu1 %v8829_v59  ;;  %2949 = vmatprep.mubr.bf16.mxu0 %v627_v21  ;;  %v618_v31 = vsel %vm521_vm4, %v599_v40, %v617_v4  ;;  %v8856_v40 = vld [vmem:[%s14136_s1 + $0x6b4] ss:$8 sps:$4 sm:$0xff]   ;;  %v8865_v23 = vld [vmem:[%s14136_s1 + $0x7a4] ss:$8 sps:$4 sm:$0xff]   ;;  %v8860_v59 = vld [vmem:[%s14136_s1 + $0x6a0] ss:$8 sps:$4 sm:$0xff]  }
  0xe8   : > { %3032 = vmatprep.mubr.bf16.mxu1 %v10154_v0  ;;  %v678_v0 = vrot.slane %v9626_v55, 2  ;;  %v8872_v21 = vld [vmem:[%s14136_s1 + $0x680] ss:$8 sps:$4 sm:$0xff]   ;;  %v8883_v4 = vld [vmem:[%s14136_s1 + $0x864] ss:$8 sps:$4 sm:$0xff]  }
  0xe9   : > { %3058 = vmatpush1.bf16.msra.mxu0 %v8824_v37  ;;  %v8874_v37 = vld [vmem:[%s14136_s1 + $0x684] ss:$8 sps:$4 sm:$0xff]  }
  0xea   : > { %3141 = vmatpush1.bf16.msra.mxu1 %v8827_v38  ;;  %3059 = vmatprep.subr.bf16.mxu0 %v8832_v49  ;;  %v680_v56 = vsel %vm638_vm2, %v678_v0, %v679_v11  ;;  %v8877_v38 = vld [vmem:[%s14136_s1 + $0x784] ss:$8 sps:$4 sm:$0xff]   ;;  %v8875_v49 = vld [vmem:[%s14136_s1 + $0x780] ss:$8 sps:$4 sm:$0xff]  }
  0xeb   : > { %3142 = vmatprep.subr.bf16.mxu1 %v8835_v2  ;;  %v8880_v2 = vld [vmem:[%s14136_s1 + $0x874] ss:$8 sps:$4 sm:$0xff]  }
  0xec   : > { %2950 = vmatmul.mubr.bf16.gmra.mxu0 %v618_v31  ;;  %v8886_v31 = vld [vmem:[%s14136_s1 + $0x854] ss:$8 sps:$4 sm:$0xff]  }
  0xed   : > { %3033 = vmatmul.mubr.bf16.gmra.mxu1 %v10157_v6  ;;  %3060 = vmatpush2.bf16.msra.mxu0 %v8830_v60  ;;  %v8842_v6 = vld [vmem:[%s14136_s1 + $0x6d0] ss:$8 sps:$4 sm:$0xff]   ;;  %v677_v60 = vsel %vm638_vm2, %v675_v13, %v676_v39 }
  0xee   : > { %3143 = vmatpush2.bf16.msra.mxu1 %v8833_v32  ;;  %3061 = vmatprep.subr.bf16.mxu0 %v8838_v3  ;;  %v684_v32 = vsel %vm638_vm2, %v679_v11, %v683_v15  ;;  %v9361_v3 = vld [vmem:[%s9591_s10 + $0xb8] sm:$0xff]  ;;  %v681_v11 = vrot.slane %v9801_v12, 2 }
  0xef   : > { %3144 = vmatprep.subr.bf16.mxu1 %v8841_v54  ;;  %3075 = vmatprep.mubr.bf16.mxu0 %v680_v56  ;;  %v10697_v54 = vpack.c.bf16 %v9361_v3, %v9360_v16 }
  0xf0   : > { %3158 = vmatprep.mubr.bf16.mxu1 %v721_v17 }
  0xf1   : > { %3062 = vmatpush2.bf16.msra.mxu0 %v8836_v46  ;;  %v748_v17 = vshrl.u32 %v10697_v54, 16 }
  0xf2   : > { %3145 = vmatpush2.bf16.msra.mxu1 %v8839_v50  ;;  %3063 = vmatprep.subr.bf16.mxu0 %v8844_v35  ;;  %v687_v35 = vrot.slane %v9837_v27, 2 }
  0xf3   : > { %3146 = vmatprep.subr.bf16.mxu1 %v8847_v42  ;;  %v304_v42 = vld [vmem:[%s9591_s10 + $0xc8] sm:$0xff] }
  0xf5   : > { %3064 = vmatpush2.bf16.msra.mxu0 %v8842_v6  ;;  %v751_v6 = vshll.u32 %v10697_v54, 16 }
  0xf6   : > { %3147 = vmatpush2.bf16.msra.mxu1 %v8845_v30  ;;  %3065 = vmatprep.subr.bf16.mxu0 %v8850_v47 }
  0xf7   : > { %3148 = vmatprep.subr.bf16.mxu1 %v8853_v18  ;;  %v8889_v18 = vld [vmem:[%s14136_s1 + $0x844] ss:$8 sps:$4 sm:$0xff]  }
  0xf9   : > { %3066 = vmatpush2.bf16.msra.mxu0 %v8848_v19  ;;  %v682_v19 = vsel %vm638_vm2, %v676_v39, %v681_v11 }
  0xfa   : > { %3149 = vmatpush2.bf16.msra.mxu1 %v8851_v52  ;;  %3067 = vmatprep.subr.bf16.mxu0 %v8856_v40 }
  0xfb   : > { %3150 = vmatprep.subr.bf16.mxu1 %v8859_v7  ;;  %v688_v7 = vsel %vm638_vm2, %v683_v15, %v687_v35 }
  0xfd   : > { %3068 = vmatpush2.bf16.msra.mxu0 %v8854_v57  ;;  %v8887_v57 = vld [vmem:[%s14136_s1 + $0x840] ss:$8 sps:$4 sm:$0xff]  }
  0xfe   : > { %3151 = vmatpush2.bf16.msra.mxu1 %v8857_v14  ;;  %3069 = vmatprep.subr.bf16.mxu0 %v8862_v1  ;;  %v750_v14 = vrot.slane %v748_v17, 2  ;;  %v753_v1 = vrot.slane %v751_v6, 3 }
  0xff   : > { %3152 = vmatprep.subr.bf16.mxu1 %v8865_v23  ;;  %v10730_v23 = vpack.c.bf16 %v304_v42, %v304_v42  ;;  %v689_v42 = vrot.slane %v10572_v25, 2 }
 0x101   : > { %3070 = vmatpush2.bf16.msra.mxu0 %v8860_v59  ;;  %v8892_v59 = vld [vmem:[%s14136_s1 + $0x834] ss:$8 sps:$4 sm:$0xff]   ;;  %v766_v39 = vshrl.u32 %v10730_v23, 16  ;;  %v769_v15 = vshll.u32 %v10730_v23, 16 }
 0x102   : > { %3153 = vmatpush2.bf16.msra.mxu1 %v8863_v36  ;;  %3071 = vmatprep.subr.bf16.mxu0 %v8868_v8 }
 0x103   : > { %3154 = vmatprep.subr.bf16.mxu1 %v8871_v58  ;;  %v685_v58 = vrot.slane %v9858_v45, 2 }
 0x105   : > { %3072 = vmatpush2.bf16.msra.mxu0 %v8866_v43  ;;  %v739_v43 = vshrl.u32 %v10572_v25, 16 }
 0x106   : > { %3155 = vmatpush2.bf16.msra.mxu1 %v8869_v29  ;;  %3073 = vmatprep.subr.bf16.mxu0 %v8874_v37  ;;  %v742_v29 = vshll.u32 %v10572_v25, 16  ;;  %v8926_v25 = vld [vmem:[%s14137_s2 + $0x70] ss:$8 sps:$4 sm:$0xff]  }
 0x107   : > { %3156 = vmatprep.subr.bf16.mxu1 %v8877_v38 }
 0x109   : > { %3074 = vmatpush2.bf16.msra.mxu0 %v8872_v21 }
 0x10a   : > { %3157 = vmatpush2.bf16.msra.mxu1 %v8875_v49  ;;  %3209 = vmatprep.subr.bf16.mxu0 %v8880_v2  ;;  %v8890_v49 = vld [vmem:[%s14136_s1 + $0x830] ss:$8 sps:$4 sm:$0xff]   ;;  %v754_v2 = vor.u32 %v753_v1, %v750_v14  ;;  %v690_v1 = vsel %vm638_vm2, %v685_v58, %v689_v42 }
 0x10c   : > { %v2579_v0 = vpop.f32.mrf.mxu0  ;;  %3076 = vmatmul.mubr.bf16.vlgmr.msra.gmra.mxu0 %v677_v60  ;;  %v686_v60 = vsel %vm638_vm2, %v681_v11, %v685_v58  ;;  %v771_v11 = vrot.slane %v769_v15, 3  ;;  %v8899_v15 = vld [vmem:[%s14136_s1 + $0x800] ss:$8 sps:$4 sm:$0xff]  }
 0x10d   : > { %v2662_v33 = vpop.f32.mrf.mxu1  ;;  %3159 = vmatmul.mubr.bf16.vlgmr.msra.gmra.mxu1 %v10180_v62  ;;  %3210 = vmatpush1.bf16.msra.mxu0 %v8878_v48  ;;  %v8884_v62 = vld [vmem:[%s14136_s1 + $0x850] ss:$8 sps:$4 sm:$0xff]   ;;  %v8895_v48 = vld [vmem:[%s14136_s1 + $0x824] ss:$8 sps:$4 sm:$0xff]  }
 0x10e   : > { %v10703_v9 = vadd.f32 %v2662_v33, %v2579_v0  ;;  %3085 = vmatprep.mubr.bf16.mxu0 %v684_v32  ;;  %v2581_v46 = vpop.f32.mrf.mxu0  ;;  %3211 = vmatprep.subr.bf16.mxu0 %v8883_v4  ;;  %v741_v32 = vrot.slane %v739_v43, 2 }
 0x10f   : > { %v2664_v50 = vpop.f32.mrf.mxu1  ;;  %3168 = vmatprep.mubr.bf16.mxu1 %v10224_v26 }
 0x110   : > { %v10709_v56 = vadd.f32 %v2664_v50, %v2581_v46  ;;  %v2583_v30 = vpop.f32.mrf.mxu0  ;;  %v755_v46 = vsel %vm707_vm3, %v10257_v20, %v754_v2  ;;  %v768_v50 = vrot.slane %v766_v39, 2  ;;  %v760_v20 = vshll.u32 %v10574_v44, 16 }
 0x111   : > { %v2666_v47 = vpop.f32.mrf.mxu1  ;;  %3212 = vmatpush1.bf16.msra.mxu0 %v8881_v22  ;;  %v744_v22 = vrot.slane %v742_v29, 3 }
 0x112   : > { %v10719_v26 = vadd.f32 %v2666_v47, %v2583_v30  ;;  %v10722_v52 = vpop.f32.mrf.mxu0  ;;  %3213 = vmatprep.subr.bf16.mxu0 %v8886_v31  ;;  %v8893_v31 = vld [vmem:[%s14136_s1 + $0x820] ss:$8 sps:$4 sm:$0xff]   ;;  %v757_v30 = vshrl.u32 %v10574_v44, 16 }
 0x113   : > { %v10724_v40 = vpop.f32.mrf.mxu1  ;;  %v745_v6 = vor.u32 %v744_v22, %v741_v32 }
 0x114   : > { %3086 = vmatmul.mubr.bf16.gmra.mxu0 %v682_v19  ;;  %v2589_v36 = vpop.f32.mrf.mxu0  ;;  %v759_v29 = vrot.slane %v757_v30, 2 }
 0x115   : > { %3169 = vmatmul.mubr.bf16.gmra.mxu1 %v10234_v53  ;;  %v2672_v8 = vpop.f32.mrf.mxu1  ;;  %3214 = vmatpush1.bf16.msra.mxu0 %v8884_v62  ;;  %v691_v53 = vrot.slane %v10697_v54, 2  ;;  %v746_v43 = vsel %vm707_vm3, %v10275_v61, %v745_v6  ;;  %v8904_v61 = vld [vmem:[%s14136_s1 + $0x8f4] ss:$8 sps:$4 sm:$0xff]  }
 0x116   : > { %3095 = vmatprep.mubr.bf16.mxu0 %v688_v7  ;;  %v10739_v37 = vadd.f32 %v2672_v8, %v2589_v36  ;;  %3215 = vmatprep.subr.bf16.mxu0 %v8889_v18  ;;  %v2591_v38 = vpop.f32.mrf.mxu0  ;;  %v8896_v7 = vld [vmem:[%s14136_s1 + $0x810] ss:$8 sps:$4 sm:$0xff]  }
 0x117   : > { %3178 = vmatprep.mubr.bf16.mxu1 %v10273_v5  ;;  %v2674_v21 = vpop.f32.mrf.mxu1  ;;  %v692_v3 = vsel %vm638_vm2, %v687_v35, %v691_v53  ;;  %v8898_v35 = vld [vmem:[%s14136_s1 + $0x814] ss:$8 sps:$4 sm:$0xff]  }
 0x118   : > { %v10746_v13 = vadd.f32 %v2674_v21, %v2591_v38  ;;  %v2593_v5 = vpop.f32.mrf.mxu0  ;;  %v762_v38 = vrot.slane %v760_v20, 3 }
 0x119   : > { %v2676_v4 = vpop.f32.mrf.mxu1  ;;  %3216 = vmatpush1.bf16.msra.mxu0 %v8887_v57  ;;  %v772_v57 = vor.u32 %v771_v11, %v768_v50 }
 0x11a   : > { %v10754_v16 = vadd.f32 %v2676_v4, %v2593_v5  ;;  %3217 = vmatprep.subr.bf16.mxu0 %v8892_v59  ;;  %v10757_v0 = vpop.f32.mrf.mxu0  ;;  %v8901_v59 = vld [vmem:[%s14136_s1 + $0x804] ss:$8 sps:$4 sm:$0xff]  }
 0x11b   : > { %v10759_v33 = vpop.f32.mrf.mxu1 }
 0x11c   : > { %3096 = vmatmul.mubr.bf16.gmra.mxu0 %v686_v60  ;;  %v2599_v62 = vpop.f32.mrf.mxu0  ;;  %v763_v60 = vor.u32 %v762_v38, %v759_v29  ;;  %v8911_v38 = vld [vmem:[%s14136_s1 + $0x8c0] ss:$8 sps:$4 sm:$0xff]  }
 0x11d   : > { %3179 = vmatmul.mubr.bf16.gmra.mxu1 %v10289_v28  ;;  %v2682_v17 = vpop.f32.mrf.mxu1  ;;  %3218 = vmatpush1.bf16.msra.mxu0 %v8890_v49  ;;  %v695_v28 = vrot.slane %v10730_v23, 2 }
 0x11e   : > { %3105 = vmatprep.mubr.bf16.mxu0 %v692_v3  ;;  %v10773_v47 = vadd.f32 %v2682_v17, %v2599_v62  ;;  %3219 = vmatprep.subr.bf16.mxu0 %v8895_v48  ;;  %v2601_v18 = vpop.f32.mrf.mxu0  ;;  %v773_v48 = vsel %vm707_vm3, %v754_v2, %v772_v57  ;;  %v788_v2 = vrot.slane %v9626_v55, 3  ;;  %v764_v17 = vsel %vm707_vm3, %v745_v6, %v763_v60  ;;  %v8923_v60 = vld [vmem:[%s14136_s1 + $0x880] ss:$8 sps:$4 sm:$0xff]  }
 0x11f   : > { %3188 = vmatprep.mubr.bf16.mxu1 %v755_v46  ;;  %v2684_v19 = vpop.f32.mrf.mxu1  ;;  %v696_v49 = vsel %vm638_vm2, %v691_v53, %v695_v28  ;;  %v693_v53 = vrot.slane %v10574_v44, 2  ;;  %v8902_v46 = vld [vmem:[%s14136_s1 + $0x8f0] ss:$8 sps:$4 sm:$0xff]   ;;  %v8907_v44 = vld [vmem:[%s14136_s1 + $0x8e4] ss:$8 sps:$4 sm:$0xff]  }
 0x120   : > { %v10779_v14 = vadd.f32 %v2684_v19, %v2601_v18  ;;  %v2603_v36 = vpop.f32.mrf.mxu0  ;;  %v8905_v28 = vld [vmem:[%s14136_s1 + $0x8e0] ss:$8 sps:$4 sm:$0xff]  }
 0x121   : > { %v2686_v8 = vpop.f32.mrf.mxu1  ;;  %3220 = vmatpush1.bf16.msra.mxu0 %v8893_v31  ;;  %v789_v31 = vrot.slane %v9724_v34, 3  ;;  %v694_v62 = vsel %vm638_vm2, %v689_v42, %v693_v53  ;;  %v8910_v42 = vld [vmem:[%s14136_s1 + $0x8d4] ss:$8 sps:$4 sm:$0xff]   ;;  %v8925_v53 = vld [vmem:[%s14136_s1 + $0x884] ss:$8 sps:$4 sm:$0xff]  }
 0x122   : > { %v10787_v21 = vadd.f32 %v2686_v8, %v2603_v36  ;;  %3221 = vmatprep.subr.bf16.mxu0 %v8898_v35  ;;  %v10790_v39 = vpop.f32.mrf.mxu0  ;;  %v8913_v36 = vld [vmem:[%s14136_s1 + $0x8c4] ss:$8 sps:$4 sm:$0xff]  }
 0x123   : > { %v10792_v58 = vpop.f32.mrf.mxu1  ;;  %v790_v20 = vsel %vm14162_vm5, %v788_v2, %v789_v31  ;;  %v793_v2 = vrot.slane %v9780_v63, 3  ;;  %v797_v63 = vrot.slane %v9837_v27, 3 }
 0x124   : > { %3106 = vmatmul.mubr.bf16.gmra.mxu0 %v690_v1  ;;  %v2609_v5 = vpop.f32.mrf.mxu0  ;;  %v8908_v1 = vld [vmem:[%s14136_s1 + $0x8d0] ss:$8 sps:$4 sm:$0xff]  }
 0x125   : > { %3189 = vmatmul.mubr.bf16.gmra.mxu1 %v746_v43  ;;  %v2692_v4 = vpop.f32.mrf.mxu1  ;;  %3222 = vmatpush1.bf16.msra.mxu0 %v8896_v7 }
 0x126   : > { %3115 = vmatprep.mubr.bf16.mxu0 %v696_v49  ;;  %v10802_v32 = vadd.f32 %v2692_v4, %v2609_v5  ;;  %3223 = vmatprep.subr.bf16.mxu0 %v8901_v59  ;;  %v2611_v22 = vpop.f32.mrf.mxu0  ;;  %v8916_v49 = vld [vmem:[%s14136_s1 + $0x8b4] ss:$8 sps:$4 sm:$0xff]   ;;  %v8920_v4 = vld [vmem:[%s14136_s1 + $0x890] ss:$8 sps:$4 sm:$0xff]  }
 0x127   : > { %3198 = vmatprep.mubr.bf16.mxu1 %v773_v48  ;;  %v2694_v3 = vpop.f32.mrf.mxu1  ;;  %v8919_v48 = vld [vmem:[%s14136_s1 + $0x8a4] ss:$8 sps:$4 sm:$0xff]   ;;  %v8922_v5 = vld [vmem:[%s14136_s1 + $0x894] ss:$8 sps:$4 sm:$0xff]  }
 0x128   : > { %v10809_v50 = vadd.f32 %v2694_v3, %v2611_v22  ;;  %v2613_v11 = vpop.f32.mrf.mxu0  ;;  %v785_v22 = vrot.slane %v9668_v10, 3  ;;  %v786_v3 = vrot.slane %v9741_v41, 3  ;;  %v791_v10 = vrot.slane %v9801_v12, 3 }
 0x129   : > { %v2696_v35 = vpop.f32.mrf.mxu1  ;;  %3224 = vmatpush1.bf16.msra.mxu0 %v8899_v15  ;;  %v8914_v15 = vld [vmem:[%s14136_s1 + $0x8b0] ss:$8 sps:$4 sm:$0xff]   ;;  %v798_v12 = vsel %vm14162_vm5, %v793_v2, %v797_v63 }
 0x12a   : > { %v10816_v55 = vadd.f32 %v2696_v35, %v2613_v11  ;;  %3225 = vmatprep.subr.bf16.mxu0 %v8904_v61  ;;  %v10818_v34 = vpop.f32.mrf.mxu0  ;;  %v8917_v61 = vld [vmem:[%s14136_s1 + $0x8a0] ss:$8 sps:$4 sm:$0xff]   ;;  %v794_v35 = vsel %vm14162_vm5, %v789_v31, %v793_v2 }
 0x12b   : > { %v10820_v30 = vpop.f32.mrf.mxu1 }
 0x12c   : > { %3116 = vmatmul.mubr.bf16.gmra.mxu0 %v694_v62  ;;  %v2619_v6 = vpop.f32.mrf.mxu0 }
 0x12d   : > { %3199 = vmatmul.mubr.bf16.gmra.mxu1 %v764_v17  ;;  %v2702_v18 = vpop.f32.mrf.mxu1  ;;  %3226 = vmatpush2.bf16.msra.mxu0 %v8902_v46  ;;  %v787_v46 = vsel %vm14162_vm5, %v785_v22, %v786_v3 }
 0x12e   : > { %v10829_v19 = vadd.f32 %v2702_v18, %v2619_v6  ;;  %3241 = vmatprep.mubr.bf16.mxu0 %v790_v20  ;;  %3227 = vmatprep.subr.bf16.mxu0 %v8907_v44  ;;  %v2621_v7 = vpop.f32.mrf.mxu0 }
 0x12f   : > { %v2704_v57 = vpop.f32.mrf.mxu1 }
 0x130   : > { %v10834_v59 = vadd.f32 %v2704_v57, %v2621_v7  ;;  %v2623_v8 = vpop.f32.mrf.mxu0 }
 0x131   : > { %v2706_v43 = vpop.f32.mrf.mxu1  ;;  %3228 = vmatpush2.bf16.msra.mxu0 %v8905_v28 }
 0x132   : > { %v10839_v29 = vadd.f32 %v2706_v43, %v2623_v8  ;;  %3229 = vmatprep.subr.bf16.mxu0 %v8910_v42  ;;  %v10872_v44 = vpop.f32.mrf.mxu0 }
 0x133   : > { %v10874_v11 = vpop.f32.mrf.mxu1 }
 0x135   : > { %3230 = vmatpush2.bf16.msra.mxu0 %v8908_v1  ;;  %v792_v1 = vsel %vm14162_vm5, %v786_v3, %v791_v10 }
 0x136   : > { %3231 = vmatprep.subr.bf16.mxu0 %v8913_v36 }
 0x139   : > { %3232 = vmatpush2.bf16.msra.mxu0 %v8911_v38 }
 0x13a   : > { %3233 = vmatprep.subr.bf16.mxu0 %v8916_v49 }
 0x13d   : > { %3234 = vmatpush2.bf16.msra.mxu0 %v8914_v15  ;;  %v801_v15 = vrot.slane %v10697_v54, 3 }
 0x13e   : > { %3235 = vmatprep.subr.bf16.mxu0 %v8919_v48 }
 0x141   : > { %3236 = vmatpush2.bf16.msra.mxu0 %v8917_v61 }
 0x142   : > { %3237 = vmatprep.subr.bf16.mxu0 %v8922_v5 }
 0x145   : > { %3238 = vmatpush2.bf16.msra.mxu0 %v8920_v4 }
 0x146   : > { %3239 = vmatprep.subr.bf16.mxu0 %v8925_v53 }
 0x149   : > { %3240 = vmatpush2.bf16.msra.mxu0 %v8923_v60 }
 0x14c   : > { %v2745_v62 = vpop.f32.mrf.mxu0  ;;  %3242 = vmatmul.mubr.bf16.vlgmr.msra.gmra.mxu0 %v787_v46 }
 0x14d   : > { %v2828_v17 = vpop.f32.mrf.mxu1  ;;  %v2746_v20 = vadd.f32 %v2745_v62, %v10703_v9  ;;  %3251 = vmatprep.mubr.bf16.mxu0 %v794_v35  ;;  %v805_v62 = vrot.slane %v10730_v23, 3 }
 0x14e   : > { %v2747_v41 = vpop.f32.mrf.mxu0 }
 0x14f   : > { %v2830_v28 = vpop.f32.mrf.mxu1  ;;  %v2748_v42 = vadd.f32 %v2747_v41, %v10709_v56  ;;  %v10881_v6 = vadd.f32 %v2828_v17, %v2746_v20  ;;  %v806_v23 = vsel %vm14162_vm5, %v801_v15, %v805_v62 }
 0x150   : > { %v2749_v18 = vpop.f32.mrf.mxu0 }
 0x151   : > { %v2832_v7 = vpop.f32.mrf.mxu1  ;;  %v2750_v31 = vadd.f32 %v2749_v18, %v10719_v26  ;;  %v10884_v57 = vadd.f32 %v2830_v28, %v2748_v42  ;;  %v795_v26 = vrot.slane %v9858_v45, 3  ;;  %v802_v45 = vsel %vm14162_vm5, %v797_v63, %v801_v15 }
 0x152   : > { %v10887_v9 = vpop.f32.mrf.mxu0 }
 0x153   : > { %v10889_v36 = vpop.f32.mrf.mxu1  ;;  %v10892_v8 = vadd.f32 %v2832_v7, %v2750_v31  ;;  %v796_v22 = vsel %vm14162_vm5, %v791_v10, %v795_v26  ;;  %v800_v42 = vsel %vm14162_vm5, %v795_v26, %v799_v51 }
 0x154   : > { %v2755_v27 = vpop.f32.mrf.mxu0  ;;  %3252 = vmatmul.mubr.bf16.gmra.mxu0 %v792_v1 }
 0x155   : > { %v2838_v56 = vpop.f32.mrf.mxu1  ;;  %v2756_v43 = vadd.f32 %v2755_v27, %v10739_v37  ;;  %3261 = vmatprep.mubr.bf16.mxu0 %v798_v12 }
 0x156   : > { %v2757_v38 = vpop.f32.mrf.mxu0 }
 0x157   : > { %v2840_v49 = vpop.f32.mrf.mxu1  ;;  %v2758_v48 = vadd.f32 %v2757_v38, %v10746_v13  ;;  %v10898_v61 = vadd.f32 %v2838_v56, %v2756_v43  ;;  %v8931_v43 = vld [vmem:[%s14137_s2 + $0x64] ss:$8 sps:$4 sm:$0xff]  }
 0x158   : > { %v2759_v5 = vpop.f32.mrf.mxu0 }
 0x159   : > { %v2842_v4 = vpop.f32.mrf.mxu1  ;;  %v2760_v53 = vadd.f32 %v2759_v5, %v10754_v16  ;;  %v10901_v60 = vadd.f32 %v2840_v49, %v2758_v48  ;;  %v8929_v49 = vld [vmem:[%s14137_s2 + $0x60] ss:$8 sps:$4 sm:$0xff]  }
 0x15a   : > { %v10904_v37 = vpop.f32.mrf.mxu0 }
 0x15b   : > { %v10906_v3 = vpop.f32.mrf.mxu1  ;;  %v10909_v2 = vadd.f32 %v2842_v4, %v2760_v53  ;;  %v8934_v4 = vld [vmem:[%s14137_s2 + $0x54] ss:$8 sps:$4 sm:$0xff]  }
 0x15c   : > { %v2765_v54 = vpop.f32.mrf.mxu0  ;;  %3262 = vmatmul.mubr.bf16.gmra.mxu0 %v796_v22 }
 0x15d   : > { %v2848_v13 = vpop.f32.mrf.mxu1  ;;  %v2766_v46 = vadd.f32 %v2765_v54, %v10773_v47  ;;  %3271 = vmatprep.mubr.bf16.mxu0 %v802_v45 }
 0x15e   : > { %v2767_v35 = vpop.f32.mrf.mxu0 }
 0x15f   : > { %v2850_v16 = vpop.f32.mrf.mxu1  ;;  %v2768_v17 = vadd.f32 %v2767_v35, %v10779_v14  ;;  %v10914_v20 = vadd.f32 %v2848_v13, %v2766_v46  ;;  %v8928_v14 = vld [vmem:[%s14137_s2 + $0x74] ss:$8 sps:$4 sm:$0xff]  }
 0x160   : > { %v2769_v10 = vpop.f32.mrf.mxu0  ;;  %6867 = vmatprep.subr.bf16.mxu1 %v8928_v14  ;;  %v8944_v14 = vld [vmem:[%s14137_s2 + $0x160] ss:$8 sps:$4 sm:$0xff]  }
 0x161   : > { %v2852_v41 = vpop.f32.mrf.mxu1  ;;  %v2770_v28 = vadd.f32 %v2769_v10, %v10787_v21  ;;  %v10917_v63 = vadd.f32 %v2850_v16, %v2768_v17  ;;  %6868 = vmatpush1.bf16.msra.mxu1 %v8926_v25  ;;  %v8937_v16 = vld [vmem:[%s14137_s2 + $0x44] ss:$8 sps:$4 sm:$0xff]   ;;  %v8935_v17 = vld [vmem:[%s14137_s2 + $0x40] ss:$8 sps:$4 sm:$0xff]   ;;  %v8952_v25 = vld [vmem:[%s14137_s2 + $0x154] ss:$8 sps:$4 sm:$0xff]  }
 0x162   : > { %v10922_v47 = vpop.f32.mrf.mxu0  ;;  %6869 = vmatprep.subr.bf16.mxu1 %v8931_v43  ;;  %v8956_v43 = vld [vmem:[%s14137_s2 + $0x140] ss:$8 sps:$4 sm:$0xff]  }
 0x163   : > { %v10924_v18 = vpop.f32.mrf.mxu1  ;;  %v10927_v7 = vadd.f32 %v2852_v41, %v2770_v28 }
 0x164   : > { %v2775_v31 = vpop.f32.mrf.mxu0  ;;  %3272 = vmatmul.mubr.bf16.gmra.mxu0 %v800_v42  ;;  %v8943_v42 = vld [vmem:[%s14137_s2 + $0x34] ss:$8 sps:$4 sm:$0xff]  }
 0x165   : > { %v2858_v21 = vpop.f32.mrf.mxu1  ;;  %v2776_v51 = vadd.f32 %v2775_v31, %v10802_v32  ;;  %3281 = vmatprep.mubr.bf16.mxu0 %v806_v23  ;;  %6870 = vmatpush1.bf16.msra.mxu1 %v8929_v49  ;;  %v8946_v23 = vld [vmem:[%s14137_s2 + $0x164] ss:$8 sps:$4 sm:$0xff]   ;;  %v8959_v49 = vld [vmem:[%s14137_s2] ss:$8 sps:$4 sm:$0xff]  }
 0x166   : > { %v2777_v1 = vpop.f32.mrf.mxu0  ;;  %6871 = vmatprep.subr.bf16.mxu1 %v8934_v4  ;;  %v8949_v31 = vld [vmem:[%s14137_s2 + $0x24] ss:$8 sps:$4 sm:$0xff]   ;;  %v8967_v4 = vld [vmem:[%s14137_s2 + $0xf4] ss:$8 sps:$4 sm:$0xff]  }
 0x167   : > { %v2860_v12 = vpop.f32.mrf.mxu1  ;;  %v2778_v27 = vadd.f32 %v2777_v1, %v10809_v50  ;;  %v10937_v56 = vadd.f32 %v2858_v21, %v2776_v51  ;;  %v8947_v21 = vld [vmem:[%s14137_s2 + $0x20] ss:$8 sps:$4 sm:$0xff]   ;;  %v8950_v51 = vld [vmem:[%s14137_s2 + $0x150] ss:$8 sps:$4 sm:$0xff]   ;;  %v8955_v1 = vld [vmem:[%s14137_s2 + $0x14] ss:$8 sps:$4 sm:$0xff]  }
 0x168   : > { %v2779_v26 = vpop.f32.mrf.mxu0 }
 0x169   : > { %v2862_v38 = vpop.f32.mrf.mxu1  ;;  %v2780_v32 = vadd.f32 %v2779_v26, %v10816_v55  ;;  %v10946_v15 = vadd.f32 %v2860_v12, %v2778_v27  ;;  %v8932_v55 = vld [vmem:[%s14137_s2 + $0x50] ss:$8 sps:$4 sm:$0xff]   ;;  %v8958_v12 = vld [vmem:[%s14137_s2 + $0x144] ss:$8 sps:$4 sm:$0xff]  }
 0x16a   : > { %v10948_v48 = vpop.f32.mrf.mxu0  ;;  %6872 = vmatpush1.bf16.msra.mxu1 %v8932_v55  ;;  %v8953_v27 = vld [vmem:[%s14137_s2 + $0x10] ss:$8 sps:$4 sm:$0xff]   ;;  %v8961_v26 = vld [vmem:[%s14137_s2 + $0x4] ss:$8 sps:$4 sm:$0xff]   ;;  %v8968_v55 = vld [vmem:[%s14137_s2 + $0x120] ss:$8 sps:$4 sm:$0xff]  }
 0x16b   : > { %v10950_v50 = vpop.f32.mrf.mxu1  ;;  %v10952_v5 = vadd.f32 %v2862_v38, %v2780_v32  ;;  %6873 = vmatprep.subr.bf16.mxu1 %v8937_v16  ;;  %v8964_v38 = vld [vmem:[%s14137_s2 + $0x134] ss:$8 sps:$4 sm:$0xff]   ;;  %v8962_v32 = vld [vmem:[%s14137_s2 + $0x130] ss:$8 sps:$4 sm:$0xff]  }
 0x16c   : > { %v2785_v53 = vpop.f32.mrf.mxu0  ;;  %3282 = vmatmul.mubr.bf16.gmra.mxu0 %v10596_v24 }
 0x16d   : > { %v2868_v22 = vpop.f32.mrf.mxu1  ;;  %v2786_v45 = vadd.f32 %v2785_v53, %v10829_v19  ;;  %v8940_v19 = vld [vmem:[%s14137_s2 + $0x174] ss:$8 sps:$4 sm:$0xff]   ;;  %v8965_v53 = vld [vmem:[%s14137_s2 + $0xf0] ss:$8 sps:$4 sm:$0xff]  }
 0x16e   : > { %v2787_v54 = vpop.f32.mrf.mxu0  ;;  %6874 = vmatpush1.bf16.msra.mxu1 %v8935_v17  ;;  %6950 = vmatprep.subr.bf16.mxu0 %v8940_v19  ;;  %v8979_v19 = vld [vmem:[%s14137_s2 + $0xd4] ss:$8 sps:$4 sm:$0xff]  }
 0x16f   : > { %v2870_v13 = vpop.f32.mrf.mxu1  ;;  %v2788_v46 = vadd.f32 %v2787_v54, %v10834_v59  ;;  %v10963_v35 = vadd.f32 %v2868_v22, %v2786_v45  ;;  %v8938_v59 = vld [vmem:[%s14137_s2 + $0x170] ss:$8 sps:$4 sm:$0xff]   ;;  %6875 = vmatprep.subr.bf16.mxu1 %v8943_v42  ;;  %v8970_v22 = vld [vmem:[%s14137_s2 + $0x124] ss:$8 sps:$4 sm:$0xff]   ;;  %v8971_v54 = vld [vmem:[%s14137_s2 + $0xe0] ss:$8 sps:$4 sm:$0xff]  }
 0x170   : > { %v2789_v24 = vpop.f32.mrf.mxu0  ;;  %6951 = vmatpush1.bf16.msra.mxu0 %v8938_v59  ;;  %v8973_v45 = vld [vmem:[%s14137_s2 + $0xe4] ss:$8 sps:$4 sm:$0xff]   ;;  %v8977_v59 = vld [vmem:[%s14137_s2 + $0xd0] ss:$8 sps:$4 sm:$0xff]  }
 0x171   : > { %v2872_v62 = vpop.f32.mrf.mxu1  ;;  %v2790_v10 = vadd.f32 %v2789_v24, %v10839_v29  ;;  %v10975_v41 = vadd.f32 %v2870_v13, %v2788_v46  ;;  %v8941_v29 = vld [vmem:[%s14137_s2 + $0x30] ss:$8 sps:$4 sm:$0xff]   ;;  %6952 = vmatprep.subr.bf16.mxu0 %v8946_v23  ;;  %v8976_v13 = vld [vmem:[%s14137_s2 + $0x114] ss:$8 sps:$4 sm:$0xff]   ;;  %v8982_v42 = vld [vmem:[%s14137_s2 + $0x104] ss:$8 sps:$4 sm:$0xff]  }
 0x172   : > { %6876 = vmatpush1.bf16.msra.mxu1 %v8941_v29  ;;  %v8974_v46 = vld [vmem:[%s14137_s2 + $0x110] ss:$8 sps:$4 sm:$0xff]   ;;  %v11054_v16 = vpop.f32.mrf.mxu0 }
 0x173   : > { %v10980_v28 = vadd.f32 %v2872_v62, %v2790_v10  ;;  %6877 = vmatprep.subr.bf16.mxu1 %v8949_v31  ;;  %v11056_v24 = vpop.f32.mrf.mxu1 }
 0x174   : > { %6953 = vmatpush1.bf16.msra.mxu0 %v8944_v14  ;;  %v8980_v14 = vld [vmem:[%s14137_s2 + $0x100] ss:$8 sps:$4 sm:$0xff]  }
 0x175   : > { %6954 = vmatprep.subr.bf16.mxu0 %v8952_v25  ;;  %v8985_v25 = vld [vmem:[%s14137_s2 + $0xc4] ss:$8 sps:$4 sm:$0xff]  }
 0x176   : > { %6878 = vmatpush1.bf16.msra.mxu1 %v8947_v21 }
 0x177   : > { %6879 = vmatprep.subr.bf16.mxu1 %v8955_v1  ;;  %v8983_v1 = vld [vmem:[%s14137_s2 + $0xc0] ss:$8 sps:$4 sm:$0xff]  }
 0x178   : > { %6955 = vmatpush1.bf16.msra.mxu0 %v8950_v51 }
 0x179   : > { %6956 = vmatprep.subr.bf16.mxu0 %v8958_v12  ;;  %v8988_v12 = vld [vmem:[%s14137_s2 + $0x1f4] ss:$8 sps:$4 sm:$0xff]  }
 0x17a   : > { %6880 = vmatpush1.bf16.msra.mxu1 %v8953_v27 }
 0x17b   : > { %6881 = vmatprep.subr.bf16.mxu1 %v8961_v26  ;;  %v8986_v26 = vld [vmem:[%s14137_s2 + $0x1f0] ss:$8 sps:$4 sm:$0xff]  }
 0x17c   : > { %6957 = vmatpush1.bf16.msra.mxu0 %v8956_v43 }
 0x17d   : > { %6958 = vmatprep.subr.bf16.mxu0 %v8964_v38 }
 0x17e   : > { %6882 = vmatpush1.bf16.msra.mxu1 %v8959_v49  ;;  %v8991_v49 = vld [vmem:[%s14137_s2 + $0xb4] ss:$8 sps:$4 sm:$0xff]  }
 0x17f   : > { %6883 = vmatprep.subr.bf16.mxu1 %v8967_v4  ;;  %v8989_v4 = vld [vmem:[%s14137_s2 + $0xb0] ss:$8 sps:$4 sm:$0xff]  }
 0x180   : > { %6959 = vmatpush1.bf16.msra.mxu0 %v8962_v32 }
 0x181   : > { %6960 = vmatprep.subr.bf16.mxu0 %v8970_v22 }
 0x182   : > { %6884 = vmatpush2.bf16.msra.mxu1 %v8965_v53  ;;  %v8994_v53 = vld [vmem:[%s14137_s2 + $0x1e4] ss:$8 sps:$4 sm:$0xff]  }
 0x183   : > { %6885 = vmatprep.subr.bf16.mxu1 %v8973_v45 }
 0x184   : > { %6961 = vmatpush1.bf16.msra.mxu0 %v8968_v55  ;;  %v8992_v55 = vld [vmem:[%s14137_s2 + $0x1e0] ss:$8 sps:$4 sm:$0xff]  }
 0x185   : > { %6962 = vmatprep.subr.bf16.mxu0 %v8976_v13  ;;  %v8997_v13 = vld [vmem:[%s14137_s2 + $0xa4] ss:$8 sps:$4 sm:$0xff]  }
 0x186   : > { %6886 = vmatpush2.bf16.msra.mxu1 %v8971_v54 }
 0x187   : > { %6887 = vmatprep.subr.bf16.mxu1 %v8979_v19 }
 0x188   : > { %6963 = vmatpush1.bf16.msra.mxu0 %v8974_v46 }
 0x189   : > { %6964 = vmatprep.subr.bf16.mxu0 %v8982_v42 }
 0x18a   : > { %6888 = vmatpush2.bf16.msra.mxu1 %v8977_v59  ;;  %v8998_v59 = vld [vmem:[%s14137_s2 + $0x1d0] ss:$8 sps:$4 sm:$0xff]  }
 0x18b   : > { %6889 = vmatprep.subr.bf16.mxu1 %v8985_v25  ;;  %v9006_v25 = vld [vmem:[%s14137_s2 + $0x1c4] ss:$8 sps:$4 sm:$0xff]  }
 0x18c   : > { %v2911_v62 = vpop.f32.mrf.mxu0  ;;  %6965 = vmatpush1.bf16.msra.mxu0 %v8980_v14 }
 0x18d   : > { %v11058_v17 = vpop.f32.mrf.mxu1  ;;  %v11064_v10 = vadd.f32 %v2911_v62, %v10881_v6  ;;  %v14147_v6 = vmov 0.0   ;;  %6966 = vmatprep.subr.bf16.mxu0 %v8988_v12  ;;  %v8995_v62 = vld [vmem:[%s14137_s2 + $0xa0] ss:$8 sps:$4 sm:$0xff]  }
 0x18e   : > { %v2913_v29 = vpop.f32.mrf.mxu0  ;;  %3598 = vst [vmem:[#allocation2] sm:$0xff] %v14147_v6  ;;  %3600 = vst [vmem:[#allocation2 + $0x18] sm:$0xff] %v14147_v6  ;;  %6890 = vmatpush2.bf16.msra.mxu1 %v8983_v1  ;;  %v9004_v12 = vld [vmem:[%s14137_s2 + $0x1c0] ss:$8 sps:$4 sm:$0xff]  }
 0x18f   : > { %v11072_v23 = vpop.f32.mrf.mxu1  ;;  %v11078_v31 = vadd.f32 %v2913_v29, %v10884_v57  ;;  %3597 = vst [vmem:[#allocation2 + $0x90] sm:$0xff] %v14147_v6  ;;  %3599 = vst [vmem:[#allocation2 + $0xb8] sm:$0xff] %v14147_v6  ;;  %6891 = vmatprep.subr.bf16.mxu1 %v8991_v49  ;;  %v9003_v29 = vld [vmem:[%s14137_s2 + $0x94] ss:$8 sps:$4 sm:$0xff]   ;;  %v9009_v49 = vld [vmem:[%s14137_s2 + $0x84] ss:$8 sps:$4 sm:$0xff]  }
 0x190   : > { %3601 = vst [vmem:[#allocation2 + $0x30] sm:$0xff] %v14147_v6  ;;  %3602 = vst [vmem:[#allocation2 + $0x48] sm:$0xff] %v14147_v6  ;;  %v2915_v57 = vpop.f32.mrf.mxu0  ;;  %6967 = vmatpush2.bf16.msra.mxu0 %v8986_v26 }
 0x191   : > { %3603 = vst [vmem:[#allocation2 + $0xd0] sm:$0xf] %v14147_v6  ;;  %3604 = vst [vmem:[#allocation2 + $0x28] sm:$0xf] %v14147_v6  ;;  %v11088_v21 = vpop.f32.mrf.mxu1  ;;  %v11094_v51 = vadd.f32 %v2915_v57, %v10892_v8  ;;  %6968 = vmatprep.subr.bf16.mxu0 %v8994_v53  ;;  %v9001_v57 = vld [vmem:[%s14137_s2 + $0x90] ss:$8 sps:$4 sm:$0xff]  }
 0x192   : > { %v11102_v27 = vpop.f32.mrf.mxu0  ;;  %6892 = vmatpush2.bf16.msra.mxu1 %v8989_v4  ;;  %v9007_v53 = vld [vmem:[%s14137_s2 + $0x80] ss:$8 sps:$4 sm:$0xff]  }
 0x193   : > { %v11104_v43 = vpop.f32.mrf.mxu1  ;;  %6893 = vmatprep.subr.bf16.mxu1 %v8997_v13  ;;  %v9015_v13 = vld [vmem:[%s14137_s2 + $0x274] ss:$8 sps:$4 sm:$0xff]  }
 0x194   : > { %v2921_v8 = vpop.f32.mrf.mxu0  ;;  %6969 = vmatpush2.bf16.msra.mxu0 %v8992_v55  ;;  %v9010_v55 = vld [vmem:[%s14137_s2 + $0x1b0] ss:$8 sps:$4 sm:$0xff]  }
 0x195   : > { %v11109_v38 = vpop.f32.mrf.mxu1  ;;  %v11115_v32 = vadd.f32 %v2921_v8, %v10898_v61 }
 0x196   : > { %v2923_v22 = vpop.f32.mrf.mxu0  ;;  %6894 = vmatpush2.bf16.msra.mxu1 %v8995_v62 }
 0x197   : > { %v11127_v45 = vadd.f32 %v2923_v22, %v10901_v60  ;;  %v11129_v61 = vpop.f32.mrf.mxu1  ;;  %v9000_v60 = vld [vmem:[%s14137_s2 + $0x1d4] ss:$8 sps:$4 sm:$0xff]   ;;  %6895 = vmatprep.subr.bf16.mxu1 %v9003_v29 }
 0x198   : > { %v2925_v54 = vpop.f32.mrf.mxu0  ;;  %6970 = vmatprep.subr.bf16.mxu0 %v9000_v60 }
 0x199   : > { %v11135_v46 = vadd.f32 %v2925_v54, %v10909_v2  ;;  %v11148_v42 = vpop.f32.mrf.mxu1  ;;  %6971 = vmatpush2.bf16.msra.mxu0 %v8998_v59 }
 0x19a   : > { %v11143_v19 = vpop.f32.mrf.mxu0  ;;  %6896 = vmatpush2.bf16.msra.mxu1 %v9001_v57  ;;  %6972 = vmatprep.subr.bf16.mxu0 %v9006_v25  ;;  %v9018_v57 = vld [vmem:[%s14137_s2 + $0x1a4] ss:$8 sps:$4 sm:$0xff]  }
 0x19b   : > { %v11165_v26 = vpop.f32.mrf.mxu1  ;;  %6897 = vmatprep.subr.bf16.mxu1 %v9009_v49  ;;  %v9022_v49 = vld [vmem:[%s14137_s2 + $0x190] ss:$8 sps:$4 sm:$0xff]  }
 0x19c   : > { %v2931_v2 = vpop.f32.mrf.mxu0 }
 0x19d   : > { %v11154_v14 = vadd.f32 %v2931_v2, %v10914_v20  ;;  %6973 = vmatpush2.bf16.msra.mxu0 %v9004_v12  ;;  %v11187_v54 = vpop.f32.mrf.mxu1 }
 0x19e   : > { %v2933_v1 = vpop.f32.mrf.mxu0  ;;  %6898 = vmatpush2.bf16.msra.mxu1 %v9007_v53 }
 0x19f   : > { %v11168_v20 = vadd.f32 %v2933_v1, %v10917_v63  ;;  %v9012_v63 = vld [vmem:[%s14137_s2 + $0x1b4] ss:$8 sps:$4 sm:$0xff]   ;;  %7033 = vmatprep.subr.bf16.mxu1 %v9015_v13  ;;  %v11195_v59 = vpop.f32.mrf.mxu1 }
 0x1a0   : > { %v2935_v8 = vpop.f32.mrf.mxu0  ;;  %6974 = vmatprep.subr.bf16.mxu0 %v9012_v63 }
 0x1a1   : > { %v11174_v4 = vadd.f32 %v2935_v8, %v10927_v7  ;;  %6975 = vmatpush2.bf16.msra.mxu0 %v9010_v55  ;;  %v11211_v12 = vpop.f32.mrf.mxu1 }
 0x1a2   : > { %v11182_v22 = vpop.f32.mrf.mxu0  ;;  %6976 = vmatprep.subr.bf16.mxu0 %v9018_v57 }
 0x1a3   : > { %v11222_v63 = vpop.f32.mrf.mxu1 }
 0x1a4   : > { %v2941_v7 = vpop.f32.mrf.mxu0 }
 0x1a5   : > { %v11193_v62 = vadd.f32 %v2941_v7, %v10937_v56  ;;  %v9016_v56 = vld [vmem:[%s14137_s2 + $0x1a0] ss:$8 sps:$4 sm:$0xff]   ;;  %v11230_v13 = vpop.f32.mrf.mxu1 }
 0x1a6   : > { %v2943_v60 = vpop.f32.mrf.mxu0  ;;  %6977 = vmatpush2.bf16.msra.mxu0 %v9016_v56 }
 0x1a7   : > { %v11198_v2 = vadd.f32 %v2943_v60, %v10946_v15  ;;  %v9030_v60 = vld [vmem:[%s14137_s2 + $0x184] ss:$8 sps:$4 sm:$0xff]   ;;  %v11238_v57 = vpop.f32.mrf.mxu1 }
 0x1a8   : > { %v2945_v29 = vpop.f32.mrf.mxu0 }
 0x1a9   : > { %v11204_v25 = vadd.f32 %v2945_v29, %v10952_v5  ;;  %v9024_v5 = vld [vmem:[%s14137_s2 + $0x194] ss:$8 sps:$4 sm:$0xff]   ;;  %v9028_v29 = vld [vmem:[%s14137_s2 + $0x180] ss:$8 sps:$4 sm:$0xff]  }
 0x1aa   : > { %v11209_v1 = vpop.f32.mrf.mxu0  ;;  %6978 = vmatprep.subr.bf16.mxu0 %v9024_v5 }
 0x1ab   : > { %14184 = vst [vmem:[#allocation3_spill] sm:$0xff] %v11204_v25  ;;  %6979 = vmatpush2.bf16.msra.mxu0 %v9022_v49 }
 0x1ac   : > { %v2951_v15 = vpop.f32.mrf.mxu0  ;;  %6980 = vmatprep.subr.bf16.mxu0 %v9030_v60 }
 0x1ad   : > { %v11214_v8 = vadd.f32 %v2951_v15, %v10963_v35 }
 0x1ae   : > { %v2953_v53 = vpop.f32.mrf.mxu0 }
 0x1af   : > { %14185 = vst [vmem:[#allocation4_spill] sm:$0xff] %v11214_v8  ;;  %v11225_v55 = vadd.f32 %v2953_v53, %v10975_v41  ;;  %6981 = vmatpush2.bf16.msra.mxu0 %v9028_v29  ;;  %v11240_v41 = vpop.f32.mrf.mxu1 }
 0x1b0   : > { %v2955_v7 = vpop.f32.mrf.mxu0  ;;  %14188 = vst [vmem:[#allocation7_spill] sm:$0xff] %v11240_v41 }
 0x1b1   : > { %14186 = vst [vmem:[#allocation5_spill] sm:$0xff] %v11225_v55  ;;  %v11228_v35 = vadd.f32 %v2955_v7, %v10980_v28  ;;  %v9036_v28 = vld [vmem:[%s14137_s2 + $0x374] ss:$8 sps:$4 sm:$0xff]   ;;  %v11245_v56 = vpop.f32.mrf.mxu1  ;;  %v3294_v55 = vlaneseq }
 0x1b2   : > { %14189 = vst [vmem:[#allocation8_spill] sm:$0xff] %v11245_v56  ;;  %7116 = vmatprep.subr.bf16.mxu0 %v9036_v28  ;;  %v11251_v5 = vpop.f32.mrf.mxu0 }
 0x1b3   : > { %14187 = vst [vmem:[#allocation6_spill] sm:$0xff] %v11228_v35  ;;  %v11247_v15 = vpop.f32.mrf.mxu1  ;;  %14192 = vst [vmem:[#allocation11_spill] sm:$0xff] %v11251_v5  ;;  %v11271_v5 = vshrl.u32 %v3294_v55, 7 }
 0x1b4   : > { %14190 = vst [vmem:[#allocation9_spill] sm:$0xff] %v11247_v15 }
 0x1b5   : > { %v11249_v49 = vpop.f32.mrf.mxu1  ;;  %v11301_v25 = vadd.s32 24, %v11271_v5 }
 0x1b6   : > { %14191 = vst [vmem:[#allocation10_spill] sm:$0xff] %v11249_v49 }
 0x1b7   : > { %v11253_v53 = vpop.f32.mrf.mxu1 }
 0x1b8   : > { %14193 = vst [vmem:[#allocation12_spill] sm:$0xff] %v11253_v53 }
 0x1b9   : > { %v11259_v29 = vpop.f32.mrf.mxu1 }
 0x1ba   : > { %14196 = vst [vmem:[#allocation15_spill] sm:$0xff] %v11259_v29  ;;  %v3379_v29 = vadd.s32 16, %v11271_v5 }
 0x1bc   : > { %v11290_v55 = vmul.u32.u64.low 3435973837, %v3379_v29  ;;  %v11291_v56 = vmul.u32.u64.high 3435973837, %v3379_v29, %v11290_v55 }
 0x1bd   : > { %v2689_v55 = vadd.f32 %v10792_v58, %v10790_v39 }
 0x1be   : > { %v3415_v39 = vshrl.u32 %v11291_v56, 3  ;;  %v11344_v56 = vsub.s32 0, %v11271_v5 }
 0x1c0   : > { %14211 = vst [vmem:[#allocation30_spill] sm:$0xff] %v11344_v56 }
 0x1cc   : > { %v11255_v7 = vpop.f32.mrf.mxu0 }
 0x1cd   : > { %14194 = vst [vmem:[#allocation13_spill] sm:$0xff] %v11255_v7  ;;  %v11263_v35 = vpop.f32.mrf.mxu1  ;;  %v3378_v7 = vadd.s32 8, %v11271_v5 }
 0x1ce   : > { %v11257_v60 = vpop.f32.mrf.mxu0  ;;  %14198 = vst [vmem:[#allocation17_spill] sm:$0xff] %v11263_v35  ;;  %v11282_v35 = vmul.u32.u64.low 3435973837, %v11271_v5  ;;  %v11283_v8 = vmul.u32.u64.high 3435973837, %v11271_v5, %v11282_v35 }
 0x1cf   : > { %14195 = vst [vmem:[#allocation14_spill] sm:$0xff] %v11257_v60  ;;  %v11269_v49 = vpop.f32.mrf.mxu1  ;;  %v2669_v35 = vadd.f32 %v10724_v40, %v10722_v52  ;;  %v11320_v52 = vadd.s32 40, %v11271_v5 }
 0x1d0   : > { %v11261_v6 = vpop.f32.mrf.mxu0  ;;  %14201 = vst [vmem:[#allocation20_spill] sm:$0xff] %v11269_v49 }
 0x1d1   : > { %14197 = vst [vmem:[#allocation16_spill] sm:$0xff] %v11261_v6  ;;  %v11279_v6 = vpop.f32.mrf.mxu1  ;;  %v2752_v40 = vadd.f32 %v10887_v9, %v2669_v35 }
 0x1d2   : > { %v11265_v28 = vpop.f32.mrf.mxu0  ;;  %14204 = vst [vmem:[#allocation23_spill] sm:$0xff] %v11279_v6  ;;  %v3393_v6 = vshrl.u32 %v11283_v8, 3  ;;  %v2699_v8 = vadd.f32 %v10820_v30, %v10818_v34  ;;  %v11329_v34 = vmul.u32.u64.low 3435973837, %v11301_v25  ;;  %v11330_v30 = vmul.u32.u64.high 3435973837, %v11301_v25, %v11329_v34 }
 0x1d3   : > { %14199 = vst [vmem:[#allocation18_spill] sm:$0xff] %v11265_v28 }
 0x1d4   : > { %v11267_v15 = vpop.f32.mrf.mxu0 }
 0x1d5   : > { %14200 = vst [vmem:[#allocation19_spill] sm:$0xff] %v11267_v15  ;;  %v11287_v15 = vmul.u32.u64.low 3435973837, %v3378_v7  ;;  %v11288_v49 = vmul.u32.u64.high 3435973837, %v3378_v7, %v11287_v15 }
 0x1d6   : > { %v11273_v53 = vpop.f32.mrf.mxu0  ;;  %v2679_v15 = vadd.f32 %v10759_v33, %v10757_v0  ;;  %v2772_v33 = vadd.f32 %v10922_v47, %v2689_v55  ;;  %v3416_v55 = vmul.u32 10, %v3415_v39  ;;  %v3324_v39 = vld [vmem:[%s14139_s4] sm:$0x3] }
 0x1d7   : > { %14202 = vst [vmem:[#allocation21_spill] sm:$0xff] %v11273_v53  ;;  %v11293_v53 = vpop.f32.mrf.mxu1 }
 0x1d8   : > { %v11276_v60 = vpop.f32.mrf.mxu0  ;;  %14206 = vst [vmem:[#allocation25_spill] sm:$0xff] %v11293_v53  ;;  %v11312_v53 = vadd.s32 32, %v11271_v5  ;;  %v2762_v0 = vadd.f32 %v10904_v37, %v2679_v15  ;;  %v11347_v35 = vmul.u32.u64.low 3435973837, %v11320_v52  ;;  %v11348_v15 = vmul.u32.u64.high 3435973837, %v11320_v52, %v11347_v35 }
 0x1d9   : > { %14203 = vst [vmem:[#allocation22_spill] sm:$0xff] %v11276_v60  ;;  %v11297_v60 = vpop.f32.mrf.mxu1  ;;  %v11365_v35 = vadd.f32 %v10924_v18, %v2772_v33  ;;  %v11388_v18 = vsub.s32 1, %v11271_v5 }
 0x1da   : > { %v11285_v28 = vpop.f32.mrf.mxu0  ;;  %14208 = vst [vmem:[#allocation27_spill] sm:$0xff] %v11297_v60  ;;  %v2709_v60 = vadd.f32 %v10874_v11, %v10872_v44  ;;  %v11333_v44 = vadd.s32 48, %v11271_v5  ;;  %v2782_v11 = vadd.f32 %v10948_v48, %v2699_v8  ;;  %v3292_v48 = vld [vmem:[%s14138_s3] sm:$0x3] }
 0x1db   : > { %14205 = vst [vmem:[#allocation24_spill] sm:$0xff] %v11285_v28  ;;  %v11326_v58 = vpop.f32.mrf.mxu1  ;;  %v11340_v37 = vmul.u32.u64.low 3435973837, %v11312_v53  ;;  %v11341_v47 = vmul.u32.u64.high 3435973837, %v11312_v53, %v11340_v37  ;;  %14214 = vst [vmem:[#allocation33_spill] sm:$0xff] %v11388_v18 }
 0x1dc   : > { %v11295_v41 = vpop.f32.mrf.mxu0  ;;  %14210 = vst [vmem:[#allocation29_spill] sm:$0xff] %v11326_v58  ;;  %v2792_v9 = vadd.f32 %v11054_v16, %v2709_v60  ;;  %v11359_v8 = vmul.u32.u64.low 3435973837, %v11333_v44  ;;  %v11360_v34 = vmul.u32.u64.high 3435973837, %v11333_v44, %v11359_v8  ;;  %v2845_v37 = vadd.f32 %v10906_v3, %v2762_v0 }
 0x1dd   : > { %14207 = vst [vmem:[#allocation26_spill] sm:$0xff] %v11295_v41  ;;  %v3404_v41 = vshrl.u32 %v11288_v49, 3  ;;  %v11353_v16 = vpop.f32.mrf.mxu1  ;;  %v11379_v8 = vrot.slane %v3292_v48, %v11344_v56  ;;  %v11385_v3 = vadd.f32 %v11058_v17, %v11064_v10  ;;  %v11403_v17 = vadd.s32 64, %v11271_v5 }
 0x1de   : > { %v11309_v28 = vpop.f32.mrf.mxu0  ;;  %14212 = vst [vmem:[#allocation31_spill] sm:$0xff] %v11353_v16  ;;  %v11376_v16 = vadd.f32 %v11056_v24, %v2792_v9  ;;  %v11398_v24 = vrot.slane %v3324_v39, %v11344_v56  ;;  %v11417_v9 = vadd.s32 72, %v11271_v5 }
 0x1df   : > { %14209 = vst [vmem:[#allocation28_spill] sm:$0xff] %v11309_v28  ;;  %v3394_v28 = vmul.u32 10, %v3393_v6  ;;  %v3405_v6 = vmul.u32 10, %v3404_v41  ;;  %v2835_v41 = vadd.f32 %v10889_v36, %v2752_v40  ;;  %v11390_v40 = vsub.s32 %v3379_v29, %v3416_v55  ;;  %v11395_v0 = vpop.f32.mrf.mxu1 }
 0x1e0   : > { %v11337_v49 = vpop.f32.mrf.mxu0  ;;  %14215 = vst [vmem:[#allocation34_spill] sm:$0xff] %v11395_v0  ;;  %14216 = vst [vmem:[#allocation35_spill] sm:$0xff] %v11398_v24  ;;  %v11440_v24 = vadd.f32 %v11072_v23, %v11078_v31  ;;  %v11475_v0 = vrot.slane %v3324_v39, %v11388_v18 }
 0x1e1   : > { %v11356_v60 = vsub.s32 %v11271_v5, %v3394_v28  ;;  %v11373_v28 = vadd.f32 %v10950_v50, %v2782_v11  ;;  %v11381_v36 = vsub.s32 %v3378_v7, %v3405_v6  ;;  %v11393_v50 = vadd.s32 56, %v11271_v5  ;;  %v11425_v55 = vpop.f32.mrf.mxu1 }
 0x1e2   : > { %v11367_v58 = vpop.f32.mrf.mxu0  ;;  %v3426_v7 = vshrl.u32 %v11330_v30, 3  ;;  %v2918_v10 = vadd.f32 %v11102_v27, %v2835_v41  ;;  %v3437_v11 = vshrl.u32 %v11341_v47, 3  ;;  %v3448_v30 = vshrl.u32 %v11348_v15, 3  ;;  %14218 = vst [vmem:[#allocation37_spill] sm:$0xff] %v11425_v55  ;;  %14225 = vst [vmem:[#allocation40_spill] sm:$0xff] %v11475_v0 }
 0x1e3   : > { %14213 = vst [vmem:[#allocation32_spill] sm:$0xff] %v11367_v58  ;;  %vm3497_vm6 = vcmp.ne.s32.totalorder %v11356_v60, 0  ;;  %vm3507_vm7 = vcmp.lt.s32.totalorder %v11356_v60, 0  ;;  %v11410_v29 = vadd.s32 10, %v11356_v60  ;;  %vm3498_vm8 = vcmp.ne.s32.totalorder %v11381_v36, 0 }
 0x1e4   : > { %v11406_v33 = vpop.f32.mrf.mxu0  ;;  %vm3508_vm9 = vcmp.lt.s32.totalorder %v11381_v36, 0  ;;  %vm3499_vm10 = vcmp.ne.s32.totalorder %v11390_v40, 0  ;;  %vm3509_vm11 = vcmp.lt.s32.totalorder %v11390_v40, 0  ;;  %vm11429_vm12 = vmand %vm3507_vm7, %vm3497_vm6  ;;  %v3427_v15 = vmul.u32 10, %v3426_v7  ;;  %v3626_v7 = vld [vmem:[#allocation2] sm:$0xe0] }
 0x1e5   : > { %14217 = vst [vmem:[#allocation36_spill] sm:$0xff] %v11406_v33  ;;  %v11422_v27 = vmul.u32.u64.low 3435973837, %v11393_v50  ;;  %v11423_v6 = vmul.u32.u64.high 3435973837, %v11393_v50, %v11422_v27  ;;  %v3459_v5 = vshrl.u32 %v11360_v34, 3  ;;  %v11445_v55 = vrot.slane %v3292_v48, %v11388_v18  ;;  %vm11454_vm13 = vmand %vm3508_vm9, %vm3498_vm8 }
 0x1e6   : > { %v11435_v41 = vmul.u32.u64.low 3435973837, %v11403_v17  ;;  %v11436_v56 = vmul.u32.u64.high 3435973837, %v11403_v17, %v11435_v41  ;;  %v11442_v27 = vpop.f32.mrf.mxu0  ;;  %v11448_v33 = vadd.s32 10, %v11381_v36  ;;  %v3438_v58 = vmul.u32 10, %v3437_v11  ;;  %vm11481_vm14 = vmand %vm3509_vm11, %vm3499_vm10 }
 0x1e7   : > { %14221 = vst [vmem:[#allocation38_spill] sm:$0xff] %v11442_v27  ;;  %14222 = vst [vmem:[#allocation39_spill] sm:$0xff] %v11445_v55  ;;  %v11459_v23 = vadd.s32 10, %v11390_v40  ;;  %v3449_v31 = vmul.u32 10, %v3448_v30  ;;  %v11462_v48 = vmul.u32.u64.low 3435973837, %v11417_v9  ;;  %v11463_v41 = vmul.u32.u64.high 3435973837, %v11417_v9, %v11462_v48 }
 0x1e8   : > { %v11467_v11 = vadd.f32 %v11088_v21, %v11094_v51  ;;  %v2928_v27 = vadd.f32 %v11143_v19, %v2845_v37  ;;  %v3659_v21 = vld [vmem:[#allocation2 + $0x90] sm:$0xc0]  ;;  %v11486_v51 = vadd.f32 %v11104_v43, %v2918_v10  ;;  %v11490_v19 = vadd.f32 %v11109_v38, %v11115_v32  ;;  %v11492_v37 = vpop.f32.mrf.mxu1  ;;  %v3660_v55 = vld [vmem:[#allocation2] sm:$0xc0]  ;;  %v11501_v0 = vpop.f32.mrf.mxu0 }
 0x1e9   : > { %v11495_v39 = vsub.s32 %v11301_v25, %v3427_v15  ;;  %v3460_v48 = vmul.u32 10, %v3459_v5  ;;  %v11499_v18 = vadd.f32 %v11129_v61, %v11127_v45  ;;  %v11508_v38 = vsub.s32 %v11312_v53, %v3438_v58 }
 0x1ea   : > { %v14230_v32 = vmov 0.0   ;;  %v11513_v25 = vadd.f32 %v11148_v42, %v11135_v46  ;;  %v11520_v61 = vsub.s32 %v11320_v52, %v3449_v31  ;;  %v11526_v53 = vadd.f32 %v11165_v26, %v2928_v27  ;;  %v11536_v5 = vpop.f32.mrf.mxu1  ;;  %v11544_v27 = vpop.f32.mrf.mxu0  ;;  %v14299_v34 = vld [vmem:[#allocation32_spill] sm:$0xff] }
 0x1eb   : > { %14228 = vst [vmem:[#allocation41_spill] sm:$0xff] %v11495_v39  ;;  %14229 = vst [vmem:[#allocation42_spill] sm:$0xff] %v11508_v38  ;;  %v3648_v10 = vpack.c.bf16 %v14230_v32, %v3626_v7  ;;  %v11523_v15 = vpack.c.bf16 %v14230_v32, %v3659_v21  ;;  %v11530_v58 = vadd.f32 %v11187_v54, %v11154_v14  ;;  %v3470_v46 = vshrl.u32 %v11423_v6, 3 }
 0x1ec   : > { %14231 = vst [vmem:[#allocation43_spill] sm:$0xff] %v11520_v61  ;;  %v11534_v42 = vpack.c.bf16 %v14230_v32, %v3660_v55  ;;  %vm3500_vm15 = vcmp.ne.s32.totalorder %v11495_v39, 0  ;;  %vm3510_vm2 = vcmp.lt.s32.totalorder %v11495_v39, 0  ;;  %v11541_v52 = vsub.s32 %v11333_v44, %v3460_v48  ;;  %14233 = vst [vmem:[#allocation45_spill] sm:$0xff] %v11544_v27  ;;  %v3625_v55 = vld [vmem:[#allocation2 + $0x90] sm:$0xe0] }
 0x1ed   : > { %v3481_v26 = vshrl.u32 %v11436_v56, 3  ;;  %vm3501_vm4 = vcmp.ne.s32.totalorder %v11508_v38, 0  ;;  %vm3511_vm6 = vcmp.lt.s32.totalorder %v11508_v38, 0  ;;  %v4436_v14 = vshrl.u32 %v3648_v10, 16  ;;  %vm11564_vm9 = vmand %vm3510_vm2, %vm3500_vm15 }
 0x1ee   : > { %14232 = vst [vmem:[#allocation44_spill] sm:$0xff] %v11541_v52  ;;  %v4439_v54 = vshll.u32 %v3648_v10, 16  ;;  %v11549_v6 = vadd.s32 10, %v11495_v39  ;;  %vm3502_vm7 = vcmp.ne.s32.totalorder %v11520_v61, 0  ;;  %vm3512_vm8 = vcmp.lt.s32.totalorder %v11520_v61, 0  ;;  %vm11575_vm10 = vmand %vm3511_vm6, %vm3501_vm4  ;;  %v11588_v10 = vpop.f32.mrf.mxu0 }
 0x1ef   : > { %v3492_v44 = vshrl.u32 %v11463_v41, 3  ;;  %v11556_v56 = vadd.f32 %v11195_v59, %v11168_v20  ;;  %v2938_v31 = vadd.f32 %v11182_v22, %v11365_v35  ;;  %v11569_v21 = vadd.s32 10, %v11508_v38  ;;  %v11571_v41 = vpop.f32.mrf.mxu1  ;;  %14243 = vst [vmem:[#allocation51_spill] sm:$0xff] %v11588_v10  ;;  %vm11594_vm2 = vmand %vm3512_vm8, %vm3502_vm7 }
 0x1f0   : > { %14234 = vst [vmem:[#allocation46_spill] sm:$0xff] %v11549_v6  ;;  %v3471_v48 = vmul.u32 10, %v3470_v46  ;;  %14238 = vst [vmem:[#allocation48_spill] sm:$0xff] %v11571_v41  ;;  %v14239_v20 = vmov 0  ;;  %v11580_v22 = vadd.s32 10, %v11520_v61  ;;  %vm3503_vm11 = vcmp.ne.s32.totalorder %v11541_v52, 0 }
 0x1f1   : > { %14237 = vst [vmem:[#allocation47_spill] sm:$0xff] %v11569_v21  ;;  %v14240_v20 = vsel %vm11575_vm10, 4294967295, %v14239_v20  ;;  %vm3513_vm15 = vcmp.lt.s32.totalorder %v11541_v52, 0  ;;  %v3482_v59 = vmul.u32 10, %v3481_v26  ;;  %v11586_v35 = vadd.f32 %v11211_v12, %v11174_v4  ;;  %v14272_v61 = vld [vmem:[#allocation12_spill] sm:$0xff] }
 0x1f2   : > { %14241 = vst [vmem:[#allocation49_spill] sm:$0xff] %v14240_v20  ;;  %14242 = vst [vmem:[#allocation50_spill] sm:$0xff] %v11580_v22  ;;  %v14244_v46 = vmov 0  ;;  %v11598_v45 = vrot.slane %v4436_v14, 2  ;;  %v11600_v43 = vrot.slane %v4439_v54, 3  ;;  %v3647_v26 = vpack.c.bf16 %v14230_v32, %v3625_v55 }
 0x1f3   : > { %v14245_v46 = vsel %vm11594_vm2, 4294967295, %v14244_v46  ;;  %v2948_v4 = vadd.f32 %v11209_v1, %v11373_v28  ;;  %v11610_v10 = vadd.s32 10, %v11541_v52  ;;  %v3493_v27 = vmul.u32 10, %v3492_v44  ;;  %vm11621_vm4 = vmand %vm3513_vm15, %vm3503_vm11  ;;  %v14254_v44 = vld [vmem:[#allocation3_spill] sm:$0xff] }
 0x1f4   : > { %14246 = vst [vmem:[#allocation52_spill] sm:$0xff] %v14245_v46  ;;  %14247 = vst [vmem:[#allocation53_spill] sm:$0xff] %v11598_v45  ;;  %v11613_v41 = vadd.f32 %v11222_v63, %v2938_v31  ;;  %v11617_v14 = vadd.f32 %v11230_v13, %v11193_v62  ;;  %v14250_v1 = vmov 0  ;;  %v11626_v28 = vsub.s32 %v11393_v50, %v3471_v48  ;;  %v11633_v63 = vpop.f32.mrf.mxu1  ;;  %v14255_v31 = vld [vmem:[#allocation7_spill] sm:$0xff]  ;;  %v14256_v62 = vld [vmem:[#allocation8_spill] sm:$0xff] }
 0x1f5   : > { %14248 = vst [vmem:[#allocation54_spill] sm:$0xff] %v11600_v43  ;;  %14249 = vst [vmem:[#allocation55_spill] sm:$0xff] %v11610_v10  ;;  %v14251_v1 = vsel %vm11621_vm4, 4294967295, %v14250_v1  ;;  %v3748_v54 = vshll.u32 %v11534_v42, 16  ;;  %v11631_v55 = vadd.f32 %v11238_v57, %v11198_v2  ;;  %v11644_v50 = vsub.s32 %v11403_v17, %v3482_v59  ;;  %v11650_v2 = vpop.f32.mrf.mxu0  ;;  %v14257_v57 = vld [vmem:[#allocation4_spill] sm:$0xff]  ;;  %v14259_v13 = vld [vmem:[#allocation11_spill] sm:$0xff] }
 0x1f6   : > { %14252 = vst [vmem:[#allocation56_spill] sm:$0xff] %v14251_v1  ;;  %14253 = vst [vmem:[#allocation57_spill] sm:$0xff] %v11626_v28  ;;  %v11648_v48 = vadd.f32 %v14255_v31, %v14254_v44  ;;  %v4424_v12 = vshrl.u32 %v3647_v26, 16  ;;  %v4427_v20 = vshll.u32 %v3647_v26, 16  ;;  %v11655_v38 = vadd.f32 %v14256_v62, %v2948_v4  ;;  %v14258_v4 = vld [vmem:[#allocation9_spill] sm:$0xff]  ;;  %v11674_v17 = vpop.f32.mrf.mxu1  ;;  %v14271_v1 = vld [vmem:[#allocation6_spill] sm:$0xff] }
 0x1f7   : > { %v11662_v59 = vsub.s32 %v11417_v9, %v3493_v27  ;;  %v3746_v44 = vshrl.u32 %v11534_v42, 16  ;;  %vm3504_vm6 = vcmp.ne.s32.totalorder %v11626_v28, 0  ;;  %vm3514_vm7 = vcmp.lt.s32.totalorder %v11626_v28, 0  ;;  %v3668_v9 = vld [vmem:[#allocation2] sm:$0x80]  ;;  %v14260_v42 = vld [vmem:[#allocation5_spill] sm:$0xff] }
 0x1f8   : > { %v3750_v31 = vrot.slane %v3748_v54, 1  ;;  %v3736_v26 = vshll.u32 %v11523_v15, 16  ;;  %v11670_v62 = vadd.f32 %v14258_v4, %v14257_v57  ;;  %v2958_v45 = vadd.f32 %v14259_v13, %v11376_v16  ;;  %v14261_v27 = vld [vmem:[#allocation10_spill] sm:$0xff]  ;;  %v11682_v54 = vpop.f32.mrf.mxu0  ;;  %v14264_v16 = vld [vmem:[#allocation13_spill] sm:$0xff]  ;;  %vm11697_vm15 = vmand %vm3514_vm7, %vm3504_vm6  ;;  %v11725_v6 = vpop.f32.mrf.mxu1 }
 0x1f9   : > { %vm3505_vm8 = vcmp.ne.s32.totalorder %v11644_v50, 0  ;;  %vm3515_vm11 = vcmp.lt.s32.totalorder %v11644_v50, 0  ;;  %v11680_v43 = vadd.f32 %v14261_v27, %v14260_v42  ;;  %14262 = vst [vmem:[#allocation3_spill] sm:$0xff] %v11682_v54  ;;  %v11685_v52 = vadd.s32 10, %v11626_v28  ;;  %v14273_v46 = vld [vmem:[#allocation15_spill] sm:$0xff]  ;;  %v14274_v54 = vld [vmem:[#allocation14_spill] sm:$0xff] }
 0x1fa   : > { %v11687_v57 = vrot.slane %v4424_v12, 2  ;;  %v11689_v4 = vrot.slane %v4427_v20, 3  ;;  %v3078_v13 = vadd.f32 %v14264_v16, %v11385_v3  ;;  %v11702_v42 = vadd.s32 10, %v11644_v50  ;;  %vm11706_vm0 = vmand %vm3515_vm11, %vm3505_vm8 }
 0x1fb   : > { %14263 = vst [vmem:[#allocation7_spill] sm:$0xff] %v11685_v52  ;;  %vm3506_vm5 = vcmp.ne.s32.totalorder %v11662_v59, 0  ;;  %vm3516_vm1 = vcmp.lt.s32.totalorder %v11662_v59, 0  ;;  %v11710_v3 = vor.u32 %v3750_v31, %v3746_v44  ;;  %v3734_v12 = vshrl.u32 %v11523_v15, 16  ;;  %v14275_v15 = vld [vmem:[#allocation16_spill] sm:$0xff] }
 0x1fc   : > { %v3738_v27 = vrot.slane %v3736_v26, 1  ;;  %v11714_v16 = vpack.c.bf16 %v14230_v32, %v3668_v9  ;;  %v11718_v22 = vadd.f32 %v14272_v61, %v14271_v1  ;;  %v11721_v21 = vadd.f32 %v14273_v46, %v2958_v45  ;;  %v14276_v32 = vld [vmem:[#allocation18_spill] sm:$0xff]  ;;  %v11734_v9 = vpop.f32.mrf.mxu0  ;;  %vm11755_vm7 = vmand %vm3516_vm1, %vm3506_vm5  ;;  %v14284_v1 = vld [vmem:[#allocation21_spill] sm:$0xff] }
 0x1fd   : > { %14269 = vst [vmem:[#allocation8_spill] sm:$0xff] %v11710_v3  ;;  %v3080_v39 = vadd.f32 %v14274_v54, %v11440_v24  ;;  %v11728_v44 = vadd.s32 10, %v11662_v59  ;;  %v3082_v31 = vadd.f32 %v14275_v15, %v11467_v11  ;;  %v3084_v26 = vadd.f32 %v14276_v32, %v11486_v51  ;;  %v14283_v51 = vld [vmem:[#allocation19_spill] sm:$0xff]  ;;  %v14285_v32 = vld [vmem:[#allocation22_spill] sm:$0xff]  ;;  %v14286_v61 = vld [vmem:[#allocation24_spill] sm:$0xff] }
 0x1fe   : > { %14270 = vst [vmem:[#allocation4_spill] sm:$0xff] %v11714_v16  ;;  %v14277_v45 = vsel %vm11429_vm12, %v11410_v29, %v11356_v60  ;;  %v14282_v60 = vld [vmem:[#allocation17_spill] sm:$0xff]  ;;  %v3088_v46 = vadd.f32 %v14283_v51, %v11490_v19  ;;  %v3090_v54 = vadd.f32 %v14284_v1, %v11499_v18  ;;  %v3094_v11 = vadd.f32 %v14286_v61, %v11526_v53  ;;  %v14287_v19 = vld [vmem:[#allocation20_spill] sm:$0xff]  ;;  %v14288_v18 = vld [vmem:[#allocation26_spill] sm:$0xff]  ;;  %v3196_v1 = vpop.f32.mrf.mxu1 }
 0x1ff   : > { %vm11741_vm6 = vcmp.lt.s32.totalorder %v14277_v45, 8  ;;  %v3161_v29 = vadd.f32 %v14282_v60, %v3078_v13  ;;  %v3092_v45 = vadd.f32 %v14285_v32, %v11513_v25  ;;  %v11772_v28 = vor.u32 %v3738_v27, %v3734_v12  ;;  %v14289_v32 = vld [vmem:[#allocation23_spill] sm:$0xff]  ;;  %v14290_v53 = vld [vmem:[#allocation25_spill] sm:$0xff]  ;;  %v14291_v12 = vld [vmem:[#allocation28_spill] sm:$0xff] }
 0x200   : > { %v3163_v60 = vadd.f32 %v14287_v19, %v3080_v39  ;;  %v3098_v51 = vadd.f32 %v14288_v18, %v11530_v58  ;;  %v3165_v15 = vadd.f32 %v14289_v32, %v3082_v31  ;;  %v3167_v61 = vadd.f32 %v14290_v53, %v3084_v26  ;;  %v14296_v18 = vld [vmem:[#allocation29_spill] sm:$0xff]  ;;  %v14297_v53 = vld [vmem:[#allocation31_spill] sm:$0xff] }
 0x201   : > { %v3100_v27 = vadd.f32 %v14291_v12, %v11556_v56  ;;  %v3102_v39 = vadd.f32 %v11337_v49, %v11586_v35  ;;  %v14292_v58 = vsel %vm11454_vm13, %v11448_v33, %v11381_v36  ;;  %v3173_v26 = vadd.f32 %v14296_v18, %v3090_v54  ;;  %v14298_v49 = vld [vmem:[#allocation34_spill] sm:$0xff]  ;;  %v14300_v36 = vld [vmem:[#allocation36_spill] sm:$0xff]  ;;  %v14301_v25 = vld [vmem:[#allocation37_spill] sm:$0xff] }
 0x202   : > { %vm11793_vm1 = vcmp.lt.s32.totalorder %v14292_v58, 8  ;;  %v3175_v12 = vadd.f32 %v14297_v53, %v3092_v45  ;;  %v3177_v35 = vadd.f32 %v14298_v49, %v3094_v11  ;;  %v3104_v13 = vadd.f32 %v14299_v34, %v11613_v41  ;;  %v14303_v18 = vld [vmem:[#allocation39_spill] sm:$0xff]  ;;  %v14304_v41 = vld [vmem:[#allocation38_spill] sm:$0xff]  ;;  %v14305_v53 = vld [vmem:[#allocation40_spill] sm:$0xff] }
 0x203   : > { %v3108_v33 = vadd.f32 %v14300_v36, %v11617_v14  ;;  %v11807_v16 = vadd.f32 %v14301_v25, %v3098_v51  ;;  %v11812_v45 = vadd.f32 %v11492_v37, %v3100_v27  ;;  %v11815_v11 = vadd.f32 %v11536_v5, %v3102_v39  ;;  %v14317_v7 = vld [vmem:[#allocation3_spill] sm:$0xff] }
 0x204   : > { %v3112_v14 = vadd.f32 %v11501_v0, %v11648_v48  ;;  %v14306_v37 = vsel %vm11481_vm14, %v11459_v23, %v11390_v40  ;;  %v14310_v48 = vld [vmem:[#allocation45_spill] sm:$0xff] }
 0x205   : > { %vm11828_vm5 = vcmp.lt.s32.totalorder %v14306_v37, 8  ;;  %v11836_v0 = vadd.f32 %v11633_v63, %v3108_v33  ;;  %v3114_v27 = vadd.f32 %v14310_v48, %v11655_v38  ;;  %v3120_v38 = vadd.f32 %v11650_v2, %v11680_v43  ;;  %v14319_v48 = vld [vmem:[#allocation47_spill] sm:$0xff] }
 0x206   : > { %v11852_v33 = vadd.f32 %v11725_v6, %v3112_v14  ;;  %v3122_v14 = vadd.f32 %v14317_v7, %v11718_v22  ;;  %v14326_v7 = vld [vmem:[#allocation43_spill] sm:$0xff] }
 0x20c   : > { %v3243_v3 = vpop.f32.mrf.mxu0 }
 0x20d   : > { %v3244_v52 = vadd.f32 %v3243_v3, %v3161_v29  ;;  %v14295_v29 = vld [vmem:[#allocation27_spill] sm:$0xff] }
 0x20e   : > { %v3245_v19 = vpop.f32.mrf.mxu0  ;;  %v3171_v31 = vadd.f32 %v14295_v29, %v3088_v46  ;;  %v3200_v46 = vpop.f32.mrf.mxu1  ;;  %v14302_v29 = vld [vmem:[#allocation35_spill] sm:$0xff] }
 0x20f   : > { %v3304_v32 = vmul.f32 %v11379_v8, %v3244_v52  ;;  %v3246_v56 = vadd.f32 %v3245_v19, %v3163_v60  ;;  %v3110_v19 = vadd.f32 %v14304_v41, %v11631_v55  ;;  %v14309_v55 = vld [vmem:[#allocation48_spill] sm:$0xff] }
 0x210   : > { %v3247_v58 = vpop.f32.mrf.mxu0  ;;  %v3202_v34 = vpop.f32.mrf.mxu1 }
 0x211   : > { %v3336_v54 = vadd.f32 %v14302_v29, %v3304_v32  ;;  %v3305_v52 = vmul.f32 %v14303_v18, %v3246_v56  ;;  %v3248_v60 = vadd.f32 %v3247_v58, %v3165_v15  ;;  %v11833_v15 = vadd.f32 %v14309_v55, %v3104_v13 }
 0x212   : > { %v3249_v51 = vpop.f32.mrf.mxu0  ;;  %v11849_v63 = vadd.f32 %v11674_v17, %v3110_v19  ;;  %v11871_v19 = vadd.f32 %v3196_v1, %v3114_v27  ;;  %v14320_v27 = vld [vmem:[#allocation42_spill] sm:$0xff] }
 0x213   : > { %v3356_v25 = vmax.f32 %v3336_v54, 0.0  ;;  %v3337_v49 = vadd.f32 %v14305_v53, %v3305_v52  ;;  %v3306_v32 = vmul.f32 %v11379_v8, %v3248_v60  ;;  %v3250_v56 = vadd.f32 %v3249_v51, %v3167_v61  ;;  %v14311_v61 = vld [vmem:[#allocation51_spill] sm:$0xff]  ;;  %v14312_v54 = vld [vmem:[#allocation46_spill] sm:$0xff]  ;;  %v14313_v52 = vld [vmem:[#allocation41_spill] sm:$0xff] }
 0x214   : > { %v3118_v39 = vadd.f32 %v14311_v61, %v11670_v62  ;;  %v3253_v30 = vpop.f32.mrf.mxu0  ;;  %v14314_v60 = vsel %vm11564_vm9, %v14312_v54, %v14313_v52  ;;  %v14321_v61 = vsel %vm11575_vm10, %v14319_v48, %v14320_v27 }
 0x215   : > { %v11844_v40 = vsel %vm11741_vm6, %v3356_v25, 0.0  ;;  %v3357_v23 = vmax.f32 %v3337_v49, 0.0  ;;  %v3338_v36 = vadd.f32 %v14302_v29, %v3306_v32  ;;  %v3307_v13 = vmul.f32 %v14303_v18, %v3250_v56  ;;  %v3204_v49 = vpop.f32.mrf.mxu1 }
 0x216   : > { %3605 = vst [vmem:[#allocation2 + $0x60] sm:$0xff] %v11844_v40  ;;  %v3254_v62 = vadd.f32 %v3253_v30, %v3171_v31  ;;  %v3255_v58 = vpop.f32.mrf.mxu0  ;;  %vm11862_vm12 = vcmp.lt.s32.totalorder %v14314_v60, 8  ;;  %v11873_v31 = vadd.f32 %v3200_v46, %v3118_v39  ;;  %v11884_v56 = vadd.f32 %v3202_v34, %v3120_v38 }
 0x217   : > { %v11868_v6 = vsel %vm11741_vm6, %v3357_v23, 0.0  ;;  %v3358_v17 = vmax.f32 %v3338_v36, 0.0  ;;  %v3339_v43 = vadd.f32 %v14305_v53, %v3307_v13  ;;  %v3256_v2 = vadd.f32 %v3255_v58, %v3173_v26  ;;  %v3206_v3 = vpop.f32.mrf.mxu1 }
 0x218   : > { %3606 = vst [vmem:[#allocation2 + $0x68] sm:$0xff] %v11868_v6  ;;  %v3308_v51 = vmul.f32 %v11379_v8, %v3254_v62  ;;  %v3257_v25 = vpop.f32.mrf.mxu0  ;;  %v3124_v46 = vadd.f32 %v11734_v9, %v11721_v21  ;;  %vm11895_vm13 = vcmp.lt.s32.totalorder %v14321_v61, 8  ;;  %v11909_v23 = vadd.f32 %v3204_v49, %v3122_v14 }
 0x219   : > { %v11881_v24 = vsel %vm11793_vm1, %v3358_v17, 0.0  ;;  %v3359_v32 = vmax.f32 %v3339_v43, 0.0  ;;  %v3309_v26 = vmul.f32 %v14303_v18, %v3256_v2  ;;  %v3258_v1 = vadd.f32 %v3257_v25, %v3175_v12  ;;  %v14325_v2 = vld [vmem:[#allocation50_spill] sm:$0xff] }
 0x21a   : > { %3607 = vst [vmem:[#allocation2 + $0x8] sm:$0xff] %v11881_v24  ;;  %v3340_v22 = vadd.f32 %v14302_v29, %v3308_v51  ;;  %v3259_v37 = vpop.f32.mrf.mxu0  ;;  %v11901_v12 = vpack.c.bf16 %v11881_v24, %v11844_v40  ;;  %v14327_v14 = vsel %vm11594_vm2, %v14325_v2, %v14326_v7 }
 0x21b   : > { %v11905_v21 = vsel %vm11793_vm1, %v3359_v32, 0.0  ;;  %v3341_v9 = vadd.f32 %v14305_v53, %v3309_v26  ;;  %v3310_v30 = vmul.f32 %v11379_v8, %v3258_v1  ;;  %v3260_v34 = vadd.f32 %v3259_v37, %v3177_v35 }
 0x21c   : > { %3608 = vst [vmem:[#allocation2 + $0x38] sm:$0xff] %v11905_v21  ;;  %v3360_v36 = vmax.f32 %v3340_v22, 0.0  ;;  %v3263_v13 = vpop.f32.mrf.mxu0  ;;  %v11914_v38 = vpack.c.bf16 %v11905_v21, %v11868_v6  ;;  %v11917_v62 = vshll.u32 %v11901_v12, 16  ;;  %vm11931_vm14 = vcmp.lt.s32.totalorder %v14327_v14, 8 }
 0x21d   : > { %v3361_v58 = vmax.f32 %v3341_v9, 0.0  ;;  %v3342_v54 = vadd.f32 %v14302_v29, %v3310_v30  ;;  %v3311_v52 = vmul.f32 %v14303_v18, %v3260_v34  ;;  %v3264_v35 = vadd.f32 %v3263_v13, %v11807_v16 }
 0x21e   : > { %v11924_v60 = vsel %vm11828_vm5, %v3360_v36, 0.0  ;;  %v3265_v17 = vpop.f32.mrf.mxu0  ;;  %v11936_v25 = vshll.u32 %v11914_v38, 16  ;;  %v11939_v49 = vshrl.u32 %v11914_v38, 16  ;;  %v11942_v16 = vshrl.u32 %v11901_v12, 16 }
 0x21f   : > { %3609 = vst [vmem:[#allocation2 + $0xd8] sm:$0xff] %v11924_v60  ;;  %v11947_v32 = vsel %vm11828_vm5, %v3361_v58, 0.0  ;;  %v3362_v26 = vmax.f32 %v3342_v54, 0.0  ;;  %v3343_v1 = vadd.f32 %v14305_v53, %v3311_v52  ;;  %v3312_v22 = vmul.f32 %v11379_v8, %v3264_v35 }
 0x220   : > { %v11951_v37 = vadd.f32 %v3206_v3, %v3124_v46  ;;  %3610 = vst [vmem:[#allocation2 + $0x70] sm:$0xff] %v11947_v32  ;;  %v3266_v55 = vadd.f32 %v3265_v17, %v11812_v45  ;;  %v3267_v48 = vpop.f32.mrf.mxu0  ;;  %v4443_v27 = vrot.slane %v11939_v49, 2  ;;  %v4444_v61 = vrot.slane %v11936_v25, 3  ;;  %v14331_v45 = vld [vmem:[#allocation55_spill] sm:$0xff]  ;;  %v14332_v3 = vld [vmem:[#allocation44_spill] sm:$0xff] }
 0x221   : > { %v11959_v5 = vsel %vm11862_vm12, %v3362_v26, 0.0  ;;  %v3363_v9 = vmax.f32 %v3343_v1, 0.0  ;;  %v3344_v30 = vadd.f32 %v14302_v29, %v3312_v22  ;;  %v3268_v34 = vadd.f32 %v3267_v48, %v11815_v11  ;;  %v14336_v1 = vld [vmem:[#allocation54_spill] sm:$0xff]  ;;  %v14337_v22 = vld [vmem:[#allocation53_spill] sm:$0xff] }
 0x222   : > { %v3313_v46 = vmul.f32 %v14303_v18, %v3266_v55  ;;  %v3269_v36 = vpop.f32.mrf.mxu0  ;;  %v14333_v58 = vsel %vm11621_vm4, %v14331_v45, %v14332_v3  ;;  %v4445_v52 = vor.u32 %v4444_v61, %v4443_v27  ;;  %v4431_v35 = vrot.slane %v11942_v16, 2  ;;  %v9013_v27 = vld [vmem:[%s14137_s2 + $0x270] ss:$8 sps:$4 sm:$0xff]  }
 0x223   : > { %vm11969_vm9 = vcmp.lt.s32.totalorder %v14333_v58, 8  ;;  %v4432_v17 = vrot.slane %v11917_v62, 3  ;;  %v11977_v11 = vsel %vm11862_vm12, %v3363_v9, 0.0  ;;  %v3364_v43 = vmax.f32 %v3344_v30, 0.0 }
 0x224   : > { %v3314_v2 = vmul.f32 %v11379_v8, %v3268_v34  ;;  %v3270_v7 = vadd.f32 %v3269_v36, %v11833_v15  ;;  %v3345_v14 = vadd.f32 %v14305_v53, %v3313_v46  ;;  %v3273_v26 = vpop.f32.mrf.mxu0  ;;  %v14338_v55 = vor.u32 %v14336_v1, %v14337_v22  ;;  %v9021_v46 = vld [vmem:[%s14137_s2 + $0x264] ss:$8 sps:$4 sm:$0xff]  }
 0x225   : > { %v11989_v41 = vor.u32 %v4432_v17, %v4431_v35  ;;  %v11993_v61 = vpack.c.bf16 %v11977_v11, %v11947_v32  ;;  %v11997_v15 = vsel %vm11895_vm13, %v3364_v43, 0.0  ;;  %v3274_v34 = vadd.f32 %v3273_v26, %v11836_v0 }
 0x226   : > { %v4446_v48 = vsel %vm707_vm3, %v14338_v55, %v4445_v52  ;;  %v3346_v9 = vadd.f32 %v14302_v29, %v3314_v2  ;;  %v3315_v30 = vmul.f32 %v14303_v18, %v3270_v7  ;;  %v3365_v36 = vmax.f32 %v3345_v14, 0.0  ;;  %v3275_v13 = vpop.f32.mrf.mxu0  ;;  %v14340_v7 = vld [vmem:[#allocation7_spill] sm:$0xff]  ;;  %v14341_v14 = vld [vmem:[#allocation57_spill] sm:$0xff] }
 0x227   : > { %6899 = vmatprep.mubr.bf16.mxu1 %v4446_v48  ;;  %v14339_v45 = vor.u32 %v11689_v4, %v11687_v57  ;;  %v12011_v58 = vshll.u32 %v11993_v61, 16  ;;  %v12014_v35 = vshrl.u32 %v11993_v61, 16  ;;  %v3316_v43 = vmul.f32 %v11379_v8, %v3274_v34 }
 0x228   : > { %v3366_v0 = vmax.f32 %v3346_v9, 0.0  ;;  %v3347_v17 = vadd.f32 %v14305_v53, %v3315_v30  ;;  %v3276_v2 = vadd.f32 %v3275_v13, %v11849_v63  ;;  %v14342_v57 = vsel %vm11697_vm15, %v14340_v7, %v14341_v14  ;;  %v3277_v1 = vpop.f32.mrf.mxu0  ;;  %v9019_v63 = vld [vmem:[%s14137_s2 + $0x260] ss:$8 sps:$4 sm:$0xff]   ;;  %v9027_v30 = vld [vmem:[%s14137_s2 + $0x254] ss:$8 sps:$4 sm:$0xff]  }
 0x229   : > { %v4434_v3 = vsel %vm707_vm3, %v14339_v45, %v11989_v41  ;;  %vm12024_vm10 = vcmp.lt.s32.totalorder %v14342_v57, 8  ;;  %v12030_v26 = vsel %vm11895_vm13, %v3365_v36, 0.0  ;;  %v4723_v10 = vrot.slane %v12014_v35, 2  ;;  %v9025_v7 = vld [vmem:[%s14137_s2 + $0x250] ss:$8 sps:$4 sm:$0xff]  }
 0x22a   : > { %6900 = vmatmul.mubr.bf16.vlgmr.msra.gmra.mxu1 %v4434_v3  ;;  %v4724_v22 = vrot.slane %v12011_v58, 3  ;;  %v12039_v55 = vpack.c.bf16 %v11959_v5, %v11924_v60  ;;  %v12043_v48 = vsel %vm11931_vm14, %v3366_v0, 0.0  ;;  %v3367_v39 = vmax.f32 %v3347_v17, 0.0  ;;  %v3279_v36 = vpop.f32.mrf.mxu0  ;;  %v9043_v45 = vld [vmem:[%s14137_s2 + $0x220] ss:$8 sps:$4 sm:$0xff]  }
 0x22b   : > { %7034 = vmatpush1.bf16.msra.mxu1 %v9013_v27  ;;  %v3348_v9 = vadd.f32 %v14302_v29, %v3316_v43  ;;  %v3317_v27 = vmul.f32 %v14303_v18, %v3276_v2  ;;  %v3278_v34 = vadd.f32 %v3277_v1, %v11852_v33  ;;  %v14345_v13 = vsel %vm11706_vm0, %v11702_v42, %v11644_v50 }
 0x22c   : > { %7035 = vmatprep.subr.bf16.mxu1 %v9021_v46  ;;  %vm12056_vm2 = vcmp.lt.s32.totalorder %v14345_v13, 8  ;;  %v12060_v3 = vor.u32 %v4724_v22, %v4723_v10  ;;  %v12063_v46 = vshll.u32 %v12039_v55, 16  ;;  %v12066_v0 = vshrl.u32 %v12039_v55, 16  ;;  %v3283_v43 = vpop.f32.mrf.mxu0 }
 0x22d   : > { %v12070_v33 = vsel %vm11931_vm14, %v3367_v39, 0.0  ;;  %v3368_v20 = vmax.f32 %v3348_v9, 0.0  ;;  %v3349_v17 = vadd.f32 %v14305_v53, %v3317_v27  ;;  %v3280_v50 = vadd.f32 %v3279_v36, %v11871_v19 }
 0x22e   : > { %v3318_v42 = vmul.f32 %v11379_v8, %v3278_v34  ;;  %v4726_v2 = vsel %vm707_vm3, %v4445_v52, %v12060_v3  ;;  %v3763_v51 = vrot.slane %v12063_v46, 1  ;;  %v3902_v14 = vrot.slane %v12066_v0, 5  ;;  %v9033_v52 = vld [vmem:[%s14137_s2 + $0x244] ss:$8 sps:$4 sm:$0xff]   ;;  %v3285_v22 = vpop.f32.mrf.mxu0 }
 0x22f   : > { %7036 = vmatpush1.bf16.msra.mxu1 %v9019_v63  ;;  %v12084_v57 = vsel %vm11969_vm9, %v3368_v20, 0.0  ;;  %v3369_v19 = vmax.f32 %v3349_v17, 0.0  ;;  %v3319_v1 = vmul.f32 %v14303_v18, %v3280_v50  ;;  %v3284_v63 = vadd.f32 %v3283_v43, %v11873_v31  ;;  %6909 = vmatprep.mubr.bf16.mxu1 %v4726_v2  ;;  %v9031_v50 = vld [vmem:[%s14137_s2 + $0x240] ss:$8 sps:$4 sm:$0xff]  }
 0x230   : > { %7037 = vmatprep.subr.bf16.mxu1 %v9027_v30  ;;  %v3350_v10 = vadd.f32 %v14302_v29, %v3318_v42  ;;  %v14348_v39 = vsel %vm11755_vm7, %v11728_v44, %v11662_v59  ;;  %v3903_v31 = vrot.slane %v12063_v46, 6  ;;  %v4719_v27 = vrot.slane %v12066_v0, 2  ;;  %v3287_v13 = vpop.f32.mrf.mxu0 }
 0x231   : > { %vm12097_vm0 = vcmp.lt.s32.totalorder %v14348_v39, 8  ;;  %v4720_v30 = vrot.slane %v12063_v46, 3  ;;  %v12106_v34 = vsel %vm11969_vm9, %v3369_v19, 0.0  ;;  %v3351_v36 = vadd.f32 %v14305_v53, %v3319_v1 }
 0x232   : > { %v3320_v47 = vmul.f32 %v11379_v8, %v3284_v63  ;;  %v3286_v59 = vadd.f32 %v3285_v22, %v11884_v56  ;;  %v3370_v44 = vmax.f32 %v3350_v10, 0.0  ;;  %v12111_v20 = vor.u32 %v3903_v31, %v3902_v14  ;;  %v9039_v14 = vld [vmem:[%s14137_s2 + $0x234] ss:$8 sps:$4 sm:$0xff]   ;;  %v3289_v19 = vpop.f32.mrf.mxu0  ;;  %v14351_v63 = vld [vmem:[#allocation8_spill] sm:$0xff] }
 0x233   : > { %v12113_v17 = vor.u32 %v4720_v30, %v4719_v27  ;;  %7038 = vmatpush1.bf16.msra.mxu1 %v9025_v7  ;;  %v3755_v54 = vrot.slane %v11936_v25, 1  ;;  %v3371_v42 = vmax.f32 %v3351_v36, 0.0  ;;  %v3288_v56 = vadd.f32 %v3287_v13, %v11909_v23 }
 0x234   : > { %v3352_v43 = vadd.f32 %v14302_v29, %v3320_v47  ;;  %v3321_v2 = vmul.f32 %v14303_v18, %v3286_v59  ;;  %7039 = vmatprep.subr.bf16.mxu1 %v9033_v52  ;;  %v12127_v7 = vsel %vm12024_vm10, %v3370_v44, 0.0  ;;  %vm14352_vm4 = vsmask.f32 7424  ;;  %v9037_v47 = vld [vmem:[%s14137_s2 + $0x230] ss:$8 sps:$4 sm:$0xff]  }
 0x235   : > { %v4722_v1 = vsel %vm707_vm3, %v11989_v41, %v12113_v17  ;;  %v3756_v10 = vsel %vm14352_vm4, %v14351_v63, %v3755_v54  ;;  %v3767_v22 = vor.u32 %v11939_v49, %v3755_v54  ;;  %v12137_v23 = vsel %vm12024_vm10, %v3371_v42, 0.0  ;;  %vm14353_vm8 = vmmov %vm14352_vm4  ;;  %v9051_v63 = vld [vmem:[%s14137_s2 + $0x214] ss:$8 sps:$4 sm:$0xff]  }
 0x236   : > { %v3372_v52 = vmax.f32 %v3352_v43, 0.0  ;;  %v3353_v39 = vadd.f32 %v14305_v53, %v3321_v2  ;;  %v3322_v31 = vmul.f32 %v11379_v8, %v3288_v56  ;;  %6910 = vmatmul.mubr.bf16.gmra.mxu1 %v4722_v1  ;;  %v3290_v27 = vadd.f32 %v3289_v19, %v11951_v37  ;;  %v9045_v37 = vld [vmem:[%s14137_s2 + $0x224] ss:$8 sps:$4 sm:$0xff]   ;;  %vm14354_vm11 = vmmov %vm14352_vm4 }
 0x237   : > { %v3771_v30 = vrot.slane %v12011_v58, 1  ;;  %v4465_v41 = vshrl.u32 %v3756_v10, 16  ;;  %v4468_v36 = vshll.u32 %v3756_v10, 16  ;;  %7040 = vmatpush1.bf16.msra.mxu1 %v9031_v50  ;;  %v3743_v8 = vrot.slane %v11917_v62, 1  ;;  %vm14355_vm15 = vmmov %vm14352_vm4 }
 0x238   : > { %v12148_v4 = vsel %vm12056_vm2, %v3372_v52, 0.0  ;;  %v3373_v59 = vmax.f32 %v3353_v39, 0.0  ;;  %v3354_v44 = vadd.f32 %v14302_v29, %v3322_v31  ;;  %7041 = vmatprep.subr.bf16.mxu1 %v9039_v14  ;;  %v3323_v13 = vmul.f32 %v14303_v18, %v3290_v27  ;;  %v3667_v39 = vld [vmem:[#allocation2 + $0x90] sm:$0x80]  ;;  %vm14358_vm6 = vmmov %vm14352_vm4 }
 0x239   : > { %3621 = vst [vmem:[#allocation2 + $0xc0] sm:$0xff] %v12148_v4  ;;  %v3772_v50 = vsel %vm14353_vm8, %v3767_v22, %v3771_v30  ;;  %v4467_v54 = vrot.slane %v4465_v41, 2  ;;  %v4470_v42 = vrot.slane %v4468_v36, 3  ;;  %v3744_v18 = vsel %vm14354_vm11, %v11772_v28, %v3743_v8  ;;  %vm14361_vm7 = vmmov %vm14352_vm4 }
 0x23a   : > { %v12162_v29 = vsel %vm12056_vm2, %v3373_v59, 0.0  ;;  %v3374_v43 = vmax.f32 %v3354_v44, 0.0  ;;  %v4473_v2 = vshrl.u32 %v3772_v50, 16  ;;  %v4476_v56 = vshll.u32 %v3772_v50, 16  ;;  %v9049_v50 = vld [vmem:[%s14137_s2 + $0x210] ss:$8 sps:$4 sm:$0xff]   ;;  %vm14363_vm1 = vmmov %vm14352_vm4 }
 0x23b   : > { %3622 = vst [vmem:[#allocation2 + $0x10] sm:$0xff] %v12162_v29  ;;  %v3355_v14 = vadd.f32 %v14305_v53, %v3323_v13  ;;  %v4471_v19 = vor.u32 %v4470_v42, %v4467_v54  ;;  %v3759_v1 = vor.u32 %v11942_v16, %v3743_v8  ;;  %7042 = vmatpush1.bf16.msra.mxu1 %v9037_v47  ;;  %v4448_v52 = vshrl.u32 %v3744_v18, 16  ;;  %v9362_v54 = vld [vmem:[#allocation2] sm:$0xff]  ;;  %vm14364_vm5 = vmmov %vm14363_vm1 }
 0x23c   : > { %v3595_v10 = vsel %vm12097_vm0, %v3374_v43, 0.0  ;;  %v4475_v22 = vrot.slane %v4473_v2, 2  ;;  %v4478_v53 = vrot.slane %v4476_v56, 3  ;;  %7043 = vmatprep.subr.bf16.mxu1 %v9045_v37  ;;  %v4451_v27 = vshll.u32 %v3744_v18, 16  ;;  %vm14365_vm12 = vmmov %vm14363_vm1 }
 0x23d   : > { %3623 = vst [vmem:[#allocation2 + $0xa8] sm:$0xff] %v3595_v10  ;;  %v3375_v28 = vmax.f32 %v3355_v14, 0.0  ;;  %v3764_v31 = vsel %vm14355_vm15, %v3759_v1, %v3763_v51  ;;  %v12182_v41 = vpack.c.bf16 %v12070_v33, %v12030_v26  ;;  %v4450_v47 = vrot.slane %v4448_v52, 2  ;;  %v9057_v14 = vld [vmem:[%s14137_s2 + $0x204] ss:$8 sps:$4 sm:$0xff]   ;;  %vm14370_vm9 = vmmov %vm14363_vm1 }
 0x23e   : > { %v12184_v36 = vor.u32 %v4478_v53, %v4475_v22  ;;  %v4456_v59 = vshrl.u32 %v3764_v31, 16  ;;  %v4459_v44 = vshll.u32 %v3764_v31, 16  ;;  %v4453_v37 = vrot.slane %v4451_v27, 3 }
 0x23f   : > { %v3596_v8 = vsel %vm12097_vm0, %v3375_v28, 0.0  ;;  %v12189_v13 = vshll.u32 %v12182_v41, 16  ;;  %7044 = vmatpush1.bf16.msra.mxu1 %v9043_v45  ;;  %v3671_v42 = vpack.c.bf16 %v9362_v54, %v3667_v39  ;;  %v12197_v9 = vshrl.u32 %v12182_v41, 16  ;;  %v3675_v39 = vld [vmem:[#allocation2 + $0xb8] sm:$0x80] }
 0x240   : > { %3624 = vst [vmem:[#allocation2 + $0x50] sm:$0xff] %v3596_v8  ;;  %v4480_v43 = vsel %vm707_vm3, %v4471_v19, %v12184_v36  ;;  %v4458_v2 = vrot.slane %v4456_v59, 2  ;;  %v4461_v56 = vrot.slane %v4459_v44, 3  ;;  %7045 = vmatprep.subr.bf16.mxu1 %v9051_v63  ;;  %v4454_v18 = vor.u32 %v4453_v37, %v4450_v47  ;;  %v9034_v63 = vld [vmem:[%s14137_s2 + $0x370] ss:$8 sps:$4 sm:$0xff]  }
 0x241   : > { %14356 = vst [vmem:[#allocation9_spill] sm:$0xff] %v12189_v13  ;;  %14357 = vst [vmem:[#allocation11_spill] sm:$0xff] %v12197_v9  ;;  %6982 = vmatprep.mubr.bf16.mxu0 %v4480_v43  ;;  %v4876_v1 = vrot.slane %v12189_v13, 3  ;;  %v12205_v45 = vpack.c.bf16 %v12043_v48, %v11997_v15  ;;  %v12209_v19 = vpack.c.bf16 %v11997_v15, %v11959_v5  ;;  %v4875_v22 = vrot.slane %v12197_v9, 2  ;;  %v9042_v15 = vld [vmem:[%s14137_s2 + $0x364] ss:$8 sps:$4 sm:$0xff]  }
 0x242   : > { %v12214_v10 = vor.u32 %v4461_v56, %v4458_v2  ;;  %v3783_v53 = vor.u32 %v12014_v35, %v3771_v30  ;;  %v3787_v52 = vrot.slane %v12189_v13, 1  ;;  %v12232_v31 = vpack.c.bf16 %v12137_v23, %v12106_v34  ;;  %v9055_v8 = vld [vmem:[%s14137_s2 + $0x200] ss:$8 sps:$4 sm:$0xff]   ;;  %v3676_v37 = vld [vmem:[#allocation2 + $0x18] sm:$0x80] }
 0x243   : > { %v12222_v28 = vshll.u32 %v12205_v45, 16  ;;  %v12225_v5 = vshrl.u32 %v12205_v45, 16  ;;  %7046 = vmatpush1.bf16.msra.mxu1 %v9049_v50  ;;  %v12234_v27 = vrot.slane %v3671_v42, 1  ;;  %v12238_v47 = vor.u32 %v4876_v1, %v4875_v22  ;;  %v9040_v2 = vld [vmem:[%s14137_s2 + $0x360] ss:$8 sps:$4 sm:$0xff]  }
 0x244   : > { %v4463_v30 = vsel %vm707_vm3, %v4454_v18, %v12214_v10  ;;  %v3788_v59 = vsel %vm14358_vm6, %v3783_v53, %v3787_v52  ;;  %v12245_v44 = vpack.c.bf16 %v12106_v34, %v12070_v33  ;;  %7047 = vmatprep.subr.bf16.mxu1 %v9057_v14  ;;  %v3775_v42 = vor.u32 %v12066_v0, %v3763_v51  ;;  %v9063_v33 = vld [vmem:[%s14137_s2 + $0x2f4] ss:$8 sps:$4 sm:$0xff]  }
 0x245   : > { %6983 = vmatmul.mubr.bf16.vlgmr.msra.gmra.mxu0 %v4463_v30  ;;  %v4871_v50 = vrot.slane %v12225_v5, 2  ;;  %v4872_v54 = vrot.slane %v12222_v28, 3  ;;  %v3681_v34 = vpack.c.bf16 %v11844_v40, %v3675_v39  ;;  %v4878_v43 = vsel %vm707_vm3, %v12060_v3, %v12238_v47  ;;  %v9048_v40 = vld [vmem:[%s14137_s2 + $0x354] ss:$8 sps:$4 sm:$0xff]   ;;  %v9061_v39 = vld [vmem:[%s14137_s2 + $0x2f0] ss:$8 sps:$4 sm:$0xff]  }
 0x246   : > { %7117 = vmatpush1.bf16.msra.mxu0 %v9034_v63  ;;  %v4737_v56 = vshrl.u32 %v3788_v59, 16  ;;  %v4740_v14 = vshll.u32 %v3788_v59, 16  ;;  %v3779_v46 = vrot.slane %v12222_v28, 1  ;;  %6919 = vmatprep.mubr.bf16.mxu1 %v4878_v43  ;;  %v12272_v51 = vshll.u32 %v12232_v31, 16 }
 0x247   : > { %v12266_v0 = vor.u32 %v4872_v54, %v4871_v50  ;;  %7118 = vmatprep.subr.bf16.mxu0 %v9042_v15  ;;  %v12275_v3 = vshrl.u32 %v12232_v31, 16  ;;  %v3682_v18 = vpack.c.bf16 %v11868_v6, %v3676_v37  ;;  %v12281_v53 = vpack.c.bf16 %v12127_v7, %v12084_v57  ;;  %7048 = vmatpush1.bf16.msra.mxu1 %v9055_v8  ;;  %v9069_v15 = vld [vmem:[%s14137_s2 + $0x2e4] ss:$8 sps:$4 sm:$0xff]   ;;  %v3646_v50 = vld [vmem:[#allocation2 + $0x10] sm:$0x1f] }
 0x248   : > { %14359 = vst [vmem:[#allocation5_spill] sm:$0xff] %v12272_v51  ;;  %v4739_v1 = vrot.slane %v4737_v56, 2  ;;  %v4742_v63 = vrot.slane %v4740_v14, 3  ;;  %v3780_v22 = vsel %vm14361_vm7, %v3775_v42, %v3779_v46  ;;  %7049 = vmatprep.subr.bf16.mxu1 %v9063_v33  ;;  %v9046_v54 = vld [vmem:[%s14137_s2 + $0x350] ss:$8 sps:$4 sm:$0xff]   ;;  %v5028_v42 = vrot.slane %v12272_v51, 3 }
 0x249   : > { %14360 = vst [vmem:[#allocation10_spill] sm:$0xff] %v12275_v3  ;;  %v4874_v6 = vsel %vm707_vm3, %v12113_v17, %v12266_v0  ;;  %v4728_v30 = vshrl.u32 %v3780_v22, 16  ;;  %v4731_v59 = vshll.u32 %v3780_v22, 16  ;;  %v5027_v37 = vrot.slane %v12275_v3, 2 }
 0x24a   : > { %6920 = vmatmul.mubr.bf16.gmra.mxu1 %v4874_v6  ;;  %7119 = vmatpush1.bf16.msra.mxu0 %v9040_v2  ;;  %v12293_v8 = vor.u32 %v4742_v63, %v4739_v1  ;;  %v12301_v43 = vpack.c.bf16 %v12084_v57, %v12043_v48  ;;  %v12303_v17 = vrot.slane %v3681_v34, 1  ;;  %v12306_v33 = vshll.u32 %v12281_v53, 16  ;;  %v9054_v1 = vld [vmem:[%s14137_s2 + $0x344] ss:$8 sps:$4 sm:$0xff]   ;;  %v9052_v34 = vld [vmem:[%s14137_s2 + $0x340] ss:$8 sps:$4 sm:$0xff]  }
 0x24b   : > { %7120 = vmatprep.subr.bf16.mxu0 %v9048_v40  ;;  %v4730_v56 = vrot.slane %v4728_v30, 2  ;;  %v4733_v14 = vrot.slane %v4731_v59, 3  ;;  %v12309_v2 = vshrl.u32 %v12281_v53, 16  ;;  %v5029_v57 = vor.u32 %v5028_v42, %v5027_v37  ;;  %7050 = vmatpush2.bf16.msra.mxu1 %v9061_v39  ;;  %v9067_v63 = vld [vmem:[%s14137_s2 + $0x2e0] ss:$8 sps:$4 sm:$0xff]  }
 0x24c   : > { %14362 = vst [vmem:[#allocation13_spill] sm:$0xff] %v12306_v33  ;;  %v4744_v48 = vsel %vm707_vm3, %v12184_v36, %v12293_v8  ;;  %v3658_v40 = vpack.c.bf16 %v3646_v50, %v3646_v50  ;;  %v12323_v22 = vrot.slane %v3682_v18, 1  ;;  %v12327_v6 = vpack.c.bf16 %v12030_v26, %v11977_v11  ;;  %v3645_v39 = vld [vmem:[#allocation2 + $0xc0] sm:$0x1f]  ;;  %7051 = vmatprep.subr.bf16.mxu1 %v9069_v15  ;;  %v9075_v18 = vld [vmem:[%s14137_s2 + $0x2d4] ss:$8 sps:$4 sm:$0xff]  }
 0x24d   : > { %6992 = vmatprep.mubr.bf16.mxu0 %v4744_v48  ;;  %v12329_v30 = vor.u32 %v4733_v14, %v4730_v56  ;;  %v5023_v36 = vrot.slane %v12309_v2, 2  ;;  %v3799_v59 = vor.u32 %v12197_v9, %v3787_v52  ;;  %v5030_v11 = vsel %vm707_vm3, %v12238_v47, %v5029_v57  ;;  %v3662_v42 = vld [vmem:[#allocation2 + $0x10] sm:$0x3f] }
 0x24e   : > { %7121 = vmatpush1.bf16.msra.mxu0 %v9046_v54  ;;  %v5024_v26 = vrot.slane %v12306_v33, 3  ;;  %v5185_v37 = vshrl.u32 %v3658_v40, 16  ;;  %v5188_v50 = vshll.u32 %v3658_v40, 16  ;;  %6929 = vmatprep.mubr.bf16.mxu1 %v5030_v11  ;;  %v3803_v52 = vrot.slane %v12272_v51, 1  ;;  %v9060_v15 = vld [vmem:[%s14137_s2 + $0x334] ss:$8 sps:$4 sm:$0xff]  }
 0x24f   : > { %v4735_v56 = vsel %vm707_vm3, %v12214_v10, %v12329_v30  ;;  %7122 = vmatprep.subr.bf16.mxu0 %v9054_v1  ;;  %v3791_v54 = vor.u32 %v12225_v5, %v3779_v46  ;;  %v3795_v47 = vrot.slane %v12306_v33, 1  ;;  %v3657_v13 = vpack.c.bf16 %v3645_v39, %v3645_v39  ;;  %7052 = vmatpush2.bf16.msra.mxu1 %v9067_v63  ;;  %v9073_v10 = vld [vmem:[%s14137_s2 + $0x2d0] ss:$8 sps:$4 sm:$0xff]  }
 0x250   : > { %6993 = vmatmul.mubr.bf16.gmra.mxu0 %v4735_v56  ;;  %v5025_v14 = vor.u32 %v5024_v26, %v5023_v36  ;;  %v5187_v48 = vrot.slane %v5185_v37, 2  ;;  %v5190_v40 = vrot.slane %v5188_v50, 3  ;;  %v3804_v1 = vsel %vm14363_vm1, %v3799_v59, %v3803_v52  ;;  %7053 = vmatprep.subr.bf16.mxu1 %v9075_v18  ;;  %v9081_v36 = vld [vmem:[%s14137_s2 + $0x2c4] ss:$8 sps:$4 sm:$0xff]   ;;  %v9058_v59 = vld [vmem:[%s14137_s2 + $0x330] ss:$8 sps:$4 sm:$0xff]  }
 0x251   : > { %v3796_v11 = vsel %vm14364_vm5, %v3791_v54, %v3795_v47  ;;  %v12355_v51 = vpack.c.bf16 %v3662_v42, %v3662_v42  ;;  %v3815_v46 = vor.u32 %v12275_v3, %v3803_v52  ;;  %v4889_v26 = vshrl.u32 %v3804_v1, 16  ;;  %v9066_v50 = vld [vmem:[%s14137_s2 + $0x324] ss:$8 sps:$4 sm:$0xff]  }
 0x252   : > { %v5026_v63 = vsel %vm707_vm3, %v12266_v0, %v5025_v14  ;;  %7123 = vmatpush1.bf16.msra.mxu0 %v9052_v34  ;;  %v5191_v39 = vor.u32 %v5190_v40, %v5187_v48  ;;  %v4892_v37 = vshll.u32 %v3804_v1, 16  ;;  %v4880_v18 = vshrl.u32 %v3796_v11, 16  ;;  %v9079_v0 = vld [vmem:[%s14137_s2 + $0x2c0] ss:$8 sps:$4 sm:$0xff]  }
 0x253   : > { %6930 = vmatmul.mubr.bf16.gmra.mxu1 %v5026_v63  ;;  %7124 = vmatprep.subr.bf16.mxu0 %v9060_v15  ;;  %v4883_v42 = vshll.u32 %v3796_v11, 16  ;;  %v5176_v56 = vshrl.u32 %v3657_v13, 16  ;;  %v5179_v52 = vshll.u32 %v3657_v13, 16  ;;  %v4891_v54 = vrot.slane %v4889_v26, 2  ;;  %v3661_v1 = vld [vmem:[#allocation2 + $0xc0] sm:$0x3f] }
 0x254   : > { %v5192_v34 = vsel %vm707_vm3, %v5029_v57, %v5191_v39  ;;  %v4894_v48 = vrot.slane %v4892_v37, 3  ;;  %v3817_v40 = vshll.u32 %v12355_v51, 16  ;;  %7054 = vmatpush2.bf16.msra.mxu1 %v9073_v10  ;;  %v4882_v3 = vrot.slane %v4880_v18, 2  ;;  %v9087_v13 = vld [vmem:[%s14137_s2 + $0x2b4] ss:$8 sps:$4 sm:$0xff]  }
 0x255   : > { %6939 = vmatprep.mubr.bf16.mxu1 %v5192_v34  ;;  %v4885_v63 = vrot.slane %v4883_v42, 3  ;;  %v5178_v15 = vrot.slane %v5176_v56, 2  ;;  %v5181_v33 = vrot.slane %v5179_v52, 3  ;;  %7055 = vmatprep.subr.bf16.mxu1 %v9081_v36  ;;  %v3843_v57 = vrot.slane %v11914_v38, 1  ;;  %v9064_v37 = vld [vmem:[%s14137_s2 + $0x320] ss:$8 sps:$4 sm:$0xff]  }
 0x256   : > { %v4895_v11 = vor.u32 %v4894_v48, %v4891_v54  ;;  %7125 = vmatpush1.bf16.msra.mxu0 %v9058_v59  ;;  %v3819_v9 = vrot.slane %v3817_v40, 1  ;;  %v3847_v39 = vrot.slane %v11993_v61, 1  ;;  %v3665_v36 = vpack.c.bf16 %v3661_v1, %v3661_v1  ;;  %v14366_v56 = vld [vmem:[#allocation4_spill] sm:$0xff] }
 0x257   : > { %v12379_v26 = vor.u32 %v4885_v63, %v4882_v3  ;;  %v5182_v10 = vor.u32 %v5181_v33, %v5178_v15  ;;  %7126 = vmatprep.subr.bf16.mxu0 %v9066_v50  ;;  %v3807_v18 = vor.u32 %v12309_v2, %v3795_v47  ;;  %v14367_v38 = vrot.slane %v14366_v56, 1  ;;  %v9072_v33 = vld [vmem:[%s14137_s2 + $0x314] ss:$8 sps:$4 sm:$0xff]   ;;  %v9085_v47 = vld [vmem:[%s14137_s2 + $0x2b0] ss:$8 sps:$4 sm:$0xff]  }
 0x258   : > { %v4896_v42 = vsel %vm707_vm3, %v12293_v8, %v4895_v11  ;;  %v3820_v59 = vsel %vm14365_vm12, %v3815_v46, %v3819_v9  ;;  %vm14368_vm13 = vcmask 1046528   ;;  %7056 = vmatpush2.bf16.msra.mxu1 %v9079_v0  ;;  %v9093_v54 = vld [vmem:[%s14137_s2 + $0x2a4] ss:$8 sps:$4 sm:$0xff]  }
 0x259   : > { %v3844_v52 = vsel %vm14368_vm13, %v14367_v38, %v3843_v57  ;;  %vm14369_vm14 = vmmov %vm14368_vm13  ;;  %7002 = vmatprep.mubr.bf16.mxu0 %v4896_v42  ;;  %v4887_v8 = vsel %vm707_vm3, %v12329_v30, %v12379_v26  ;;  %v5183_v46 = vsel %vm707_vm3, %v5025_v14, %v5182_v10  ;;  %v5041_v50 = vshrl.u32 %v3820_v59, 16  ;;  %7057 = vmatprep.subr.bf16.mxu1 %v9087_v13  ;;  %v9070_v30 = vld [vmem:[%s14137_s2 + $0x310] ss:$8 sps:$4 sm:$0xff]   ;;  %v9078_v56 = vld [vmem:[%s14137_s2 + $0x304] ss:$8 sps:$4 sm:$0xff]  }
 0x25a   : > { %v3848_v3 = vsel %vm14369_vm14, %v3843_v57, %v3847_v39  ;;  %v5044_v34 = vshll.u32 %v3820_v59, 16  ;;  %7003 = vmatmul.mubr.bf16.gmra.mxu0 %v4887_v8  ;;  %v4499_v0 = vshrl.u32 %v3844_v52, 16  ;;  %v4502_v48 = vshll.u32 %v3844_v52, 16  ;;  %v9091_v8 = vld [vmem:[%s14137_s2 + $0x2a0] ss:$8 sps:$4 sm:$0xff]   ;;  %vm14371_vm10 = vmmov %vm14368_vm13 }
 0x25b   : > { %v4507_v40 = vshrl.u32 %v3848_v3, 16  ;;  %v4510_v1 = vshll.u32 %v3848_v3, 16  ;;  %6940 = vmatmul.mubr.bf16.gmra.mxu1 %v5183_v46  ;;  %v5043_v63 = vrot.slane %v5041_v50, 2  ;;  %7127 = vmatpush1.bf16.msra.mxu0 %v9064_v37  ;;  %v3809_v14 = vshll.u32 %v3665_v36, 16  ;;  %vm14372_vm2 = vmmov %vm14371_vm10 }
 0x25c   : > { %v5046_v15 = vrot.slane %v5044_v34, 3  ;;  %v3824_v13 = vshrl.u32 %v12355_v51, 16  ;;  %v4501_v57 = vrot.slane %v4499_v0, 2  ;;  %v4504_v10 = vrot.slane %v4502_v48, 3  ;;  %7128 = vmatprep.subr.bf16.mxu0 %v9072_v33  ;;  %7058 = vmatpush2.bf16.msra.mxu1 %v9085_v47  ;;  %v9099_v47 = vld [vmem:[%s14137_s2 + $0x294] ss:$8 sps:$4 sm:$0xff]   ;;  %vm14373_vm0 = vmmov %vm14372_vm2 }
 0x25d   : > { %v4509_v42 = vrot.slane %v4507_v40, 2  ;;  %v4512_v59 = vrot.slane %v4510_v1, 3  ;;  %v3811_v52 = vrot.slane %v3809_v14, 1  ;;  %v3821_v3 = vshrl.u32 %v3665_v36, 16  ;;  %7059 = vmatprep.subr.bf16.mxu1 %v9093_v54  ;;  %v9076_v54 = vld [vmem:[%s14137_s2 + $0x300] ss:$8 sps:$4 sm:$0xff]   ;;  %vm14374_vm4 = vmmov %vm14373_vm0 }
 0x25e   : > { %v5047_v38 = vor.u32 %v5046_v15, %v5043_v63  ;;  %v3826_v37 = vor.u32 %v3824_v13, %v3819_v9  ;;  %v4505_v51 = vor.u32 %v4504_v10, %v4501_v57  ;;  %v3684_v33 = vpack.c.bf16 %v11947_v32, %v11905_v21  ;;  %v9097_v15 = vld [vmem:[%s14137_s2 + $0x290] ss:$8 sps:$4 sm:$0xff]   ;;  %vm14375_vm8 = vmmov %vm14373_vm0 }
 0x25f   : > { %v12417_v46 = vor.u32 %v4512_v59, %v4509_v42  ;;  %v3881_v50 = vrot.slane %v12327_v6, 1  ;;  %v3812_v36 = vsel %vm14370_vm9, %v3807_v18, %v3811_v52  ;;  %7129 = vmatpush1.bf16.msra.mxu0 %v9070_v30  ;;  %v3823_v40 = vor.u32 %v3821_v3, %v3811_v52  ;;  %v9105_v42 = vld [vmem:[%s14137_s2 + $0x284] ss:$8 sps:$4 sm:$0xff]   ;;  %vm14376_vm11 = vmmov %vm14373_vm0 }
 0x260   : > { %v5048_v9 = vsel %vm707_vm3, %v4895_v11, %v5047_v38  ;;  %v5203_v34 = vshrl.u32 %v3826_v37, 16  ;;  %v5206_v0 = vshll.u32 %v3826_v37, 16  ;;  %v5032_v32 = vshrl.u32 %v3812_v36, 16  ;;  %7130 = vmatprep.subr.bf16.mxu0 %v9078_v56  ;;  %v9084_v11 = vld [vmem:[%s14137_s2 + $0x3f4] ss:$8 sps:$4 sm:$0xff]   ;;  %7060 = vmatpush2.bf16.msra.mxu1 %v9091_v8  ;;  %vm14377_vm15 = vmmov %vm14373_vm0 }
 0x261   : > { %7012 = vmatprep.mubr.bf16.mxu0 %v5048_v9  ;;  %v4514_v21 = vsel %vm707_vm3, %v4505_v51, %v12417_v46  ;;  %v5035_v48 = vshll.u32 %v3812_v36, 16  ;;  %v3877_v63 = vrot.slane %v3684_v33, 1  ;;  %v3840_v30 = vrot.slane %v11901_v12, 1  ;;  %7061 = vmatprep.subr.bf16.mxu1 %v9099_v47  ;;  %v9082_v56 = vld [vmem:[%s14137_s2 + $0x3f0] ss:$8 sps:$4 sm:$0xff]   ;;  %vm14378_vm6 = vmmov %vm14373_vm0 }
 0x262   : > { %7065 = vmatprep.mubr.bf16.mxu1 %v4514_v21  ;;  %v5205_v18 = vrot.slane %v5203_v34, 2  ;;  %v5208_v1 = vrot.slane %v5206_v0, 3  ;;  %v5034_v14 = vrot.slane %v5032_v32, 2  ;;  %v5194_v57 = vshrl.u32 %v3823_v40, 16  ;;  %v9090_v47 = vld [vmem:[%s14137_s2 + $0x3e4] ss:$8 sps:$4 sm:$0xff]   ;;  %vm14379_vm7 = vmmov %vm14373_vm0 }
 0x263   : > { %v5037_v13 = vrot.slane %v5035_v48, 3  ;;  %v5197_v10 = vshll.u32 %v3823_v40, 16  ;;  %7131 = vmatpush1.bf16.msra.mxu0 %v9076_v54  ;;  %v3878_v52 = vsel %vm14371_vm10, %v12323_v22, %v3877_v63  ;;  %v3882_v12 = vsel %vm14372_vm2, %v3877_v63, %v3881_v50  ;;  %v9103_v0 = vld [vmem:[%s14137_s2 + $0x280] ss:$8 sps:$4 sm:$0xff]   ;;  %vm14380_vm1 = vmmov %vm14373_vm0 }
 0x264   : > { %v5209_v59 = vor.u32 %v5208_v1, %v5205_v18  ;;  %v3841_v37 = vsel %vm14373_vm0, %v12234_v27, %v3840_v30  ;;  %7132 = vmatprep.subr.bf16.mxu0 %v9084_v11  ;;  %v5196_v8 = vrot.slane %v5194_v57, 2  ;;  %v4533_v33 = vshrl.u32 %v3878_v52, 16  ;;  %7062 = vmatpush2.bf16.msra.mxu1 %v9097_v15  ;;  %vm14381_vm5 = vmmov %vm14373_vm0 }
 0x265   : > { %v5038_v3 = vor.u32 %v5037_v13, %v5034_v14  ;;  %v5199_v51 = vrot.slane %v5197_v10, 3  ;;  %v4536_v36 = vshll.u32 %v3878_v52, 16  ;;  %v4541_v22 = vshrl.u32 %v3882_v12, 16  ;;  %7063 = vmatprep.subr.bf16.mxu1 %v9105_v42  ;;  %v9096_v10 = vld [vmem:[%s14137_s2 + $0x3d4] ss:$8 sps:$4 sm:$0xff]   ;;  %vm14382_vm12 = vmmov %vm14373_vm0 }
 0x266   : > { %v5210_v9 = vsel %vm707_vm3, %v5047_v38, %v5209_v59  ;;  %v4544_v34 = vshll.u32 %v3882_v12, 16  ;;  %v4535_v21 = vrot.slane %v4533_v33, 2  ;;  %v3845_v32 = vrot.slane %v12039_v55, 1  ;;  %v9111_v38 = vld [vmem:[%s14137_s2 + $0x474] ss:$8 sps:$4 sm:$0xff]   ;;  %vm14383_vm13 = vmmov %vm14373_vm0 }
 0x267   : > { %v5039_v27 = vsel %vm707_vm3, %v12379_v26, %v5038_v3  ;;  %v5200_v54 = vor.u32 %v5199_v51, %v5196_v8  ;;  %v4538_v48 = vrot.slane %v4536_v36, 3  ;;  %v4543_v11 = vrot.slane %v4541_v22, 2  ;;  %7133 = vmatpush2.bf16.msra.mxu0 %v9082_v56  ;;  %v9088_v26 = vld [vmem:[%s14137_s2 + $0x3e0] ss:$8 sps:$4 sm:$0xff]   ;;  %v9094_v33 = vld [vmem:[%s14137_s2 + $0x3d0] ss:$8 sps:$4 sm:$0xff]   ;;  %vm14384_vm14 = vmmov %vm14373_vm0 }
 0x268   : > { %7013 = vmatmul.mubr.bf16.gmra.mxu0 %v5039_v27  ;;  %v4546_v40 = vrot.slane %v4544_v34, 3  ;;  %v4482_v18 = vshrl.u32 %v3841_v37, 16  ;;  %v3846_v63 = vsel %vm14374_vm4, %v3840_v30, %v3845_v32  ;;  %v4485_v15 = vshll.u32 %v3841_v37, 16  ;;  %7134 = vmatprep.subr.bf16.mxu0 %v9090_v47  ;;  %v9102_v22 = vld [vmem:[%s14137_s2 + $0x3c4] ss:$8 sps:$4 sm:$0xff]   ;;  %vm14385_vm9 = vmmov %vm14373_vm0 }
 0x269   : > { %7022 = vmatprep.mubr.bf16.mxu0 %v5210_v9  ;;  %v5201_v1 = vsel %vm707_vm3, %v5038_v3, %v5200_v54  ;;  %v3851_v14 = vrot.slane %v12182_v41, 1  ;;  %v4539_v13 = vor.u32 %v4538_v48, %v4535_v21  ;;  %7064 = vmatpush2.bf16.msra.mxu1 %v9103_v0  ;;  %v4490_v59 = vshrl.u32 %v3846_v63, 16  ;;  %vm14386_vm10 = vmmov %vm14373_vm0 }
 0x26a   : > { %v12471_v57 = vor.u32 %v4546_v40, %v4543_v11  ;;  %v4484_v42 = vrot.slane %v4482_v18, 2  ;;  %v4487_v56 = vrot.slane %v4485_v15, 3  ;;  %v4493_v52 = vshll.u32 %v3846_v63, 16  ;;  %7199 = vmatprep.subr.bf16.mxu1 %v9111_v38  ;;  %v9109_v38 = vld [vmem:[%s14137_s2 + $0x470] ss:$8 sps:$4 sm:$0xff]   ;;  %vm14387_vm4 = vmmov %vm14373_vm0 }
 0x26b   : > { %v3852_v30 = vsel %vm14375_vm8, %v3847_v39, %v3851_v14  ;;  %v3849_v12 = vrot.slane %v12205_v45, 1  ;;  %v4492_v3 = vrot.slane %v4490_v59, 2  ;;  %7135 = vmatpush2.bf16.msra.mxu0 %v9088_v26  ;;  %v3855_v39 = vrot.slane %v12232_v31, 1  ;;  %v9117_v18 = vld [vmem:[%s14137_s2 + $0x464] ss:$8 sps:$4 sm:$0xff]  }
 0x26c   : > { %v4548_v37 = vsel %vm707_vm3, %v4539_v13, %v12471_v57  ;;  %v4755_v8 = vshrl.u32 %v3852_v30, 16  ;;  %v4758_v51 = vshll.u32 %v3852_v30, 16  ;;  %v4488_v47 = vor.u32 %v4487_v56, %v4484_v42  ;;  %7136 = vmatprep.subr.bf16.mxu0 %v9096_v10  ;;  %v9108_v10 = vld [vmem:[%s14137_s2 + $0x3b4] ss:$8 sps:$4 sm:$0xff]   ;;  %v9106_v30 = vld [vmem:[%s14137_s2 + $0x3b0] ss:$8 sps:$4 sm:$0xff]  }
 0x26d   : > { %v4495_v9 = vrot.slane %v4493_v52, 3  ;;  %v3850_v36 = vsel %vm14376_vm11, %v3845_v32, %v3849_v12  ;;  %v3856_v32 = vsel %vm14377_vm15, %v3851_v14, %v3855_v39  ;;  %v3683_v48 = vpack.c.bf16 %v11924_v60, %v11881_v24  ;;  %v9100_v14 = vld [vmem:[%s14137_s2 + $0x3c0] ss:$8 sps:$4 sm:$0xff]  }
 0x26e   : > { %v4757_v34 = vrot.slane %v4755_v8, 2  ;;  %v4760_v0 = vrot.slane %v4758_v51, 3  ;;  %v4746_v27 = vshrl.u32 %v3850_v36, 16  ;;  %v4749_v54 = vshll.u32 %v3850_v36, 16 }
 0x26f   : > { %v4496_v21 = vor.u32 %v4495_v9, %v4492_v3  ;;  %v3879_v11 = vrot.slane %v12209_v19, 1  ;;  %v4907_v15 = vshrl.u32 %v3856_v32, 16  ;;  %7137 = vmatpush2.bf16.msra.mxu0 %v9094_v33  ;;  %v4910_v24 = vshll.u32 %v3856_v32, 16  ;;  %v9123_v33 = vld [vmem:[%s14137_s2 + $0x454] ss:$8 sps:$4 sm:$0xff]  }
 0x270   : > { %7023 = vmatmul.mubr.bf16.gmra.mxu0 %v5201_v1  ;;  %v4761_v40 = vor.u32 %v4760_v0, %v4757_v34  ;;  %v4748_v26 = vrot.slane %v4746_v27, 2  ;;  %v4751_v63 = vrot.slane %v4749_v54, 3  ;;  %v3874_v60 = vrot.slane %v3683_v48, 1  ;;  %7138 = vmatprep.subr.bf16.mxu0 %v9102_v22  ;;  %v3670_v27 = vld [vmem:[#allocation2 + $0x10] sm:$0x7f] }
 0x271   : > { %7148 = vmatprep.mubr.bf16.mxu0 %v4548_v37  ;;  %v4497_v13 = vsel %vm707_vm3, %v4488_v47, %v4496_v21  ;;  %v3885_v1 = vrot.slane %v12245_v44, 1  ;;  %v4909_v56 = vrot.slane %v4907_v15, 2  ;;  %v3853_v52 = vrot.slane %v12281_v53, 1  ;;  %v9115_v37 = vld [vmem:[%s14137_s2 + $0x460] ss:$8 sps:$4 sm:$0xff]  }
 0x272   : > { %7066 = vmatmul.mubr.bf16.vlgmr.msra.gmra.mxu1 %v4497_v13  ;;  %v4762_v42 = vsel %vm707_vm3, %v12417_v46, %v4761_v40  ;;  %v12514_v59 = vor.u32 %v4751_v63, %v4748_v26  ;;  %v4912_v3 = vrot.slane %v4910_v24, 3  ;;  %v3875_v8 = vsel %vm14378_vm6, %v12303_v17, %v3874_v60  ;;  %v3669_v26 = vld [vmem:[#allocation2 + $0xc0] sm:$0x7f] }
 0x273   : > { %7075 = vmatprep.mubr.bf16.mxu1 %v4762_v42  ;;  %7200 = vmatpush1.bf16.msra.mxu1 %v9109_v38  ;;  %v3880_v46 = vsel %vm14379_vm7, %v3874_v60, %v3879_v11  ;;  %v3886_v51 = vsel %vm14380_vm1, %v3881_v50, %v3885_v1  ;;  %v4516_v47 = vshrl.u32 %v3875_v8, 16  ;;  %v4519_v9 = vshll.u32 %v3875_v8, 16  ;;  %v9114_v50 = vld [vmem:[%s14137_s2 + $0x3a4] ss:$8 sps:$4 sm:$0xff]   ;;  %v9121_v38 = vld [vmem:[%s14137_s2 + $0x450] ss:$8 sps:$4 sm:$0xff]  }
 0x274   : > { %7201 = vmatprep.subr.bf16.mxu1 %v9117_v18  ;;  %v4524_v36 = vshrl.u32 %v3880_v46, 16  ;;  %7139 = vmatpush2.bf16.msra.mxu0 %v9100_v14  ;;  %v12536_v17 = vor.u32 %v4912_v3, %v4909_v56  ;;  %v4527_v22 = vshll.u32 %v3880_v46, 16  ;;  %v4773_v34 = vshrl.u32 %v3886_v51, 16  ;;  %v9129_v15 = vld [vmem:[%s14137_s2 + $0x444] ss:$8 sps:$4 sm:$0xff]  }
 0x275   : > { %v4776_v0 = vshll.u32 %v3886_v51, 16  ;;  %v12540_v54 = vpack.c.bf16 %v12162_v29, %v12137_v23  ;;  %7140 = vmatprep.subr.bf16.mxu0 %v9108_v10  ;;  %v3854_v32 = vsel %vm14381_vm5, %v3849_v12, %v3853_v52  ;;  %v4753_v23 = vsel %vm707_vm3, %v4496_v21, %v12514_v59  ;;  %v9112_v21 = vld [vmem:[%s14137_s2 + $0x3a0] ss:$8 sps:$4 sm:$0xff]  }
 0x276   : > { %v12555_v29 = vrot.slane %v4516_v47, 2  ;;  %v12557_v48 = vrot.slane %v4519_v9, 3  ;;  %v4526_v18 = vrot.slane %v4524_v36, 2  ;;  %v4914_v63 = vsel %vm707_vm3, %v4761_v40, %v12536_v17  ;;  %v9120_v40 = vld [vmem:[%s14137_s2 + $0x394] ss:$8 sps:$4 sm:$0xff]  }
 0x277   : > { %7202 = vmatpush1.bf16.msra.mxu1 %v9115_v37  ;;  %v4898_v14 = vshrl.u32 %v3854_v32, 16  ;;  %v4901_v12 = vshll.u32 %v3854_v32, 16  ;;  %v3674_v13 = vpack.c.bf16 %v3670_v27, %v3670_v27  ;;  %v4529_v24 = vrot.slane %v4527_v22, 3 }
 0x278   : > { %7203 = vmatprep.subr.bf16.mxu1 %v9123_v33  ;;  %7141 = vmatpush2.bf16.msra.mxu0 %v9106_v30  ;;  %v4775_v60 = vrot.slane %v4773_v34, 2  ;;  %v4778_v10 = vrot.slane %v4776_v0, 3  ;;  %v3883_v42 = vrot.slane %v12301_v43, 1  ;;  %v3673_v8 = vpack.c.bf16 %v3669_v26, %v3669_v26  ;;  %v9127_v30 = vld [vmem:[%s14137_s2 + $0x440] ss:$8 sps:$4 sm:$0xff]  }
 0x279   : > { %7142 = vmatprep.subr.bf16.mxu0 %v9114_v50  ;;  %v4900_v56 = vrot.slane %v4898_v14, 2  ;;  %v4903_v37 = vrot.slane %v4901_v12, 3  ;;  %v3859_v3 = vrot.slane %v3674_v13, 1  ;;  %v3889_v46 = vrot.slane %v12540_v54, 1  ;;  %v9135_v33 = vld [vmem:[%s14137_s2 + $0x434] ss:$8 sps:$4 sm:$0xff]  }
 0x27a   : > { %7076 = vmatmul.mubr.bf16.gmra.mxu1 %v4753_v23  ;;  %v12577_v51 = vpack.c.bf16 %v12148_v4, %v12127_v7  ;;  %v3884_v9 = vsel %vm14383_vm13, %v3879_v11, %v3883_v42  ;;  %v9118_v7 = vld [vmem:[%s14137_s2 + $0x390] ss:$8 sps:$4 sm:$0xff]   ;;  %v12595_v34 = vrot.slane %v3673_v8, 1  ;;  %v4522_v0 = vor.u32 %v12557_v48, %v12555_v29  ;;  %v9141_v48 = vld [vmem:[%s14137_s2 + $0x424] ss:$8 sps:$4 sm:$0xff]  }
 0x27b   : > { %7085 = vmatprep.mubr.bf16.mxu1 %v4914_v63  ;;  %7204 = vmatpush1.bf16.msra.mxu1 %v9121_v38  ;;  %v3860_v47 = vsel %vm14382_vm12, %v3855_v39, %v3859_v3  ;;  %v12593_v4 = vor.u32 %v4903_v37, %v4900_v56  ;;  %v9126_v39 = vld [vmem:[%s14137_s2 + $0x384] ss:$8 sps:$4 sm:$0xff]   ;;  %v12602_v11 = vor.u32 %v4529_v24, %v4526_v18  ;;  %v9133_v50 = vld [vmem:[%s14137_s2 + $0x430] ss:$8 sps:$4 sm:$0xff]   ;;  %v4764_v18 = vshrl.u32 %v3884_v9, 16 }
 0x27c   : > { %7205 = vmatprep.subr.bf16.mxu1 %v9129_v15  ;;  %7143 = vmatpush2.bf16.msra.mxu0 %v9112_v21  ;;  %v5059_v36 = vshrl.u32 %v3860_v47, 16  ;;  %v5062_v22 = vshll.u32 %v3860_v47, 16  ;;  %v12604_v27 = vor.u32 %v4778_v10, %v4775_v60  ;;  %v3890_v23 = vsel %vm14384_vm14, %v3885_v1, %v3889_v46  ;;  %v9124_v1 = vld [vmem:[%s14137_s2 + $0x380] ss:$8 sps:$4 sm:$0xff]   ;;  %v3680_v21 = vld [vmem:[#allocation2 + $0x50] sm:$0x7f] }
 0x27d   : > { %7144 = vmatprep.subr.bf16.mxu0 %v9120_v40  ;;  %v3858_v29 = vsel %vm14385_vm9, %v3853_v52, %v12595_v34  ;;  %v3887_v15 = vrot.slane %v12577_v51, 1  ;;  %v4905_v14 = vsel %vm707_vm3, %v12514_v59, %v12593_v4  ;;  %v5221_v12 = vshrl.u32 %v3859_v3, 16  ;;  %v9132_v24 = vld [vmem:[%s14137_s2 + $0x574] ss:$8 sps:$4 sm:$0xff]   ;;  %v9139_v59 = vld [vmem:[%s14137_s2 + $0x420] ss:$8 sps:$4 sm:$0xff]  }
 0x27e   : > { %v5061_v38 = vrot.slane %v5059_v36, 2  ;;  %v5064_v32 = vrot.slane %v5062_v22, 3  ;;  %v5050_v26 = vshrl.u32 %v3858_v29, 16  ;;  %v5053_v63 = vshll.u32 %v3858_v29, 16  ;;  %v9147_v47 = vld [vmem:[%s14137_s2 + $0x414] ss:$8 sps:$4 sm:$0xff]  }
 0x27f   : > { %7206 = vmatpush1.bf16.msra.mxu1 %v9127_v30  ;;  %v5224_v13 = vshll.u32 %v3859_v3, 16  ;;  %v4767_v60 = vshll.u32 %v3884_v9, 16  ;;  %v4925_v10 = vshrl.u32 %v3890_v23, 16  ;;  %v4928_v3 = vshll.u32 %v3890_v23, 16  ;;  %v9138_v22 = vld [vmem:[%s14137_s2 + $0x564] ss:$8 sps:$4 sm:$0xff]  }
 0x280   : > { %7207 = vmatprep.subr.bf16.mxu1 %v9135_v33  ;;  %7145 = vmatpush2.bf16.msra.mxu0 %v9118_v7  ;;  %v5065_v52 = vor.u32 %v5064_v32, %v5061_v38  ;;  %v5052_v40 = vrot.slane %v5050_v26, 2  ;;  %v5055_v56 = vrot.slane %v5053_v63, 3  ;;  %v5223_v8 = vrot.slane %v5221_v12, 2  ;;  %v9130_v7 = vld [vmem:[%s14137_s2 + $0x570] ss:$8 sps:$4 sm:$0xff]  }
 0x281   : > { %7146 = vmatprep.subr.bf16.mxu0 %v9126_v39  ;;  %v5226_v30 = vrot.slane %v5224_v13, 3  ;;  %v4531_v33 = vsel %vm707_vm3, %v4522_v0, %v12602_v11  ;;  %v3692_v9 = vpack.c.bf16 %v3680_v21, %v3680_v21  ;;  %vm3895_vm2 = vsmask.f32 2304  ;;  %v9145_v32 = vld [vmem:[%s14137_s2 + $0x410] ss:$8 sps:$4 sm:$0xff]  }
 0x282   : > { %7086 = vmatmul.mubr.bf16.gmra.mxu1 %v4905_v14  ;;  %v5066_v37 = vsel %vm707_vm3, %v12536_v17, %v5065_v52  ;;  %v3888_v17 = vsel %vm14386_vm10, %v3883_v42, %v3887_v15  ;;  %v4780_v36 = vsel %vm707_vm3, %v12471_v57, %v12604_v27  ;;  %v12655_v39 = vor.u32 %v5055_v56, %v5052_v40 }
 0x283   : > { %7208 = vmatpush1.bf16.msra.mxu1 %v9133_v50  ;;  %7095 = vmatprep.mubr.bf16.mxu1 %v5066_v37  ;;  %v5212_v0 = vshrl.u32 %v12595_v34, 16  ;;  %v5215_v42 = vshll.u32 %v12595_v34, 16  ;;  %v4766_v50 = vrot.slane %v4764_v18, 2  ;;  %v4769_v38 = vrot.slane %v4767_v60, 3  ;;  %v9153_v34 = vld [vmem:[%s14137_s2 + $0x404] ss:$8 sps:$4 sm:$0xff]  }
 0x284   : > { %7209 = vmatprep.subr.bf16.mxu1 %v9141_v48  ;;  %7147 = vmatpush2.bf16.msra.mxu0 %v9124_v1  ;;  %v5227_v23 = vor.u32 %v5226_v30, %v5223_v8  ;;  %v12662_v29 = vrot.slane %v3692_v9, 1  ;;  %v4927_v57 = vrot.slane %v4925_v10, 2  ;;  %v4930_v48 = vrot.slane %v4928_v3, 3  ;;  %v3679_v1 = vld [vmem:[#allocation2 + $0xa8] sm:$0x7f] }
 0x285   : > { %7282 = vmatprep.subr.bf16.mxu0 %v9132_v24  ;;  %v4916_v26 = vshrl.u32 %v3888_v17, 16  ;;  %v3899_v63 = vrot.slane %v11939_v49, 5  ;;  %v4919_v18 = vshll.u32 %v3888_v17, 16  ;;  %v3900_v12 = vrot.slane %v11936_v25, 6  ;;  %v9136_v49 = vld [vmem:[%s14137_s2 + $0x560] ss:$8 sps:$4 sm:$0xff]  }
 0x286   : > { %v3894_v14 = vsel %vm14373_vm0, %v3889_v46, %v12662_v29  ;;  %v3906_v13 = vrot.slane %v12014_v35, 5  ;;  %v5057_v21 = vsel %vm707_vm3, %v12593_v4, %v12655_v39  ;;  %v5214_v24 = vrot.slane %v5212_v0, 2  ;;  %v9144_v25 = vld [vmem:[%s14137_s2 + $0x554] ss:$8 sps:$4 sm:$0xff]   ;;  %v9142_v17 = vld [vmem:[%s14137_s2 + $0x550] ss:$8 sps:$4 sm:$0xff]  }
 0x287   : > { %7210 = vmatpush1.bf16.msra.mxu1 %v9139_v59  ;;  %7149 = vmatmul.mubr.bf16.vlgmr.msra.gmra.mxu0 %v4531_v33  ;;  %v5217_v60 = vrot.slane %v5215_v42, 3  ;;  %v3907_v10 = vrot.slane %v12011_v58, 6  ;;  %v3896_v46 = vrot.slane %v11942_v16, 5  ;;  %v5228_v35 = vsel %vm707_vm3, %v5065_v52, %v5227_v23  ;;  %v9151_v58 = vld [vmem:[%s14137_s2 + $0x400] ss:$8 sps:$4 sm:$0xff]  }
 0x288   : > { %7211 = vmatprep.subr.bf16.mxu1 %v9147_v47  ;;  %7158 = vmatprep.mubr.bf16.mxu0 %v4780_v36  ;;  %v3901_v40 = vor.u32 %v3900_v12, %v3899_v63  ;;  %v3691_v56 = vpack.c.bf16 %v3679_v1, %v3679_v1  ;;  %v12686_v37 = vor.u32 %v4769_v38, %v4766_v50  ;;  %v5077_v4 = vshrl.u32 %v3894_v14, 16  ;;  %v9159_v52 = vld [vmem:[%s14137_s2 + $0x4f4] ss:$8 sps:$4 sm:$0xff]   ;;  %v9150_v0 = vld [vmem:[%s14137_s2 + $0x544] ss:$8 sps:$4 sm:$0xff]  }
 0x289   : > { %7283 = vmatpush1.bf16.msra.mxu0 %v9130_v7  ;;  %v12688_v59 = vor.u32 %v4930_v48, %v4927_v57  ;;  %v12693_v3 = vor.u32 %v3907_v10, %v3906_v13  ;;  %v5080_v8 = vshll.u32 %v3894_v14, 16  ;;  %v4918_v9 = vrot.slane %v4916_v26, 2  ;;  %v9157_v26 = vld [vmem:[%s14137_s2 + $0x4f0] ss:$8 sps:$4 sm:$0xff]   ;;  %v9165_v63 = vld [vmem:[%s14137_s2 + $0x4e4] ss:$8 sps:$4 sm:$0xff]  }
 0x28a   : > { %7284 = vmatprep.subr.bf16.mxu0 %v9138_v22  ;;  %7096 = vmatmul.mubr.bf16.gmra.mxu1 %v5057_v21  ;;  %v4567_v30 = vshrl.u32 %v3901_v40, 16  ;;  %v4570_v33 = vshll.u32 %v3901_v40, 16  ;;  %v12698_v47 = vrot.slane %v3691_v56, 1  ;;  %v4921_v7 = vrot.slane %v4919_v18, 3  ;;  %v3698_v18 = vld [vmem:[#allocation2 + $0x68] sm:$0xfe] }
 0x28b   : > { %7105 = vmatprep.mubr.bf16.mxu1 %v5228_v35  ;;  %7212 = vmatpush1.bf16.msra.mxu1 %v9145_v32  ;;  %v5218_v36 = vor.u32 %v5217_v60, %v5214_v24  ;;  %v3909_v22 = vsel %vm3895_vm2, %v3901_v40, %v12693_v3  ;;  %v3897_v23 = vrot.slane %v11917_v62, 6  ;;  %v4771_v57 = vsel %vm707_vm3, %v12602_v11, %v12686_v37  ;;  %v9148_v14 = vld [vmem:[%s14137_s2 + $0x540] ss:$8 sps:$4 sm:$0xff]   ;;  %v9363_v35 = vld [vmem:[#allocation2 + $0x38] sm:$0xff] }
 0x28c   : > { %7213 = vmatprep.subr.bf16.mxu1 %v9153_v34  ;;  %v4569_v42 = vrot.slane %v4567_v30, 2  ;;  %v4572_v50 = vrot.slane %v4570_v33, 3  ;;  %v4575_v38 = vshrl.u32 %v3909_v22, 16  ;;  %v4578_v32 = vshll.u32 %v3909_v22, 16  ;;  %v9163_v10 = vld [vmem:[%s14137_s2 + $0x4e0] ss:$8 sps:$4 sm:$0xff]  }
 0x28d   : > { %7285 = vmatpush1.bf16.msra.mxu0 %v9136_v49  ;;  %v4932_v48 = vsel %vm707_vm3, %v12604_v27, %v12688_v59  ;;  %v3892_v62 = vsel %vm14387_vm4, %v3887_v15, %v12698_v47  ;;  %v5079_v11 = vrot.slane %v5077_v4, 2  ;;  %v5082_v1 = vrot.slane %v5080_v8, 3  ;;  %v9156_v15 = vld [vmem:[%s14137_s2 + $0x534] ss:$8 sps:$4 sm:$0xff]   ;;  %v9154_v16 = vld [vmem:[%s14137_s2 + $0x530] ss:$8 sps:$4 sm:$0xff]  }
 0x28e   : > { %7286 = vmatprep.subr.bf16.mxu0 %v9144_v25  ;;  %v4577_v34 = vrot.slane %v4575_v38, 2  ;;  %v4580_v27 = vrot.slane %v4578_v32, 3  ;;  %v12728_v12 = vor.u32 %v4921_v7, %v4918_v9  ;;  %v5219_v13 = vsel %vm707_vm3, %v12655_v39, %v5218_v36  ;;  %v9171_v8 = vld [vmem:[%s14137_s2 + $0x4d4] ss:$8 sps:$4 sm:$0xff]   ;;  %v9169_v22 = vld [vmem:[%s14137_s2 + $0x4d0] ss:$8 sps:$4 sm:$0xff]  }
 0x28f   : > { %7214 = vmatpush1.bf16.msra.mxu1 %v9151_v58  ;;  %7159 = vmatmul.mubr.bf16.gmra.mxu0 %v4771_v57  ;;  %v4573_v49 = vor.u32 %v4572_v50, %v4569_v42  ;;  %v5068_v24 = vshrl.u32 %v3892_v62, 16  ;;  %v5071_v60 = vshll.u32 %v3892_v62, 16  ;;  %v5239_v25 = vshrl.u32 %v12662_v29, 16  ;;  %v9177_v50 = vld [vmem:[%s14137_s2 + $0x4c4] ss:$8 sps:$4 sm:$0xff]  }
 0x290   : > { %7215 = vmatprep.subr.bf16.mxu1 %v9159_v52  ;;  %7168 = vmatprep.mubr.bf16.mxu0 %v4932_v48  ;;  %v12735_v21 = vor.u32 %v4580_v27, %v4577_v34  ;;  %v5242_v39 = vshll.u32 %v12662_v29, 16  ;;  %v3702_v40 = vpack.c.bf16 %v9363_v35, %v3698_v18  ;;  %v3898_v56 = vor.u32 %v3897_v23, %v3896_v46  ;;  %v9162_v46 = vld [vmem:[%s14137_s2 + $0x524] ss:$8 sps:$4 sm:$0xff]   ;;  %v9160_v23 = vld [vmem:[%s14137_s2 + $0x520] ss:$8 sps:$4 sm:$0xff]  }
 0x291   : > { %7287 = vmatpush1.bf16.msra.mxu0 %v9142_v17  ;;  %v12744_v58 = vor.u32 %v5082_v1, %v5079_v11  ;;  %v3910_v52 = vrot.slane %v12225_v5, 5  ;;  %v3911_v30 = vrot.slane %v12222_v28, 6  ;;  %vm3950_vm8 = vcmask 1041408   ;;  %v9168_v62 = vld [vmem:[%s14137_s2 + $0x514] ss:$8 sps:$4 sm:$0xff]  }
 0x292   : > { %7288 = vmatprep.subr.bf16.mxu0 %v9150_v0  ;;  %7106 = vmatmul.mubr.bf16.gmra.mxu1 %v5219_v13  ;;  %v4582_v4 = vsel %vm707_vm3, %v4573_v49, %v12735_v21  ;;  %v3955_v29 = vrot.slane %v11993_v61, 6  ;;  %v5070_v33 = vrot.slane %v5068_v24, 2  ;;  %v5073_v17 = vrot.slane %v5071_v60, 3  ;;  %v9166_v35 = vld [vmem:[%s14137_s2 + $0x510] ss:$8 sps:$4 sm:$0xff]  }
 0x293   : > { %7216 = vmatpush2.bf16.msra.mxu1 %v9157_v26  ;;  %7231 = vmatprep.mubr.bf16.mxu1 %v4582_v4  ;;  %v3905_v5 = vsel %vm3895_vm2, %v3898_v56, %v12111_v20  ;;  %v4550_v28 = vshrl.u32 %v3898_v56, 16  ;;  %v4923_v9 = vsel %vm707_vm3, %v12686_v37, %v12728_v12  ;;  %v5241_v7 = vrot.slane %v5239_v25, 2  ;;  %v9183_v25 = vld [vmem:[%s14137_s2 + $0x4b4] ss:$8 sps:$4 sm:$0xff]   ;;  %v9225_v61 = vld [vmem:[%s14137_s2 + $0x644] ss:$8 sps:$4 sm:$0xff]  }
 0x294   : > { %7217 = vmatprep.subr.bf16.mxu1 %v9165_v63  ;;  %v5244_v36 = vrot.slane %v5242_v39, 3  ;;  %v12768_v0 = vrot.slane %v3702_v40, 6  ;;  %v5084_v42 = vsel %vm707_vm3, %v12688_v59, %v12744_v58  ;;  %v5230_v37 = vshrl.u32 %v12698_v47, 16 }
 0x295   : > { %7289 = vmatpush1.bf16.msra.mxu0 %v9148_v14  ;;  %v4553_v38 = vshll.u32 %v3898_v56, 16  ;;  %v4558_v32 = vshrl.u32 %v3905_v5, 16  ;;  %v5233_v57 = vshll.u32 %v12698_v47, 16  ;;  %v4552_v48 = vrot.slane %v4550_v28, 2  ;;  %v9175_v47 = vld [vmem:[%s14137_s2 + $0x4c0] ss:$8 sps:$4 sm:$0xff]  }
 0x296   : > { %7290 = vmatprep.subr.bf16.mxu0 %v9156_v15  ;;  %v3956_v59 = vsel %vm3950_vm8, %v12768_v0, %v3955_v29  ;;  %v4561_v26 = vshll.u32 %v3905_v5, 16  ;;  %v12785_v63 = vor.u32 %v5073_v17, %v5070_v33  ;;  %v12790_v34 = vor.u32 %v3911_v30, %v3910_v52  ;;  %v14388_v14 = vld [vmem:[#allocation11_spill] sm:$0xff]  ;;  %v14389_v15 = vld [vmem:[#allocation9_spill] sm:$0xff] }
 0x297   : > { %7218 = vmatpush2.bf16.msra.mxu1 %v9163_v10  ;;  %7169 = vmatmul.mubr.bf16.gmra.mxu0 %v4923_v9  ;;  %v4555_v11 = vrot.slane %v4553_v38, 3  ;;  %v4560_v1 = vrot.slane %v4558_v32, 2  ;;  %v5245_v27 = vor.u32 %v5244_v36, %v5241_v7  ;;  %v3914_v13 = vrot.slane %v14388_v14, 5  ;;  %v9174_v30 = vld [vmem:[%s14137_s2 + $0x504] ss:$8 sps:$4 sm:$0xff]  }
 0x298   : > { %7219 = vmatprep.subr.bf16.mxu1 %v9171_v8  ;;  %7178 = vmatprep.mubr.bf16.mxu0 %v5084_v42  ;;  %v4563_v18 = vrot.slane %v4561_v26, 3  ;;  %v3915_v49 = vrot.slane %v14389_v15, 6  ;;  %v12797_v24 = vrot.slane %v5230_v37, 2  ;;  %v4609_v60 = vshrl.u32 %v3956_v59, 16  ;;  %v9181_v33 = vld [vmem:[%s14137_s2 + $0x4b0] ss:$8 sps:$4 sm:$0xff]  }
 0x299   : > { %7291 = vmatpush1.bf16.msra.mxu0 %v9154_v16  ;;  %v4612_v10 = vshll.u32 %v3956_v59, 16  ;;  %v3913_v39 = vsel %vm3895_vm2, %v12111_v20, %v12790_v34  ;;  %v4556_v40 = vor.u32 %v4555_v11, %v4552_v48  ;;  %v5075_v52 = vsel %vm707_vm3, %v12728_v12, %v12785_v63  ;;  %v14390_v42 = vld [vmem:[#allocation13_spill] sm:$0xff]  ;;  %v9172_v37 = vld [vmem:[%s14137_s2 + $0x500] ss:$8 sps:$4 sm:$0xff]  }
 0x29a   : > { %7292 = vmatprep.subr.bf16.mxu0 %v9162_v46  ;;  %v4564_v56 = vor.u32 %v4563_v18, %v4560_v1  ;;  %v4782_v4 = vshrl.u32 %v3913_v39, 16  ;;  %v4785_v8 = vshll.u32 %v3913_v39, 16  ;;  %v5235_v16 = vrot.slane %v5233_v57, 3  ;;  %v14391_v57 = vld [vmem:[#allocation10_spill] sm:$0xff]  ;;  %v12839_v26 = vld [vmem:[#allocation2 + $0x50] sm:$0xff] }
 0x29b   : > { %7220 = vmatpush2.bf16.msra.mxu1 %v9169_v22  ;;  %v4601_v20 = vshrl.u32 %v12768_v0, 16  ;;  %v4604_v46 = vshll.u32 %v12768_v0, 16  ;;  %v3916_v5 = vor.u32 %v3915_v49, %v3914_v13  ;;  %v5246_v9 = vsel %vm707_vm3, %v12744_v58, %v5245_v27  ;;  %v9189_v22 = vld [vmem:[%s14137_s2 + $0x4a4] ss:$8 sps:$4 sm:$0xff]   ;;  %v9180_v58 = vld [vmem:[%s14137_s2 + $0x5f4] ss:$8 sps:$4 sm:$0xff]  }
 0x29c   : > { %7221 = vmatprep.subr.bf16.mxu1 %v9177_v50  ;;  %v12820_v17 = vsel %vm707_vm3, %v4556_v40, %v4564_v56  ;;  %v4784_v12 = vrot.slane %v4782_v4, 2  ;;  %v4787_v28 = vrot.slane %v4785_v8, 3  ;;  %v4611_v7 = vrot.slane %v4609_v60, 2  ;;  %v9187_v11 = vld [vmem:[%s14137_s2 + $0x4a0] ss:$8 sps:$4 sm:$0xff]   ;;  %v9364_v15 = vld [vmem:[#allocation2 + $0x10] sm:$0xff] }
 0x29d   : > { %7293 = vmatpush1.bf16.msra.mxu0 %v9160_v23  ;;  %v4614_v36 = vrot.slane %v4612_v10, 3  ;;  %v3918_v0 = vrot.slane %v12309_v2, 5  ;;  %v3919_v50 = vrot.slane %v14390_v42, 6  ;;  %v4603_v32 = vrot.slane %v4601_v20, 2  ;;  %v14392_v2 = vld [vmem:[#allocation5_spill] sm:$0xff] }
 0x29e   : > { %7294 = vmatprep.subr.bf16.mxu0 %v9168_v62  ;;  %v12835_v38 = vor.u32 %v4787_v28, %v4784_v12  ;;  %v4606_v23 = vrot.slane %v4604_v46, 3  ;;  %v3922_v59 = vrot.slane %v14391_v57, 5  ;;  %v3923_v48 = vrot.slane %v14392_v2, 6  ;;  %v9195_v18 = vld [vmem:[%s14137_s2 + $0x494] ss:$8 sps:$4 sm:$0xff]  }
 0x29f   : > { %7222 = vmatpush2.bf16.msra.mxu1 %v9175_v47  ;;  %7179 = vmatmul.mubr.bf16.gmra.mxu0 %v5075_v52  ;;  %v5236_v62 = vor.u32 %v5235_v16, %v12797_v24  ;;  %v3917_v1 = vsel %vm3895_vm2, %v12693_v3, %v3916_v5  ;;  %v12851_v47 = vor.u32 %v4614_v36, %v4611_v7  ;;  %v9178_v14 = vld [vmem:[%s14137_s2 + $0x5f0] ss:$8 sps:$4 sm:$0xff]   ;;  %v9186_v24 = vld [vmem:[%s14137_s2 + $0x5e4] ss:$8 sps:$4 sm:$0xff]   ;;  %v9192_v20 = vld [vmem:[%s14137_s2 + $0x5d4] ss:$8 sps:$4 sm:$0xff]  }
 0x2a0   : > { %7223 = vmatprep.subr.bf16.mxu1 %v9183_v25  ;;  %7188 = vmatprep.mubr.bf16.mxu0 %v5246_v9  ;;  %v12849_v27 = vsel %vm707_vm3, %v4564_v56, %v12835_v38  ;;  %v12859_v13 = vor.u32 %v3919_v50, %v3918_v0  ;;  %v12862_v3 = vpack.c.bf16 %v12839_v26, %v9364_v15  ;;  %v4791_v60 = vshrl.u32 %v3917_v1, 16  ;;  %v9199_v9 = vld [vmem:[%s14137_s2 + $0x480] ss:$8 sps:$4 sm:$0xff]   ;;  %v9207_v50 = vld [vmem:[%s14137_s2 + $0x674] ss:$8 sps:$4 sm:$0xff]  }
 0x2a1   : > { %7295 = vmatpush1.bf16.msra.mxu0 %v9166_v35  ;;  %v4607_v49 = vor.u32 %v4606_v23, %v4603_v32  ;;  %v4794_v10 = vshll.u32 %v3917_v1, 16  ;;  %v12867_v25 = vor.u32 %v3923_v48, %v3922_v59  ;;  %v5237_v39 = vsel %vm707_vm3, %v12785_v63, %v5236_v62  ;;  %v9193_v35 = vld [vmem:[%s14137_s2 + $0x490] ss:$8 sps:$4 sm:$0xff]   ;;  %v9201_v63 = vld [vmem:[%s14137_s2 + $0x484] ss:$8 sps:$4 sm:$0xff]  }
 0x2a2   : > { %7296 = vmatprep.subr.bf16.mxu0 %v9174_v30  ;;  %v3921_v40 = vsel %vm3895_vm2, %v12790_v34, %v12859_v13  ;;  %v3936_v56 = vshrl.u32 %v12862_v3, 16  ;;  %v3939_v4 = vshll.u32 %v12862_v3, 16  ;;  %v12884_v30 = vld [vmem:[#allocation2 + $0xa8] sm:$0xff]  ;;  %v4793_v46 = vrot.slane %v4791_v60, 2  ;;  %v9365_v0 = vld [vmem:[#allocation2 + $0xc0] sm:$0xff] }
 0x2a3   : > { %7224 = vmatpush2.bf16.msra.mxu1 %v9181_v33  ;;  %v4616_v8 = vsel %vm707_vm3, %v4607_v49, %v12851_v47  ;;  %v4934_v52 = vshrl.u32 %v3921_v40, 16  ;;  %v9184_v34 = vld [vmem:[%s14137_s2 + $0x5e0] ss:$8 sps:$4 sm:$0xff]   ;;  %v4937_v16 = vshll.u32 %v3921_v40, 16  ;;  %v4796_v33 = vrot.slane %v4794_v10, 3 }
 0x2a4   : > { %7225 = vmatprep.subr.bf16.mxu1 %v9189_v22  ;;  %v3925_v12 = vsel %vm3895_vm2, %v3916_v5, %v12867_v25  ;;  %v3938_v36 = vrot.slane %v3936_v56, 5  ;;  %v3941_v22 = vrot.slane %v3939_v4, 6  ;;  %v12898_v42 = vpack.c.bf16 %v12884_v30, %v9365_v0  ;;  %v9190_v5 = vld [vmem:[%s14137_s2 + $0x5d0] ss:$8 sps:$4 sm:$0xff]   ;;  %v9198_v57 = vld [vmem:[%s14137_s2 + $0x5c4] ss:$8 sps:$4 sm:$0xff]  }
 0x2a5   : > { %7297 = vmatpush1.bf16.msra.mxu0 %v9172_v37  ;;  %v4936_v28 = vrot.slane %v4934_v52, 2  ;;  %v4939_v7 = vrot.slane %v4937_v16, 3  ;;  %v3697_v37 = vld [vmem:[#allocation2 + $0x60] sm:$0xfe]  ;;  %v4946_v32 = vshll.u32 %v3925_v12, 16  ;;  %v12911_v59 = vor.u32 %v4796_v33, %v4793_v46  ;;  %v9366_v48 = vld [vmem:[#allocation2 + $0x8] sm:$0xff] }
 0x2a6   : > { %7298 = vmatprep.subr.bf16.mxu0 %v9180_v58  ;;  %v4943_v58 = vshrl.u32 %v3925_v12, 16  ;;  %v9205_v2 = vld [vmem:[%s14137_s2 + $0x670] ss:$8 sps:$4 sm:$0xff]   ;;  %v3701_v62 = vpack.c.bf16 %v9366_v48, %v3697_v37  ;;  %v12921_v1 = vor.u32 %v3941_v22, %v3938_v36  ;;  %v3930_v15 = vshll.u32 %v12898_v42, 16  ;;  %v9196_v49 = vld [vmem:[%s14137_s2 + $0x5c0] ss:$8 sps:$4 sm:$0xff]  }
 0x2a7   : > { %7226 = vmatpush2.bf16.msra.mxu1 %v9187_v11  ;;  %7189 = vmatmul.mubr.bf16.gmra.mxu0 %v5237_v39  ;;  %v12906_v23 = vor.u32 %v4939_v7, %v4936_v28  ;;  %v4948_v60 = vrot.slane %v4946_v32, 3  ;;  %v9204_v39 = vld [vmem:[%s14137_s2 + $0x5b4] ss:$8 sps:$4 sm:$0xff]   ;;  %v3959_v40 = vrot.slane %v12182_v41, 6  ;;  %v9217_v12 = vld [vmem:[%s14137_s2 + $0x650] ss:$8 sps:$4 sm:$0xff]  }
 0x2a8   : > { %7227 = vmatprep.subr.bf16.mxu1 %v9195_v18  ;;  %7314 = vmatprep.mubr.bf16.mxu0 %v4616_v8  ;;  %v3927_v18 = vshrl.u32 %v12898_v42, 16  ;;  %v3932_v56 = vrot.slane %v3930_v15, 6  ;;  %v3951_v4 = vrot.slane %v3701_v62, 6  ;;  %v3943_v8 = vsel %vm3895_vm2, %v12867_v25, %v12921_v1  ;;  %v9210_v25 = vld [vmem:[%s14137_s2 + $0x5a4] ss:$8 sps:$4 sm:$0xff]  }
 0x2a9   : > { %7299 = vmatpush2.bf16.msra.mxu0 %v9178_v14  ;;  %v12919_v11 = vsel %vm707_vm3, %v12835_v38, %v12906_v23  ;;  %v9213_v14 = vld [vmem:[%s14137_s2 + $0x664] ss:$8 sps:$4 sm:$0xff]   ;;  %v3953_v38 = vrot.slane %v12039_v55, 6  ;;  %v9211_v55 = vld [vmem:[%s14137_s2 + $0x660] ss:$8 sps:$4 sm:$0xff]   ;;  %v3960_v16 = vsel %vm3950_vm8, %v3955_v29, %v3959_v40  ;;  %v5098_v46 = vshll.u32 %v3943_v8, 16 }
 0x2aa   : > { %7300 = vmatprep.subr.bf16.mxu0 %v9186_v24  ;;  %v4945_v24 = vrot.slane %v4943_v58, 2  ;;  %v3929_v10 = vrot.slane %v3927_v18, 5  ;;  %v4584_v28 = vshrl.u32 %v3951_v4, 16  ;;  %v4587_v29 = vshll.u32 %v3951_v4, 16  ;;  %v9237_v41 = vld [vmem:[%s14137_s2 + $0x624] ss:$8 sps:$4 sm:$0xff]  }
 0x2ab   : > { %7228 = vmatpush2.bf16.msra.mxu1 %v9193_v35  ;;  %v4798_v35 = vsel %vm707_vm3, %v12735_v21, %v12911_v59  ;;  %v3957_v0 = vrot.slane %v12205_v45, 6  ;;  %v4809_v37 = vshrl.u32 %v3960_v16, 16  ;;  %v5100_v62 = vrot.slane %v5098_v46, 3  ;;  %v9241_v45 = vld [vmem:[%s14137_s2 + $0x610] ss:$8 sps:$4 sm:$0xff]  }
 0x2ac   : > { %7229 = vmatprep.subr.bf16.mxu1 %v9201_v63  ;;  %v12949_v21 = vor.u32 %v3932_v56, %v3929_v10  ;;  %v9202_v63 = vld [vmem:[%s14137_s2 + $0x5b0] ss:$8 sps:$4 sm:$0xff]   ;;  %v12954_v52 = vor.u32 %v4948_v60, %v4945_v24  ;;  %v3963_v18 = vrot.slane %v12232_v31, 6  ;;  %v4586_v15 = vrot.slane %v4584_v28, 2  ;;  %v9232_v31 = vld [vmem:[%s14137_s2 + $0x760] ss:$8 sps:$4 sm:$0xff]  }
 0x2ad   : > { %7301 = vmatpush2.bf16.msra.mxu0 %v9184_v34  ;;  %v3954_v34 = vsel %vm3950_vm8, %v3951_v4, %v3953_v38  ;;  %v4589_v24 = vrot.slane %v4587_v29, 3  ;;  %v3958_v10 = vsel %vm3950_vm8, %v3953_v38, %v3957_v0  ;;  %v13005_v4 = vld [vmem:[#allocation2 + $0x70] sm:$0xff]  ;;  %v9222_v38 = vld [vmem:[%s14137_s2 + $0x584] ss:$8 sps:$4 sm:$0xff]   ;;  %v3983_v46 = vrot.slane %v12327_v6, 6 }
 0x2ae   : > { %7302 = vmatprep.subr.bf16.mxu0 %v9192_v20  ;;  %v5095_v20 = vshrl.u32 %v3943_v8, 16  ;;  %v3934_v33 = vsel %vm3895_vm2, %v12859_v13, %v12949_v21  ;;  %v4592_v36 = vshrl.u32 %v3954_v34, 16  ;;  %v4595_v22 = vshll.u32 %v3954_v34, 16  ;;  %v9208_v13 = vld [vmem:[%s14137_s2 + $0x5a0] ss:$8 sps:$4 sm:$0xff]  }
 0x2af   : > { %7230 = vmatpush2.bf16.msra.mxu1 %v9199_v9  ;;  %v5086_v9 = vshrl.u32 %v3934_v33, 16  ;;  %v5089_v7 = vshll.u32 %v3934_v33, 16  ;;  %v5260_v34 = vshll.u32 %v12921_v1, 16  ;;  %v4590_v33 = vor.u32 %v4589_v24, %v4586_v15 }
 0x2b0   : > { %7365 = vmatprep.subr.bf16.mxu1 %v9207_v50  ;;  %v3706_v50 = vld [vmem:[#allocation2 + $0x38] sm:$0xfe]  ;;  %v5097_v48 = vrot.slane %v5095_v20, 2  ;;  %v4597_v60 = vrot.slane %v4595_v22, 3  ;;  %v4803_v20 = vshll.u32 %v3958_v10, 16  ;;  %vm4112_vm15 = vcmask 1040384  }
 0x2b1   : > { %7303 = vmatpush2.bf16.msra.mxu0 %v9190_v5  ;;  %v4812_v5 = vshll.u32 %v3960_v16, 16  ;;  %v5088_v58 = vrot.slane %v5086_v9, 2  ;;  %v5091_v32 = vrot.slane %v5089_v7, 3  ;;  %v3712_v8 = vpack.c.bf16 %v13005_v4, %v3706_v50  ;;  %v9235_v22 = vld [vmem:[%s14137_s2 + $0x620] ss:$8 sps:$4 sm:$0xff]  }
 0x2b2   : > { %7304 = vmatprep.subr.bf16.mxu0 %v9198_v57  ;;  %7232 = vmatmul.mubr.bf16.vlgmr.msra.gmra.mxu1 %v12820_v17  ;;  %v9219_v17 = vld [vmem:[%s14137_s2 + $0x654] ss:$8 sps:$4 sm:$0xff]   ;;  %v4800_v16 = vshrl.u32 %v3958_v10, 16  ;;  %v3961_v9 = vrot.slane %v12281_v53, 6  ;;  %vm4001_vm11 = vsmask.f32 1280 }
 0x2b3   : > { %7241 = vmatprep.mubr.bf16.mxu1 %v4798_v35  ;;  %7366 = vmatpush1.bf16.msra.mxu1 %v9205_v2  ;;  %v9216_v57 = vld [vmem:[%s14137_s2 + $0x594] ss:$8 sps:$4 sm:$0xff]   ;;  %v4950_v2 = vsel %vm707_vm3, %v12911_v59, %v12954_v52  ;;  %v4811_v35 = vrot.slane %v4809_v37, 2  ;;  %v4814_v56 = vrot.slane %v4812_v5, 3  ;;  %v13033_v7 = vrot.slane %v3712_v8, 6 }
 0x2b4   : > { %7367 = vmatprep.subr.bf16.mxu1 %v9213_v14  ;;  %v9223_v14 = vld [vmem:[%s14137_s2 + $0x640] ss:$8 sps:$4 sm:$0xff]   ;;  %v9231_v59 = vld [vmem:[%s14137_s2 + $0x634] ss:$8 sps:$4 sm:$0xff]   ;;  %v4802_v37 = vrot.slane %v4800_v16, 2  ;;  %v4805_v5 = vrot.slane %v4803_v20, 3 }
 0x2b5   : > { %7305 = vmatpush2.bf16.msra.mxu0 %v9196_v49  ;;  %v12989_v49 = vor.u32 %v5091_v32, %v5088_v58  ;;  %v13038_v29 = vor.u32 %v4814_v56, %v4811_v35  ;;  %v3967_v58 = vrot.slane %v12862_v3, 6  ;;  %v3700_v32 = vld [vmem:[#allocation2 + $0x48] sm:$0x1]  ;;  %v9261_v3 = vld [vmem:[%s14137_s2 + $0x6e4] ss:$8 sps:$4 sm:$0xff]  }
 0x2b6   : > { %7306 = vmatprep.subr.bf16.mxu0 %v9204_v39  ;;  %v9214_v39 = vld [vmem:[%s14137_s2 + $0x590] ss:$8 sps:$4 sm:$0xff]   ;;  %v13073_v56 = vor.u32 %v4805_v5, %v4802_v37 }
 0x2b7   : > { %7368 = vmatpush1.bf16.msra.mxu1 %v9211_v55  ;;  %v13003_v55 = vsel %vm707_vm3, %v12906_v23, %v12989_v49  ;;  %v5257_v23 = vshrl.u32 %v12921_v1, 16  ;;  %v9220_v1 = vld [vmem:[%s14137_s2 + $0x580] ss:$8 sps:$4 sm:$0xff]   ;;  %v4816_v35 = vsel %vm707_vm3, %v12851_v47, %v13038_v29  ;;  %v9249_v47 = vld [vmem:[%s14137_s2 + $0x604] ss:$8 sps:$4 sm:$0xff]  }
 0x2b8   : > { %7369 = vmatprep.subr.bf16.mxu1 %v9219_v17  ;;  %v13011_v17 = vor.u32 %v5100_v62, %v5097_v48  ;;  %v3699_v48 = vld [vmem:[#allocation2 + $0x30] sm:$0x1] }
 0x2b9   : > { %7307 = vmatpush2.bf16.msra.mxu0 %v9202_v63  ;;  %v3964_v63 = vsel %vm3950_vm8, %v3959_v40, %v3963_v18  ;;  %v5259_v50 = vrot.slane %v5257_v23, 2  ;;  %v3703_v8 = vpack.c.bf16 %v3699_v48, %v3699_v48 }
 0x2ba   : > { %7308 = vmatprep.subr.bf16.mxu0 %v9210_v25  ;;  %7242 = vmatmul.mubr.bf16.gmra.mxu1 %v12849_v27  ;;  %v4594_v27 = vrot.slane %v4592_v36, 2  ;;  %v9229_v25 = vld [vmem:[%s14137_s2 + $0x630] ss:$8 sps:$4 sm:$0xff]   ;;  %v4961_v40 = vshrl.u32 %v3964_v63, 16  ;;  %v4964_v28 = vshll.u32 %v3964_v63, 16  ;;  %v5102_v36 = vsel %vm707_vm3, %v12954_v52, %v13011_v17 }
 0x2bb   : > { %7251 = vmatprep.mubr.bf16.mxu1 %v4950_v2  ;;  %7370 = vmatpush1.bf16.msra.mxu1 %v9217_v12  ;;  %v9243_v52 = vld [vmem:[%s14137_s2 + $0x614] ss:$8 sps:$4 sm:$0xff]   ;;  %v5251_v2 = vshll.u32 %v12949_v21, 16 }
 0x2bc   : > { %7371 = vmatprep.subr.bf16.mxu1 %v9225_v61  ;;  %v13024_v12 = vor.u32 %v4597_v60, %v4594_v27  ;;  %v9228_v61 = vld [vmem:[%s14137_s2 + $0x774] ss:$8 sps:$4 sm:$0xff]   ;;  %v4963_v15 = vrot.slane %v4961_v40, 2  ;;  %v4966_v24 = vrot.slane %v4964_v28, 3  ;;  %v3962_v27 = vsel %vm3950_vm8, %v3957_v0, %v3961_v9 }
 0x2bd   : > { %7309 = vmatpush2.bf16.msra.mxu0 %v9208_v13  ;;  %v5262_v13 = vrot.slane %v5260_v34, 3  ;;  %v3968_v0 = vsel %vm3950_vm8, %v3963_v18, %v3967_v58  ;;  %v5253_v23 = vrot.slane %v5251_v2, 3  ;;  %v4635_v34 = vshrl.u32 %v13033_v7, 16  ;;  %v9246_v2 = vld [vmem:[%s14137_s2 + $0x744] ss:$8 sps:$4 sm:$0xff]  }
 0x2be   : > { %7310 = vmatprep.subr.bf16.mxu0 %v9216_v57  ;;  %v5248_v57 = vshrl.u32 %v12949_v21, 16  ;;  %v4599_v62 = vsel %vm707_vm3, %v4590_v33, %v13024_v12  ;;  %v9234_v21 = vld [vmem:[%s14137_s2 + $0x764] ss:$8 sps:$4 sm:$0xff]   ;;  %v13091_v18 = vor.u32 %v4966_v24, %v4963_v15  ;;  %v4952_v16 = vshrl.u32 %v3962_v27, 16 }
 0x2bf   : > { %7372 = vmatpush1.bf16.msra.mxu1 %v9223_v14  ;;  %v9226_v14 = vld [vmem:[%s14137_s2 + $0x770] ss:$8 sps:$4 sm:$0xff]   ;;  %v5263_v60 = vor.u32 %v5262_v13, %v5259_v50  ;;  %v4955_v20 = vshll.u32 %v3962_v27, 16  ;;  %v3965_v33 = vrot.slane %v12898_v42, 6  ;;  %v9247_v42 = vld [vmem:[%s14137_s2 + $0x600] ss:$8 sps:$4 sm:$0xff]  }
 0x2c0   : > { %7373 = vmatprep.subr.bf16.mxu1 %v9231_v59  ;;  %v5250_v63 = vrot.slane %v5248_v57, 2  ;;  %v5116_v50 = vshll.u32 %v3968_v0, 16  ;;  %v9255_v13 = vld [vmem:[%s14137_s2 + $0x6f4] ss:$8 sps:$4 sm:$0xff]   ;;  %v4637_v37 = vrot.slane %v4635_v34, 2  ;;  %v4031_v57 = vshll.u32 %v12327_v6, 16 }
 0x2c1   : > { %7311 = vmatpush2.bf16.msra.mxu0 %v9214_v39  ;;  %v3704_v39 = vpack.c.bf16 %v3700_v32, %v3700_v32  ;;  %v3966_v32 = vsel %vm3950_vm8, %v3961_v9, %v3965_v33  ;;  %v4954_v48 = vrot.slane %v4952_v16, 2  ;;  %v9253_v9 = vld [vmem:[%s14137_s2 + $0x6f0] ss:$8 sps:$4 sm:$0xff]   ;;  %v9259_v34 = vld [vmem:[%s14137_s2 + $0x6e0] ss:$8 sps:$4 sm:$0xff]  }
 0x2c2   : > { %7312 = vmatprep.subr.bf16.mxu0 %v9222_v38  ;;  %7252 = vmatmul.mubr.bf16.gmra.mxu1 %v12919_v11  ;;  %v3984_v11 = vsel %vm3950_vm8, %v13033_v7, %v3983_v46  ;;  %v3718_v38 = vld [vmem:[#allocation2 + $0x38] sm:$0xfc]  ;;  %v3705_v16 = vld [vmem:[#allocation2 + $0x8] sm:$0xfe] }
 0x2c3   : > { %7261 = vmatprep.mubr.bf16.mxu1 %v5102_v36  ;;  %7374 = vmatpush1.bf16.msra.mxu1 %v9229_v25  ;;  %v4643_v59 = vshrl.u32 %v3984_v11, 16  ;;  %v4646_v10 = vshll.u32 %v3984_v11, 16  ;;  %v4638_v25 = vshll.u32 %v13033_v7, 16  ;;  %v3971_v7 = vrot.slane %v3704_v39, 6 }
 0x2c4   : > { %7375 = vmatprep.subr.bf16.mxu1 %v9237_v41  ;;  %v9240_v41 = vld [vmem:[%s14137_s2 + $0x754] ss:$8 sps:$4 sm:$0xff]   ;;  %v5113_v36 = vshrl.u32 %v3968_v0, 16  ;;  %v4968_v11 = vsel %vm707_vm3, %v13038_v29, %v13091_v18  ;;  %v5107_v39 = vshll.u32 %v3966_v32, 16  ;;  %v4033_v0 = vrot.slane %v4031_v57, 7 }
 0x2c5   : > { %7313 = vmatpush2.bf16.msra.mxu0 %v9220_v1  ;;  %v5264_v1 = vsel %vm707_vm3, %v13011_v17, %v5263_v60  ;;  %v4645_v40 = vrot.slane %v4643_v59, 2  ;;  %v4648_v28 = vrot.slane %v4646_v10, 3  ;;  %v5254_v17 = vor.u32 %v5253_v23, %v5250_v63  ;;  %v9244_v10 = vld [vmem:[%s14137_s2 + $0x740] ss:$8 sps:$4 sm:$0xff]  }
 0x2c6   : > { %7448 = vmatprep.subr.bf16.mxu0 %v9228_v61  ;;  %v4807_v61 = vsel %vm707_vm3, %v13024_v12, %v13073_v56  ;;  %v4640_v5 = vrot.slane %v4638_v25, 3  ;;  %v9238_v12 = vld [vmem:[%s14137_s2 + $0x750] ss:$8 sps:$4 sm:$0xff]   ;;  %v3972_v29 = vsel %vm3950_vm8, %v3967_v58, %v3971_v7  ;;  %v5115_v53 = vrot.slane %v5113_v36, 2 }
 0x2c7   : > { %7376 = vmatpush1.bf16.msra.mxu1 %v9235_v22  ;;  %v3969_v22 = vrot.slane %v3703_v8, 6  ;;  %v5255_v60 = vsel %vm707_vm3, %v12989_v49, %v5254_v17  ;;  %v5104_v58 = vshrl.u32 %v3966_v32, 16  ;;  %v9252_v49 = vld [vmem:[%s14137_s2 + $0x734] ss:$8 sps:$4 sm:$0xff]  }
 0x2c8   : > { %7315 = vmatmul.mubr.bf16.vlgmr.msra.gmra.mxu0 %v4599_v62  ;;  %7377 = vmatprep.subr.bf16.mxu1 %v9243_v52  ;;  %v4028_v52 = vshrl.u32 %v12327_v6, 16  ;;  %v4957_v62 = vrot.slane %v4955_v20, 3  ;;  %v4641_v59 = vor.u32 %v4640_v5, %v4637_v37 }
 0x2c9   : > { %7324 = vmatprep.mubr.bf16.mxu0 %v4816_v35  ;;  %7449 = vmatpush1.bf16.msra.mxu0 %v9226_v14  ;;  %v13124_v14 = vor.u32 %v4648_v28, %v4645_v40  ;;  %v3970_v15 = vsel %vm3950_vm8, %v3965_v33, %v3969_v22  ;;  %v5275_v35 = vshrl.u32 %v3972_v29, 16  ;;  %v9267_v33 = vld [vmem:[%s14137_s2 + $0x6d4] ss:$8 sps:$4 sm:$0xff]   ;;  %v5109_v40 = vrot.slane %v5107_v39, 3  ;;  %v9270_v39 = vld [vmem:[%s14137_s2 + $0x704] ss:$8 sps:$4 sm:$0xff]  }
 0x2ca   : > { %7450 = vmatprep.subr.bf16.mxu0 %v9234_v21  ;;  %7262 = vmatmul.mubr.bf16.gmra.mxu1 %v13003_v55  ;;  %v3722_v55 = vpack.c.bf16 %v13005_v4, %v3718_v38  ;;  %v5118_v21 = vrot.slane %v5116_v50, 3  ;;  %v5278_v38 = vshll.u32 %v3972_v29, 16  ;;  %v5269_v63 = vshll.u32 %v3970_v15, 16  ;;  %v9271_v29 = vld [vmem:[%s14137_s2 + $0x6c0] ss:$8 sps:$4 sm:$0xff]  }
 0x2cb   : > { %7271 = vmatprep.mubr.bf16.mxu1 %v5264_v1  ;;  %7378 = vmatpush1.bf16.msra.mxu1 %v9241_v45  ;;  %v4030_v45 = vrot.slane %v4028_v52, 6  ;;  %v4650_v8 = vsel %vm707_vm3, %v4641_v59, %v13124_v14  ;;  %v4958_v23 = vor.u32 %v4957_v62, %v4954_v48  ;;  %v5106_v1 = vrot.slane %v5104_v58, 2  ;;  %v3717_v62 = vld [vmem:[#allocation2 + $0x8] sm:$0xfc]  ;;  %v9262_v59 = vld [vmem:[%s14137_s2 + $0x710] ss:$8 sps:$4 sm:$0xff]  }
 0x2cc   : > { %7379 = vmatprep.subr.bf16.mxu1 %v9249_v47  ;;  %v4011_v24 = vshrl.u32 %v3722_v55, 16  ;;  %v4014_v27 = vshll.u32 %v3722_v55, 16  ;;  %v5266_v47 = vshrl.u32 %v3970_v15, 16  ;;  %v5119_v20 = vor.u32 %v5118_v21, %v5115_v53  ;;  %v13160_v55 = vld [vmem:[#allocation2 + $0xd8] sm:$0xff] }
 0x2cd   : > { %7451 = vmatpush1.bf16.msra.mxu0 %v9232_v31  ;;  %v5277_v28 = vrot.slane %v5275_v35, 2  ;;  %v13155_v7 = vor.u32 %v4033_v0, %v4030_v45  ;;  %v5271_v22 = vrot.slane %v5269_v63, 3  ;;  %v3711_v50 = vpack.c.bf16 %v13160_v55, %v3705_v16  ;;  %v9279_v21 = vld [vmem:[%s14137_s2 + $0x6b4] ss:$8 sps:$4 sm:$0xff]  }
 0x2ce   : > { %7452 = vmatprep.subr.bf16.mxu0 %v9240_v41  ;;  %v4013_v25 = vrot.slane %v4011_v24, 6  ;;  %v4016_v31 = vrot.slane %v4014_v27, 7  ;;  %v9250_v41 = vld [vmem:[%s14137_s2 + $0x730] ss:$8 sps:$4 sm:$0xff]   ;;  %v5268_v36 = vrot.slane %v5266_v47, 2  ;;  %v4959_v17 = vsel %vm707_vm3, %v13073_v56, %v4958_v23 }
 0x2cf   : > { %7380 = vmatpush1.bf16.msra.mxu1 %v9247_v42  ;;  %v5280_v42 = vrot.slane %v5278_v38, 3  ;;  %v5120_v5 = vsel %vm707_vm3, %v13091_v18, %v5119_v20  ;;  %v9256_v56 = vld [vmem:[%s14137_s2 + $0x720] ss:$8 sps:$4 sm:$0xff]   ;;  %v9264_v18 = vld [vmem:[%s14137_s2 + $0x714] ss:$8 sps:$4 sm:$0xff]   ;;  %v3981_v48 = vrot.slane %v12209_v19, 6  ;;  %v3721_v58 = vpack.c.bf16 %v13160_v55, %v3717_v62 }
 0x2d0   : > { %7325 = vmatmul.mubr.bf16.gmra.mxu0 %v4807_v61  ;;  %7381 = vmatprep.subr.bf16.mxu1 %v9255_v13  ;;  %v9258_v61 = vld [vmem:[%s14137_s2 + $0x724] ss:$8 sps:$4 sm:$0xff]   ;;  %v9265_v13 = vld [vmem:[%s14137_s2 + $0x6d0] ss:$8 sps:$4 sm:$0xff]   ;;  %v4017_v37 = vor.u32 %v4016_v31, %v4013_v25  ;;  %v5272_v57 = vor.u32 %v5271_v22, %v5268_v36  ;;  %v4019_v47 = vshrl.u32 %v12209_v19, 16  ;;  %v4022_v63 = vshll.u32 %v12209_v19, 16 }
 0x2d1   : > { %7334 = vmatprep.mubr.bf16.mxu0 %v4968_v11  ;;  %7453 = vmatpush1.bf16.msra.mxu0 %v9238_v12  ;;  %v9273_v12 = vld [vmem:[%s14137_s2 + $0x6c4] ss:$8 sps:$4 sm:$0xff]   ;;  %v5110_v11 = vor.u32 %v5109_v40, %v5106_v1  ;;  %v5281_v52 = vor.u32 %v5280_v42, %v5277_v28  ;;  %v4006_v1 = vshll.u32 %v3721_v58, 16  ;;  %v9276_v40 = vld [vmem:[%s14137_s2 + $0x7f4] ss:$8 sps:$4 sm:$0xff]  }
 0x2d2   : > { %7454 = vmatprep.subr.bf16.mxu0 %v9246_v2  ;;  %7272 = vmatmul.mubr.bf16.gmra.mxu1 %v5255_v60  ;;  %v4035_v32 = vsel %vm4001_vm11, %v4017_v37, %v13155_v7  ;;  %v3979_v2 = vrot.slane %v3711_v50, 6  ;;  %v4669_v53 = vshrl.u32 %v4017_v37, 16  ;;  %v4672_v15 = vshll.u32 %v4017_v37, 16  ;;  %v9285_v31 = vld [vmem:[%s14137_s2 + $0x6a4] ss:$8 sps:$4 sm:$0xff]  }
 0x2d3   : > { %7382 = vmatpush2.bf16.msra.mxu1 %v9253_v9  ;;  %7397 = vmatprep.mubr.bf16.mxu1 %v4650_v8  ;;  %v3987_v9 = vrot.slane %v12245_v44, 6  ;;  %v4677_v24 = vshrl.u32 %v4035_v32, 16  ;;  %v4680_v27 = vshll.u32 %v4035_v32, 16  ;;  %v5111_v60 = vsel %vm707_vm3, %v4958_v23, %v5110_v11  ;;  %v9277_v8 = vld [vmem:[%s14137_s2 + $0x6b0] ss:$8 sps:$4 sm:$0xff]  }
 0x2d4   : > { %7383 = vmatprep.subr.bf16.mxu1 %v9261_v3  ;;  %v3985_v3 = vrot.slane %v12301_v43, 6  ;;  %v5273_v35 = vsel %vm707_vm3, %v5110_v11, %v5272_v57  ;;  %v3982_v45 = vsel %vm3950_vm8, %v3979_v2, %v3981_v48  ;;  %v4618_v0 = vshrl.u32 %v3979_v2, 16  ;;  %v9283_v22 = vld [vmem:[%s14137_s2 + $0x6a0] ss:$8 sps:$4 sm:$0xff]   ;;  %v9282_v62 = vld [vmem:[%s14137_s2 + $0x7e4] ss:$8 sps:$4 sm:$0xff]  }
 0x2d5   : > { %7455 = vmatpush1.bf16.msra.mxu0 %v9244_v10  ;;  %v5282_v10 = vsel %vm707_vm3, %v5119_v20, %v5281_v52  ;;  %v3988_v38 = vsel %vm3950_vm8, %v3983_v46, %v3987_v9  ;;  %v4674_v23 = vrot.slane %v4672_v15, 3  ;;  %v4682_v25 = vrot.slane %v4680_v27, 3  ;;  %v9268_v46 = vld [vmem:[%s14137_s2 + $0x700] ss:$8 sps:$4 sm:$0xff]   ;;  %v9289_v27 = vld [vmem:[%s14137_s2 + $0x690] ss:$8 sps:$4 sm:$0xff]  }
 0x2d6   : > { %7456 = vmatprep.subr.bf16.mxu0 %v9252_v49  ;;  %v4671_v49 = vrot.slane %v4669_v53, 2  ;;  %v4621_v16 = vshll.u32 %v3979_v2, 16  ;;  %v4626_v20 = vshrl.u32 %v3982_v45, 16  ;;  %v4629_v28 = vshll.u32 %v3982_v45, 16 }
 0x2d7   : > { %7384 = vmatpush2.bf16.msra.mxu1 %v9259_v34  ;;  %v4679_v34 = vrot.slane %v4677_v24, 2  ;;  %v4830_v42 = vshll.u32 %v3988_v38, 16  ;;  %v3986_v36 = vsel %vm3950_vm8, %v3981_v48, %v3985_v3  ;;  %v4021_v50 = vrot.slane %v4019_v47, 6 }
 0x2d8   : > { %7335 = vmatmul.mubr.bf16.gmra.mxu0 %v4959_v17  ;;  %7385 = vmatprep.subr.bf16.mxu1 %v9267_v33  ;;  %v3991_v33 = vrot.slane %v12540_v54, 6  ;;  %v4024_v17 = vrot.slane %v4022_v63, 7  ;;  %v4049_v37 = vshll.u32 %v12245_v44, 16  ;;  %v13232_v11 = vrot.slane %v4618_v0, 2 }
 0x2d9   : > { %7344 = vmatprep.mubr.bf16.mxu0 %v5120_v5  ;;  %7457 = vmatpush1.bf16.msra.mxu0 %v9250_v41  ;;  %v4003_v41 = vshrl.u32 %v3721_v58, 16  ;;  %v4675_v5 = vor.u32 %v4674_v23, %v4671_v49  ;;  %v4623_v32 = vrot.slane %v4621_v16, 3  ;;  %v4628_v52 = vrot.slane %v4626_v20, 2  ;;  %v9280_v49 = vld [vmem:[%s14137_s2 + $0x7e0] ss:$8 sps:$4 sm:$0xff]  }
 0x2da   : > { %7458 = vmatprep.subr.bf16.mxu0 %v9258_v61  ;;  %v4827_v61 = vshrl.u32 %v3988_v38, 16  ;;  %v3992_v57 = vsel %vm3950_vm8, %v3987_v9, %v3991_v33  ;;  %v4008_v48 = vrot.slane %v4006_v1, 7  ;;  %v4832_v15 = vrot.slane %v4830_v42, 3  ;;  %v9288_v23 = vld [vmem:[%s14137_s2 + $0x7d4] ss:$8 sps:$4 sm:$0xff]  }
 0x2db   : > { %7386 = vmatpush2.bf16.msra.mxu1 %v9265_v13  ;;  %v4046_v13 = vshrl.u32 %v12245_v44, 16  ;;  %v4005_v2 = vrot.slane %v4003_v41, 6  ;;  %v4818_v24 = vshrl.u32 %v3986_v36, 16  ;;  %v4982_v45 = vshll.u32 %v3992_v57, 16 }
 0x2dc   : > { %7387 = vmatprep.subr.bf16.mxu1 %v9273_v12  ;;  %v13227_v12 = vor.u32 %v4682_v25, %v4679_v34  ;;  %v4829_v53 = vrot.slane %v4827_v61, 2  ;;  %v3989_v0 = vrot.slane %v12577_v51, 6  ;;  %v4037_v47 = vshrl.u32 %v12301_v43, 16 }
 0x2dd   : > { %7459 = vmatpush1.bf16.msra.mxu0 %v9256_v56  ;;  %v9291_v56 = vld [vmem:[%s14137_s2 + $0x694] ss:$8 sps:$4 sm:$0xff]   ;;  %v4048_v9 = vrot.slane %v4046_v13, 6  ;;  %v4040_v63 = vshll.u32 %v12301_v43, 16  ;;  %v4624_v34 = vor.u32 %v4623_v32, %v13232_v11  ;;  %v4984_v61 = vrot.slane %v4982_v45, 3 }
 0x2de   : > { %7460 = vmatprep.subr.bf16.mxu0 %v9264_v18  ;;  %v9274_v18 = vld [vmem:[%s14137_s2 + $0x7f0] ss:$8 sps:$4 sm:$0xff]   ;;  %v4684_v58 = vsel %vm707_vm3, %v4675_v5, %v13227_v12  ;;  %v3990_v42 = vsel %vm3950_vm8, %v3985_v3, %v3989_v0  ;;  %v9294_v5 = vld [vmem:[%s14137_s2 + $0x7c4] ss:$8 sps:$4 sm:$0xff]  }
 0x2df   : > { %7388 = vmatpush2.bf16.msra.mxu1 %v9271_v29  ;;  %v4631_v29 = vrot.slane %v4629_v28, 3  ;;  %v4042_v13 = vrot.slane %v4040_v63, 7 }
 0x2e0   : > { %7345 = vmatmul.mubr.bf16.gmra.mxu0 %v5111_v60  ;;  %7389 = vmatprep.subr.bf16.mxu1 %v9279_v21  ;;  %v4821_v21 = vshll.u32 %v3986_v36, 16  ;;  %v13246_v60 = vor.u32 %v4024_v17, %v4021_v50  ;;  %v4064_v36 = vshrl.u32 %v12540_v54, 16  ;;  %v4039_v17 = vrot.slane %v4037_v47, 6 }
 0x2e1   : > { %7354 = vmatprep.mubr.bf16.mxu0 %v5282_v10  ;;  %7461 = vmatpush1.bf16.msra.mxu0 %v9262_v59  ;;  %v4051_v59 = vrot.slane %v4049_v37, 7  ;;  %v9297_v10 = vld [vmem:[%s14137_s2 + $0x684] ss:$8 sps:$4 sm:$0xff]   ;;  %v13268_v25 = vor.u32 %v4631_v29, %v4628_v52  ;;  %v4067_v37 = vshll.u32 %v12540_v54, 16 }
 0x2e2   : > { %7462 = vmatprep.subr.bf16.mxu0 %v9270_v39  ;;  %v4979_v39 = vshrl.u32 %v3992_v57, 16  ;;  %v4823_v20 = vrot.slane %v4821_v21, 3  ;;  %v13332_v21 = vor.u32 %v4042_v13, %v4039_v17 }
 0x2e3   : > { %7390 = vmatpush2.bf16.msra.mxu1 %v9277_v8  ;;  %v13257_v8 = vor.u32 %v4008_v48, %v4005_v2  ;;  %v13280_v1 = vor.u32 %v4051_v59, %v4048_v9  ;;  %v4633_v3 = vsel %vm707_vm3, %v4624_v34, %v13268_v25  ;;  %v4066_v9 = vrot.slane %v4064_v36, 6  ;;  %v9315_v34 = vld [vmem:[%s14137_s2 + $0x854] ss:$8 sps:$4 sm:$0xff]  }
 0x2e4   : > { %7391 = vmatprep.subr.bf16.mxu1 %v9285_v31  ;;  %v13270_v31 = vor.u32 %v4832_v15, %v4829_v53  ;;  %v4981_v28 = vrot.slane %v4979_v39, 2  ;;  %v4970_v15 = vshrl.u32 %v3990_v42, 16  ;;  %v4069_v59 = vrot.slane %v4067_v37, 7 }
 0x2e5   : > { %7463 = vmatpush1.bf16.msra.mxu0 %v9268_v46  ;;  %v4820_v46 = vrot.slane %v4818_v24, 2  ;;  %v4026_v41 = vsel %vm4001_vm11, %v13257_v8, %v13246_v60  ;;  %v4652_v57 = vshrl.u32 %v13257_v8, 16  ;;  %v4655_v2 = vshll.u32 %v13257_v8, 16 }
 0x2e6   : > { %7464 = vmatprep.subr.bf16.mxu0 %v9276_v40  ;;  %v9303_v40 = vld [vmem:[%s14137_s2 + $0x874] ss:$8 sps:$4 sm:$0xff]   ;;  %v4660_v11 = vshrl.u32 %v4026_v41, 16  ;;  %v4663_v32 = vshll.u32 %v4026_v41, 16  ;;  %v4053_v48 = vsel %vm4001_vm11, %v13155_v7, %v13280_v1  ;;  %v13322_v53 = vor.u32 %v4984_v61, %v4981_v28  ;;  %v9292_v7 = vld [vmem:[%s14137_s2 + $0x7c0] ss:$8 sps:$4 sm:$0xff]  }
 0x2e7   : > { %7392 = vmatpush2.bf16.msra.mxu1 %v9283_v22  ;;  %v9286_v22 = vld [vmem:[%s14137_s2 + $0x7d0] ss:$8 sps:$4 sm:$0xff]   ;;  %v13320_v29 = vor.u32 %v4823_v20, %v4820_v46  ;;  %v4973_v24 = vshll.u32 %v3990_v42, 16  ;;  %v4845_v45 = vshrl.u32 %v4053_v48, 16  ;;  %v4657_v47 = vrot.slane %v4655_v2, 3 }
 0x2e8   : > { %7355 = vmatmul.mubr.bf16.gmra.mxu0 %v5273_v35  ;;  %7393 = vmatprep.subr.bf16.mxu1 %v9291_v56  ;;  %v9369_v35 = vld [vmem:[#allocation2] sm:$0xff]  ;;  %v4834_v56 = vsel %vm707_vm3, %v13124_v14, %v13270_v31  ;;  %v4665_v39 = vrot.slane %v4663_v32, 3  ;;  %v13352_v28 = vsel %vm4001_vm11, %v13246_v60, %v13332_v21  ;;  %v13354_v61 = vor.u32 %v4069_v59, %v4066_v9 }
 0x2e9   : > { %7465 = vmatpush2.bf16.msra.mxu0 %v9274_v18  ;;  %7480 = vmatprep.mubr.bf16.mxu0 %v4684_v58  ;;  %v13260_v38 = vpack.c.bf16 %v9369_v35, %v12839_v26  ;;  %v9295_v26 = vld [vmem:[%s14137_s2 + $0x680] ss:$8 sps:$4 sm:$0xff]   ;;  %v9301_v18 = vld [vmem:[%s14137_s2 + $0x870] ss:$8 sps:$4 sm:$0xff]   ;;  %v9309_v14 = vld [vmem:[%s14137_s2 + $0x864] ss:$8 sps:$4 sm:$0xff]   ;;  %v4825_v17 = vsel %vm707_vm3, %v13268_v25, %v13320_v29 }
 0x2ea   : > { %7466 = vmatprep.subr.bf16.mxu0 %v9282_v62  ;;  %v13275_v16 = vpop.f32.mrf.mxu1  ;;  %v13315_v62 = vpack.c.bf16 %v9369_v35, %v12884_v30  ;;  %v9300_v58 = vld [vmem:[%s14137_s2 + $0x7b4] ss:$8 sps:$4 sm:$0xff]   ;;  %v4654_v35 = vrot.slane %v4652_v57, 2  ;;  %v4975_v46 = vrot.slane %v4973_v24, 3  ;;  %v4055_v42 = vshrl.u32 %v12577_v51, 16 }
 0x2eb   : > { %7394 = vmatpush2.bf16.msra.mxu1 %v9289_v27  ;;  %v3995_v50 = vrot.slane %v13260_v38, 6  ;;  %v3710_v27 = vld [vmem:[#allocation2 + $0x28] sm:$0x1]  ;;  %v4058_v36 = vshll.u32 %v12577_v51, 16  ;;  %v4847_v37 = vrot.slane %v4845_v45, 2 }
 0x2ec   : > { %7395 = vmatprep.subr.bf16.mxu1 %v9297_v10  ;;  %v13307_v52 = vpop.f32.mrf.mxu1  ;;  %v4662_v10 = vrot.slane %v4660_v11, 2  ;;  %v3993_v63 = vrot.slane %v13315_v62, 6  ;;  %v4986_v11 = vsel %vm707_vm3, %v13270_v31, %v13322_v53  ;;  %v4658_v32 = vor.u32 %v4657_v47, %v4654_v35  ;;  %v9321_v57 = vld [vmem:[%s14137_s2 + $0x844] ss:$8 sps:$4 sm:$0xff]   ;;  %v9304_v31 = vld [vmem:[%s14137_s2 + $0x7a0] ss:$8 sps:$4 sm:$0xff]  }
 0x2ed   : > { %7467 = vmatpush2.bf16.msra.mxu0 %v9280_v49  ;;  %v3996_v30 = vsel %vm3950_vm8, %v3991_v33, %v3995_v50  ;;  %v4848_v49 = vshll.u32 %v4053_v48, 16  ;;  %v9307_v33 = vld [vmem:[%s14137_s2 + $0x860] ss:$8 sps:$4 sm:$0xff]   ;;  %v4057_v24 = vrot.slane %v4055_v42, 6  ;;  %v4082_v35 = vshrl.u32 %v13260_v38, 16 }
 0x2ee   : > { %7468 = vmatprep.subr.bf16.mxu0 %v9288_v23  ;;  %v13340_v8 = vpop.f32.mrf.mxu1  ;;  %v3716_v23 = vpack.c.bf16 %v3710_v27, %v3710_v27  ;;  %v5131_v20 = vshrl.u32 %v3996_v30, 16  ;;  %v5134_v41 = vshll.u32 %v3996_v30, 16  ;;  %v13364_v13 = vor.u32 %v4665_v39, %v4662_v10  ;;  %v9312_v30 = vld [vmem:[%s14137_s2 + $0x794] ss:$8 sps:$4 sm:$0xff]  }
 0x2ef   : > { %7396 = vmatpush2.bf16.msra.mxu1 %v9295_v26  ;;  %v4972_v26 = vrot.slane %v4970_v15, 2  ;;  %v4850_v60 = vrot.slane %v4848_v49, 3  ;;  %v3994_v25 = vsel %vm3950_vm8, %v3989_v0, %v3993_v63  ;;  %v4836_v15 = vshrl.u32 %v13352_v28, 16  ;;  %v3726_v39 = vld [vmem:[#allocation2 + $0x38] sm:$0xf8] }
 0x2f0   : > { %7531 = vmatprep.subr.bf16.mxu1 %v9303_v40  ;;  %v9298_v40 = vld [vmem:[%s14137_s2 + $0x7b0] ss:$8 sps:$4 sm:$0xff]   ;;  %v5133_v48 = vrot.slane %v5131_v20, 2  ;;  %v4071_v0 = vsel %vm4001_vm11, %v13280_v1, %v13354_v61  ;;  %v4060_v27 = vrot.slane %v4058_v36, 7  ;;  %v13396_v9 = vsel %vm707_vm3, %v4658_v32, %v13364_v13  ;;  %v9319_v1 = vld [vmem:[%s14137_s2 + $0x840] ss:$8 sps:$4 sm:$0xff]  }
 0x2f1   : > { %7469 = vmatpush2.bf16.msra.mxu0 %v9286_v22  ;;  %v9306_v22 = vld [vmem:[%s14137_s2 + $0x7a4] ss:$8 sps:$4 sm:$0xff]   ;;  %v13382_v2 = vor.u32 %v4975_v46, %v4972_v26  ;;  %v13398_v59 = vor.u32 %v4850_v60, %v4847_v37  ;;  %v5125_v10 = vshll.u32 %v3994_v25, 16  ;;  %v4839_v49 = vshll.u32 %v13352_v28, 16  ;;  %v3720_v60 = vld [vmem:[#allocation2 + $0x28] sm:$0x3] }
 0x2f2   : > { %7470 = vmatprep.subr.bf16.mxu0 %v9294_v5  ;;  %7398 = vmatmul.mubr.bf16.vlgmr.msra.gmra.mxu1 %v4633_v3  ;;  %v3709_v5 = vld [vmem:[#allocation2 + $0xd0] sm:$0x1]  ;;  %v13366_v3 = vpop.f32.mrf.mxu1  ;;  %v4085_v47 = vshll.u32 %v13260_v38, 16  ;;  %v4997_v46 = vshrl.u32 %v4071_v0, 16  ;;  %v5000_v20 = vshll.u32 %v4071_v0, 16  ;;  %v13425_v28 = vor.u32 %v4060_v27, %v4057_v24 }
 0x2f3   : > { %7407 = vmatprep.mubr.bf16.mxu1 %v4834_v56  ;;  %7532 = vmatpush1.bf16.msra.mxu1 %v9301_v18  ;;  %v9313_v56 = vld [vmem:[%s14137_s2 + $0x850] ss:$8 sps:$4 sm:$0xff]   ;;  %v3999_v18 = vrot.slane %v3716_v23, 6  ;;  %v4977_v23 = vsel %vm707_vm3, %v13320_v29, %v13382_v2  ;;  %v3730_v42 = vpack.c.bf16 %v13005_v4, %v3726_v39  ;;  %v4084_v32 = vrot.slane %v4082_v35, 6 }
 0x2f4   : > { %7533 = vmatprep.subr.bf16.mxu1 %v9309_v14  ;;  %v5136_v14 = vrot.slane %v5134_v41, 3  ;;  %v9318_v41 = vld [vmem:[%s14137_s2 + $0x784] ss:$8 sps:$4 sm:$0xff]   ;;  %v4852_v4 = vsel %vm707_vm3, %v13227_v12, %v13398_v59  ;;  %v13449_v12 = vsel %vm4001_vm11, %v13332_v21, %v13425_v28  ;;  %v3724_v24 = vpack.c.bf16 %v3720_v60, %v3720_v60  ;;  %v9325_v21 = vld [vmem:[%s14137_s2 + $0x820] ss:$8 sps:$4 sm:$0xff]  }
 0x2f5   : > { %7471 = vmatpush2.bf16.msra.mxu0 %v9292_v7  ;;  %v3715_v7 = vpack.c.bf16 %v3709_v5, %v3709_v5  ;;  %v13454_v0 = vrot.slane %v3730_v42, 7  ;;  %v4073_v35 = vshrl.u32 %v13315_v62, 16 }
 0x2f6   : > { %7472 = vmatprep.subr.bf16.mxu0 %v9300_v58  ;;  %v5122_v58 = vshrl.u32 %v3994_v25, 16  ;;  %v13400_v45 = vpop.f32.mrf.mxu1  ;;  %v13417_v26 = vor.u32 %v5136_v14, %v5133_v48  ;;  %v4087_v25 = vrot.slane %v4085_v47, 7  ;;  %v9327_v48 = vld [vmem:[%s14137_s2 + $0x824] ss:$8 sps:$4 sm:$0xff]   ;;  %v4999_v14 = vrot.slane %v4997_v46, 2 }
 0x2f7   : > { %7534 = vmatpush1.bf16.msra.mxu1 %v9307_v33  ;;  %v4000_v33 = vsel %vm3950_vm8, %v3995_v50, %v3999_v18  ;;  %v9310_v50 = vld [vmem:[%s14137_s2 + $0x790] ss:$8 sps:$4 sm:$0xff]   ;;  %v3997_v29 = vrot.slane %v3715_v7, 6  ;;  %v4117_v18 = vrot.slane %v12327_v6, 7  ;;  %v4076_v47 = vshll.u32 %v13315_v62, 16 }
 0x2f8   : > { %7535 = vmatprep.subr.bf16.mxu1 %v9315_v34  ;;  %v9324_v34 = vld [vmem:[%s14137_s2 + $0x834] ss:$8 sps:$4 sm:$0xff]   ;;  %v5124_v36 = vrot.slane %v5122_v58, 2  ;;  %v5296_v37 = vshll.u32 %v4000_v33, 16  ;;  %v13428_v5 = vpop.f32.mrf.mxu1  ;;  %v4100_v46 = vshrl.u32 %v3724_v24, 16 }
 0x2f9   : > { %7473 = vmatpush2.bf16.msra.mxu0 %v9298_v40  ;;  %v4838_v40 = vrot.slane %v4836_v15, 2  ;;  %v5002_v15 = vrot.slane %v5000_v20, 3  ;;  %v4118_v39 = vsel %vm4112_vm15, %v13454_v0, %v4117_v18  ;;  %v4103_v20 = vshll.u32 %v3724_v24, 16  ;;  %v9352_v6 = vld [vmem:[%s14137_s2 + $0x890] ss:$8 sps:$4 sm:$0xff]  }
 0x2fa   : > { %7474 = vmatprep.subr.bf16.mxu0 %v9306_v22  ;;  %7408 = vmatmul.mubr.bf16.gmra.mxu1 %v4825_v17  ;;  %v5127_v22 = vrot.slane %v5125_v10, 3  ;;  %v5293_v17 = vshrl.u32 %v4000_v33, 16  ;;  %v13458_v58 = vpop.f32.mrf.mxu1  ;;  %v4711_v42 = vshrl.u32 %v4118_v39, 16 }
 0x2fb   : > { %7417 = vmatprep.mubr.bf16.mxu1 %v4986_v11  ;;  %7536 = vmatpush1.bf16.msra.mxu1 %v9313_v56  ;;  %v9322_v56 = vld [vmem:[%s14137_s2 + $0x830] ss:$8 sps:$4 sm:$0xff]   ;;  %v4841_v11 = vrot.slane %v4839_v49, 3  ;;  %v9330_v49 = vld [vmem:[%s14137_s2 + $0x814] ss:$8 sps:$4 sm:$0xff]  }
 0x2fc   : > { %7537 = vmatprep.subr.bf16.mxu1 %v9321_v57  ;;  %v5138_v57 = vsel %vm707_vm3, %v13322_v53, %v13417_v26  ;;  %v3998_v53 = vsel %vm3950_vm8, %v3993_v63, %v3997_v29  ;;  %v13456_v27 = vor.u32 %v5127_v22, %v5124_v36  ;;  %v5295_v7 = vrot.slane %v5293_v17, 2  ;;  %v13485_v17 = vpop.f32.mrf.mxu1 }
 0x2fd   : > { %7475 = vmatpush2.bf16.msra.mxu0 %v9304_v31  ;;  %v9316_v31 = vld [vmem:[%s14137_s2 + $0x780] ss:$8 sps:$4 sm:$0xff]   ;;  %v13463_v10 = vor.u32 %v4841_v11, %v4838_v40  ;;  %v13465_v63 = vor.u32 %v4087_v25, %v4084_v32  ;;  %v5284_v33 = vshrl.u32 %v3998_v53, 16  ;;  %v4714_v36 = vshll.u32 %v4118_v39, 16 }
 0x2fe   : > { %7476 = vmatprep.subr.bf16.mxu0 %v9312_v30  ;;  %v5298_v30 = vrot.slane %v5296_v37, 3  ;;  %v5129_v40 = vsel %vm707_vm3, %v13382_v2, %v13456_v27  ;;  %v9328_v37 = vld [vmem:[%s14137_s2 + $0x810] ss:$8 sps:$4 sm:$0xff]   ;;  %v4706_v2 = vshll.u32 %v13454_v0, 16  ;;  %v4075_v25 = vrot.slane %v4073_v35, 6 }
 0x2ff   : > { %7538 = vmatpush1.bf16.msra.mxu1 %v9319_v1  ;;  %v13471_v1 = vor.u32 %v5002_v15, %v4999_v14  ;;  %v4089_v60 = vsel %vm4001_vm11, %v13354_v61, %v13465_v63  ;;  %v5286_v32 = vrot.slane %v5284_v33, 2  ;;  %v4102_v15 = vrot.slane %v4100_v46, 6 }
 0x300   : > { %7539 = vmatprep.subr.bf16.mxu1 %v9324_v34  ;;  %v5287_v34 = vshll.u32 %v3998_v53, 16  ;;  %v5299_v29 = vor.u32 %v5298_v30, %v5295_v7  ;;  %v4713_v24 = vrot.slane %v4711_v42, 2  ;;  %v4716_v7 = vrot.slane %v4714_v36, 3 }
 0x301   : > { %7477 = vmatpush2.bf16.msra.mxu0 %v9310_v50  ;;  %v3719_v50 = vld [vmem:[#allocation2 + $0xd0] sm:$0x3]  ;;  %v5152_v39 = vshll.u32 %v4089_v60, 16 }
 0x302   : > { %7478 = vmatprep.subr.bf16.mxu0 %v9318_v41  ;;  %7418 = vmatmul.mubr.bf16.gmra.mxu1 %v4977_v23  ;;  %v4988_v23 = vshrl.u32 %v13449_v12, 16  ;;  %v5289_v61 = vrot.slane %v5287_v34, 3 }
 0x303   : > { %7427 = vmatprep.mubr.bf16.mxu1 %v5138_v57  ;;  %7540 = vmatpush1.bf16.msra.mxu1 %v9322_v56  ;;  %v4703_v56 = vshrl.u32 %v13454_v0, 16  ;;  %v4078_v57 = vrot.slane %v4076_v47, 7  ;;  %v4991_v0 = vshll.u32 %v13449_v12, 16  ;;  %v4708_v12 = vrot.slane %v4706_v2, 3 }
 0x304   : > { %7541 = vmatprep.subr.bf16.mxu1 %v9327_v48  ;;  %v3723_v48 = vpack.c.bf16 %v3719_v50, %v3719_v50  ;;  %v4990_v36 = vrot.slane %v4988_v23, 2 }
 0x305   : > { %7479 = vmatpush2.bf16.msra.mxu0 %v9316_v31  ;;  %v6984_v41 = vpop.f32.mrf.mxu0  ;;  %v4105_v31 = vrot.slane %v4103_v20, 7  ;;  %v13516_v35 = vor.u32 %v4078_v57, %v4075_v25  ;;  %v5290_v20 = vor.u32 %v5289_v61, %v5286_v32 }
 0x306   : > { %v13483_v22 = vadd.f32 %v6984_v41, %v13275_v16  ;;  %v9333_v16 = vld [vmem:[%s14137_s2 + $0x804] ss:$8 sps:$4 sm:$0xff]   ;;  %v4094_v47 = vshll.u32 %v3723_v48, 16  ;;  %v4843_v41 = vsel %vm707_vm3, %v13364_v13, %v13463_v10 }
 0x307   : > { %7542 = vmatpush1.bf16.msra.mxu1 %v9325_v21  ;;  %v6986_v11 = vpop.f32.mrf.mxu0  ;;  %v4106_v50 = vor.u32 %v4105_v31, %v4102_v15  ;;  %v4080_v2 = vsel %vm4001_vm11, %v13425_v28, %v13516_v35  ;;  %v5291_v32 = vsel %vm707_vm3, %v13456_v27, %v5290_v20  ;;  %v9337_v27 = vld [vmem:[%s14137_s2 + $0x8e0] ss:$8 sps:$4 sm:$0xff]  }
 0x308   : > { %7481 = vmatmul.mubr.bf16.vlgmr.msra.gmra.mxu0 %v13396_v9  ;;  %7543 = vmatprep.subr.bf16.mxu1 %v9330_v49  ;;  %v13500_v14 = vadd.f32 %v6986_v11, %v13307_v52  ;;  %v5300_v9 = vsel %vm707_vm3, %v13417_v26, %v5299_v29  ;;  %v9331_v52 = vld [vmem:[%s14137_s2 + $0x800] ss:$8 sps:$4 sm:$0xff]   ;;  %v4705_v49 = vrot.slane %v4703_v56, 2  ;;  %v9336_v26 = vld [vmem:[%s14137_s2 + $0x8f4] ss:$8 sps:$4 sm:$0xff]   ;;  %v13529_v29 = vor.u32 %v4716_v7, %v4713_v24 }
 0x309   : > { %7490 = vmatprep.mubr.bf16.mxu0 %v4852_v4  ;;  %v6988_v53 = vpop.f32.mrf.mxu0  ;;  %v5149_v4 = vshrl.u32 %v4089_v60, 16  ;;  %v9334_v56 = vld [vmem:[%s14137_s2 + $0x8f0] ss:$8 sps:$4 sm:$0xff]   ;;  %v4096_v11 = vrot.slane %v4094_v47, 7  ;;  %v4107_v25 = vsel %vm4001_vm11, %v13465_v63, %v4106_v50  ;;  %v5143_v63 = vshll.u32 %v4080_v2, 16 }
 0x30a   : > { %7428 = vmatmul.mubr.bf16.gmra.mxu1 %v5129_v40  ;;  %v13505_v30 = vpop.f32.mrf.mxu1  ;;  %v13508_v21 = vadd.f32 %v6988_v53, %v13340_v8  ;;  %v4091_v8 = vshrl.u32 %v3723_v48, 16  ;;  %v5004_v40 = vsel %vm707_vm3, %v13398_v59, %v13471_v1  ;;  %v4709_v13 = vor.u32 %v4708_v12, %v4705_v49  ;;  %v9339_v59 = vld [vmem:[%s14137_s2 + $0x8e4] ss:$8 sps:$4 sm:$0xff]   ;;  %v9342_v24 = vld [vmem:[%s14137_s2 + $0x8d4] ss:$8 sps:$4 sm:$0xff]  }
 0x30b   : > { %7437 = vmatprep.mubr.bf16.mxu1 %v5300_v9  ;;  %7544 = vmatpush1.bf16.msra.mxu1 %v9328_v37  ;;  %v6990_v33 = vpop.f32.mrf.mxu0  ;;  %v4993_v37 = vrot.slane %v4991_v0, 3  ;;  %v5151_v60 = vrot.slane %v5149_v4, 2  ;;  %v5140_v53 = vshrl.u32 %v4080_v2, 16  ;;  %v5311_v9 = vshrl.u32 %v4107_v25, 16  ;;  %v3725_v50 = vld [vmem:[#allocation2 + $0x8] sm:$0xf8] }
 0x30c   : > { %7545 = vmatprep.subr.bf16.mxu1 %v9333_v16  ;;  %v13518_v34 = vpop.f32.mrf.mxu1  ;;  %v13521_v46 = vadd.f32 %v6990_v33, %v13366_v3  ;;  %v5154_v3 = vrot.slane %v5152_v39, 3  ;;  %v4093_v23 = vrot.slane %v4091_v8, 6  ;;  %v4718_v61 = vsel %vm707_vm3, %v4709_v13, %v13529_v29  ;;  %v9340_v8 = vld [vmem:[%s14137_s2 + $0x8d0] ss:$8 sps:$4 sm:$0xff]  }
 0x30d   : > { %v4994_v15 = vor.u32 %v4993_v37, %v4990_v36  ;;  %v5314_v0 = vshll.u32 %v4107_v25, 16  ;;  %v5145_v12 = vrot.slane %v5143_v63, 3  ;;  %v3729_v13 = vpack.c.bf16 %v13160_v55, %v3725_v50 }
 0x30e   : > { %v13531_v42 = vpop.f32.mrf.mxu1  ;;  %v5155_v31 = vor.u32 %v5154_v3, %v5151_v60  ;;  %v4097_v7 = vor.u32 %v4096_v11, %v4093_v23  ;;  %v4115_v11 = vrot.slane %v12209_v19, 7  ;;  %v9351_v19 = vld [vmem:[%s14137_s2 + $0x8a4] ss:$8 sps:$4 sm:$0xff]  }
 0x30f   : > { %7546 = vmatpush1.bf16.msra.mxu1 %v9331_v52  ;;  %v4995_v33 = vsel %vm707_vm3, %v13463_v10, %v4994_v15  ;;  %v5316_v20 = vrot.slane %v5314_v0, 3  ;;  %v9345_v10 = vld [vmem:[%s14137_s2 + $0x8c4] ss:$8 sps:$4 sm:$0xff]  }
 0x310   : > { %7491 = vmatmul.mubr.bf16.gmra.mxu0 %v4843_v41  ;;  %7547 = vmatprep.subr.bf16.mxu1 %v9336_v26  ;;  %v6994_v16 = vpop.f32.mrf.mxu0  ;;  %v13549_v48 = vpop.f32.mrf.mxu1  ;;  %v5142_v26 = vrot.slane %v5140_v53, 2 }
 0x311   : > { %7500 = vmatprep.mubr.bf16.mxu0 %v5004_v40  ;;  %v13547_v57 = vadd.f32 %v6994_v16, %v13400_v45 }
 0x312   : > { %7438 = vmatmul.mubr.bf16.gmra.mxu1 %v5291_v32  ;;  %v6996_v28 = vpop.f32.mrf.mxu0  ;;  %v5146_v36 = vor.u32 %v5145_v12, %v5142_v26  ;;  %v4125_v12 = vrot.slane %v12540_v54, 7 }
 0x313   : > { %7548 = vmatpush2.bf16.msra.mxu1 %v9334_v56  ;;  %7563 = vmatprep.mubr.bf16.mxu1 %v4718_v61  ;;  %v13557_v45 = vadd.f32 %v6996_v28, %v13428_v5  ;;  %v13562_v4 = vpop.f32.mrf.mxu1  ;;  %v5156_v5 = vsel %vm707_vm3, %v13471_v1, %v5155_v31  ;;  %v4098_v1 = vsel %vm4001_vm11, %v13516_v35, %v4097_v7  ;;  %v9348_v35 = vld [vmem:[%s14137_s2 + $0x8b4] ss:$8 sps:$4 sm:$0xff]   ;;  %v9346_v61 = vld [vmem:[%s14137_s2 + $0x8b0] ss:$8 sps:$4 sm:$0xff]   ;;  %v4121_v28 = vrot.slane %v12245_v44, 7 }
 0x314   : > { %7549 = vmatprep.subr.bf16.mxu1 %v9339_v59  ;;  %v6998_v52 = vpop.f32.mrf.mxu0  ;;  %v5302_v37 = vshrl.u32 %v4098_v1, 16  ;;  %v5305_v60 = vshll.u32 %v4098_v1, 16  ;;  %v5147_v32 = vsel %vm707_vm3, %v4994_v15, %v5146_v36  ;;  %v4113_v15 = vrot.slane %v3729_v13, 7 }
 0x315   : > { %v13565_v39 = vadd.f32 %v6998_v52, %v13458_v58  ;;  %v5313_v58 = vrot.slane %v5311_v9, 2  ;;  %v13582_v41 = vpop.f32.mrf.mxu1  ;;  %v4119_v52 = vrot.slane %v12301_v43, 7  ;;  %v9357_v43 = vld [vmem:[%s14137_s2 + $0x884] ss:$8 sps:$4 sm:$0xff]  }
 0x316   : > { %v7000_v49 = vpop.f32.mrf.mxu0  ;;  %v5307_v25 = vrot.slane %v5305_v60, 3  ;;  %v4116_v44 = vsel %vm4112_vm15, %v4113_v15, %v4115_v11  ;;  %v4689_v26 = vshll.u32 %v4113_v15, 16 }
 0x317   : > { %7550 = vmatpush2.bf16.msra.mxu1 %v9337_v27  ;;  %v13575_v47 = vadd.f32 %v7000_v49, %v13485_v17  ;;  %v9343_v17 = vld [vmem:[%s14137_s2 + $0x8c0] ss:$8 sps:$4 sm:$0xff]   ;;  %v5317_v56 = vor.u32 %v5316_v20, %v5313_v58  ;;  %v6935_v2 = vpop.f32.mrf.mxu1  ;;  %v4697_v7 = vshll.u32 %v4116_v44, 16  ;;  %v4120_v50 = vsel %vm4112_vm15, %v4115_v11, %v4119_v52 }
 0x318   : > { %7501 = vmatmul.mubr.bf16.gmra.mxu0 %v4995_v33  ;;  %7551 = vmatprep.subr.bf16.mxu1 %v9342_v24  ;;  %v9354_v24 = vld [vmem:[%s14137_s2 + $0x894] ss:$8 sps:$4 sm:$0xff]   ;;  %v4857_v11 = vshll.u32 %v4120_v50, 16 }
 0x319   : > { %7510 = vmatprep.mubr.bf16.mxu0 %v5156_v5  ;;  %v6937_v53 = vpop.f32.mrf.mxu1  ;;  %v4699_v1 = vrot.slane %v4697_v7, 3 }
 0x31a   : > { %v7004_v40 = vpop.f32.mrf.mxu0 }
 0x31b   : > { %7552 = vmatpush2.bf16.msra.mxu1 %v9340_v8  ;;  %v13588_v3 = vadd.f32 %v7004_v40, %v13505_v30  ;;  %v5304_v30 = vrot.slane %v5302_v37, 2  ;;  %v6941_v0 = vpop.f32.mrf.mxu1  ;;  %v9355_v37 = vld [vmem:[%s14137_s2 + $0x880] ss:$8 sps:$4 sm:$0xff]  }
 0x31c   : > { %7553 = vmatprep.subr.bf16.mxu1 %v9345_v10  ;;  %v7006_v59 = vpop.f32.mrf.mxu0 }
 0x31d   : > { %v13595_v23 = vadd.f32 %v7006_v59, %v13518_v34  ;;  %v5318_v34 = vsel %vm707_vm3, %v5155_v31, %v5317_v56  ;;  %v5308_v9 = vor.u32 %v5307_v25, %v5304_v30  ;;  %v4122_v31 = vsel %vm4112_vm15, %v4117_v18, %v4121_v28  ;;  %v6943_v8 = vpop.f32.mrf.mxu1 }
 0x31e   : > { %v7008_v16 = vpop.f32.mrf.mxu0  ;;  %v4863_v49 = vshrl.u32 %v4122_v31, 16  ;;  %v4866_v33 = vshll.u32 %v4122_v31, 16  ;;  %v4686_v18 = vshrl.u32 %v4113_v15, 16  ;;  %v4691_v56 = vrot.slane %v4689_v26, 3  ;;  %v3728_v31 = vld [vmem:[#allocation2 + $0x28] sm:$0x7] }
 0x31f   : > { %7554 = vmatpush2.bf16.msra.mxu1 %v9343_v17  ;;  %v13604_v55 = vadd.f32 %v7008_v16, %v13531_v42  ;;  %v9349_v42 = vld [vmem:[%s14137_s2 + $0x8a0] ss:$8 sps:$4 sm:$0xff]   ;;  %v5309_v5 = vsel %vm707_vm3, %v5146_v36, %v5308_v9  ;;  %v4854_v59 = vshrl.u32 %v4120_v50, 16 }
 0x320   : > { %7511 = vmatmul.mubr.bf16.gmra.mxu0 %v5147_v32  ;;  %7555 = vmatprep.subr.bf16.mxu1 %v9348_v35  ;;  %v7010_v27 = vpop.f32.mrf.mxu0  ;;  %v4865_v36 = vrot.slane %v4863_v49, 2  ;;  %v4868_v17 = vrot.slane %v4866_v33, 3  ;;  %v4688_v60 = vrot.slane %v4686_v18, 2  ;;  %v6945_v35 = vpop.f32.mrf.mxu1 }
 0x321   : > { %7520 = vmatprep.mubr.bf16.mxu0 %v5318_v34  ;;  %v13611_v63 = vadd.f32 %v7010_v27, %v13549_v48  ;;  %v4694_v48 = vshrl.u32 %v4116_v44, 16  ;;  %v4856_v9 = vrot.slane %v4854_v59, 2 }
 0x322   : > { %v4869_v25 = vor.u32 %v4868_v17, %v4865_v36  ;;  %v4692_v15 = vor.u32 %v4691_v56, %v4688_v60  ;;  %v6947_v27 = vpop.f32.mrf.mxu1  ;;  %v3727_v60 = vld [vmem:[#allocation2 + $0xd0] sm:$0x7] }
 0x323   : > { %7556 = vmatpush2.bf16.msra.mxu1 %v9346_v61  ;;  %v4696_v10 = vrot.slane %v4694_v48, 2 }
 0x324   : > { %7557 = vmatprep.subr.bf16.mxu1 %v9351_v19 }
 0x325   : > { %v4700_v32 = vor.u32 %v4699_v1, %v4696_v10 }
 0x327   : > { %7558 = vmatpush2.bf16.msra.mxu1 %v9349_v42  ;;  %v4859_v42 = vrot.slane %v4857_v11, 3 }
 0x328   : > { %v7014_v58 = vpop.f32.mrf.mxu0  ;;  %7521 = vmatmul.mubr.bf16.gmra.mxu0 %v5309_v5  ;;  %7559 = vmatprep.subr.bf16.mxu1 %v9354_v24  ;;  %v4701_v24 = vsel %vm707_vm3, %v4692_v15, %v4700_v32 }
 0x329   : > { %v13633_v20 = vadd.f32 %v7014_v58, %v13562_v4  ;;  %v4126_v4 = vsel %vm4112_vm15, %v4121_v28, %v4125_v12  ;;  %v4129_v28 = vrot.slane %v13260_v38, 7 }
 0x32a   : > { %v7016_v40 = vpop.f32.mrf.mxu0  ;;  %v5015_v61 = vshrl.u32 %v4126_v4, 16  ;;  %v5018_v34 = vshll.u32 %v4126_v4, 16 }
 0x32b   : > { %v13637_v54 = vadd.f32 %v7016_v40, %v13582_v41  ;;  %7560 = vmatpush2.bf16.msra.mxu1 %v9352_v6  ;;  %v4123_v41 = vrot.slane %v12577_v51, 7  ;;  %v3732_v6 = vpack.c.bf16 %v3728_v31, %v3728_v31 }
 0x32c   : > { %v7018_v13 = vpop.f32.mrf.mxu0  ;;  %7561 = vmatprep.subr.bf16.mxu1 %v9357_v43  ;;  %v5017_v49 = vrot.slane %v5015_v61, 2  ;;  %v5020_v33 = vrot.slane %v5018_v34, 3 }
 0x32d   : > { %v13643_v16 = vadd.f32 %v7018_v13, %v6935_v2  ;;  %v4124_v51 = vsel %vm4112_vm15, %v4119_v52, %v4123_v41  ;;  %v4860_v52 = vor.u32 %v4859_v42, %v4856_v9 }
 0x32e   : > { %v7020_v30 = vpop.f32.mrf.mxu0  ;;  %v5006_v58 = vshrl.u32 %v4124_v51, 16 }
 0x32f   : > { %v13646_v19 = vadd.f32 %v7020_v30, %v6937_v53  ;;  %7562 = vmatpush2.bf16.msra.mxu1 %v9355_v37  ;;  %v4870_v53 = vsel %vm707_vm3, %v13529_v29, %v4869_v25  ;;  %v5009_v29 = vshll.u32 %v4124_v51, 16  ;;  %v4133_v37 = vrot.slane %v3732_v6, 7 }
 0x330   : > { %v7024_v44 = vpop.f32.mrf.mxu0  ;;  %v4861_v4 = vsel %vm707_vm3, %v4700_v32, %v4860_v52 }
 0x331   : > { %v13649_v2 = vadd.f32 %v7024_v44, %v6941_v0  ;;  %v4130_v0 = vsel %vm4112_vm15, %v4125_v12, %v4129_v28  ;;  %v4134_v15 = vsel %vm4112_vm15, %v4129_v28, %v4133_v37 }
 0x332   : > { %v7026_v48 = vpop.f32.mrf.mxu0  ;;  %v7067_v7 = vpop.f32.mrf.mxu1  ;;  %7564 = vmatmul.mubr.bf16.vlgmr.msra.gmra.mxu1 %v4701_v24  ;;  %v5167_v40 = vshrl.u32 %v4130_v0, 16  ;;  %v5170_v36 = vshll.u32 %v4130_v0, 16  ;;  %v5329_v31 = vshrl.u32 %v4134_v15, 16  ;;  %v5332_v24 = vshll.u32 %v4134_v15, 16 }
 0x333   : > { %v13655_v38 = vadd.f32 %v7026_v48, %v6943_v8  ;;  %v13658_v5 = vadd.f32 %v7067_v7, %v13483_v22  ;;  %7573 = vmatprep.mubr.bf16.mxu1 %v4870_v53  ;;  %v4127_v8 = vrot.slane %v13315_v62, 7  ;;  %v5021_v22 = vor.u32 %v5020_v33, %v5017_v49 }
 0x334   : > { %v7028_v18 = vpop.f32.mrf.mxu0  ;;  %v7069_v26 = vpop.f32.mrf.mxu1  ;;  %v5011_v62 = vrot.slane %v5009_v29, 3  ;;  %v5169_v30 = vrot.slane %v5167_v40, 2  ;;  %v5172_v61 = vrot.slane %v5170_v36, 3  ;;  %v5334_v0 = vrot.slane %v5332_v24, 3 }
 0x335   : > { %v13661_v43 = vadd.f32 %v7028_v18, %v6945_v35  ;;  %v13664_v10 = vadd.f32 %v7069_v26, %v13500_v14  ;;  %v5008_v35 = vrot.slane %v5006_v58, 2  ;;  %v4128_v13 = vsel %vm4112_vm15, %v4123_v41, %v4127_v8 }
 0x336   : > { %v7030_v1 = vpop.f32.mrf.mxu0  ;;  %v7071_v50 = vpop.f32.mrf.mxu1  ;;  %v5022_v11 = vsel %vm707_vm3, %v4869_v25, %v5021_v22  ;;  %v5173_v41 = vor.u32 %v5172_v61, %v5169_v30 }
 0x337   : > { %v13667_v17 = vadd.f32 %v7030_v1, %v6947_v27  ;;  %v13670_v12 = vadd.f32 %v7071_v50, %v13508_v21  ;;  %v3731_v21 = vpack.c.bf16 %v3727_v60, %v3727_v60  ;;  %v5158_v27 = vshrl.u32 %v4128_v13, 16 }
 0x338   : > { %v7073_v56 = vpop.f32.mrf.mxu1  ;;  %v5012_v9 = vor.u32 %v5011_v62, %v5008_v35  ;;  %v5174_v33 = vsel %vm707_vm3, %v5021_v22, %v5173_v41 }
 0x339   : > { %v13674_v14 = vadd.f32 %v7073_v56, %v13521_v46  ;;  %v5161_v46 = vshll.u32 %v4128_v13, 16  ;;  %v4131_v51 = vrot.slane %v3731_v21, 7  ;;  %v5160_v7 = vrot.slane %v5158_v27, 2 }
 0x33a   : > { %v7077_v59 = vpop.f32.mrf.mxu1  ;;  %7574 = vmatmul.mubr.bf16.gmra.mxu1 %v4861_v4  ;;  %v5013_v28 = vsel %vm707_vm3, %v4860_v52, %v5012_v9 }
 0x33b   : > { %v7078_v34 = vadd.f32 %v7077_v59, %v13547_v57  ;;  %7583 = vmatprep.mubr.bf16.mxu1 %v5022_v11  ;;  %v5163_v53 = vrot.slane %v5161_v46, 3  ;;  %v4132_v6 = vsel %vm4112_vm15, %v4127_v8, %v4131_v51 }
 0x33c   : > { %v7079_v32 = vpop.f32.mrf.mxu1  ;;  %v5320_v29 = vshrl.u32 %v4132_v6, 16  ;;  %v5323_v1 = vshll.u32 %v4132_v6, 16 }
 0x33d   : > { %v7080_v44 = vadd.f32 %v7079_v32, %v13557_v45  ;;  %v5331_v45 = vrot.slane %v5329_v31, 2 }
 0x33e   : > { %v7081_v42 = vpop.f32.mrf.mxu1  ;;  %v5322_v8 = vrot.slane %v5320_v29, 2  ;;  %v5325_v60 = vrot.slane %v5323_v1, 3 }
 0x33f   : > { %v7082_v25 = vadd.f32 %v7081_v42, %v13565_v39  ;;  %v5164_v39 = vor.u32 %v5163_v53, %v5160_v7  ;;  %v5335_v50 = vor.u32 %v5334_v0, %v5331_v45 }
 0x340   : > { %v7083_v48 = vpop.f32.mrf.mxu1  ;;  %v5326_v11 = vor.u32 %v5325_v60, %v5322_v8 }
 0x341   : > { %v7084_v57 = vadd.f32 %v7083_v48, %v13575_v47  ;;  %v5165_v22 = vsel %vm707_vm3, %v5012_v9, %v5164_v39 }
 0x342   : > { %v7087_v49 = vpop.f32.mrf.mxu1  ;;  %7584 = vmatmul.mubr.bf16.gmra.mxu1 %v5013_v28 }
 0x343   : > { %v7088_v18 = vadd.f32 %v7087_v49, %v13588_v3  ;;  %7593 = vmatprep.mubr.bf16.mxu1 %v5174_v33 }
 0x344   : > { %v7089_v26 = vpop.f32.mrf.mxu1 }
 0x345   : > { %v7090_v58 = vadd.f32 %v7089_v26, %v13595_v23  ;;  %v5336_v23 = vsel %vm707_vm3, %v5173_v41, %v5335_v50 }
 0x346   : > { %v7091_v47 = vpop.f32.mrf.mxu1 }
 0x347   : > { %v7092_v52 = vadd.f32 %v7091_v47, %v13604_v55  ;;  %v7150_v40 = vpop.f32.mrf.mxu0 }
 0x348   : > { %v7093_v36 = vpop.f32.mrf.mxu1  ;;  %v13691_v37 = vadd.f32 %v7150_v40, %v13658_v5 }
 0x349   : > { %v7094_v3 = vadd.f32 %v7093_v36, %v13611_v63  ;;  %v7152_v56 = vpop.f32.mrf.mxu0 }
 0x34a   : > { %v7097_v4 = vpop.f32.mrf.mxu1  ;;  %7594 = vmatmul.mubr.bf16.gmra.mxu1 %v5165_v22  ;;  %v7153_v35 = vadd.f32 %v7152_v56, %v13664_v10 }
 0x34b   : > { %v7098_v55 = vadd.f32 %v7097_v4, %v13633_v20  ;;  %7603 = vmatprep.mubr.bf16.mxu1 %v5336_v23  ;;  %v7154_v62 = vpop.f32.mrf.mxu0  ;;  %v5327_v20 = vsel %vm707_vm3, %v5164_v39, %v5326_v11  ;;  %vm14422_vm3 = vcmask 1044480  }
 0x34c   : > { %v7099_v13 = vpop.f32.mrf.mxu1  ;;  %v7155_v59 = vadd.f32 %v7154_v62, %v13670_v12  ;;  %vm14425_vm6 = vmmov %vm14422_vm3 }
 0x34d   : > { %v7100_v5 = vadd.f32 %v7099_v13, %v13637_v54  ;;  %v7156_v63 = vpop.f32.mrf.mxu0  ;;  %vm14426_vm7 = vmmov %vm14422_vm3 }
 0x34e   : > { %v7101_v30 = vpop.f32.mrf.mxu1  ;;  %v7157_v61 = vadd.f32 %v7156_v63, %v13674_v14  ;;  %vm14427_vm1 = vmmov %vm14422_vm3 }
 0x34f   : > { %v7102_v21 = vadd.f32 %v7101_v30, %v13643_v16  ;;  %v7160_v15 = vpop.f32.mrf.mxu0  ;;  %vm14428_vm5 = vmmov %vm14427_vm1 }
 0x350   : > { %v7103_v32 = vpop.f32.mrf.mxu1  ;;  %v7161_v27 = vadd.f32 %v7160_v15, %v7078_v34  ;;  %vm14429_vm12 = vmmov %vm14427_vm1 }
 0x351   : > { %v7104_v10 = vadd.f32 %v7103_v32, %v13646_v19  ;;  %v7162_v46 = vpop.f32.mrf.mxu0  ;;  %vm14431_vm13 = vmmov %vm14427_vm1 }
 0x352   : > { %v7107_v9 = vpop.f32.mrf.mxu1  ;;  %7604 = vmatmul.mubr.bf16.gmra.mxu1 %v5327_v20  ;;  %v7163_v12 = vadd.f32 %v7162_v46, %v7080_v44  ;;  %vm14432_vm14 = vmmov %vm14427_vm1 }
 0x353   : > { %v7108_v54 = vadd.f32 %v7107_v9, %v13649_v2  ;;  %v7164_v42 = vpop.f32.mrf.mxu0  ;;  %vm14434_vm9 = vmmov %vm14427_vm1 }
 0x354   : > { %v7109_v41 = vpop.f32.mrf.mxu1  ;;  %v7165_v31 = vadd.f32 %v7164_v42, %v7082_v25  ;;  %vm14435_vm10 = vmmov %vm14427_vm1 }
 0x355   : > { %v7110_v14 = vadd.f32 %v7109_v41, %v13655_v38  ;;  %v7166_v24 = vpop.f32.mrf.mxu0  ;;  %vm14436_vm2 = vmmov %vm14427_vm1 }
 0x356   : > { %v7111_v16 = vpop.f32.mrf.mxu1  ;;  %v7167_v51 = vadd.f32 %v7166_v24, %v7084_v57  ;;  %vm14437_vm0 = vmmov %vm14427_vm1 }
 0x357   : > { %v7112_v34 = vadd.f32 %v7111_v16, %v13661_v43  ;;  %v7170_v48 = vpop.f32.mrf.mxu0  ;;  %vm14438_vm4 = vmmov %vm14437_vm0 }
 0x358   : > { %v7113_v19 = vpop.f32.mrf.mxu1  ;;  %v7171_v7 = vadd.f32 %v7170_v48, %v7088_v18  ;;  %vm14439_vm8 = vmmov %vm14437_vm0 }
 0x359   : > { %v7114_v53 = vadd.f32 %v7113_v19, %v13667_v17  ;;  %v7172_v28 = vpop.f32.mrf.mxu0  ;;  %vm14440_vm11 = vmmov %vm14437_vm0 }
 0x35a   : > { %v7173_v49 = vadd.f32 %v7172_v28, %v7090_v58  ;;  %vm14469_vm15 = vmmov %vm14437_vm0 }
 0x35b   : > { %v7174_v44 = vpop.f32.mrf.mxu0 }
 0x35c   : > { %v7175_v33 = vadd.f32 %v7174_v44, %v7092_v52 }
 0x35d   : > { %v7176_v2 = vpop.f32.mrf.mxu0 }
 0x35e   : > { %v7177_v45 = vadd.f32 %v7176_v2, %v7094_v3 }
 0x35f   : > { %v7180_v0 = vpop.f32.mrf.mxu0 }
 0x360   : > { %v7181_v25 = vadd.f32 %v7180_v0, %v7098_v55 }
 0x361   : > { %v7182_v6 = vpop.f32.mrf.mxu0 }
 0x362   : > { %v7183_v38 = vadd.f32 %v7182_v6, %v7100_v5 }
 0x363   : > { %v7184_v26 = vpop.f32.mrf.mxu0 }
 0x364   : > { %v7185_v39 = vadd.f32 %v7184_v26, %v7102_v21 }
 0x365   : > { %v7186_v57 = vpop.f32.mrf.mxu0 }
 0x366   : > { %v7187_v29 = vadd.f32 %v7186_v57, %v7104_v10 }
 0x367   : > { %v7190_v43 = vpop.f32.mrf.mxu0 }
 0x368   : > { %v7191_v1 = vadd.f32 %v7190_v43, %v7108_v54 }
 0x369   : > { %v7192_v47 = vpop.f32.mrf.mxu0 }
 0x36a   : > { %v7193_v18 = vadd.f32 %v7192_v47, %v7110_v14 }
 0x36b   : > { %v7194_v50 = vpop.f32.mrf.mxu0 }
 0x36c   : > { %v7195_v17 = vadd.f32 %v7194_v50, %v7112_v34 }
 0x36d   : > { %v7196_v40 = vpop.f32.mrf.mxu0 }
 0x36e   : > { %v7197_v58 = vadd.f32 %v7196_v40, %v7114_v53 }
 0x372   : > { %v7233_v36 = vpop.f32.mrf.mxu1 }
 0x373   : > { %v13708_v52 = vadd.f32 %v7233_v36, %v13691_v37 }
 0x374   : > { %v7235_v22 = vpop.f32.mrf.mxu1 }
 0x375   : > { %v13710_v3 = vadd.f32 %v7235_v22, %v7153_v35 }
 0x376   : > { %v7237_v8 = vpop.f32.mrf.mxu1 }
 0x377   : > { %v13712_v60 = vadd.f32 %v7237_v8, %v7155_v59 }
 0x378   : > { %v7239_v56 = vpop.f32.mrf.mxu1 }
 0x379   : > { %v13714_v4 = vadd.f32 %v7239_v56, %v7157_v61 }
 0x37a   : > { %v7243_v23 = vpop.f32.mrf.mxu1 }
 0x37b   : > { %v13716_v55 = vadd.f32 %v7243_v23, %v7161_v27 }
 0x37c   : > { %v7245_v62 = vpop.f32.mrf.mxu1 }
 0x37d   : > { %v13718_v13 = vadd.f32 %v7245_v62, %v7163_v12 }
 0x37e   : > { %v7247_v5 = vpop.f32.mrf.mxu1 }
 0x37f   : > { %v13720_v11 = vadd.f32 %v7247_v5, %v7165_v31 }
 0x380   : > { %v7249_v37 = vpop.f32.mrf.mxu1 }
 0x381   : > { %v13722_v63 = vadd.f32 %v7249_v37, %v7167_v51 }
 0x382   : > { %v7253_v35 = vpop.f32.mrf.mxu1 }
 0x383   : > { %v13724_v30 = vadd.f32 %v7253_v35, %v7171_v7 }
 0x384   : > { %v7255_v59 = vpop.f32.mrf.mxu1 }
 0x385   : > { %v13726_v21 = vadd.f32 %v7255_v59, %v7173_v49 }
 0x386   : > { %v7257_v61 = vpop.f32.mrf.mxu1 }
 0x387   : > { %v13728_v15 = vadd.f32 %v7257_v61, %v7175_v33 }
 0x388   : > { %v13730_v32 = vpop.f32.mrf.mxu0  ;;  %v7259_v27 = vpop.f32.mrf.mxu1 }
 0x389   : > { %v13732_v10 = vadd.f32 %v7259_v27, %v7177_v45 }
 0x38a   : > { %v13734_v20 = vpop.f32.mrf.mxu0  ;;  %v7263_v46 = vpop.f32.mrf.mxu1 }
 0x38b   : > { %v13736_v9 = vadd.f32 %v7263_v46, %v7181_v25 }
 0x38c   : > { %v13738_v12 = vpop.f32.mrf.mxu0  ;;  %v7265_v54 = vpop.f32.mrf.mxu1 }
 0x38d   : > { %14393 = vst [vmem:[#allocation6_spill] sm:$0xff] %v13736_v9  ;;  %v13740_v42 = vadd.f32 %v7265_v54, %v7183_v38  ;;  %v7317_v9 = vadd.f32 %v13730_v32, %v13708_v52  ;;  %v9381_v32 = vld [vmem:[%s9591_s10 + $0x68] sm:$0xff] }
 0x38e   : > { %v13742_v41 = vpop.f32.mrf.mxu0  ;;  %v7267_v31 = vpop.f32.mrf.mxu1 }
 0x38f   : > { %14394 = vst [vmem:[#allocation12_spill] sm:$0xff] %v13740_v42  ;;  %v13744_v14 = vadd.f32 %v7267_v31, %v7185_v39  ;;  %v9377_v42 = vld [vmem:[%s9591_s10 + $0x48] sm:$0xff] }
 0x390   : > { %v13746_v24 = vpop.f32.mrf.mxu0  ;;  %v7269_v16 = vpop.f32.mrf.mxu1 }
 0x391   : > { %14395 = vst [vmem:[#allocation15_spill] sm:$0xff] %v13744_v14  ;;  %v13748_v51 = vadd.f32 %v7269_v16, %v7187_v29 }
 0x392   : > { %v13750_v34 = vpop.f32.mrf.mxu0  ;;  %v7273_v48 = vpop.f32.mrf.mxu1 }
 0x393   : > { %14396 = vst [vmem:[#allocation14_spill] sm:$0xff] %v13748_v51  ;;  %v13752_v19 = vadd.f32 %v7273_v48, %v7191_v1  ;;  %v9374_v51 = vld [vmem:[%s9591_s10 + $0x30] sm:$0xff] }
 0x394   : > { %v13754_v7 = vpop.f32.mrf.mxu0  ;;  %v7275_v53 = vpop.f32.mrf.mxu1 }
 0x395   : > { %14397 = vst [vmem:[#allocation16_spill] sm:$0xff] %v13752_v19  ;;  %v13756_v28 = vadd.f32 %v7275_v53, %v7193_v18 }
 0x396   : > { %v7277_v49 = vpop.f32.mrf.mxu1  ;;  %v13758_v44 = vpop.f32.mrf.mxu0 }
 0x397   : > { %14398 = vst [vmem:[#allocation18_spill] sm:$0xff] %v13756_v28  ;;  %v13760_v33 = vadd.f32 %v7277_v49, %v7195_v17 }
 0x398   : > { %v7279_v2 = vpop.f32.mrf.mxu1  ;;  %v13764_v0 = vpop.f32.mrf.mxu0 }
 0x399   : > { %14399 = vst [vmem:[#allocation17_spill] sm:$0xff] %v13760_v33  ;;  %v13762_v45 = vadd.f32 %v7279_v2, %v7197_v58  ;;  %v9370_v33 = vld [vmem:[%s9591_s10 + $0x10] sm:$0xff] }
 0x39a   : > { %v13766_v25 = vpop.f32.mrf.mxu0 }
 0x39b   : > { %14400 = vst [vmem:[#allocation19_spill] sm:$0xff] %v13762_v45 }
 0x39c   : > { %v13768_v6 = vpop.f32.mrf.mxu0 }
 0x39e   : > { %v13770_v38 = vpop.f32.mrf.mxu0 }
 0x39f   : > { %14401 = vst [vmem:[#allocation21_spill] sm:$0xff] %v13770_v38 }
 0x3a0   : > { %v13772_v26 = vpop.f32.mrf.mxu0 }
 0x3a1   : > { %14402 = vst [vmem:[#allocation22_spill] sm:$0xff] %v13772_v26 }
 0x3a2   : > { %v13774_v39 = vpop.f32.mrf.mxu0 }
 0x3a3   : > { %14403 = vst [vmem:[#allocation24_spill] sm:$0xff] %v13774_v39 }
 0x3a4   : > { %v13778_v29 = vpop.f32.mrf.mxu0 }
 0x3a5   : > { %14404 = vst [vmem:[#allocation20_spill] sm:$0xff] %v13778_v29  ;;  %v9375_v29 = vld [vmem:[%s9591_s10 + $0x38] sm:$0xff] }
 0x3a6   : > { %v13784_v47 = vpop.f32.mrf.mxu0  ;;  %v7709_v14 = vrot.slane %v9375_v29, 3  ;;  %v9379_v29 = vld [vmem:[%s9591_s10 + $0x58] sm:$0xff] }
 0x3a7   : > { %14405 = vst [vmem:[#allocation26_spill] sm:$0xff] %v13784_v47  ;;  %v7717_v26 = vrot.slane %v9379_v29, 3  ;;  %v7721_v29 = vrot.slane %v9381_v32, 3  ;;  %v9382_v32 = vld [vmem:[%s9591_s10 + $0x70] sm:$0xff] }
 0x3a8   : > { %v13790_v17 = vpop.f32.mrf.mxu0 }
 0x3a9   : > { %14406 = vst [vmem:[#allocation23_spill] sm:$0xff] %v13790_v17  ;;  %v9372_v17 = vld [vmem:[%s9591_s10 + $0x18] sm:$0xff] }
 0x3aa   : > { %v13796_v36 = vpop.f32.mrf.mxu0  ;;  %v7704_v19 = vrot.slane %v9372_v17, 3 }
 0x3ab   : > { %14407 = vst [vmem:[#allocation25_spill] sm:$0xff] %v13796_v36  ;;  %v9371_v36 = vld [vmem:[%s9591_s10 + $0x20] sm:$0xff] }
 0x3ac   : > { %v13800_v8 = vpop.f32.mrf.mxu0 }
 0x3ad   : > { %14408 = vst [vmem:[#allocation28_spill] sm:$0xff] %v13800_v8  ;;  %v7614_v8 = vld [vmem:[%s14140_s5] sm:$0x3] }
 0x3ae   : > { %v13804_v23 = vpop.f32.mrf.mxu0 }
 0x3af   : > { %14409 = vst [vmem:[#allocation27_spill] sm:$0xff] %v13804_v23 }
 0x3b2   : > { %v13776_v57 = vpop.f32.mrf.mxu1 }
 0x3b4   : > { %v13780_v43 = vpop.f32.mrf.mxu1 }
 0x3b6   : > { %v13782_v1 = vpop.f32.mrf.mxu1 }
 0x3b8   : > { %v13786_v18 = vpop.f32.mrf.mxu1 }
 0x3ba   : > { %v13788_v50 = vpop.f32.mrf.mxu1 }
 0x3bc   : > { %v13792_v40 = vpop.f32.mrf.mxu1 }
 0x3be   : > { %v13794_v58 = vpop.f32.mrf.mxu1 }
 0x3c0   : > { %v13798_v22 = vpop.f32.mrf.mxu1 }
 0x3c2   : > { %v13802_v56 = vpop.f32.mrf.mxu1 }
 0x3c4   : > { %v13806_v62 = vpop.f32.mrf.mxu1 }
 0x3c5   : > { %14410 = vst [vmem:[#allocation29_spill] sm:$0xff] %v13806_v62 }
 0x3c6   : > { %v13810_v37 = vpop.f32.mrf.mxu1 }
 0x3c7   : > { %14411 = vst [vmem:[#allocation31_spill] sm:$0xff] %v13810_v37 }
 0x3c8   : > { %v13808_v5 = vpop.f32.mrf.mxu0  ;;  %v13814_v59 = vpop.f32.mrf.mxu1 }
 0x3c9   : > { %14412 = vst [vmem:[#allocation34_spill] sm:$0xff] %v13814_v59  ;;  %v7713_v59 = vrot.slane %v9377_v42, 3 }
 0x3ca   : > { %v13812_v35 = vpop.f32.mrf.mxu0  ;;  %v13818_v27 = vpop.f32.mrf.mxu1 }
 0x3cb   : > { %14413 = vst [vmem:[#allocation32_spill] sm:$0xff] %v13818_v27 }
 0x3cc   : > { %v13816_v61 = vpop.f32.mrf.mxu0  ;;  %v13822_v54 = vpop.f32.mrf.mxu1 }
 0x3cd   : > { %14414 = vst [vmem:[#allocation36_spill] sm:$0xff] %v13822_v54  ;;  %v7707_v54 = vrot.slane %v9374_v51, 3  ;;  %v9378_v51 = vld [vmem:[%s9591_s10 + $0x50] sm:$0xff] }
 0x3ce   : > { %v13820_v46 = vpop.f32.mrf.mxu0  ;;  %v13826_v16 = vpop.f32.mrf.mxu1  ;;  %v7715_v62 = vrot.slane %v9378_v51, 3 }
 0x3cf   : > { %14415 = vst [vmem:[#allocation37_spill] sm:$0xff] %v13826_v16  ;;  %v7701_v16 = vrot.slane %v9370_v33, 3  ;;  %v14420_v33 = vld [vmem:[#allocation30_spill] sm:$0xff] }
 0x3d0   : > { %v13824_v31 = vpop.f32.mrf.mxu0  ;;  %v13830_v53 = vpop.f32.mrf.mxu1  ;;  %v13855_v27 = vrot.slane %v7614_v8, %v14420_v33 }
 0x3d1   : > { %14416 = vst [vmem:[#allocation35_spill] sm:$0xff] %v13830_v53  ;;  %v7702_v53 = vrot.slane %v9371_v36, 3  ;;  %v9376_v36 = vld [vmem:[%s9591_s10 + $0x40] sm:$0xff] }
 0x3d2   : > { %v13828_v48 = vpop.f32.mrf.mxu0  ;;  %v13834_v2 = vpop.f32.mrf.mxu1  ;;  %v7711_v39 = vrot.slane %v9376_v36, 3  ;;  %v14424_v36 = vld [vmem:[#allocation33_spill] sm:$0xff] }
 0x3d3   : > { %14417 = vst [vmem:[#allocation39_spill] sm:$0xff] %v13834_v2  ;;  %v7646_v2 = vld [vmem:[%s14141_s6] sm:$0x3]  ;;  %v13874_v42 = vrot.slane %v7614_v8, %v14424_v36  ;;  %v13884_v51 = vsel %vm14426_vm7, %v7702_v53, %v7707_v54  ;;  %v7319_v8 = vadd.f32 %v13734_v20, %v13710_v3  ;;  %v7723_v3 = vrot.slane %v9382_v32, 3  ;;  %v9383_v20 = vld [vmem:[%s9591_s10 + $0x78] sm:$0xff]  ;;  %vm14475_vm7 = vmmov %vm14437_vm0 }
 0x3d4   : > { %v13832_v49 = vpop.f32.mrf.mxu0  ;;  %v13838_v45 = vpop.f32.mrf.mxu1  ;;  %v13862_v17 = vrot.slane %v7646_v2, %v14420_v33  ;;  %v9380_v33 = vld [vmem:[%s9591_s10 + $0x60] sm:$0xff]  ;;  %v13921_v32 = vsel %vm14435_vm10, %v7717_v26, %v7721_v29 }
 0x3d5   : > { %14418 = vst [vmem:[#allocation38_spill] sm:$0xff] %v13838_v45  ;;  %v9373_v45 = vld [vmem:[%s9591_s10 + $0x28] sm:$0xff] }
 0x3d6   : > { %v13836_v23 = vpop.f32.mrf.mxu0  ;;  %v7705_v47 = vrot.slane %v9373_v45, 3  ;;  %v13859_v37 = vpop.f32.mrf.mxu1  ;;  %v13865_v45 = vsel %vm14422_vm3, %v7701_v16, %v7702_v53  ;;  %v7719_v16 = vrot.slane %v9380_v33, 3  ;;  %v13897_v33 = vsel %vm14429_vm12, %v7709_v14, %v7713_v59  ;;  %vm14473_vm3 = vmmov %vm14437_vm0 }
 0x3d7   : > { %14421 = vst [vmem:[#allocation48_spill] sm:$0xff] %v13859_v37  ;;  %v13877_v37 = vrot.slane %v7646_v2, %v14424_v36  ;;  %v7400_v2 = vadd.f32 %v13776_v57, %v7317_v9  ;;  %v13894_v36 = vsel %vm14428_vm5, %v7707_v54, %v7711_v39  ;;  %v13902_v53 = vsel %vm14431_vm13, %v7711_v39, %v7715_v62 }
 0x3d8   : > { %v13845_v28 = vpop.f32.mrf.mxu0  ;;  %v13881_v38 = vsel %vm14425_vm6, %v7704_v19, %v7705_v47  ;;  %v13887_v52 = vsel %vm14427_vm1, %v7705_v47, %v7709_v14  ;;  %v13899_v19 = vpop.f32.mrf.mxu1  ;;  %v13905_v47 = vsel %vm14432_vm14, %v7713_v59, %v7717_v26  ;;  %v7725_v9 = vrot.slane %v9383_v20, 3  ;;  %v9384_v20 = vld [vmem:[%s9591_s10 + $0x80] sm:$0xff]  ;;  %vm14474_vm6 = vmmov %vm14437_vm0 }
 0x3d9   : > { %14419 = vst [vmem:[#allocation40_spill] sm:$0xff] %v13845_v28  ;;  %14430 = vst [vmem:[#allocation51_spill] sm:$0xff] %v13899_v19  ;;  %v7321_v57 = vadd.f32 %v13738_v12, %v13712_v60  ;;  %v7402_v14 = vadd.f32 %v13780_v43, %v7319_v8  ;;  %v7483_v54 = vadd.f32 %v13808_v5, %v7400_v2  ;;  %v13925_v60 = vld [vmem:[%s9591_s10 + $0x88] sm:$0xff] }
 0x3da   : > { %v13871_v28 = vpop.f32.mrf.mxu0  ;;  %14433 = vst [vmem:[#allocation46_spill] sm:$0xff] %v13905_v47  ;;  %v13916_v39 = vsel %vm14434_vm9, %v7715_v62, %v7719_v16  ;;  %v7323_v59 = vadd.f32 %v13742_v41, %v13714_v4  ;;  %v7727_v47 = vrot.slane %v9384_v20, 3  ;;  %v7729_v12 = vrot.slane %v13925_v60, 3  ;;  %v13941_v20 = vld [vmem:[%s9591_s10 + $0x90] sm:$0xff]  ;;  %v9389_v60 = vld [vmem:[%s9591_s10 + $0xa8] sm:$0xff]  ;;  %vm14476_vm1 = vmmov %vm14437_vm0 }
 0x3db   : > { %14423 = vst [vmem:[#allocation45_spill] sm:$0xff] %v13871_v28  ;;  %v7327_v43 = vadd.f32 %v13746_v24, %v13716_v55  ;;  %v7404_v62 = vadd.f32 %v13782_v1, %v7321_v57  ;;  %v7485_v5 = vadd.f32 %v13812_v35, %v7402_v14  ;;  %v7329_v4 = vadd.f32 %v13750_v34, %v13718_v13 }
 0x3dc   : > { %v13913_v28 = vpop.f32.mrf.mxu0  ;;  %v13935_v26 = vsel %vm14436_vm2, %v7719_v16, %v7723_v3  ;;  %v13938_v2 = vsel %vm14437_vm0, %v7721_v29, %v7725_v9  ;;  %v7731_v55 = vrot.slane %v13941_v20, 3  ;;  %v7406_v24 = vadd.f32 %v13786_v18, %v7323_v59 }
 0x3dd   : > { %v7487_v1 = vadd.f32 %v13816_v61, %v7404_v62  ;;  %v7331_v34 = vadd.f32 %v13754_v7, %v13720_v11  ;;  %v7333_v16 = vadd.f32 %v13758_v44, %v13722_v63  ;;  %v13955_v57 = vsel %vm14438_vm4, %v7723_v3, %v7727_v47 }
 0x3de   : > { %v13946_v35 = vpop.f32.mrf.mxu0  ;;  %v13960_v18 = vsel %vm14439_vm8, %v7725_v9, %v7729_v12  ;;  %v7489_v61 = vadd.f32 %v13820_v46, %v7406_v24  ;;  %v7337_v63 = vadd.f32 %v13764_v0, %v13724_v30  ;;  %v7410_v7 = vadd.f32 %v13788_v50, %v7327_v43 }
 0x3df   : > { %v7412_v44 = vadd.f32 %v13792_v40, %v7329_v4  ;;  %v13972_v9 = vsel %vm14440_vm11, %v7727_v47, %v7731_v55  ;;  %v7414_v30 = vadd.f32 %v13794_v58, %v7331_v34  ;;  %v13988_v47 = vld [vmem:[%s9591_s10 + $0x98] sm:$0xff] }
 0x3e0   : > { %v13974_v46 = vpop.f32.mrf.mxu0  ;;  %v7493_v0 = vadd.f32 %v13824_v31, %v7410_v7 }
 0x3e1   : > { %v7495_v50 = vadd.f32 %v13828_v48, %v7412_v44  ;;  %v7339_v48 = vadd.f32 %v13766_v25, %v13726_v21  ;;  %v7497_v24 = vadd.f32 %v13832_v49, %v7414_v30  ;;  %v14007_v49 = vld [vmem:[%s9591_s10 + $0xa0] sm:$0xff]  ;;  %v14442_v44 = vld [vmem:[#allocation40_spill] sm:$0xff] }
 0x3f2   : > { %v7565_v19 = vpop.f32.mrf.mxu1 }
 0x3f3   : > { %v7566_v8 = vadd.f32 %v7565_v19, %v7483_v54 }
 0x3f4   : > { %v7567_v41 = vpop.f32.mrf.mxu1 }
 0x3f5   : > { %v7626_v19 = vmul.f32 %v13855_v27, %v7566_v8  ;;  %v7568_v13 = vadd.f32 %v7567_v41, %v7485_v5  ;;  %v7416_v41 = vadd.f32 %v13798_v22, %v7333_v16  ;;  %v7735_v16 = vrot.slane %v14007_v49, 3 }
 0x3f6   : > { %v7569_v29 = vpop.f32.mrf.mxu1 }
 0x3f7   : > { %v7658_v14 = vadd.f32 %v13862_v17, %v7626_v19  ;;  %v7627_v54 = vmul.f32 %v13874_v42, %v7568_v13  ;;  %v7570_v11 = vadd.f32 %v7569_v29, %v7487_v1  ;;  %v13998_v13 = vpop.f32.mrf.mxu0  ;;  %v7499_v21 = vadd.f32 %v13836_v23, %v7416_v41  ;;  %v14441_v23 = vld [vmem:[#allocation21_spill] sm:$0xff] }
 0x3f8   : > { %v7571_v3 = vpop.f32.mrf.mxu1 }
 0x3f9   : > { %v7763_v59 = vadd.f32 %v13865_v45, %v7658_v14  ;;  %v7659_v62 = vadd.f32 %v13877_v37, %v7627_v54  ;;  %v7628_v5 = vmul.f32 %v13855_v27, %v7570_v11  ;;  %v7572_v8 = vadd.f32 %v7571_v3, %v7489_v61 }
 0x3fa   : > { %v7575_v40 = vpop.f32.mrf.mxu1  ;;  %v7733_v45 = vrot.slane %v13988_v47, 3  ;;  %v7420_v14 = vadd.f32 %v13802_v56, %v7337_v63  ;;  %v7341_v56 = vadd.f32 %v13768_v6, %v13728_v15  ;;  %v7343_v63 = vadd.f32 %v14441_v23, %v13732_v10  ;;  %v14444_v15 = vld [vmem:[#allocation22_spill] sm:$0xff]  ;;  %v14446_v10 = vld [vmem:[#allocation31_spill] sm:$0xff] }
 0x3fb   : > { %v7783_v43 = vmax.f32 %v7763_v59, 0.0  ;;  %v7764_v4 = vadd.f32 %v13881_v38, %v7659_v62  ;;  %v7660_v58 = vadd.f32 %v13862_v17, %v7628_v5  ;;  %v7629_v31 = vmul.f32 %v13874_v42, %v7572_v8  ;;  %v14019_v5 = vpop.f32.mrf.mxu0 }
 0x3fc   : > { %v7576_v1 = vadd.f32 %v7575_v40, %v7493_v0  ;;  %v7577_v19 = vpop.f32.mrf.mxu1  ;;  %v7503_v3 = vadd.f32 %v14442_v44, %v7420_v14  ;;  %v14445_v40 = vld [vmem:[#allocation29_spill] sm:$0xff] }
 0x3fd   : > { %7803 = vst [vmem:[%s13985_s27] sm:$0xff] %v7783_v43  ;;  %v7784_v34 = vmax.f32 %v7764_v4, 0.0  ;;  %v7765_v38 = vadd.f32 %v13884_v51, %v7660_v58  ;;  %v7661_v29 = vadd.f32 %v13877_v37, %v7629_v31  ;;  %v7578_v61 = vadd.f32 %v7577_v19, %v7495_v50  ;;  %v14443_v50 = vld [vmem:[#allocation6_spill] sm:$0xff] }
 0x3fe   : > { %v7630_v25 = vmul.f32 %v13855_v27, %v7576_v1  ;;  %v7579_v22 = vpop.f32.mrf.mxu1  ;;  %v7347_v6 = vadd.f32 %v14444_v15, %v14443_v50  ;;  %v7422_v43 = vadd.f32 %v14445_v40, %v7339_v48  ;;  %v7424_v4 = vadd.f32 %v14446_v10, %v7341_v56  ;;  %v14451_v56 = vld [vmem:[#allocation32_spill] sm:$0xff] }
 0x3ff   : > { %7804 = vst [vmem:[%s13985_s27 + $0x8] sm:$0xff] %v7784_v34  ;;  %v7785_v54 = vmax.f32 %v7765_v38, 0.0  ;;  %v7766_v11 = vadd.f32 %v13887_v52, %v7661_v29  ;;  %v7631_v51 = vmul.f32 %v13874_v42, %v7578_v61  ;;  %v7580_v7 = vadd.f32 %v7579_v22, %v7497_v24  ;;  %v14447_v34 = vld [vmem:[#allocation34_spill] sm:$0xff]  ;;  %v14448_v29 = vld [vmem:[#allocation45_spill] sm:$0xff]  ;;  %v14455_v50 = vld [vmem:[#allocation36_spill] sm:$0xff] }
 0x400   : > { %v7662_v59 = vadd.f32 %v13862_v17, %v7630_v25  ;;  %v7581_v62 = vpop.f32.mrf.mxu1  ;;  %v7426_v38 = vadd.f32 %v14447_v34, %v7343_v63  ;;  %v7505_v61 = vadd.f32 %v14448_v29, %v7422_v43  ;;  %v7507_v48 = vadd.f32 %v13913_v28, %v7424_v4  ;;  %v14459_v34 = vld [vmem:[#allocation23_spill] sm:$0xff] }
 0x401   : > { %7805 = vst [vmem:[%s13985_s27 + $0x10] sm:$0xff] %v7785_v54  ;;  %v7786_v8 = vmax.f32 %v7766_v11, 0.0  ;;  %v7663_v52 = vadd.f32 %v13877_v37, %v7631_v51  ;;  %v7632_v30 = vmul.f32 %v13855_v27, %v7580_v7  ;;  %v7582_v0 = vadd.f32 %v7581_v62, %v7499_v21  ;;  %v14449_v11 = vld [vmem:[#allocation12_spill] sm:$0xff] }
 0x402   : > { %v7767_v58 = vadd.f32 %v13894_v36, %v7662_v59  ;;  %v7585_v31 = vpop.f32.mrf.mxu1  ;;  %v7518_v36 = vpop.f32.mrf.mxu0  ;;  %v14450_v51 = vld [vmem:[#allocation24_spill] sm:$0xff]  ;;  %v7430_v23 = vadd.f32 %v14451_v56, %v7347_v6  ;;  %v7509_v63 = vadd.f32 %v13946_v35, %v7426_v38  ;;  %v14452_v59 = vld [vmem:[#allocation46_spill] sm:$0xff] }
 0x403   : > { %7806 = vst [vmem:[%s13985_s27 + $0x18] sm:$0xff] %v7786_v8  ;;  %v7768_v41 = vadd.f32 %v13897_v33, %v7663_v52  ;;  %v7664_v24 = vadd.f32 %v13862_v17, %v7632_v30  ;;  %v7633_v1 = vmul.f32 %v13874_v42, %v7582_v0  ;;  %v7586_v19 = vadd.f32 %v7585_v31, %v7503_v3  ;;  %v14453_v52 = vld [vmem:[#allocation15_spill] sm:$0xff]  ;;  %v14454_v30 = vld [vmem:[#allocation20_spill] sm:$0xff] }
 0x404   : > { %v7787_v14 = vmax.f32 %v7767_v58, 0.0  ;;  %v7587_v21 = vpop.f32.mrf.mxu1  ;;  %v7349_v7 = vadd.f32 %v14450_v51, %v14449_v11  ;;  %v7351_v0 = vadd.f32 %v14454_v30, %v14453_v52  ;;  %v7513_v6 = vadd.f32 %v13974_v46, %v7430_v23  ;;  %v7522_v43 = vpop.f32.mrf.mxu0  ;;  %v14463_v51 = vld [vmem:[#allocation35_spill] sm:$0xff] }
 0x405   : > { %v7788_v25 = vmax.f32 %v7768_v41, 0.0  ;;  %v7769_v22 = vadd.f32 %v13902_v53, %v7664_v24  ;;  %v7665_v33 = vadd.f32 %v13877_v37, %v7633_v1  ;;  %v7634_v54 = vmul.f32 %v13855_v27, %v7586_v19  ;;  %v14456_v41 = vld [vmem:[#allocation14_spill] sm:$0xff]  ;;  %v14458_v19 = vld [vmem:[#allocation16_spill] sm:$0xff] }
 0x406   : > { %7807 = vst [vmem:[%s13985_s27 + $0x20] sm:$0xff] %v7787_v14  ;;  %v7588_v28 = vadd.f32 %v7587_v21, %v7505_v61  ;;  %v7589_v44 = vpop.f32.mrf.mxu1  ;;  %v7432_v15 = vadd.f32 %v14455_v50, %v7349_v7  ;;  %v14457_v24 = vld [vmem:[#allocation26_spill] sm:$0xff]  ;;  %v7357_v38 = vadd.f32 %v14459_v34, %v14458_v19  ;;  %v7524_v23 = vpop.f32.mrf.mxu0 }
 0x407   : > { %7808 = vst [vmem:[%s13985_s27 + $0x28] sm:$0xff] %v7788_v25  ;;  %v7789_v3 = vmax.f32 %v7769_v22, 0.0  ;;  %v7770_v62 = vadd.f32 %v14452_v59, %v7665_v33  ;;  %v7666_v53 = vadd.f32 %v13862_v17, %v7634_v54  ;;  %v7590_v8 = vadd.f32 %v7589_v44, %v7507_v48  ;;  %v14460_v25 = vld [vmem:[#allocation18_spill] sm:$0xff]  ;;  %v14461_v22 = vld [vmem:[#allocation25_spill] sm:$0xff]  ;;  %v14464_v59 = vld [vmem:[#allocation39_spill] sm:$0xff] }
 0x408   : > { %v7635_v35 = vmul.f32 %v13874_v42, %v7588_v28  ;;  %v7591_v40 = vpop.f32.mrf.mxu1  ;;  %v7353_v1 = vadd.f32 %v14457_v24, %v14456_v41  ;;  %v7515_v46 = vadd.f32 %v13998_v13, %v7432_v15  ;;  %v7359_v33 = vadd.f32 %v14461_v22, %v14460_v25  ;;  %v14462_v54 = vld [vmem:[#allocation37_spill] sm:$0xff] }
 0x409   : > { %7809 = vst [vmem:[%s13985_s27 + $0x30] sm:$0xff] %v7789_v3  ;;  %v7790_v10 = vmax.f32 %v7770_v62, 0.0  ;;  %v7771_v4 = vadd.f32 %v13916_v39, %v7666_v53  ;;  %v7636_v58 = vmul.f32 %v13855_v27, %v7590_v8  ;;  %v7592_v31 = vadd.f32 %v7591_v40, %v7509_v63  ;;  %v14465_v15 = vld [vmem:[#allocation17_spill] sm:$0xff]  ;;  %v14467_v40 = vld [vmem:[#allocation38_spill] sm:$0xff] }
 0x40a   : > { %v7667_v29 = vadd.f32 %v13877_v37, %v7635_v35  ;;  %v7595_v61 = vpop.f32.mrf.mxu1  ;;  %v7434_v11 = vadd.f32 %v14462_v54, %v7351_v0  ;;  %v7436_v7 = vadd.f32 %v14463_v51, %v7353_v1  ;;  %v7440_v62 = vadd.f32 %v14464_v59, %v7357_v38  ;;  %v14468_v1 = vld [vmem:[#allocation48_spill] sm:$0xff] }
 0x40b   : > { %7810 = vst [vmem:[%s13985_s27 + $0x38] sm:$0xff] %v7790_v10  ;;  %v7791_v48 = vmax.f32 %v7771_v4, 0.0  ;;  %v7668_v14 = vadd.f32 %v13862_v17, %v7636_v58  ;;  %v7637_v39 = vmul.f32 %v13874_v42, %v7592_v31  ;;  %v7596_v21 = vadd.f32 %v7595_v61, %v7513_v6  ;;  %v14466_v6 = vld [vmem:[#allocation28_spill] sm:$0xff] }
 0x40c   : > { %v7772_v56 = vadd.f32 %v13921_v32, %v7667_v29  ;;  %v7597_v13 = vpop.f32.mrf.mxu1  ;;  %v7517_v53 = vadd.f32 %v14019_v5, %v7434_v11  ;;  %v7519_v8 = vadd.f32 %v7518_v36, %v7436_v7  ;;  %v7361_v35 = vadd.f32 %v14466_v6, %v14465_v15  ;;  %v7526_v36 = vpop.f32.mrf.mxu0 }
 0x40d   : > { %7811 = vst [vmem:[%s13985_s27 + $0x40] sm:$0xff] %v7791_v48  ;;  %v7773_v63 = vadd.f32 %v13935_v26, %v7668_v14  ;;  %v7669_v28 = vadd.f32 %v13877_v37, %v7637_v39  ;;  %v7638_v44 = vmul.f32 %v13855_v27, %v7596_v21  ;;  %v7598_v3 = vadd.f32 %v7597_v13, %v7515_v46  ;;  %v14470_v14 = vld [vmem:[#allocation19_spill] sm:$0xff] }
 0x40e   : > { %v7792_v52 = vmax.f32 %v7772_v56, 0.0  ;;  %v7599_v30 = vpop.f32.mrf.mxu1  ;;  %v7442_v10 = vadd.f32 %v14467_v40, %v7359_v33  ;;  %v7523_v4 = vadd.f32 %v7522_v43, %v7440_v62  ;;  %v7444_v19 = vadd.f32 %v14468_v1, %v7361_v35  ;;  %v14471_v39 = vld [vmem:[#allocation27_spill] sm:$0xff] }
 0x40f   : > { %v7793_v32 = vmax.f32 %v7773_v63, 0.0  ;;  %v7774_v0 = vadd.f32 %v13938_v2, %v7669_v28  ;;  %v7670_v50 = vadd.f32 %v13862_v17, %v7638_v44  ;;  %v7639_v26 = vmul.f32 %v13874_v42, %v7598_v3  ;;  %v14472_v56 = vld [vmem:[#allocation51_spill] sm:$0xff]  ;;  %v9390_v44 = vld [vmem:[%s9591_s10 + $0xb0] sm:$0xff] }
 0x410   : > { %7812 = vst [vmem:[%s13985_s27 + $0x48] sm:$0xff] %v7792_v52  ;;  %v7600_v58 = vadd.f32 %v7599_v30, %v7517_v53  ;;  %v7601_v5 = vpop.f32.mrf.mxu1  ;;  %v7525_v34 = vadd.f32 %v7524_v23, %v7442_v10  ;;  %v7734_v43 = vsel %vm14469_vm15, %v7729_v12, %v7733_v45  ;;  %v7363_v21 = vadd.f32 %v14471_v39, %v14470_v14  ;;  %v7528_v12 = vpop.f32.mrf.mxu0  ;;  %v9391_v30 = vld [vmem:[%s9591_s10 + $0xb8] sm:$0xff] }
 0x411   : > { %7813 = vst [vmem:[%s13985_s27 + $0x50] sm:$0xff] %v7793_v32  ;;  %v7794_v31 = vmax.f32 %v7774_v0, 0.0  ;;  %v7775_v41 = vadd.f32 %v13955_v57, %v7670_v50  ;;  %v7671_v2 = vadd.f32 %v13877_v37, %v7639_v26  ;;  %v7602_v24 = vadd.f32 %v7601_v5, %v7519_v8 }
 0x412   : > { %v7640_v38 = vmul.f32 %v13855_v27, %v7600_v58  ;;  %v7605_v46 = vpop.f32.mrf.mxu1  ;;  %v7527_v25 = vadd.f32 %v7526_v36, %v7444_v19  ;;  %v7737_v54 = vrot.slane %v9389_v60, 3  ;;  %v7446_v13 = vadd.f32 %v14472_v56, %v7363_v21 }
 0x413   : > { %7814 = vst [vmem:[%s13985_s27 + $0x58] sm:$0xff] %v7794_v31  ;;  %v7795_v29 = vmax.f32 %v7775_v41, 0.0  ;;  %v7776_v57 = vadd.f32 %v13960_v18, %v7671_v2  ;;  %v7641_v61 = vmul.f32 %v13874_v42, %v7602_v24  ;;  %v7606_v48 = vadd.f32 %v7605_v46, %v7523_v4 }
 0x414   : > { %v7672_v22 = vadd.f32 %v13862_v17, %v7640_v38  ;;  %v7607_v33 = vpop.f32.mrf.mxu1  ;;  %v7736_v63 = vsel %vm14473_vm3, %v7731_v55, %v7735_v16  ;;  %v7739_v3 = vrot.slane %v9390_v44, 3  ;;  %v7529_v52 = vadd.f32 %v7528_v12, %v7446_v13 }
 0x415   : > { %7815 = vst [vmem:[%s13985_s27 + $0x60] sm:$0xff] %v7795_v29  ;;  %v7796_v11 = vmax.f32 %v7776_v57, 0.0  ;;  %v7673_v51 = vadd.f32 %v13877_v37, %v7641_v61  ;;  %v7642_v18 = vmul.f32 %v13855_v27, %v7606_v48  ;;  %v7608_v7 = vadd.f32 %v7607_v33, %v7525_v34 }
 0x416   : > { %v7777_v23 = vadd.f32 %v13972_v9, %v7672_v22  ;;  %v7609_v28 = vpop.f32.mrf.mxu1  ;;  %v7738_v20 = vsel %vm14474_vm6, %v7733_v45, %v7737_v54  ;;  %v7741_v32 = vrot.slane %v9391_v30, 3  ;;  %v7740_v6 = vsel %vm14475_vm7, %v7735_v16, %v7739_v3 }
 0x417   : > { %7816 = vst [vmem:[%s13985_s27 + $0x68] sm:$0xff] %v7796_v11  ;;  %v7778_v59 = vadd.f32 %v7734_v43, %v7673_v51  ;;  %v7674_v62 = vadd.f32 %v13862_v17, %v7642_v18  ;;  %v7643_v53 = vmul.f32 %v13874_v42, %v7608_v7  ;;  %v7610_v8 = vadd.f32 %v7609_v28, %v7527_v25 }
 0x418   : > { %v7797_v9 = vmax.f32 %v7777_v23, 0.0  ;;  %v7611_v55 = vpop.f32.mrf.mxu1 }
 0x419   : > { %v7798_v0 = vmax.f32 %v7778_v59, 0.0  ;;  %v7779_v50 = vadd.f32 %v7736_v63, %v7674_v62  ;;  %v7675_v26 = vadd.f32 %v13877_v37, %v7643_v53  ;;  %v7644_v15 = vmul.f32 %v13855_v27, %v7610_v8 }
 0x41a   : > { %7817 = vst [vmem:[%s13985_s27 + $0x70] sm:$0xff] %v7797_v9  ;;  %v7612_v47 = vadd.f32 %v7611_v55, %v7529_v52  ;;  %v7742_v27 = vsel %vm14476_vm1, %v7737_v54, %v7741_v32 }
 0x41b   : > { %7818 = vst [vmem:[%s13985_s27 + $0x78] sm:$0xff] %v7798_v0  ;;  %v7799_v45 = vmax.f32 %v7779_v50, 0.0  ;;  %v7780_v35 = vadd.f32 %v7738_v20, %v7675_v26  ;;  %v7676_v40 = vadd.f32 %v13862_v17, %v7644_v15 }
 0x41c   : > { %v7645_v10 = vmul.f32 %v13874_v42, %v7612_v47 }
 0x41d   : > { %7819 = vst [vmem:[%s13985_s27 + $0x80] sm:$0xff] %v7799_v45  ;;  %v7800_v4 = vmax.f32 %v7780_v35, 0.0  ;;  %v7781_v58 = vadd.f32 %v7740_v6, %v7676_v40 }
 0x41e   : > { %v7677_v5 = vadd.f32 %v13877_v37, %v7645_v10 }
 0x41f   : > { %7820 = vst [vmem:[%s13985_s27 + $0x88] sm:$0xff] %v7800_v4  ;;  %v7801_v49 = vmax.f32 %v7781_v58, 0.0 }
 0x420   : > { %v7782_v36 = vadd.f32 %v7742_v27, %v7677_v5 }
 0x421   : > { %7821 = vst [vmem:[%s13985_s27 + $0x90] sm:$0xff] %v7801_v49 }
 0x422   : > { %v7802_v16 = vmax.f32 %v7782_v36, 0.0 }
 0x424   : > { %7822 = vst [vmem:[%s13985_s27 + $0x98] sm:$0xff] %v7802_v16 }
 0x425 PF: > { %s17_s24 = sadd.s32 1, %s9398_s24  }
 0x426   : > { %p14_p4 = scmp.ge.s32.totalorder %s17_s24, 4  }
 0x428   :  { %16 = sbr.rel (!%p14_p4) target bundleno = 1 (0x1), region = 78 }

</bundles_post_ra>
